<compile_context>
chip_gen: v7x
topology: tpu7x:2x2x1
jax: 0.10.0
libtpu: 0.0.40
codegen_flags: <defaults>
</compile_context>

<pallas_src>
import jax
import jax.numpy as jnp
from jax.experimental import pallas as pl
from jax.experimental.pallas import tpu as pltpu

# ----------------------------- config -----------------------------
IN_DIM = 6                     # raw node feature dim
H_DIM = 32                     # kwargs['h_dim']
TRANS_DIM = 64                 # kwargs['trans_dim']
D_MODEL = TRANS_DIM // 2       # d_model of the Mamba blocks (32)
N_LAYERS = 2                   # kwargs['n_layers']
NUM_HEADS = 2                  # kwargs['num_heads']
DIM_PER_HEAD = H_DIM           # LSHAttnBucketing dim_per_head
BLOCK_SIZE = 8                 # kwargs['block_size'] (pad_to_multiple)
MLP_HIDDEN = 128               # mlp_out hidden_channels

# Mamba mixer hyper-params (mamba_ssm defaults)
EXPAND = 2
D_INNER = EXPAND * D_MODEL     # 64
D_STATE = 16
D_CONV = 4
DT_RANK = max(1, -(-D_MODEL // 16))    # ceil(d_model/16) = 2
LOG2_S = D_STATE.bit_length() - 1
assert (1 << LOG2_S) == D_STATE

LN_EPS = 1e-5
VMEM = pltpu.MemorySpace.VMEM


def _vspecs(n):
    return [pl.BlockSpec(memory_space=VMEM) for _ in range(n)]


def _layernorm(x, w, b):
    mu = jnp.mean(x, axis=-1, keepdims=True)
    xc = x - mu
    var = jnp.mean(xc * xc, axis=-1, keepdims=True)
    return xc * jax.lax.rsqrt(var + LN_EPS) * w + b


# ----------------------------- the single fused kernel -----------------------------
def _hmamba_kernel(
    x_ref, mask_ref,
    fe0_w_ref, fe0_b_ref, fe1_w_ref, fe1_b_ref,
    ln1_w_ref, ln1_b_ref, wq_ref, wk_ref, wv_ref, wo_w_ref, wo_b_ref,
    mnw_ref, mnb_ref, minw_ref, mcw_ref, mcb_ref,
    mxdc_ref, mxbT_ref, mdtw_ref, mdtb_ref, mAT_ref, mD_ref, moutw_ref,
    nf_w_ref, nf_b_ref, w0_ref, n_w_ref, n_b_ref,
    l0_w_ref, l0_b_ref, n0_w_ref, n0_b_ref,
    l1_w_ref, l1_b_ref, n1_w_ref, n1_b_ref,
    l2_w_ref, l2_b_ref, n2_w_ref, n2_b_ref,
    l3_w_ref, l3_b_ref,
    o_ref,
    dA_ref, inp_ref, hs_ref,
):
    f32 = jnp.float32
    L = x_ref.shape[0]
    LS = L * D_STATE

    # ---- layer-independent iota selection masks (hoisted, built once) ----
    # causal-shift matrices: S_sh[t, j] = 1 iff j == t - sh  (so S_sh @ x == x shifted down by sh)
    row_ll = jax.lax.broadcasted_iota(jnp.int32, (L, L), 0)
    col_ll = jax.lax.broadcasted_iota(jnp.int32, (L, L), 1)
    shift_mats = [jnp.where(col_ll == row_ll - sh, 1.0, 0.0) for sh in range(1, D_CONV)]

    # rsel[t*S+s, c] = 1 iff c == t     (repeats each dt row S times via one matmul)
    row_a = jax.lax.broadcasted_iota(jnp.int32, (LS, L), 0)
    col_a = jax.lax.broadcasted_iota(jnp.int32, (LS, L), 1)
    rsel = jnp.where((row_a >> LOG2_S) == col_a, 1.0, 0.0)

    # grep[t*S+s, s'] = 1 iff s' == s   (tiles A_T / B^T over the L steps via one matmul)
    row_b = jax.lax.broadcasted_iota(jnp.int32, (LS, D_STATE), 0)
    col_b = jax.lax.broadcasted_iota(jnp.int32, (LS, D_STATE), 1)
    grep = jnp.where((row_b & (D_STATE - 1)) == col_b, 1.0, 0.0)

    # gsel[s, t*S+s'] = 1 iff s == s'   (lane-tiles C via one matmul)
    row_c = jax.lax.broadcasted_iota(jnp.int32, (D_STATE, LS), 0)
    col_c = jax.lax.broadcasted_iota(jnp.int32, (D_STATE, LS), 1)
    gsel = jnp.where(row_c == (col_c & (D_STATE - 1)), 1.0, 0.0)

    # block-diagonal mask for the batched C.h contraction: [l, t*S+s] valid iff t == l
    row_d = jax.lax.broadcasted_iota(jnp.int32, (L, LS), 0)
    col_d = jax.lax.broadcasted_iota(jnp.int32, (L, LS), 1)
    blockdiag = (col_d >> LOG2_S) == row_d

    key_mask = mask_ref[...]                         # (1, L): 1 = real token, 0 = padded

    # ---------------- feature encoder: Linear -> ReLU -> Linear ----------------
    enc = jnp.dot(x_ref[...], fe0_w_ref[...], preferred_element_type=f32) + fe0_b_ref[...]
    enc = jnp.maximum(enc, 0.0)
    enc = jnp.dot(enc, fe1_w_ref[...], preferred_element_type=f32) + fe1_b_ref[...]

    # ---------------- attention block: LN -> masked MHA -> W_o ----------------
    xn = _layernorm(enc, ln1_w_ref[...], ln1_b_ref[...])
    q = jnp.dot(xn, wq_ref[...], preferred_element_type=f32)      # (L, H*Dh)
    k = jnp.dot(xn, wk_ref[...], preferred_element_type=f32)
    v = jnp.dot(xn, wv_ref[...], preferred_element_type=f32)
    scale = 1.0 / (DIM_PER_HEAD ** 0.5)
    wo_w = wo_w_ref[...]
    attn_out = jnp.zeros((L, D_MODEL), f32) + wo_b_ref[...]
    for hh in range(NUM_HEADS):
        lo = hh * DIM_PER_HEAD
        hi = lo + DIM_PER_HEAD
        s = jnp.einsum("nd,md->nm", q[:, lo:hi], k[:, lo:hi],
                       preferred_element_type=f32) * scale
        s = jnp.where(key_mask > 0.5, s, -1e30)                   # mask padded keys
        s = s - jnp.max(s, axis=-1, keepdims=True)
        p = jnp.exp(s)
        p = p * pl.reciprocal(jnp.sum(p, axis=-1, keepdims=True), approx=True)
        o_h = jnp.dot(p, v[:, lo:hi], preferred_element_type=f32)
        # algebraically the single fused (L,H*Dh)x(H*Dh,D_MODEL) W_o matmul, split
        # along the contraction axis (avoids an unaligned lane concatenation).
        attn_out = attn_out + jnp.dot(o_h, wo_w[lo:hi, :], preferred_element_type=f32)

    hidden = attn_out
    residual = jnp.zeros((L, D_MODEL), f32)

    # ---------------- Mamba layers (looped in-kernel over stacked weights) ----------------
    for li in range(N_LAYERS):
        res = hidden + residual
        xn_m = _layernorm(res, mnw_ref[li], mnb_ref[li])

        # in_proj: keep the packed lane-dense (L, 2*D_INNER)=128-lane [x | z] layout
        xz = jnp.dot(xn_m, minw_ref[li], preferred_element_type=f32)

        # causal depthwise conv + SiLU, fused over [x | z]: the z half carries an
        # identity tap so the same SiLU also produces the gate.  The causal shifts
        # are tiny shift-matrix matmuls (idle MXU) - no pad scratch, no VMEM trips.
        conv_w = mcw_ref[li]                                       # (D_CONV, 2*D_INNER)
        acc = xz * conv_w[D_CONV - 1:D_CONV, :] + mcb_ref[li]
        for sh in range(1, D_CONV):
            shifted = jnp.dot(shift_mats[sh - 1], xz, preferred_element_type=f32)
            acc = acc + shifted * conv_w[D_CONV - 1 - sh:D_CONV - sh, :]
        xcz = acc * jax.nn.sigmoid(acc)                            # [SiLU(conv(x)) | SiLU(z)]
        xc = xcz[:, :D_INNER]
        gate = xcz[:, D_INNER:]

        # input-dependent SSM parameters
        x_dc = jnp.dot(xc, mxdc_ref[li], preferred_element_type=f32)     # (L, DT_RANK+S) = [dt | C]
        dt = jax.nn.softplus(
            jnp.dot(x_dc[:, :DT_RANK], mdtw_ref[li], preferred_element_type=f32) + mdtb_ref[li])
        Cm = x_dc[:, DT_RANK:]                                           # (L, S)
        BmT = jnp.einsum("sd,ld->sl", mxbT_ref[li], xc,
                         preferred_element_type=f32)                     # (S, L)
        u = dt * xc                                                      # (L, D_INNER)

        # hoist exp / rank-1 input fully off the serial chain: materialize dA and
        # B (x) (dt*x) for ALL steps in (L*S, D_INNER) VMEM scratches before the scan.
        A_rep = jnp.dot(grep, mAT_ref[li], preferred_element_type=f32)   # A_T[s] tiled over t
        dt_rep = jnp.dot(rsel, dt, preferred_element_type=f32)           # dt[t] repeated over s
        dA_ref[...] = jnp.exp(dt_rep * A_rep)
        B_rep = jnp.dot(grep, BmT, preferred_element_type=f32)           # (LS, L)
        inp_ref[...] = jnp.dot(rsel * B_rep, u, preferred_element_type=f32)

        # selective scan: the only serial work per step is h = dA_t*h + inp_t.
        hstate = jnp.zeros((D_STATE, D_INNER), f32)
        for t in range(L):
            a = t * D_STATE
            b = a + D_STATE
            hstate = dA_ref[a:b, :] * hstate + inp_ref[a:b, :]
            hs_ref[a:b, :] = hstate

        # batched C.h contraction: ONE (L, L*S) x (L*S, D_INNER) MXU matmul against
        # a block-diagonal C (no per-token matvecs, no masked row stores).
        c_block = jnp.where(blockdiag,
                            jnp.dot(Cm, gsel, preferred_element_type=f32), 0.0)
        y = jnp.dot(c_block, hs_ref[...], preferred_element_type=f32)    # (L, D_INNER)

        # vectorized epilogue: D skip, z-gate, out_proj
        y = (y + xc * mD_ref[li]) * gate
        hidden = jnp.dot(y, moutw_ref[li], preferred_element_type=f32)   # (L, D_MODEL)
        residual = res

    # ---------------- head: norm_f -> W0 -> norm -> 4-layer MLP + residual ----------------
    res = hidden + residual
    hf = _layernorm(res, nf_w_ref[...], nf_b_ref[...])                   # norm_f
    hf = jnp.dot(hf, w0_ref[...], preferred_element_type=f32)            # W0 (no bias)
    hf = _layernorm(hf, n_w_ref[...], n_b_ref[...])                      # self.norm

    m = jnp.dot(hf, l0_w_ref[...], preferred_element_type=f32) + l0_b_ref[...]
    m = jnp.maximum(_layernorm(m, n0_w_ref[...], n0_b_ref[...]), 0.0)
    m = jnp.dot(m, l1_w_ref[...], preferred_element_type=f32) + l1_b_ref[...]
    m = jnp.maximum(_layernorm(m, n1_w_ref[...], n1_b_ref[...]), 0.0)
    m = jnp.dot(m, l2_w_ref[...], preferred_element_type=f32) + l2_b_ref[...]
    m = jnp.maximum(_layernorm(m, n2_w_ref[...], n2_b_ref[...]), 0.0)
    m = jnp.dot(m, l3_w_ref[...], preferred_element_type=f32) + l3_b_ref[...]

    o_ref[...] = hf + m                                                  # out = x + mlp_out(x)


# ----------------------------- forward (glue) -----------------------------
def hmamba_forward(params, x_raw, coords_raw):
    # TODO(synk): HEPTAttention's LSH region bucketing (quantile_partition / regions_h) and the
    # coords-based relative PE (w_rpe) are not defined in the reference source; dense masked
    # multi-head softmax attention is used instead, so coords_raw is unused here.
    del coords_raw
    raw_size = x_raw.shape[0]
    pad = (-raw_size) % BLOCK_SIZE
    n_pad = raw_size + pad
    x = jnp.pad(x_raw, ((0, pad), (0, 0)))
    key_mask = (jnp.arange(n_pad) < raw_size).astype(jnp.float32).reshape(1, n_pad)

    lsh = params["lsh"]
    st = params["mamba"]          # per-layer weights stacked on a leading N_LAYERS axis
    mlp = params["mlp"]
    args = (
        x, key_mask,
        params["fe0_w"], params["fe0_b"], params["fe1_w"], params["fe1_b"],
        lsh["norm1_w"], lsh["norm1_b"], lsh["wq"], lsh["wk"], lsh["wv"], lsh["wo_w"], lsh["wo_b"],
        st["norm_w"], st["norm_b"], st["in_proj_w"], st["conv_w"], st["conv_b"],
        st["x_proj_wdc"], st["x_proj_wbT"], st["dt_w"], st["dt_b"], st["A_T"], st["D"],
        st["out_proj_w"],
        params["norm_f_w"], params["norm_f_b"], params["W0_w"], params["norm_w"], params["norm_b"],
        mlp["l0_w"], mlp["l0_b"], mlp["n0_w"], mlp["n0_b"],
        mlp["l1_w"], mlp["l1_b"], mlp["n1_w"], mlp["n1_b"],
        mlp["l2_w"], mlp["l2_b"], mlp["n2_w"], mlp["n2_b"],
        mlp["l3_w"], mlp["l3_b"],
    )
    out = pl.pallas_call(
        _hmamba_kernel,
        out_shape=jax.ShapeDtypeStruct((n_pad, H_DIM), jnp.float32),
        in_specs=_vspecs(len(args)),
        out_specs=pl.BlockSpec(memory_space=VMEM),
        scratch_shapes=[
            pltpu.VMEM((n_pad * D_STATE, D_INNER), jnp.float32),   # dA for all steps
            pltpu.VMEM((n_pad * D_STATE, D_INNER), jnp.float32),   # B (x) (dt*x) for all steps
            pltpu.VMEM((n_pad * D_STATE, D_INNER), jnp.float32),   # scan states h_t
        ],
    )(*args)
    return out[:raw_size, :]


# ----------------------------- deterministic parameter init (pre-processed layouts) -----------------------------
def init_params(key):
    ks = iter(jax.random.split(key, 64))

    def w(shape, std=0.02):
        return jax.random.normal(next(ks), shape, jnp.float32) * std

    def rowb(d):
        return jnp.zeros((1, d), jnp.float32)

    def ln(d):
        return jnp.ones((1, d), jnp.float32), jnp.zeros((1, d), jnp.float32)

    n1w, n1b = ln(D_MODEL)
    lsh = {
        "norm1_w": n1w, "norm1_b": n1b,
        "wq": w((D_MODEL, NUM_HEADS * DIM_PER_HEAD)),
        "wk": w((D_MODEL, NUM_HEADS * DIM_PER_HEAD)),
        "wv": w((D_MODEL, NUM_HEADS * DIM_PER_HEAD)),
        "wo_w": w((NUM_HEADS * DIM_PER_HEAD, D_MODEL)),
        "wo_b": rowb(D_MODEL),
    }

    def mamba_layer():
        nw, nb = ln(D_MODEL)
        dt_init = jnp.linspace(1e-3, 1e-1, D_INNER).astype(jnp.float32)
        x_proj_w = w((D_INNER, DT_RANK + 2 * D_STATE), std=D_INNER ** -0.5)
        conv_w_x = w((D_CONV, D_INNER), std=0.2)
        # fused depthwise conv weights over the packed [x | z] layout: x half = real
        # taps, z half = identity last tap (so SiLU(conv(.)) of the z half == the gate).
        z_id = jnp.zeros((D_CONV, D_INNER), jnp.float32).at[D_CONV - 1, :].set(1.0)
        conv_w_full = jnp.concatenate([conv_w_x, z_id], axis=1)                 # (K, 2*D_INNER)
        conv_b_full = jnp.concatenate(
            [jnp.zeros((D_INNER,), jnp.float32), jnp.zeros((D_INNER,), jnp.float32)]
        ).reshape(1, 2 * D_INNER)
        # A_log = log(arange(1..S)) tiled over d_inner; hoist A = -exp(A_log) and transpose
        A = jnp.tile(jnp.arange(1, D_STATE + 1, dtype=jnp.float32)[None, :], (D_INNER, 1))
        return {
            "norm_w": nw, "norm_b": nb,
            "in_proj_w": w((D_MODEL, 2 * D_INNER)),
            "conv_w": conv_w_full,
            "conv_b": conv_b_full,
            # x_proj split: [dt | C] columns fused; B columns stored pre-transposed (S, d_inner)
            "x_proj_wdc": jnp.concatenate(
                [x_proj_w[:, :DT_RANK], x_proj_w[:, DT_RANK + D_STATE:]], axis=1),
            "x_proj_wbT": x_proj_w[:, DT_RANK:DT_RANK + D_STATE].T,
            "dt_w": w((DT_RANK, D_INNER), std=DT_RANK ** -0.5),
            "dt_b": jnp.log(jnp.expm1(dt_init)).reshape(1, D_INNER),
            "A_T": (-A).T,                     # (-exp(A_log)).T, precomputed once
            "D": jnp.ones((1, D_INNER), jnp.float32),
            "out_proj_w": w((D_INNER, D_MODEL)),
        }

    layer_list = [mamba_layer() for _ in range(N_LAYERS)]
    mamba = {k: jnp.stack([lp[k] for lp in layer_list], axis=0) for k in layer_list[0]}

    nf_w, nf_b = ln(D_MODEL)
    n_w, n_b = ln(H_DIM)
    n0w, n0b = ln(MLP_HIDDEN)
    n1w2, n1b2 = ln(MLP_HIDDEN)
    n2w, n2b = ln(MLP_HIDDEN)
    return {
        "fe0_w": w((IN_DIM, H_DIM)), "fe0_b": rowb(H_DIM),
        "fe1_w": w((H_DIM, H_DIM)), "fe1_b": rowb(H_DIM),
        "lsh": lsh,
        "mamba": mamba,
        "norm_f_w": nf_w, "norm_f_b": nf_b,
        "W0_w": w((D_MODEL, H_DIM)),
        "norm_w": n_w, "norm_b": n_b,
        "mlp": {
            "l0_w": w((H_DIM, MLP_HIDDEN)), "l0_b": rowb(MLP_HIDDEN), "n0_w": n0w, "n0_b": n0b,
            "l1_w": w((MLP_HIDDEN, MLP_HIDDEN)), "l1_b": rowb(MLP_HIDDEN), "n1_w": n1w2, "n1_b": n1b2,
            "l2_w": w((MLP_HIDDEN, MLP_HIDDEN)), "l2_b": rowb(MLP_HIDDEN), "n2_w": n2w, "n2_b": n2b,
            "l3_w": w((MLP_HIDDEN, H_DIM)), "l3_b": rowb(H_DIM),
        },
    }


# ----------------------------- main -----------------------------
if __name__ == "__main__":
    key = jax.random.PRNGKey(0)
    k_param, k_x, k_c = jax.random.split(key, 3)
    params = init_params(k_param)

    n_raw = 14                                    # raw number of points (padded to 16)
    x = jax.random.normal(k_x, (n_raw, IN_DIM), jnp.float32)
    coords = jax.random.normal(k_c, (n_raw, 6), jnp.float32)

    fwd = jax.jit(hmamba_forward)
    out = jax.block_until_ready(fwd(params, x, coords))
    assert out.shape == (n_raw, H_DIM), out.shape
    assert bool(jnp.all(jnp.isfinite(out)))
    print("KERNEL_OK")
</pallas_src>

<mosaic_0001>
module attributes {stable_mosaic.version = 11 : i64} {
  func.func @_hmamba_kernel(%arg0: memref<16x6xf32, #tpu.memory_space<vmem>>, %arg1: memref<1x16xf32, #tpu.memory_space<vmem>>, %arg2: memref<6x32xf32, #tpu.memory_space<vmem>>, %arg3: memref<1x32xf32, #tpu.memory_space<vmem>>, %arg4: memref<32x32xf32, #tpu.memory_space<vmem>>, %arg5: memref<1x32xf32, #tpu.memory_space<vmem>>, %arg6: memref<1x32xf32, #tpu.memory_space<vmem>>, %arg7: memref<1x32xf32, #tpu.memory_space<vmem>>, %arg8: memref<32x64xf32, #tpu.memory_space<vmem>>, %arg9: memref<32x64xf32, #tpu.memory_space<vmem>>, %arg10: memref<32x64xf32, #tpu.memory_space<vmem>>, %arg11: memref<64x32xf32, #tpu.memory_space<vmem>>, %arg12: memref<1x32xf32, #tpu.memory_space<vmem>>, %arg13: memref<2x1x32xf32, #tpu.memory_space<vmem>>, %arg14: memref<2x1x32xf32, #tpu.memory_space<vmem>>, %arg15: memref<2x32x128xf32, #tpu.memory_space<vmem>>, %arg16: memref<2x4x128xf32, #tpu.memory_space<vmem>>, %arg17: memref<2x1x128xf32, #tpu.memory_space<vmem>>, %arg18: memref<2x64x18xf32, #tpu.memory_space<vmem>>, %arg19: memref<2x16x64xf32, #tpu.memory_space<vmem>>, %arg20: memref<2x2x64xf32, #tpu.memory_space<vmem>>, %arg21: memref<2x1x64xf32, #tpu.memory_space<vmem>>, %arg22: memref<2x16x64xf32, #tpu.memory_space<vmem>>, %arg23: memref<2x1x64xf32, #tpu.memory_space<vmem>>, %arg24: memref<2x64x32xf32, #tpu.memory_space<vmem>>, %arg25: memref<1x32xf32, #tpu.memory_space<vmem>>, %arg26: memref<1x32xf32, #tpu.memory_space<vmem>>, %arg27: memref<32x32xf32, #tpu.memory_space<vmem>>, %arg28: memref<1x32xf32, #tpu.memory_space<vmem>>, %arg29: memref<1x32xf32, #tpu.memory_space<vmem>>, %arg30: memref<32x128xf32, #tpu.memory_space<vmem>>, %arg31: memref<1x128xf32, #tpu.memory_space<vmem>>, %arg32: memref<1x128xf32, #tpu.memory_space<vmem>>, %arg33: memref<1x128xf32, #tpu.memory_space<vmem>>, %arg34: memref<128x128xf32, #tpu.memory_space<vmem>>, %arg35: memref<1x128xf32, #tpu.memory_space<vmem>>, %arg36: memref<1x128xf32, #tpu.memory_space<vmem>>, %arg37: memref<1x128xf32, #tpu.memory_space<vmem>>, %arg38: memref<128x128xf32, #tpu.memory_space<vmem>>, %arg39: memref<1x128xf32, #tpu.memory_space<vmem>>, %arg40: memref<1x128xf32, #tpu.memory_space<vmem>>, %arg41: memref<1x128xf32, #tpu.memory_space<vmem>>, %arg42: memref<128x32xf32, #tpu.memory_space<vmem>>, %arg43: memref<1x32xf32, #tpu.memory_space<vmem>>, %arg44: memref<16x32xf32, #tpu.memory_space<vmem>>, %arg45: memref<256x64xf32, #tpu.memory_space<vmem>>, %arg46: memref<256x64xf32, #tpu.memory_space<vmem>>, %arg47: memref<256x64xf32, #tpu.memory_space<vmem>>) attributes {dimension_semantics = [], scalar_prefetch = 0 : i64, scratch_operands = 3 : i64, tpu.core_type = #tpu.core_type<tc>} {
    %0 = tpu.iota {dimensions = array<i32: 0>} : vector<16x16xi32>
    %1 = tpu.iota {dimensions = array<i32: 1>} : vector<16x16xi32>
    %c1_i32 = arith.constant 1 : i32
    %2 = vector.broadcast %c1_i32 : i32 to vector<16x16xi32>
    %3 = arith.subi %0, %2 : vector<16x16xi32>
    %4 = arith.cmpi eq, %1, %3 : vector<16x16xi32>
    %cst = arith.constant 1.000000e+00 : f32
    %cst_0 = arith.constant 0.000000e+00 : f32
    %5 = vector.broadcast %cst : f32 to vector<16x16xf32>
    %6 = vector.broadcast %cst_0 : f32 to vector<16x16xf32>
    %7 = arith.select %4, %5, %6 : vector<16x16xi1>, vector<16x16xf32>
    %c2_i32 = arith.constant 2 : i32
    %8 = vector.broadcast %c2_i32 : i32 to vector<16x16xi32>
    %9 = arith.subi %0, %8 : vector<16x16xi32>
    %10 = arith.cmpi eq, %1, %9 : vector<16x16xi32>
    %cst_1 = arith.constant 1.000000e+00 : f32
    %cst_2 = arith.constant 0.000000e+00 : f32
    %11 = vector.broadcast %cst_1 : f32 to vector<16x16xf32>
    %12 = vector.broadcast %cst_2 : f32 to vector<16x16xf32>
    %13 = arith.select %10, %11, %12 : vector<16x16xi1>, vector<16x16xf32>
    %c3_i32 = arith.constant 3 : i32
    %14 = vector.broadcast %c3_i32 : i32 to vector<16x16xi32>
    %15 = arith.subi %0, %14 : vector<16x16xi32>
    %16 = arith.cmpi eq, %1, %15 : vector<16x16xi32>
    %cst_3 = arith.constant 1.000000e+00 : f32
    %cst_4 = arith.constant 0.000000e+00 : f32
    %17 = vector.broadcast %cst_3 : f32 to vector<16x16xf32>
    %18 = vector.broadcast %cst_4 : f32 to vector<16x16xf32>
    %19 = arith.select %16, %17, %18 : vector<16x16xi1>, vector<16x16xf32>
    %20 = tpu.iota {dimensions = array<i32: 0>} : vector<256x16xi32>
    %21 = tpu.iota {dimensions = array<i32: 1>} : vector<256x16xi32>
    %c4_i32 = arith.constant 4 : i32
    %22 = vector.broadcast %c4_i32 : i32 to vector<256x16xi32>
    %23 = arith.shrsi %20, %22 : vector<256x16xi32>
    %24 = arith.cmpi eq, %23, %21 : vector<256x16xi32>
    %cst_5 = arith.constant 1.000000e+00 : f32
    %cst_6 = arith.constant 0.000000e+00 : f32
    %25 = vector.broadcast %cst_5 : f32 to vector<256x16xf32>
    %26 = vector.broadcast %cst_6 : f32 to vector<256x16xf32>
    %27 = arith.select %24, %25, %26 : vector<256x16xi1>, vector<256x16xf32>
    %28 = tpu.iota {dimensions = array<i32: 0>} : vector<256x16xi32>
    %29 = tpu.iota {dimensions = array<i32: 1>} : vector<256x16xi32>
    %c15_i32 = arith.constant 15 : i32
    %30 = vector.broadcast %c15_i32 : i32 to vector<256x16xi32>
    %31 = arith.andi %28, %30 : vector<256x16xi32>
    %32 = arith.cmpi eq, %31, %29 : vector<256x16xi32>
    %cst_7 = arith.constant 1.000000e+00 : f32
    %cst_8 = arith.constant 0.000000e+00 : f32
    %33 = vector.broadcast %cst_7 : f32 to vector<256x16xf32>
    %34 = vector.broadcast %cst_8 : f32 to vector<256x16xf32>
    %35 = arith.select %32, %33, %34 : vector<256x16xi1>, vector<256x16xf32>
    %36 = tpu.iota {dimensions = array<i32: 0>} : vector<16x256xi32>
    %37 = tpu.iota {dimensions = array<i32: 1>} : vector<16x256xi32>
    %c15_i32_9 = arith.constant 15 : i32
    %38 = vector.broadcast %c15_i32_9 : i32 to vector<16x256xi32>
    %39 = arith.andi %37, %38 : vector<16x256xi32>
    %40 = arith.cmpi eq, %36, %39 : vector<16x256xi32>
    %cst_10 = arith.constant 1.000000e+00 : f32
    %cst_11 = arith.constant 0.000000e+00 : f32
    %41 = vector.broadcast %cst_10 : f32 to vector<16x256xf32>
    %42 = vector.broadcast %cst_11 : f32 to vector<16x256xf32>
    %43 = arith.select %40, %41, %42 : vector<16x256xi1>, vector<16x256xf32>
    %44 = tpu.iota {dimensions = array<i32: 0>} : vector<16x256xi32>
    %45 = tpu.iota {dimensions = array<i32: 1>} : vector<16x256xi32>
    %c4_i32_12 = arith.constant 4 : i32
    %46 = vector.broadcast %c4_i32_12 : i32 to vector<16x256xi32>
    %47 = arith.shrsi %45, %46 : vector<16x256xi32>
    %48 = arith.cmpi eq, %47, %44 : vector<16x256xi32>
    %c0 = arith.constant 0 : index
    %c0_13 = arith.constant 0 : index
    %49 = vector.load %arg1[%c0, %c0_13] : memref<1x16xf32, #tpu.memory_space<vmem>>, vector<1x16xf32>
    %c0_14 = arith.constant 0 : index
    %c0_15 = arith.constant 0 : index
    %50 = vector.load %arg0[%c0_14, %c0_15] : memref<16x6xf32, #tpu.memory_space<vmem>>, vector<16x6xf32>
    %c0_16 = arith.constant 0 : index
    %c0_17 = arith.constant 0 : index
    %51 = vector.load %arg2[%c0_16, %c0_17] : memref<6x32xf32, #tpu.memory_space<vmem>>, vector<6x32xf32>
    %cst_18 = arith.constant dense<0.000000e+00> : vector<16x32xf32>
    %52 = tpu.matmul %50, %51, %cst_18 {dimension_numbers = #tpu.dot_dimension_numbers<[1], [0], [0], [1], [0, 0, 1, 1], [], []>} : vector<16x6xf32>, vector<6x32xf32>, vector<16x32xf32> -> vector<16x32xf32>
    %c0_19 = arith.constant 0 : index
    %c0_20 = arith.constant 0 : index
    %53 = vector.load %arg3[%c0_19, %c0_20] : memref<1x32xf32, #tpu.memory_space<vmem>>, vector<1x32xf32>
    %54 = vector.broadcast %53 : vector<1x32xf32> to vector<16x32xf32>
    %55 = arith.addf %52, %54 : vector<16x32xf32>
    %cst_21 = arith.constant 0.000000e+00 : f32
    %56 = vector.broadcast %cst_21 : f32 to vector<16x32xf32>
    %57 = arith.maximumf %55, %56 : vector<16x32xf32>
    %c0_22 = arith.constant 0 : index
    %c0_23 = arith.constant 0 : index
    %58 = vector.load %arg4[%c0_22, %c0_23] : memref<32x32xf32, #tpu.memory_space<vmem>>, vector<32x32xf32>
    %cst_24 = arith.constant dense<0.000000e+00> : vector<16x32xf32>
    %59 = tpu.matmul %57, %58, %cst_24 {dimension_numbers = #tpu.dot_dimension_numbers<[1], [0], [0], [1], [0, 0, 1, 1], [], []>} : vector<16x32xf32>, vector<32x32xf32>, vector<16x32xf32> -> vector<16x32xf32>
    %c0_25 = arith.constant 0 : index
    %c0_26 = arith.constant 0 : index
    %60 = vector.load %arg5[%c0_25, %c0_26] : memref<1x32xf32, #tpu.memory_space<vmem>>, vector<1x32xf32>
    %61 = vector.broadcast %60 : vector<1x32xf32> to vector<16x32xf32>
    %62 = arith.addf %59, %61 : vector<16x32xf32>
    %c0_27 = arith.constant 0 : index
    %c0_28 = arith.constant 0 : index
    %63 = vector.load %arg6[%c0_27, %c0_28] : memref<1x32xf32, #tpu.memory_space<vmem>>, vector<1x32xf32>
    %c0_29 = arith.constant 0 : index
    %c0_30 = arith.constant 0 : index
    %64 = vector.load %arg7[%c0_29, %c0_30] : memref<1x32xf32, #tpu.memory_space<vmem>>, vector<1x32xf32>
    %cst_31 = arith.constant dense<0.000000e+00> : vector<16xf32>
    %65 = vector.multi_reduction <add>, %62, %cst_31 [1] : vector<16x32xf32> to vector<16xf32>
    %66 = vector.shape_cast %65 : vector<16xf32> to vector<16x1xf32>
    %cst_32 = arith.constant 3.200000e+01 : f32
    %67 = vector.broadcast %cst_32 : f32 to vector<16x1xf32>
    %68 = arith.divf %66, %67 : vector<16x1xf32>
    %69 = vector.broadcast %68 : vector<16x1xf32> to vector<16x32xf32>
    %70 = arith.subf %62, %69 : vector<16x32xf32>
    %71 = arith.mulf %70, %70 : vector<16x32xf32>
    %cst_33 = arith.constant dense<0.000000e+00> : vector<16xf32>
    %72 = vector.multi_reduction <add>, %71, %cst_33 [1] : vector<16x32xf32> to vector<16xf32>
    %73 = vector.shape_cast %72 : vector<16xf32> to vector<16x1xf32>
    %cst_34 = arith.constant 3.200000e+01 : f32
    %74 = vector.broadcast %cst_34 : f32 to vector<16x1xf32>
    %75 = arith.divf %73, %74 : vector<16x1xf32>
    %cst_35 = arith.constant 9.99999974E-6 : f32
    %76 = vector.broadcast %cst_35 : f32 to vector<16x1xf32>
    %77 = arith.addf %75, %76 : vector<16x1xf32>
    %78 = math.rsqrt %77 : vector<16x1xf32>
    %79 = vector.broadcast %78 : vector<16x1xf32> to vector<16x32xf32>
    %80 = arith.mulf %70, %79 : vector<16x32xf32>
    %81 = vector.broadcast %63 : vector<1x32xf32> to vector<16x32xf32>
    %82 = arith.mulf %80, %81 : vector<16x32xf32>
    %83 = vector.broadcast %64 : vector<1x32xf32> to vector<16x32xf32>
    %84 = arith.addf %82, %83 : vector<16x32xf32>
    %c0_36 = arith.constant 0 : index
    %c0_37 = arith.constant 0 : index
    %85 = vector.load %arg8[%c0_36, %c0_37] : memref<32x64xf32, #tpu.memory_space<vmem>>, vector<32x64xf32>
    %cst_38 = arith.constant dense<0.000000e+00> : vector<16x64xf32>
    %86 = tpu.matmul %84, %85, %cst_38 {dimension_numbers = #tpu.dot_dimension_numbers<[1], [0], [0], [1], [0, 0, 1, 1], [], []>} : vector<16x32xf32>, vector<32x64xf32>, vector<16x64xf32> -> vector<16x64xf32>
    %c0_39 = arith.constant 0 : index
    %c0_40 = arith.constant 0 : index
    %87 = vector.load %arg9[%c0_39, %c0_40] : memref<32x64xf32, #tpu.memory_space<vmem>>, vector<32x64xf32>
    %cst_41 = arith.constant dense<0.000000e+00> : vector<16x64xf32>
    %88 = tpu.matmul %84, %87, %cst_41 {dimension_numbers = #tpu.dot_dimension_numbers<[1], [0], [0], [1], [0, 0, 1, 1], [], []>} : vector<16x32xf32>, vector<32x64xf32>, vector<16x64xf32> -> vector<16x64xf32>
    %c0_42 = arith.constant 0 : index
    %c0_43 = arith.constant 0 : index
    %89 = vector.load %arg10[%c0_42, %c0_43] : memref<32x64xf32, #tpu.memory_space<vmem>>, vector<32x64xf32>
    %cst_44 = arith.constant dense<0.000000e+00> : vector<16x64xf32>
    %90 = tpu.matmul %84, %89, %cst_44 {dimension_numbers = #tpu.dot_dimension_numbers<[1], [0], [0], [1], [0, 0, 1, 1], [], []>} : vector<16x32xf32>, vector<32x64xf32>, vector<16x64xf32> -> vector<16x64xf32>
    %c0_45 = arith.constant 0 : index
    %c0_46 = arith.constant 0 : index
    %91 = vector.load %arg11[%c0_45, %c0_46] : memref<64x32xf32, #tpu.memory_space<vmem>>, vector<64x32xf32>
    %cst_47 = arith.constant 0.000000e+00 : f32
    %92 = vector.broadcast %cst_47 : f32 to vector<16x32xf32>
    %c0_48 = arith.constant 0 : index
    %c0_49 = arith.constant 0 : index
    %93 = vector.load %arg12[%c0_48, %c0_49] : memref<1x32xf32, #tpu.memory_space<vmem>>, vector<1x32xf32>
    %94 = vector.broadcast %93 : vector<1x32xf32> to vector<16x32xf32>
    %95 = arith.addf %92, %94 : vector<16x32xf32>
    %96 = vector.extract_strided_slice %86 {offsets = [0, 0], sizes = [16, 32], strides = [1, 1]} : vector<16x64xf32> to vector<16x32xf32>
    %97 = vector.extract_strided_slice %88 {offsets = [0, 0], sizes = [16, 32], strides = [1, 1]} : vector<16x64xf32> to vector<16x32xf32>
    "tpu.trace_start"() <{level = 10 : i32, message = "nd,md->nm"}> : () -> ()
    %cst_50 = arith.constant dense<0.000000e+00> : vector<16x16xf32>
    %98 = tpu.matmul %96, %97, %cst_50 {dimension_numbers = #tpu.dot_dimension_numbers<[1], [1], [0], [0], [0, 0, 1, 0], [], []>} : vector<16x32xf32>, vector<16x32xf32>, vector<16x16xf32> -> vector<16x16xf32>
    "tpu.trace_stop"() : () -> ()
    %cst_51 = arith.constant 0.176776692 : f32
    %99 = vector.broadcast %cst_51 : f32 to vector<16x16xf32>
    %100 = arith.mulf %98, %99 : vector<16x16xf32>
    %cst_52 = arith.constant 5.000000e-01 : f32
    %101 = vector.broadcast %cst_52 : f32 to vector<1x16xf32>
    %102 = arith.cmpf ogt, %49, %101 : vector<1x16xf32>
    %cst_53 = arith.constant -1.000000e+30 : f32
    %103 = vector.shape_cast %102 : vector<1x16xi1> to vector<1x16xi1>
    %104 = vector.broadcast %103 : vector<1x16xi1> to vector<16x16xi1>
    %105 = vector.broadcast %cst_53 : f32 to vector<16x16xf32>
    %106 = arith.select %104, %100, %105 : vector<16x16xi1>, vector<16x16xf32>
    %cst_54 = arith.constant dense<0xFF800000> : vector<16xf32>
    %107 = vector.multi_reduction <maximumf>, %106, %cst_54 [1] : vector<16x16xf32> to vector<16xf32>
    %108 = vector.shape_cast %107 : vector<16xf32> to vector<16x1xf32>
    %109 = vector.broadcast %108 : vector<16x1xf32> to vector<16x16xf32>
    %110 = arith.subf %106, %109 : vector<16x16xf32>
    %111 = math.exp %110 : vector<16x16xf32>
    %cst_55 = arith.constant dense<0.000000e+00> : vector<16xf32>
    %112 = vector.multi_reduction <add>, %111, %cst_55 [1] : vector<16x16xf32> to vector<16xf32>
    %113 = vector.shape_cast %112 : vector<16xf32> to vector<16x1xf32>
    %114 = tpu.reciprocal %113 {approx = true} : vector<16x1xf32> -> vector<16x1xf32>
    %115 = vector.broadcast %114 : vector<16x1xf32> to vector<16x16xf32>
    %116 = arith.mulf %111, %115 : vector<16x16xf32>
    %117 = vector.extract_strided_slice %90 {offsets = [0, 0], sizes = [16, 32], strides = [1, 1]} : vector<16x64xf32> to vector<16x32xf32>
    %cst_56 = arith.constant dense<0.000000e+00> : vector<16x32xf32>
    %118 = tpu.matmul %116, %117, %cst_56 {dimension_numbers = #tpu.dot_dimension_numbers<[1], [0], [0], [1], [0, 0, 1, 1], [], []>} : vector<16x16xf32>, vector<16x32xf32>, vector<16x32xf32> -> vector<16x32xf32>
    %119 = vector.extract_strided_slice %91 {offsets = [0, 0], sizes = [32, 32], strides = [1, 1]} : vector<64x32xf32> to vector<32x32xf32>
    %cst_57 = arith.constant dense<0.000000e+00> : vector<16x32xf32>
    %120 = tpu.matmul %118, %119, %cst_57 {dimension_numbers = #tpu.dot_dimension_numbers<[1], [0], [0], [1], [0, 0, 1, 1], [], []>} : vector<16x32xf32>, vector<32x32xf32>, vector<16x32xf32> -> vector<16x32xf32>
    %121 = arith.addf %95, %120 : vector<16x32xf32>
    %122 = vector.extract_strided_slice %86 {offsets = [0, 32], sizes = [16, 32], strides = [1, 1]} : vector<16x64xf32> to vector<16x32xf32>
    %123 = vector.extract_strided_slice %88 {offsets = [0, 32], sizes = [16, 32], strides = [1, 1]} : vector<16x64xf32> to vector<16x32xf32>
    "tpu.trace_start"() <{level = 10 : i32, message = "nd,md->nm"}> : () -> ()
    %cst_58 = arith.constant dense<0.000000e+00> : vector<16x16xf32>
    %124 = tpu.matmul %122, %123, %cst_58 {dimension_numbers = #tpu.dot_dimension_numbers<[1], [1], [0], [0], [0, 0, 1, 0], [], []>} : vector<16x32xf32>, vector<16x32xf32>, vector<16x16xf32> -> vector<16x16xf32>
    "tpu.trace_stop"() : () -> ()
    %cst_59 = arith.constant 0.176776692 : f32
    %125 = vector.broadcast %cst_59 : f32 to vector<16x16xf32>
    %126 = arith.mulf %124, %125 : vector<16x16xf32>
    %cst_60 = arith.constant 5.000000e-01 : f32
    %127 = vector.broadcast %cst_60 : f32 to vector<1x16xf32>
    %128 = arith.cmpf ogt, %49, %127 : vector<1x16xf32>
    %cst_61 = arith.constant -1.000000e+30 : f32
    %129 = vector.shape_cast %128 : vector<1x16xi1> to vector<1x16xi1>
    %130 = vector.broadcast %129 : vector<1x16xi1> to vector<16x16xi1>
    %131 = vector.broadcast %cst_61 : f32 to vector<16x16xf32>
    %132 = arith.select %130, %126, %131 : vector<16x16xi1>, vector<16x16xf32>
    %cst_62 = arith.constant dense<0xFF800000> : vector<16xf32>
    %133 = vector.multi_reduction <maximumf>, %132, %cst_62 [1] : vector<16x16xf32> to vector<16xf32>
    %134 = vector.shape_cast %133 : vector<16xf32> to vector<16x1xf32>
    %135 = vector.broadcast %134 : vector<16x1xf32> to vector<16x16xf32>
    %136 = arith.subf %132, %135 : vector<16x16xf32>
    %137 = math.exp %136 : vector<16x16xf32>
    %cst_63 = arith.constant dense<0.000000e+00> : vector<16xf32>
    %138 = vector.multi_reduction <add>, %137, %cst_63 [1] : vector<16x16xf32> to vector<16xf32>
    %139 = vector.shape_cast %138 : vector<16xf32> to vector<16x1xf32>
    %140 = tpu.reciprocal %139 {approx = true} : vector<16x1xf32> -> vector<16x1xf32>
    %141 = vector.broadcast %140 : vector<16x1xf32> to vector<16x16xf32>
    %142 = arith.mulf %137, %141 : vector<16x16xf32>
    %143 = vector.extract_strided_slice %90 {offsets = [0, 32], sizes = [16, 32], strides = [1, 1]} : vector<16x64xf32> to vector<16x32xf32>
    %cst_64 = arith.constant dense<0.000000e+00> : vector<16x32xf32>
    %144 = tpu.matmul %142, %143, %cst_64 {dimension_numbers = #tpu.dot_dimension_numbers<[1], [0], [0], [1], [0, 0, 1, 1], [], []>} : vector<16x16xf32>, vector<16x32xf32>, vector<16x32xf32> -> vector<16x32xf32>
    %145 = vector.extract_strided_slice %91 {offsets = [32, 0], sizes = [32, 32], strides = [1, 1]} : vector<64x32xf32> to vector<32x32xf32>
    %cst_65 = arith.constant dense<0.000000e+00> : vector<16x32xf32>
    %146 = tpu.matmul %144, %145, %cst_65 {dimension_numbers = #tpu.dot_dimension_numbers<[1], [0], [0], [1], [0, 0, 1, 1], [], []>} : vector<16x32xf32>, vector<32x32xf32>, vector<16x32xf32> -> vector<16x32xf32>
    %147 = arith.addf %121, %146 : vector<16x32xf32>
    %cst_66 = arith.constant 0.000000e+00 : f32
    %148 = vector.broadcast %cst_66 : f32 to vector<16x32xf32>
    %149 = arith.addf %147, %148 : vector<16x32xf32>
    %c0_67 = arith.constant 0 : index
    %c0_68 = arith.constant 0 : index
    %c0_69 = arith.constant 0 : index
    %150 = vector.load %arg13[%c0_67, %c0_68, %c0_69] : memref<2x1x32xf32, #tpu.memory_space<vmem>>, vector<1x1x32xf32>
    %151 = vector.shape_cast %150 : vector<1x1x32xf32> to vector<1x32xf32>
    %c0_70 = arith.constant 0 : index
    %c0_71 = arith.constant 0 : index
    %c0_72 = arith.constant 0 : index
    %152 = vector.load %arg14[%c0_70, %c0_71, %c0_72] : memref<2x1x32xf32, #tpu.memory_space<vmem>>, vector<1x1x32xf32>
    %153 = vector.shape_cast %152 : vector<1x1x32xf32> to vector<1x32xf32>
    %cst_73 = arith.constant dense<0.000000e+00> : vector<16xf32>
    %154 = vector.multi_reduction <add>, %149, %cst_73 [1] : vector<16x32xf32> to vector<16xf32>
    %155 = vector.shape_cast %154 : vector<16xf32> to vector<16x1xf32>
    %cst_74 = arith.constant 3.200000e+01 : f32
    %156 = vector.broadcast %cst_74 : f32 to vector<16x1xf32>
    %157 = arith.divf %155, %156 : vector<16x1xf32>
    %158 = vector.broadcast %157 : vector<16x1xf32> to vector<16x32xf32>
    %159 = arith.subf %149, %158 : vector<16x32xf32>
    %160 = arith.mulf %159, %159 : vector<16x32xf32>
    %cst_75 = arith.constant dense<0.000000e+00> : vector<16xf32>
    %161 = vector.multi_reduction <add>, %160, %cst_75 [1] : vector<16x32xf32> to vector<16xf32>
    %162 = vector.shape_cast %161 : vector<16xf32> to vector<16x1xf32>
    %cst_76 = arith.constant 3.200000e+01 : f32
    %163 = vector.broadcast %cst_76 : f32 to vector<16x1xf32>
    %164 = arith.divf %162, %163 : vector<16x1xf32>
    %cst_77 = arith.constant 9.99999974E-6 : f32
    %165 = vector.broadcast %cst_77 : f32 to vector<16x1xf32>
    %166 = arith.addf %164, %165 : vector<16x1xf32>
    %167 = math.rsqrt %166 : vector<16x1xf32>
    %168 = vector.broadcast %167 : vector<16x1xf32> to vector<16x32xf32>
    %169 = arith.mulf %159, %168 : vector<16x32xf32>
    %170 = vector.broadcast %151 : vector<1x32xf32> to vector<16x32xf32>
    %171 = arith.mulf %169, %170 : vector<16x32xf32>
    %172 = vector.broadcast %153 : vector<1x32xf32> to vector<16x32xf32>
    %173 = arith.addf %171, %172 : vector<16x32xf32>
    %c0_78 = arith.constant 0 : index
    %c0_79 = arith.constant 0 : index
    %c0_80 = arith.constant 0 : index
    %174 = vector.load %arg15[%c0_78, %c0_79, %c0_80] : memref<2x32x128xf32, #tpu.memory_space<vmem>>, vector<1x32x128xf32>
    %175 = vector.shape_cast %174 : vector<1x32x128xf32> to vector<32x128xf32>
    %cst_81 = arith.constant dense<0.000000e+00> : vector<16x128xf32>
    %176 = tpu.matmul %173, %175, %cst_81 {dimension_numbers = #tpu.dot_dimension_numbers<[1], [0], [0], [1], [0, 0, 1, 1], [], []>} : vector<16x32xf32>, vector<32x128xf32>, vector<16x128xf32> -> vector<16x128xf32>
    %c0_82 = arith.constant 0 : index
    %c0_83 = arith.constant 0 : index
    %c0_84 = arith.constant 0 : index
    %177 = vector.load %arg16[%c0_82, %c0_83, %c0_84] : memref<2x4x128xf32, #tpu.memory_space<vmem>>, vector<1x4x128xf32>
    %178 = vector.shape_cast %177 : vector<1x4x128xf32> to vector<4x128xf32>
    %179 = vector.extract_strided_slice %178 {offsets = [3, 0], sizes = [1, 128], strides = [1, 1]} : vector<4x128xf32> to vector<1x128xf32>
    %180 = vector.broadcast %179 : vector<1x128xf32> to vector<16x128xf32>
    %181 = arith.mulf %176, %180 : vector<16x128xf32>
    %c0_85 = arith.constant 0 : index
    %c0_86 = arith.constant 0 : index
    %c0_87 = arith.constant 0 : index
    %182 = vector.load %arg17[%c0_85, %c0_86, %c0_87] : memref<2x1x128xf32, #tpu.memory_space<vmem>>, vector<1x1x128xf32>
    %183 = vector.shape_cast %182 : vector<1x1x128xf32> to vector<1x128xf32>
    %184 = vector.broadcast %183 : vector<1x128xf32> to vector<16x128xf32>
    %185 = arith.addf %181, %184 : vector<16x128xf32>
    %cst_88 = arith.constant dense<0.000000e+00> : vector<16x128xf32>
    %186 = tpu.matmul %7, %176, %cst_88 {dimension_numbers = #tpu.dot_dimension_numbers<[1], [0], [0], [1], [0, 0, 1, 1], [], []>} : vector<16x16xf32>, vector<16x128xf32>, vector<16x128xf32> -> vector<16x128xf32>
    %187 = vector.extract_strided_slice %178 {offsets = [2, 0], sizes = [1, 128], strides = [1, 1]} : vector<4x128xf32> to vector<1x128xf32>
    %188 = vector.broadcast %187 : vector<1x128xf32> to vector<16x128xf32>
    %189 = arith.mulf %186, %188 : vector<16x128xf32>
    %190 = arith.addf %185, %189 : vector<16x128xf32>
    %cst_89 = arith.constant dense<0.000000e+00> : vector<16x128xf32>
    %191 = tpu.matmul %13, %176, %cst_89 {dimension_numbers = #tpu.dot_dimension_numbers<[1], [0], [0], [1], [0, 0, 1, 1], [], []>} : vector<16x16xf32>, vector<16x128xf32>, vector<16x128xf32> -> vector<16x128xf32>
    %192 = vector.extract_strided_slice %178 {offsets = [1, 0], sizes = [1, 128], strides = [1, 1]} : vector<4x128xf32> to vector<1x128xf32>
    %193 = vector.broadcast %192 : vector<1x128xf32> to vector<16x128xf32>
    %194 = arith.mulf %191, %193 : vector<16x128xf32>
    %195 = arith.addf %190, %194 : vector<16x128xf32>
    %cst_90 = arith.constant dense<0.000000e+00> : vector<16x128xf32>
    %196 = tpu.matmul %19, %176, %cst_90 {dimension_numbers = #tpu.dot_dimension_numbers<[1], [0], [0], [1], [0, 0, 1, 1], [], []>} : vector<16x16xf32>, vector<16x128xf32>, vector<16x128xf32> -> vector<16x128xf32>
    %197 = vector.extract_strided_slice %178 {offsets = [0, 0], sizes = [1, 128], strides = [1, 1]} : vector<4x128xf32> to vector<1x128xf32>
    %198 = vector.broadcast %197 : vector<1x128xf32> to vector<16x128xf32>
    %199 = arith.mulf %196, %198 : vector<16x128xf32>
    %200 = arith.addf %195, %199 : vector<16x128xf32>
    %201 = arith.negf %200 : vector<16x128xf32>
    %202 = math.exp %201 : vector<16x128xf32>
    %cst_91 = arith.constant 1.000000e+00 : f32
    %203 = vector.broadcast %cst_91 : f32 to vector<16x128xf32>
    %204 = arith.addf %203, %202 : vector<16x128xf32>
    %205 = arith.divf %203, %204 : vector<16x128xf32>
    %206 = arith.mulf %200, %205 : vector<16x128xf32>
    %207 = vector.extract_strided_slice %206 {offsets = [0, 0], sizes = [16, 64], strides = [1, 1]} : vector<16x128xf32> to vector<16x64xf32>
    %208 = vector.extract_strided_slice %206 {offsets = [0, 64], sizes = [16, 64], strides = [1, 1]} : vector<16x128xf32> to vector<16x64xf32>
    %c0_92 = arith.constant 0 : index
    %c0_93 = arith.constant 0 : index
    %c0_94 = arith.constant 0 : index
    %209 = vector.load %arg18[%c0_92, %c0_93, %c0_94] : memref<2x64x18xf32, #tpu.memory_space<vmem>>, vector<1x64x18xf32>
    %210 = vector.shape_cast %209 : vector<1x64x18xf32> to vector<64x18xf32>
    %cst_95 = arith.constant dense<0.000000e+00> : vector<16x18xf32>
    %211 = tpu.matmul %207, %210, %cst_95 {dimension_numbers = #tpu.dot_dimension_numbers<[1], [0], [0], [1], [0, 0, 1, 1], [], []>} : vector<16x64xf32>, vector<64x18xf32>, vector<16x18xf32> -> vector<16x18xf32>
    %212 = vector.extract_strided_slice %211 {offsets = [0, 0], sizes = [16, 2], strides = [1, 1]} : vector<16x18xf32> to vector<16x2xf32>
    %c0_96 = arith.constant 0 : index
    %c0_97 = arith.constant 0 : index
    %c0_98 = arith.constant 0 : index
    %213 = vector.load %arg20[%c0_96, %c0_97, %c0_98] : memref<2x2x64xf32, #tpu.memory_space<vmem>>, vector<1x2x64xf32>
    %214 = vector.shape_cast %213 : vector<1x2x64xf32> to vector<2x64xf32>
    %cst_99 = arith.constant dense<0.000000e+00> : vector<16x64xf32>
    %215 = tpu.matmul %212, %214, %cst_99 {dimension_numbers = #tpu.dot_dimension_numbers<[1], [0], [0], [1], [0, 0, 1, 1], [], []>} : vector<16x2xf32>, vector<2x64xf32>, vector<16x64xf32> -> vector<16x64xf32>
    %c0_100 = arith.constant 0 : index
    %c0_101 = arith.constant 0 : index
    %c0_102 = arith.constant 0 : index
    %216 = vector.load %arg21[%c0_100, %c0_101, %c0_102] : memref<2x1x64xf32, #tpu.memory_space<vmem>>, vector<1x1x64xf32>
    %217 = vector.shape_cast %216 : vector<1x1x64xf32> to vector<1x64xf32>
    %218 = vector.broadcast %217 : vector<1x64xf32> to vector<16x64xf32>
    %219 = arith.addf %215, %218 : vector<16x64xf32>
    %cst_103 = arith.constant 0.000000e+00 : f32
    %220 = vector.broadcast %cst_103 : f32 to vector<16x64xf32>
    %221 = arith.maximumf %219, %220 : vector<16x64xf32>
    %222 = vector.broadcast %cst_103 : f32 to vector<16x64xf32>
    %223 = arith.subf %219, %222 : vector<16x64xf32>
    %224 = arith.cmpf one, %223, %223 : vector<16x64xf32>
    %225 = vector.broadcast %cst_103 : f32 to vector<16x64xf32>
    %226 = arith.addf %219, %225 : vector<16x64xf32>
    %227 = math.absf %223 : vector<16x64xf32>
    %cst_104 = arith.constant 0.000000e+00 : f32
    %228 = vector.broadcast %cst_104 : f32 to vector<16x64xf32>
    %229 = arith.subf %228, %227 : vector<16x64xf32>
    %230 = math.exp %229 : vector<16x64xf32>
    %231 = math.log1p %230 : vector<16x64xf32>
    %232 = arith.addf %221, %231 : vector<16x64xf32>
    %233 = arith.select %224, %226, %232 : vector<16x64xi1>, vector<16x64xf32>
    %234 = vector.extract_strided_slice %211 {offsets = [0, 2], sizes = [16, 16], strides = [1, 1]} : vector<16x18xf32> to vector<16x16xf32>
    %c0_105 = arith.constant 0 : index
    %c0_106 = arith.constant 0 : index
    %c0_107 = arith.constant 0 : index
    %235 = vector.load %arg19[%c0_105, %c0_106, %c0_107] : memref<2x16x64xf32, #tpu.memory_space<vmem>>, vector<1x16x64xf32>
    %236 = vector.shape_cast %235 : vector<1x16x64xf32> to vector<16x64xf32>
    "tpu.trace_start"() <{level = 10 : i32, message = "sd,ld->sl"}> : () -> ()
    %cst_108 = arith.constant dense<0.000000e+00> : vector<16x16xf32>
    %237 = tpu.matmul %236, %207, %cst_108 {dimension_numbers = #tpu.dot_dimension_numbers<[1], [1], [0], [0], [0, 0, 1, 0], [], []>} : vector<16x64xf32>, vector<16x64xf32>, vector<16x16xf32> -> vector<16x16xf32>
    "tpu.trace_stop"() : () -> ()
    %238 = arith.mulf %233, %207 : vector<16x64xf32>
    %c0_109 = arith.constant 0 : index
    %c0_110 = arith.constant 0 : index
    %c0_111 = arith.constant 0 : index
    %239 = vector.load %arg22[%c0_109, %c0_110, %c0_111] : memref<2x16x64xf32, #tpu.memory_space<vmem>>, vector<1x16x64xf32>
    %240 = vector.shape_cast %239 : vector<1x16x64xf32> to vector<16x64xf32>
    %cst_112 = arith.constant dense<0.000000e+00> : vector<256x64xf32>
    %241 = tpu.matmul %35, %240, %cst_112 {dimension_numbers = #tpu.dot_dimension_numbers<[1], [0], [0], [1], [0, 0, 1, 1], [], []>} : vector<256x16xf32>, vector<16x64xf32>, vector<256x64xf32> -> vector<256x64xf32>
    %cst_113 = arith.constant dense<0.000000e+00> : vector<256x64xf32>
    %242 = tpu.matmul %27, %233, %cst_113 {dimension_numbers = #tpu.dot_dimension_numbers<[1], [0], [0], [1], [0, 0, 1, 1], [], []>} : vector<256x16xf32>, vector<16x64xf32>, vector<256x64xf32> -> vector<256x64xf32>
    %243 = arith.mulf %242, %241 : vector<256x64xf32>
    %244 = math.exp %243 : vector<256x64xf32>
    %c0_114 = arith.constant 0 : index
    %c0_115 = arith.constant 0 : index
    %245 = vector.load %arg45[%c0_114, %c0_115] : memref<256x64xf32, #tpu.memory_space<vmem>>, vector<256x64xf32>
    tpu.vector_store %arg45[%c0_114, %c0_115], %244 {strides = array<i32>} : memref<256x64xf32, #tpu.memory_space<vmem>>, vector<256x64xf32>,
    %cst_116 = arith.constant dense<0.000000e+00> : vector<256x16xf32>
    %246 = tpu.matmul %35, %237, %cst_116 {dimension_numbers = #tpu.dot_dimension_numbers<[1], [0], [0], [1], [0, 0, 1, 1], [], []>} : vector<256x16xf32>, vector<16x16xf32>, vector<256x16xf32> -> vector<256x16xf32>
    %247 = arith.mulf %27, %246 : vector<256x16xf32>
    %cst_117 = arith.constant dense<0.000000e+00> : vector<256x64xf32>
    %248 = tpu.matmul %247, %238, %cst_117 {dimension_numbers = #tpu.dot_dimension_numbers<[1], [0], [0], [1], [0, 0, 1, 1], [], []>} : vector<256x16xf32>, vector<16x64xf32>, vector<256x64xf32> -> vector<256x64xf32>
    %c0_118 = arith.constant 0 : index
    %c0_119 = arith.constant 0 : index
    %249 = vector.load %arg46[%c0_118, %c0_119] : memref<256x64xf32, #tpu.memory_space<vmem>>, vector<256x64xf32>
    tpu.vector_store %arg46[%c0_118, %c0_119], %248 {strides = array<i32>} : memref<256x64xf32, #tpu.memory_space<vmem>>, vector<256x64xf32>,
    %cst_120 = arith.constant 0.000000e+00 : f32
    %250 = vector.broadcast %cst_120 : f32 to vector<16x64xf32>
    %c0_121 = arith.constant 0 : index
    %c0_122 = arith.constant 0 : index
    %251 = vector.load %arg45[%c0_121, %c0_122] : memref<256x64xf32, #tpu.memory_space<vmem>>, vector<16x64xf32>
    %252 = arith.mulf %251, %250 : vector<16x64xf32>
    %c0_123 = arith.constant 0 : index
    %c0_124 = arith.constant 0 : index
    %253 = vector.load %arg46[%c0_123, %c0_124] : memref<256x64xf32, #tpu.memory_space<vmem>>, vector<16x64xf32>
    %254 = arith.addf %252, %253 : vector<16x64xf32>
    %c0_125 = arith.constant 0 : index
    %c0_126 = arith.constant 0 : index
    %255 = vector.load %arg47[%c0_125, %c0_126] : memref<256x64xf32, #tpu.memory_space<vmem>>, vector<16x64xf32>
    tpu.vector_store %arg47[%c0_125, %c0_126], %254 {strides = array<i32>} : memref<256x64xf32, #tpu.memory_space<vmem>>, vector<16x64xf32>,
    %c16 = arith.constant 16 : index
    %c0_127 = arith.constant 0 : index
    %256 = vector.load %arg45[%c16, %c0_127] : memref<256x64xf32, #tpu.memory_space<vmem>>, vector<16x64xf32>
    %257 = arith.mulf %256, %254 : vector<16x64xf32>
    %c16_128 = arith.constant 16 : index
    %c0_129 = arith.constant 0 : index
    %258 = vector.load %arg46[%c16_128, %c0_129] : memref<256x64xf32, #tpu.memory_space<vmem>>, vector<16x64xf32>
    %259 = arith.addf %257, %258 : vector<16x64xf32>
    %c16_130 = arith.constant 16 : index
    %c0_131 = arith.constant 0 : index
    %260 = vector.load %arg47[%c16_130, %c0_131] : memref<256x64xf32, #tpu.memory_space<vmem>>, vector<16x64xf32>
    tpu.vector_store %arg47[%c16_130, %c0_131], %259 {strides = array<i32>} : memref<256x64xf32, #tpu.memory_space<vmem>>, vector<16x64xf32>,
    %c32 = arith.constant 32 : index
    %c0_132 = arith.constant 0 : index
    %261 = vector.load %arg45[%c32, %c0_132] : memref<256x64xf32, #tpu.memory_space<vmem>>, vector<16x64xf32>
    %262 = arith.mulf %261, %259 : vector<16x64xf32>
    %c32_133 = arith.constant 32 : index
    %c0_134 = arith.constant 0 : index
    %263 = vector.load %arg46[%c32_133, %c0_134] : memref<256x64xf32, #tpu.memory_space<vmem>>, vector<16x64xf32>
    %264 = arith.addf %262, %263 : vector<16x64xf32>
    %c32_135 = arith.constant 32 : index
    %c0_136 = arith.constant 0 : index
    %265 = vector.load %arg47[%c32_135, %c0_136] : memref<256x64xf32, #tpu.memory_space<vmem>>, vector<16x64xf32>
    tpu.vector_store %arg47[%c32_135, %c0_136], %264 {strides = array<i32>} : memref<256x64xf32, #tpu.memory_space<vmem>>, vector<16x64xf32>,
    %c48 = arith.constant 48 : index
    %c0_137 = arith.constant 0 : index
    %266 = vector.load %arg45[%c48, %c0_137] : memref<256x64xf32, #tpu.memory_space<vmem>>, vector<16x64xf32>
    %267 = arith.mulf %266, %264 : vector<16x64xf32>
    %c48_138 = arith.constant 48 : index
    %c0_139 = arith.constant 0 : index
    %268 = vector.load %arg46[%c48_138, %c0_139] : memref<256x64xf32, #tpu.memory_space<vmem>>, vector<16x64xf32>
    %269 = arith.addf %267, %268 : vector<16x64xf32>
    %c48_140 = arith.constant 48 : index
    %c0_141 = arith.constant 0 : index
    %270 = vector.load %arg47[%c48_140, %c0_141] : memref<256x64xf32, #tpu.memory_space<vmem>>, vector<16x64xf32>
    tpu.vector_store %arg47[%c48_140, %c0_141], %269 {strides = array<i32>} : memref<256x64xf32, #tpu.memory_space<vmem>>, vector<16x64xf32>,
    %c64 = arith.constant 64 : index
    %c0_142 = arith.constant 0 : index
    %271 = vector.load %arg45[%c64, %c0_142] : memref<256x64xf32, #tpu.memory_space<vmem>>, vector<16x64xf32>
    %272 = arith.mulf %271, %269 : vector<16x64xf32>
    %c64_143 = arith.constant 64 : index
    %c0_144 = arith.constant 0 : index
    %273 = vector.load %arg46[%c64_143, %c0_144] : memref<256x64xf32, #tpu.memory_space<vmem>>, vector<16x64xf32>
    %274 = arith.addf %272, %273 : vector<16x64xf32>
    %c64_145 = arith.constant 64 : index
    %c0_146 = arith.constant 0 : index
    %275 = vector.load %arg47[%c64_145, %c0_146] : memref<256x64xf32, #tpu.memory_space<vmem>>, vector<16x64xf32>
    tpu.vector_store %arg47[%c64_145, %c0_146], %274 {strides = array<i32>} : memref<256x64xf32, #tpu.memory_space<vmem>>, vector<16x64xf32>,
    %c80 = arith.constant 80 : index
    %c0_147 = arith.constant 0 : index
    %276 = vector.load %arg45[%c80, %c0_147] : memref<256x64xf32, #tpu.memory_space<vmem>>, vector<16x64xf32>
    %277 = arith.mulf %276, %274 : vector<16x64xf32>
    %c80_148 = arith.constant 80 : index
    %c0_149 = arith.constant 0 : index
    %278 = vector.load %arg46[%c80_148, %c0_149] : memref<256x64xf32, #tpu.memory_space<vmem>>, vector<16x64xf32>
    %279 = arith.addf %277, %278 : vector<16x64xf32>
    %c80_150 = arith.constant 80 : index
    %c0_151 = arith.constant 0 : index
    %280 = vector.load %arg47[%c80_150, %c0_151] : memref<256x64xf32, #tpu.memory_space<vmem>>, vector<16x64xf32>
    tpu.vector_store %arg47[%c80_150, %c0_151], %279 {strides = array<i32>} : memref<256x64xf32, #tpu.memory_space<vmem>>, vector<16x64xf32>,
    %c96 = arith.constant 96 : index
    %c0_152 = arith.constant 0 : index
    %281 = vector.load %arg45[%c96, %c0_152] : memref<256x64xf32, #tpu.memory_space<vmem>>, vector<16x64xf32>
    %282 = arith.mulf %281, %279 : vector<16x64xf32>
    %c96_153 = arith.constant 96 : index
    %c0_154 = arith.constant 0 : index
    %283 = vector.load %arg46[%c96_153, %c0_154] : memref<256x64xf32, #tpu.memory_space<vmem>>, vector<16x64xf32>
    %284 = arith.addf %282, %283 : vector<16x64xf32>
    %c96_155 = arith.constant 96 : index
    %c0_156 = arith.constant 0 : index
    %285 = vector.load %arg47[%c96_155, %c0_156] : memref<256x64xf32, #tpu.memory_space<vmem>>, vector<16x64xf32>
    tpu.vector_store %arg47[%c96_155, %c0_156], %284 {strides = array<i32>} : memref<256x64xf32, #tpu.memory_space<vmem>>, vector<16x64xf32>,
    %c112 = arith.constant 112 : index
    %c0_157 = arith.constant 0 : index
    %286 = vector.load %arg45[%c112, %c0_157] : memref<256x64xf32, #tpu.memory_space<vmem>>, vector<16x64xf32>
    %287 = arith.mulf %286, %284 : vector<16x64xf32>
    %c112_158 = arith.constant 112 : index
    %c0_159 = arith.constant 0 : index
    %288 = vector.load %arg46[%c112_158, %c0_159] : memref<256x64xf32, #tpu.memory_space<vmem>>, vector<16x64xf32>
    %289 = arith.addf %287, %288 : vector<16x64xf32>
    %c112_160 = arith.constant 112 : index
    %c0_161 = arith.constant 0 : index
    %290 = vector.load %arg47[%c112_160, %c0_161] : memref<256x64xf32, #tpu.memory_space<vmem>>, vector<16x64xf32>
    tpu.vector_store %arg47[%c112_160, %c0_161], %289 {strides = array<i32>} : memref<256x64xf32, #tpu.memory_space<vmem>>, vector<16x64xf32>,
    %c128 = arith.constant 128 : index
    %c0_162 = arith.constant 0 : index
    %291 = vector.load %arg45[%c128, %c0_162] : memref<256x64xf32, #tpu.memory_space<vmem>>, vector<16x64xf32>
    %292 = arith.mulf %291, %289 : vector<16x64xf32>
    %c128_163 = arith.constant 128 : index
    %c0_164 = arith.constant 0 : index
    %293 = vector.load %arg46[%c128_163, %c0_164] : memref<256x64xf32, #tpu.memory_space<vmem>>, vector<16x64xf32>
    %294 = arith.addf %292, %293 : vector<16x64xf32>
    %c128_165 = arith.constant 128 : index
    %c0_166 = arith.constant 0 : index
    %295 = vector.load %arg47[%c128_165, %c0_166] : memref<256x64xf32, #tpu.memory_space<vmem>>, vector<16x64xf32>
    tpu.vector_store %arg47[%c128_165, %c0_166], %294 {strides = array<i32>} : memref<256x64xf32, #tpu.memory_space<vmem>>, vector<16x64xf32>,
    %c144 = arith.constant 144 : index
    %c0_167 = arith.constant 0 : index
    %296 = vector.load %arg45[%c144, %c0_167] : memref<256x64xf32, #tpu.memory_space<vmem>>, vector<16x64xf32>
    %297 = arith.mulf %296, %294 : vector<16x64xf32>
    %c144_168 = arith.constant 144 : index
    %c0_169 = arith.constant 0 : index
    %298 = vector.load %arg46[%c144_168, %c0_169] : memref<256x64xf32, #tpu.memory_space<vmem>>, vector<16x64xf32>
    %299 = arith.addf %297, %298 : vector<16x64xf32>
    %c144_170 = arith.constant 144 : index
    %c0_171 = arith.constant 0 : index
    %300 = vector.load %arg47[%c144_170, %c0_171] : memref<256x64xf32, #tpu.memory_space<vmem>>, vector<16x64xf32>
    tpu.vector_store %arg47[%c144_170, %c0_171], %299 {strides = array<i32>} : memref<256x64xf32, #tpu.memory_space<vmem>>, vector<16x64xf32>,
    %c160 = arith.constant 160 : index
    %c0_172 = arith.constant 0 : index
    %301 = vector.load %arg45[%c160, %c0_172] : memref<256x64xf32, #tpu.memory_space<vmem>>, vector<16x64xf32>
    %302 = arith.mulf %301, %299 : vector<16x64xf32>
    %c160_173 = arith.constant 160 : index
    %c0_174 = arith.constant 0 : index
    %303 = vector.load %arg46[%c160_173, %c0_174] : memref<256x64xf32, #tpu.memory_space<vmem>>, vector<16x64xf32>
    %304 = arith.addf %302, %303 : vector<16x64xf32>
    %c160_175 = arith.constant 160 : index
    %c0_176 = arith.constant 0 : index
    %305 = vector.load %arg47[%c160_175, %c0_176] : memref<256x64xf32, #tpu.memory_space<vmem>>, vector<16x64xf32>
    tpu.vector_store %arg47[%c160_175, %c0_176], %304 {strides = array<i32>} : memref<256x64xf32, #tpu.memory_space<vmem>>, vector<16x64xf32>,
    %c176 = arith.constant 176 : index
    %c0_177 = arith.constant 0 : index
    %306 = vector.load %arg45[%c176, %c0_177] : memref<256x64xf32, #tpu.memory_space<vmem>>, vector<16x64xf32>
    %307 = arith.mulf %306, %304 : vector<16x64xf32>
    %c176_178 = arith.constant 176 : index
    %c0_179 = arith.constant 0 : index
    %308 = vector.load %arg46[%c176_178, %c0_179] : memref<256x64xf32, #tpu.memory_space<vmem>>, vector<16x64xf32>
    %309 = arith.addf %307, %308 : vector<16x64xf32>
    %c176_180 = arith.constant 176 : index
    %c0_181 = arith.constant 0 : index
    %310 = vector.load %arg47[%c176_180, %c0_181] : memref<256x64xf32, #tpu.memory_space<vmem>>, vector<16x64xf32>
    tpu.vector_store %arg47[%c176_180, %c0_181], %309 {strides = array<i32>} : memref<256x64xf32, #tpu.memory_space<vmem>>, vector<16x64xf32>,
    %c192 = arith.constant 192 : index
    %c0_182 = arith.constant 0 : index
    %311 = vector.load %arg45[%c192, %c0_182] : memref<256x64xf32, #tpu.memory_space<vmem>>, vector<16x64xf32>
    %312 = arith.mulf %311, %309 : vector<16x64xf32>
    %c192_183 = arith.constant 192 : index
    %c0_184 = arith.constant 0 : index
    %313 = vector.load %arg46[%c192_183, %c0_184] : memref<256x64xf32, #tpu.memory_space<vmem>>, vector<16x64xf32>
    %314 = arith.addf %312, %313 : vector<16x64xf32>
    %c192_185 = arith.constant 192 : index
    %c0_186 = arith.constant 0 : index
    %315 = vector.load %arg47[%c192_185, %c0_186] : memref<256x64xf32, #tpu.memory_space<vmem>>, vector<16x64xf32>
    tpu.vector_store %arg47[%c192_185, %c0_186], %314 {strides = array<i32>} : memref<256x64xf32, #tpu.memory_space<vmem>>, vector<16x64xf32>,
    %c208 = arith.constant 208 : index
    %c0_187 = arith.constant 0 : index
    %316 = vector.load %arg45[%c208, %c0_187] : memref<256x64xf32, #tpu.memory_space<vmem>>, vector<16x64xf32>
    %317 = arith.mulf %316, %314 : vector<16x64xf32>
    %c208_188 = arith.constant 208 : index
    %c0_189 = arith.constant 0 : index
    %318 = vector.load %arg46[%c208_188, %c0_189] : memref<256x64xf32, #tpu.memory_space<vmem>>, vector<16x64xf32>
    %319 = arith.addf %317, %318 : vector<16x64xf32>
    %c208_190 = arith.constant 208 : index
    %c0_191 = arith.constant 0 : index
    %320 = vector.load %arg47[%c208_190, %c0_191] : memref<256x64xf32, #tpu.memory_space<vmem>>, vector<16x64xf32>
    tpu.vector_store %arg47[%c208_190, %c0_191], %319 {strides = array<i32>} : memref<256x64xf32, #tpu.memory_space<vmem>>, vector<16x64xf32>,
    %c224 = arith.constant 224 : index
    %c0_192 = arith.constant 0 : index
    %321 = vector.load %arg45[%c224, %c0_192] : memref<256x64xf32, #tpu.memory_space<vmem>>, vector<16x64xf32>
    %322 = arith.mulf %321, %319 : vector<16x64xf32>
    %c224_193 = arith.constant 224 : index
    %c0_194 = arith.constant 0 : index
    %323 = vector.load %arg46[%c224_193, %c0_194] : memref<256x64xf32, #tpu.memory_space<vmem>>, vector<16x64xf32>
    %324 = arith.addf %322, %323 : vector<16x64xf32>
    %c224_195 = arith.constant 224 : index
    %c0_196 = arith.constant 0 : index
    %325 = vector.load %arg47[%c224_195, %c0_196] : memref<256x64xf32, #tpu.memory_space<vmem>>, vector<16x64xf32>
    tpu.vector_store %arg47[%c224_195, %c0_196], %324 {strides = array<i32>} : memref<256x64xf32, #tpu.memory_space<vmem>>, vector<16x64xf32>,
    %c240 = arith.constant 240 : index
    %c0_197 = arith.constant 0 : index
    %326 = vector.load %arg45[%c240, %c0_197] : memref<256x64xf32, #tpu.memory_space<vmem>>, vector<16x64xf32>
    %327 = arith.mulf %326, %324 : vector<16x64xf32>
    %c240_198 = arith.constant 240 : index
    %c0_199 = arith.constant 0 : index
    %328 = vector.load %arg46[%c240_198, %c0_199] : memref<256x64xf32, #tpu.memory_space<vmem>>, vector<16x64xf32>
    %329 = arith.addf %327, %328 : vector<16x64xf32>
    %c240_200 = arith.constant 240 : index
    %c0_201 = arith.constant 0 : index
    %330 = vector.load %arg47[%c240_200, %c0_201] : memref<256x64xf32, #tpu.memory_space<vmem>>, vector<16x64xf32>
    tpu.vector_store %arg47[%c240_200, %c0_201], %329 {strides = array<i32>} : memref<256x64xf32, #tpu.memory_space<vmem>>, vector<16x64xf32>,
    %cst_202 = arith.constant dense<0.000000e+00> : vector<16x256xf32>
    %331 = tpu.matmul %234, %43, %cst_202 {dimension_numbers = #tpu.dot_dimension_numbers<[1], [0], [0], [1], [0, 0, 1, 1], [], []>} : vector<16x16xf32>, vector<16x256xf32>, vector<16x256xf32> -> vector<16x256xf32>
    %cst_203 = arith.constant 0.000000e+00 : f32
    %332 = vector.broadcast %cst_203 : f32 to vector<16x256xf32>
    %333 = arith.select %48, %331, %332 : vector<16x256xi1>, vector<16x256xf32>
    %c0_204 = arith.constant 0 : index
    %c0_205 = arith.constant 0 : index
    %334 = vector.load %arg47[%c0_204, %c0_205] : memref<256x64xf32, #tpu.memory_space<vmem>>, vector<256x64xf32>
    %cst_206 = arith.constant dense<0.000000e+00> : vector<16x64xf32>
    %335 = tpu.matmul %333, %334, %cst_206 {dimension_numbers = #tpu.dot_dimension_numbers<[1], [0], [0], [1], [0, 0, 1, 1], [], []>} : vector<16x256xf32>, vector<256x64xf32>, vector<16x64xf32> -> vector<16x64xf32>
    %c0_207 = arith.constant 0 : index
    %c0_208 = arith.constant 0 : index
    %c0_209 = arith.constant 0 : index
    %336 = vector.load %arg23[%c0_207, %c0_208, %c0_209] : memref<2x1x64xf32, #tpu.memory_space<vmem>>, vector<1x1x64xf32>
    %337 = vector.shape_cast %336 : vector<1x1x64xf32> to vector<1x64xf32>
    %338 = vector.broadcast %337 : vector<1x64xf32> to vector<16x64xf32>
    %339 = arith.mulf %207, %338 : vector<16x64xf32>
    %340 = arith.addf %335, %339 : vector<16x64xf32>
    %341 = arith.mulf %340, %208 : vector<16x64xf32>
    %c0_210 = arith.constant 0 : index
    %c0_211 = arith.constant 0 : index
    %c0_212 = arith.constant 0 : index
    %342 = vector.load %arg24[%c0_210, %c0_211, %c0_212] : memref<2x64x32xf32, #tpu.memory_space<vmem>>, vector<1x64x32xf32>
    %343 = vector.shape_cast %342 : vector<1x64x32xf32> to vector<64x32xf32>
    %cst_213 = arith.constant dense<0.000000e+00> : vector<16x32xf32>
    %344 = tpu.matmul %341, %343, %cst_213 {dimension_numbers = #tpu.dot_dimension_numbers<[1], [0], [0], [1], [0, 0, 1, 1], [], []>} : vector<16x64xf32>, vector<64x32xf32>, vector<16x32xf32> -> vector<16x32xf32>
    %345 = arith.addf %344, %149 : vector<16x32xf32>
    %c1 = arith.constant 1 : index
    %c0_214 = arith.constant 0 : index
    %c0_215 = arith.constant 0 : index
    %346 = vector.load %arg13[%c1, %c0_214, %c0_215] : memref<2x1x32xf32, #tpu.memory_space<vmem>>, vector<1x1x32xf32>
    %347 = vector.shape_cast %346 : vector<1x1x32xf32> to vector<1x32xf32>
    %c1_216 = arith.constant 1 : index
    %c0_217 = arith.constant 0 : index
    %c0_218 = arith.constant 0 : index
    %348 = vector.load %arg14[%c1_216, %c0_217, %c0_218] : memref<2x1x32xf32, #tpu.memory_space<vmem>>, vector<1x1x32xf32>
    %349 = vector.shape_cast %348 : vector<1x1x32xf32> to vector<1x32xf32>
    %cst_219 = arith.constant dense<0.000000e+00> : vector<16xf32>
    %350 = vector.multi_reduction <add>, %345, %cst_219 [1] : vector<16x32xf32> to vector<16xf32>
    %351 = vector.shape_cast %350 : vector<16xf32> to vector<16x1xf32>
    %cst_220 = arith.constant 3.200000e+01 : f32
    %352 = vector.broadcast %cst_220 : f32 to vector<16x1xf32>
    %353 = arith.divf %351, %352 : vector<16x1xf32>
    %354 = vector.broadcast %353 : vector<16x1xf32> to vector<16x32xf32>
    %355 = arith.subf %345, %354 : vector<16x32xf32>
    %356 = arith.mulf %355, %355 : vector<16x32xf32>
    %cst_221 = arith.constant dense<0.000000e+00> : vector<16xf32>
    %357 = vector.multi_reduction <add>, %356, %cst_221 [1] : vector<16x32xf32> to vector<16xf32>
    %358 = vector.shape_cast %357 : vector<16xf32> to vector<16x1xf32>
    %cst_222 = arith.constant 3.200000e+01 : f32
    %359 = vector.broadcast %cst_222 : f32 to vector<16x1xf32>
    %360 = arith.divf %358, %359 : vector<16x1xf32>
    %cst_223 = arith.constant 9.99999974E-6 : f32
    %361 = vector.broadcast %cst_223 : f32 to vector<16x1xf32>
    %362 = arith.addf %360, %361 : vector<16x1xf32>
    %363 = math.rsqrt %362 : vector<16x1xf32>
    %364 = vector.broadcast %363 : vector<16x1xf32> to vector<16x32xf32>
    %365 = arith.mulf %355, %364 : vector<16x32xf32>
    %366 = vector.broadcast %347 : vector<1x32xf32> to vector<16x32xf32>
    %367 = arith.mulf %365, %366 : vector<16x32xf32>
    %368 = vector.broadcast %349 : vector<1x32xf32> to vector<16x32xf32>
    %369 = arith.addf %367, %368 : vector<16x32xf32>
    %c1_224 = arith.constant 1 : index
    %c0_225 = arith.constant 0 : index
    %c0_226 = arith.constant 0 : index
    %370 = vector.load %arg15[%c1_224, %c0_225, %c0_226] : memref<2x32x128xf32, #tpu.memory_space<vmem>>, vector<1x32x128xf32>
    %371 = vector.shape_cast %370 : vector<1x32x128xf32> to vector<32x128xf32>
    %cst_227 = arith.constant dense<0.000000e+00> : vector<16x128xf32>
    %372 = tpu.matmul %369, %371, %cst_227 {dimension_numbers = #tpu.dot_dimension_numbers<[1], [0], [0], [1], [0, 0, 1, 1], [], []>} : vector<16x32xf32>, vector<32x128xf32>, vector<16x128xf32> -> vector<16x128xf32>
    %c1_228 = arith.constant 1 : index
    %c0_229 = arith.constant 0 : index
    %c0_230 = arith.constant 0 : index
    %373 = vector.load %arg16[%c1_228, %c0_229, %c0_230] : memref<2x4x128xf32, #tpu.memory_space<vmem>>, vector<1x4x128xf32>
    %374 = vector.shape_cast %373 : vector<1x4x128xf32> to vector<4x128xf32>
    %375 = vector.extract_strided_slice %374 {offsets = [3, 0], sizes = [1, 128], strides = [1, 1]} : vector<4x128xf32> to vector<1x128xf32>
    %376 = vector.broadcast %375 : vector<1x128xf32> to vector<16x128xf32>
    %377 = arith.mulf %372, %376 : vector<16x128xf32>
    %c1_231 = arith.constant 1 : index
    %c0_232 = arith.constant 0 : index
    %c0_233 = arith.constant 0 : index
    %378 = vector.load %arg17[%c1_231, %c0_232, %c0_233] : memref<2x1x128xf32, #tpu.memory_space<vmem>>, vector<1x1x128xf32>
    %379 = vector.shape_cast %378 : vector<1x1x128xf32> to vector<1x128xf32>
    %380 = vector.broadcast %379 : vector<1x128xf32> to vector<16x128xf32>
    %381 = arith.addf %377, %380 : vector<16x128xf32>
    %cst_234 = arith.constant dense<0.000000e+00> : vector<16x128xf32>
    %382 = tpu.matmul %7, %372, %cst_234 {dimension_numbers = #tpu.dot_dimension_numbers<[1], [0], [0], [1], [0, 0, 1, 1], [], []>} : vector<16x16xf32>, vector<16x128xf32>, vector<16x128xf32> -> vector<16x128xf32>
    %383 = vector.extract_strided_slice %374 {offsets = [2, 0], sizes = [1, 128], strides = [1, 1]} : vector<4x128xf32> to vector<1x128xf32>
    %384 = vector.broadcast %383 : vector<1x128xf32> to vector<16x128xf32>
    %385 = arith.mulf %382, %384 : vector<16x128xf32>
    %386 = arith.addf %381, %385 : vector<16x128xf32>
    %cst_235 = arith.constant dense<0.000000e+00> : vector<16x128xf32>
    %387 = tpu.matmul %13, %372, %cst_235 {dimension_numbers = #tpu.dot_dimension_numbers<[1], [0], [0], [1], [0, 0, 1, 1], [], []>} : vector<16x16xf32>, vector<16x128xf32>, vector<16x128xf32> -> vector<16x128xf32>
    %388 = vector.extract_strided_slice %374 {offsets = [1, 0], sizes = [1, 128], strides = [1, 1]} : vector<4x128xf32> to vector<1x128xf32>
    %389 = vector.broadcast %388 : vector<1x128xf32> to vector<16x128xf32>
    %390 = arith.mulf %387, %389 : vector<16x128xf32>
    %391 = arith.addf %386, %390 : vector<16x128xf32>
    %cst_236 = arith.constant dense<0.000000e+00> : vector<16x128xf32>
    %392 = tpu.matmul %19, %372, %cst_236 {dimension_numbers = #tpu.dot_dimension_numbers<[1], [0], [0], [1], [0, 0, 1, 1], [], []>} : vector<16x16xf32>, vector<16x128xf32>, vector<16x128xf32> -> vector<16x128xf32>
    %393 = vector.extract_strided_slice %374 {offsets = [0, 0], sizes = [1, 128], strides = [1, 1]} : vector<4x128xf32> to vector<1x128xf32>
    %394 = vector.broadcast %393 : vector<1x128xf32> to vector<16x128xf32>
    %395 = arith.mulf %392, %394 : vector<16x128xf32>
    %396 = arith.addf %391, %395 : vector<16x128xf32>
    %397 = arith.negf %396 : vector<16x128xf32>
    %398 = math.exp %397 : vector<16x128xf32>
    %cst_237 = arith.constant 1.000000e+00 : f32
    %399 = vector.broadcast %cst_237 : f32 to vector<16x128xf32>
    %400 = arith.addf %399, %398 : vector<16x128xf32>
    %401 = arith.divf %399, %400 : vector<16x128xf32>
    %402 = arith.mulf %396, %401 : vector<16x128xf32>
    %403 = vector.extract_strided_slice %402 {offsets = [0, 0], sizes = [16, 64], strides = [1, 1]} : vector<16x128xf32> to vector<16x64xf32>
    %404 = vector.extract_strided_slice %402 {offsets = [0, 64], sizes = [16, 64], strides = [1, 1]} : vector<16x128xf32> to vector<16x64xf32>
    %c1_238 = arith.constant 1 : index
    %c0_239 = arith.constant 0 : index
    %c0_240 = arith.constant 0 : index
    %405 = vector.load %arg18[%c1_238, %c0_239, %c0_240] : memref<2x64x18xf32, #tpu.memory_space<vmem>>, vector<1x64x18xf32>
    %406 = vector.shape_cast %405 : vector<1x64x18xf32> to vector<64x18xf32>
    %cst_241 = arith.constant dense<0.000000e+00> : vector<16x18xf32>
    %407 = tpu.matmul %403, %406, %cst_241 {dimension_numbers = #tpu.dot_dimension_numbers<[1], [0], [0], [1], [0, 0, 1, 1], [], []>} : vector<16x64xf32>, vector<64x18xf32>, vector<16x18xf32> -> vector<16x18xf32>
    %408 = vector.extract_strided_slice %407 {offsets = [0, 0], sizes = [16, 2], strides = [1, 1]} : vector<16x18xf32> to vector<16x2xf32>
    %c1_242 = arith.constant 1 : index
    %c0_243 = arith.constant 0 : index
    %c0_244 = arith.constant 0 : index
    %409 = vector.load %arg20[%c1_242, %c0_243, %c0_244] : memref<2x2x64xf32, #tpu.memory_space<vmem>>, vector<1x2x64xf32>
    %410 = vector.shape_cast %409 : vector<1x2x64xf32> to vector<2x64xf32>
    %cst_245 = arith.constant dense<0.000000e+00> : vector<16x64xf32>
    %411 = tpu.matmul %408, %410, %cst_245 {dimension_numbers = #tpu.dot_dimension_numbers<[1], [0], [0], [1], [0, 0, 1, 1], [], []>} : vector<16x2xf32>, vector<2x64xf32>, vector<16x64xf32> -> vector<16x64xf32>
    %c1_246 = arith.constant 1 : index
    %c0_247 = arith.constant 0 : index
    %c0_248 = arith.constant 0 : index
    %412 = vector.load %arg21[%c1_246, %c0_247, %c0_248] : memref<2x1x64xf32, #tpu.memory_space<vmem>>, vector<1x1x64xf32>
    %413 = vector.shape_cast %412 : vector<1x1x64xf32> to vector<1x64xf32>
    %414 = vector.broadcast %413 : vector<1x64xf32> to vector<16x64xf32>
    %415 = arith.addf %411, %414 : vector<16x64xf32>
    %cst_249 = arith.constant 0.000000e+00 : f32
    %416 = vector.broadcast %cst_249 : f32 to vector<16x64xf32>
    %417 = arith.maximumf %415, %416 : vector<16x64xf32>
    %418 = vector.broadcast %cst_249 : f32 to vector<16x64xf32>
    %419 = arith.subf %415, %418 : vector<16x64xf32>
    %420 = arith.cmpf one, %419, %419 : vector<16x64xf32>
    %421 = vector.broadcast %cst_249 : f32 to vector<16x64xf32>
    %422 = arith.addf %415, %421 : vector<16x64xf32>
    %423 = math.absf %419 : vector<16x64xf32>
    %cst_250 = arith.constant 0.000000e+00 : f32
    %424 = vector.broadcast %cst_250 : f32 to vector<16x64xf32>
    %425 = arith.subf %424, %423 : vector<16x64xf32>
    %426 = math.exp %425 : vector<16x64xf32>
    %427 = math.log1p %426 : vector<16x64xf32>
    %428 = arith.addf %417, %427 : vector<16x64xf32>
    %429 = arith.select %420, %422, %428 : vector<16x64xi1>, vector<16x64xf32>
    %430 = vector.extract_strided_slice %407 {offsets = [0, 2], sizes = [16, 16], strides = [1, 1]} : vector<16x18xf32> to vector<16x16xf32>
    %c1_251 = arith.constant 1 : index
    %c0_252 = arith.constant 0 : index
    %c0_253 = arith.constant 0 : index
    %431 = vector.load %arg19[%c1_251, %c0_252, %c0_253] : memref<2x16x64xf32, #tpu.memory_space<vmem>>, vector<1x16x64xf32>
    %432 = vector.shape_cast %431 : vector<1x16x64xf32> to vector<16x64xf32>
    "tpu.trace_start"() <{level = 10 : i32, message = "sd,ld->sl"}> : () -> ()
    %cst_254 = arith.constant dense<0.000000e+00> : vector<16x16xf32>
    %433 = tpu.matmul %432, %403, %cst_254 {dimension_numbers = #tpu.dot_dimension_numbers<[1], [1], [0], [0], [0, 0, 1, 0], [], []>} : vector<16x64xf32>, vector<16x64xf32>, vector<16x16xf32> -> vector<16x16xf32>
    "tpu.trace_stop"() : () -> ()
    %434 = arith.mulf %429, %403 : vector<16x64xf32>
    %c1_255 = arith.constant 1 : index
    %c0_256 = arith.constant 0 : index
    %c0_257 = arith.constant 0 : index
    %435 = vector.load %arg22[%c1_255, %c0_256, %c0_257] : memref<2x16x64xf32, #tpu.memory_space<vmem>>, vector<1x16x64xf32>
    %436 = vector.shape_cast %435 : vector<1x16x64xf32> to vector<16x64xf32>
    %cst_258 = arith.constant dense<0.000000e+00> : vector<256x64xf32>
    %437 = tpu.matmul %35, %436, %cst_258 {dimension_numbers = #tpu.dot_dimension_numbers<[1], [0], [0], [1], [0, 0, 1, 1], [], []>} : vector<256x16xf32>, vector<16x64xf32>, vector<256x64xf32> -> vector<256x64xf32>
    %cst_259 = arith.constant dense<0.000000e+00> : vector<256x64xf32>
    %438 = tpu.matmul %27, %429, %cst_259 {dimension_numbers = #tpu.dot_dimension_numbers<[1], [0], [0], [1], [0, 0, 1, 1], [], []>} : vector<256x16xf32>, vector<16x64xf32>, vector<256x64xf32> -> vector<256x64xf32>
    %439 = arith.mulf %438, %437 : vector<256x64xf32>
    %440 = math.exp %439 : vector<256x64xf32>
    %c0_260 = arith.constant 0 : index
    %c0_261 = arith.constant 0 : index
    %441 = vector.load %arg45[%c0_260, %c0_261] : memref<256x64xf32, #tpu.memory_space<vmem>>, vector<256x64xf32>
    tpu.vector_store %arg45[%c0_260, %c0_261], %440 {strides = array<i32>} : memref<256x64xf32, #tpu.memory_space<vmem>>, vector<256x64xf32>,
    %cst_262 = arith.constant dense<0.000000e+00> : vector<256x16xf32>
    %442 = tpu.matmul %35, %433, %cst_262 {dimension_numbers = #tpu.dot_dimension_numbers<[1], [0], [0], [1], [0, 0, 1, 1], [], []>} : vector<256x16xf32>, vector<16x16xf32>, vector<256x16xf32> -> vector<256x16xf32>
    %443 = arith.mulf %27, %442 : vector<256x16xf32>
    %cst_263 = arith.constant dense<0.000000e+00> : vector<256x64xf32>
    %444 = tpu.matmul %443, %434, %cst_263 {dimension_numbers = #tpu.dot_dimension_numbers<[1], [0], [0], [1], [0, 0, 1, 1], [], []>} : vector<256x16xf32>, vector<16x64xf32>, vector<256x64xf32> -> vector<256x64xf32>
    %c0_264 = arith.constant 0 : index
    %c0_265 = arith.constant 0 : index
    %445 = vector.load %arg46[%c0_264, %c0_265] : memref<256x64xf32, #tpu.memory_space<vmem>>, vector<256x64xf32>
    tpu.vector_store %arg46[%c0_264, %c0_265], %444 {strides = array<i32>} : memref<256x64xf32, #tpu.memory_space<vmem>>, vector<256x64xf32>,
    %cst_266 = arith.constant 0.000000e+00 : f32
    %446 = vector.broadcast %cst_266 : f32 to vector<16x64xf32>
    %c0_267 = arith.constant 0 : index
    %c0_268 = arith.constant 0 : index
    %447 = vector.load %arg45[%c0_267, %c0_268] : memref<256x64xf32, #tpu.memory_space<vmem>>, vector<16x64xf32>
    %448 = arith.mulf %447, %446 : vector<16x64xf32>
    %c0_269 = arith.constant 0 : index
    %c0_270 = arith.constant 0 : index
    %449 = vector.load %arg46[%c0_269, %c0_270] : memref<256x64xf32, #tpu.memory_space<vmem>>, vector<16x64xf32>
    %450 = arith.addf %448, %449 : vector<16x64xf32>
    %c0_271 = arith.constant 0 : index
    %c0_272 = arith.constant 0 : index
    %451 = vector.load %arg47[%c0_271, %c0_272] : memref<256x64xf32, #tpu.memory_space<vmem>>, vector<16x64xf32>
    tpu.vector_store %arg47[%c0_271, %c0_272], %450 {strides = array<i32>} : memref<256x64xf32, #tpu.memory_space<vmem>>, vector<16x64xf32>,
    %c16_273 = arith.constant 16 : index
    %c0_274 = arith.constant 0 : index
    %452 = vector.load %arg45[%c16_273, %c0_274] : memref<256x64xf32, #tpu.memory_space<vmem>>, vector<16x64xf32>
    %453 = arith.mulf %452, %450 : vector<16x64xf32>
    %c16_275 = arith.constant 16 : index
    %c0_276 = arith.constant 0 : index
    %454 = vector.load %arg46[%c16_275, %c0_276] : memref<256x64xf32, #tpu.memory_space<vmem>>, vector<16x64xf32>
    %455 = arith.addf %453, %454 : vector<16x64xf32>
    %c16_277 = arith.constant 16 : index
    %c0_278 = arith.constant 0 : index
    %456 = vector.load %arg47[%c16_277, %c0_278] : memref<256x64xf32, #tpu.memory_space<vmem>>, vector<16x64xf32>
    tpu.vector_store %arg47[%c16_277, %c0_278], %455 {strides = array<i32>} : memref<256x64xf32, #tpu.memory_space<vmem>>, vector<16x64xf32>,
    %c32_279 = arith.constant 32 : index
    %c0_280 = arith.constant 0 : index
    %457 = vector.load %arg45[%c32_279, %c0_280] : memref<256x64xf32, #tpu.memory_space<vmem>>, vector<16x64xf32>
    %458 = arith.mulf %457, %455 : vector<16x64xf32>
    %c32_281 = arith.constant 32 : index
    %c0_282 = arith.constant 0 : index
    %459 = vector.load %arg46[%c32_281, %c0_282] : memref<256x64xf32, #tpu.memory_space<vmem>>, vector<16x64xf32>
    %460 = arith.addf %458, %459 : vector<16x64xf32>
    %c32_283 = arith.constant 32 : index
    %c0_284 = arith.constant 0 : index
    %461 = vector.load %arg47[%c32_283, %c0_284] : memref<256x64xf32, #tpu.memory_space<vmem>>, vector<16x64xf32>
    tpu.vector_store %arg47[%c32_283, %c0_284], %460 {strides = array<i32>} : memref<256x64xf32, #tpu.memory_space<vmem>>, vector<16x64xf32>,
    %c48_285 = arith.constant 48 : index
    %c0_286 = arith.constant 0 : index
    %462 = vector.load %arg45[%c48_285, %c0_286] : memref<256x64xf32, #tpu.memory_space<vmem>>, vector<16x64xf32>
    %463 = arith.mulf %462, %460 : vector<16x64xf32>
    %c48_287 = arith.constant 48 : index
    %c0_288 = arith.constant 0 : index
    %464 = vector.load %arg46[%c48_287, %c0_288] : memref<256x64xf32, #tpu.memory_space<vmem>>, vector<16x64xf32>
    %465 = arith.addf %463, %464 : vector<16x64xf32>
    %c48_289 = arith.constant 48 : index
    %c0_290 = arith.constant 0 : index
    %466 = vector.load %arg47[%c48_289, %c0_290] : memref<256x64xf32, #tpu.memory_space<vmem>>, vector<16x64xf32>
    tpu.vector_store %arg47[%c48_289, %c0_290], %465 {strides = array<i32>} : memref<256x64xf32, #tpu.memory_space<vmem>>, vector<16x64xf32>,
    %c64_291 = arith.constant 64 : index
    %c0_292 = arith.constant 0 : index
    %467 = vector.load %arg45[%c64_291, %c0_292] : memref<256x64xf32, #tpu.memory_space<vmem>>, vector<16x64xf32>
    %468 = arith.mulf %467, %465 : vector<16x64xf32>
    %c64_293 = arith.constant 64 : index
    %c0_294 = arith.constant 0 : index
    %469 = vector.load %arg46[%c64_293, %c0_294] : memref<256x64xf32, #tpu.memory_space<vmem>>, vector<16x64xf32>
    %470 = arith.addf %468, %469 : vector<16x64xf32>
    %c64_295 = arith.constant 64 : index
    %c0_296 = arith.constant 0 : index
    %471 = vector.load %arg47[%c64_295, %c0_296] : memref<256x64xf32, #tpu.memory_space<vmem>>, vector<16x64xf32>
    tpu.vector_store %arg47[%c64_295, %c0_296], %470 {strides = array<i32>} : memref<256x64xf32, #tpu.memory_space<vmem>>, vector<16x64xf32>,
    %c80_297 = arith.constant 80 : index
    %c0_298 = arith.constant 0 : index
    %472 = vector.load %arg45[%c80_297, %c0_298] : memref<256x64xf32, #tpu.memory_space<vmem>>, vector<16x64xf32>
    %473 = arith.mulf %472, %470 : vector<16x64xf32>
    %c80_299 = arith.constant 80 : index
    %c0_300 = arith.constant 0 : index
    %474 = vector.load %arg46[%c80_299, %c0_300] : memref<256x64xf32, #tpu.memory_space<vmem>>, vector<16x64xf32>
    %475 = arith.addf %473, %474 : vector<16x64xf32>
    %c80_301 = arith.constant 80 : index
    %c0_302 = arith.constant 0 : index
    %476 = vector.load %arg47[%c80_301, %c0_302] : memref<256x64xf32, #tpu.memory_space<vmem>>, vector<16x64xf32>
    tpu.vector_store %arg47[%c80_301, %c0_302], %475 {strides = array<i32>} : memref<256x64xf32, #tpu.memory_space<vmem>>, vector<16x64xf32>,
    %c96_303 = arith.constant 96 : index
    %c0_304 = arith.constant 0 : index
    %477 = vector.load %arg45[%c96_303, %c0_304] : memref<256x64xf32, #tpu.memory_space<vmem>>, vector<16x64xf32>
    %478 = arith.mulf %477, %475 : vector<16x64xf32>
    %c96_305 = arith.constant 96 : index
    %c0_306 = arith.constant 0 : index
    %479 = vector.load %arg46[%c96_305, %c0_306] : memref<256x64xf32, #tpu.memory_space<vmem>>, vector<16x64xf32>
    %480 = arith.addf %478, %479 : vector<16x64xf32>
    %c96_307 = arith.constant 96 : index
    %c0_308 = arith.constant 0 : index
    %481 = vector.load %arg47[%c96_307, %c0_308] : memref<256x64xf32, #tpu.memory_space<vmem>>, vector<16x64xf32>
    tpu.vector_store %arg47[%c96_307, %c0_308], %480 {strides = array<i32>} : memref<256x64xf32, #tpu.memory_space<vmem>>, vector<16x64xf32>,
    %c112_309 = arith.constant 112 : index
    %c0_310 = arith.constant 0 : index
    %482 = vector.load %arg45[%c112_309, %c0_310] : memref<256x64xf32, #tpu.memory_space<vmem>>, vector<16x64xf32>
    %483 = arith.mulf %482, %480 : vector<16x64xf32>
    %c112_311 = arith.constant 112 : index
    %c0_312 = arith.constant 0 : index
    %484 = vector.load %arg46[%c112_311, %c0_312] : memref<256x64xf32, #tpu.memory_space<vmem>>, vector<16x64xf32>
    %485 = arith.addf %483, %484 : vector<16x64xf32>
    %c112_313 = arith.constant 112 : index
    %c0_314 = arith.constant 0 : index
    %486 = vector.load %arg47[%c112_313, %c0_314] : memref<256x64xf32, #tpu.memory_space<vmem>>, vector<16x64xf32>
    tpu.vector_store %arg47[%c112_313, %c0_314], %485 {strides = array<i32>} : memref<256x64xf32, #tpu.memory_space<vmem>>, vector<16x64xf32>,
    %c128_315 = arith.constant 128 : index
    %c0_316 = arith.constant 0 : index
    %487 = vector.load %arg45[%c128_315, %c0_316] : memref<256x64xf32, #tpu.memory_space<vmem>>, vector<16x64xf32>
    %488 = arith.mulf %487, %485 : vector<16x64xf32>
    %c128_317 = arith.constant 128 : index
    %c0_318 = arith.constant 0 : index
    %489 = vector.load %arg46[%c128_317, %c0_318] : memref<256x64xf32, #tpu.memory_space<vmem>>, vector<16x64xf32>
    %490 = arith.addf %488, %489 : vector<16x64xf32>
    %c128_319 = arith.constant 128 : index
    %c0_320 = arith.constant 0 : index
    %491 = vector.load %arg47[%c128_319, %c0_320] : memref<256x64xf32, #tpu.memory_space<vmem>>, vector<16x64xf32>
    tpu.vector_store %arg47[%c128_319, %c0_320], %490 {strides = array<i32>} : memref<256x64xf32, #tpu.memory_space<vmem>>, vector<16x64xf32>,
    %c144_321 = arith.constant 144 : index
    %c0_322 = arith.constant 0 : index
    %492 = vector.load %arg45[%c144_321, %c0_322] : memref<256x64xf32, #tpu.memory_space<vmem>>, vector<16x64xf32>
    %493 = arith.mulf %492, %490 : vector<16x64xf32>
    %c144_323 = arith.constant 144 : index
    %c0_324 = arith.constant 0 : index
    %494 = vector.load %arg46[%c144_323, %c0_324] : memref<256x64xf32, #tpu.memory_space<vmem>>, vector<16x64xf32>
    %495 = arith.addf %493, %494 : vector<16x64xf32>
    %c144_325 = arith.constant 144 : index
    %c0_326 = arith.constant 0 : index
    %496 = vector.load %arg47[%c144_325, %c0_326] : memref<256x64xf32, #tpu.memory_space<vmem>>, vector<16x64xf32>
    tpu.vector_store %arg47[%c144_325, %c0_326], %495 {strides = array<i32>} : memref<256x64xf32, #tpu.memory_space<vmem>>, vector<16x64xf32>,
    %c160_327 = arith.constant 160 : index
    %c0_328 = arith.constant 0 : index
    %497 = vector.load %arg45[%c160_327, %c0_328] : memref<256x64xf32, #tpu.memory_space<vmem>>, vector<16x64xf32>
    %498 = arith.mulf %497, %495 : vector<16x64xf32>
    %c160_329 = arith.constant 160 : index
    %c0_330 = arith.constant 0 : index
    %499 = vector.load %arg46[%c160_329, %c0_330] : memref<256x64xf32, #tpu.memory_space<vmem>>, vector<16x64xf32>
    %500 = arith.addf %498, %499 : vector<16x64xf32>
    %c160_331 = arith.constant 160 : index
    %c0_332 = arith.constant 0 : index
    %501 = vector.load %arg47[%c160_331, %c0_332] : memref<256x64xf32, #tpu.memory_space<vmem>>, vector<16x64xf32>
    tpu.vector_store %arg47[%c160_331, %c0_332], %500 {strides = array<i32>} : memref<256x64xf32, #tpu.memory_space<vmem>>, vector<16x64xf32>,
    %c176_333 = arith.constant 176 : index
    %c0_334 = arith.constant 0 : index
    %502 = vector.load %arg45[%c176_333, %c0_334] : memref<256x64xf32, #tpu.memory_space<vmem>>, vector<16x64xf32>
    %503 = arith.mulf %502, %500 : vector<16x64xf32>
    %c176_335 = arith.constant 176 : index
    %c0_336 = arith.constant 0 : index
    %504 = vector.load %arg46[%c176_335, %c0_336] : memref<256x64xf32, #tpu.memory_space<vmem>>, vector<16x64xf32>
    %505 = arith.addf %503, %504 : vector<16x64xf32>
    %c176_337 = arith.constant 176 : index
    %c0_338 = arith.constant 0 : index
    %506 = vector.load %arg47[%c176_337, %c0_338] : memref<256x64xf32, #tpu.memory_space<vmem>>, vector<16x64xf32>
    tpu.vector_store %arg47[%c176_337, %c0_338], %505 {strides = array<i32>} : memref<256x64xf32, #tpu.memory_space<vmem>>, vector<16x64xf32>,
    %c192_339 = arith.constant 192 : index
    %c0_340 = arith.constant 0 : index
    %507 = vector.load %arg45[%c192_339, %c0_340] : memref<256x64xf32, #tpu.memory_space<vmem>>, vector<16x64xf32>
    %508 = arith.mulf %507, %505 : vector<16x64xf32>
    %c192_341 = arith.constant 192 : index
    %c0_342 = arith.constant 0 : index
    %509 = vector.load %arg46[%c192_341, %c0_342] : memref<256x64xf32, #tpu.memory_space<vmem>>, vector<16x64xf32>
    %510 = arith.addf %508, %509 : vector<16x64xf32>
    %c192_343 = arith.constant 192 : index
    %c0_344 = arith.constant 0 : index
    %511 = vector.load %arg47[%c192_343, %c0_344] : memref<256x64xf32, #tpu.memory_space<vmem>>, vector<16x64xf32>
    tpu.vector_store %arg47[%c192_343, %c0_344], %510 {strides = array<i32>} : memref<256x64xf32, #tpu.memory_space<vmem>>, vector<16x64xf32>,
    %c208_345 = arith.constant 208 : index
    %c0_346 = arith.constant 0 : index
    %512 = vector.load %arg45[%c208_345, %c0_346] : memref<256x64xf32, #tpu.memory_space<vmem>>, vector<16x64xf32>
    %513 = arith.mulf %512, %510 : vector<16x64xf32>
    %c208_347 = arith.constant 208 : index
    %c0_348 = arith.constant 0 : index
    %514 = vector.load %arg46[%c208_347, %c0_348] : memref<256x64xf32, #tpu.memory_space<vmem>>, vector<16x64xf32>
    %515 = arith.addf %513, %514 : vector<16x64xf32>
    %c208_349 = arith.constant 208 : index
    %c0_350 = arith.constant 0 : index
    %516 = vector.load %arg47[%c208_349, %c0_350] : memref<256x64xf32, #tpu.memory_space<vmem>>, vector<16x64xf32>
    tpu.vector_store %arg47[%c208_349, %c0_350], %515 {strides = array<i32>} : memref<256x64xf32, #tpu.memory_space<vmem>>, vector<16x64xf32>,
    %c224_351 = arith.constant 224 : index
    %c0_352 = arith.constant 0 : index
    %517 = vector.load %arg45[%c224_351, %c0_352] : memref<256x64xf32, #tpu.memory_space<vmem>>, vector<16x64xf32>
    %518 = arith.mulf %517, %515 : vector<16x64xf32>
    %c224_353 = arith.constant 224 : index
    %c0_354 = arith.constant 0 : index
    %519 = vector.load %arg46[%c224_353, %c0_354] : memref<256x64xf32, #tpu.memory_space<vmem>>, vector<16x64xf32>
    %520 = arith.addf %518, %519 : vector<16x64xf32>
    %c224_355 = arith.constant 224 : index
    %c0_356 = arith.constant 0 : index
    %521 = vector.load %arg47[%c224_355, %c0_356] : memref<256x64xf32, #tpu.memory_space<vmem>>, vector<16x64xf32>
    tpu.vector_store %arg47[%c224_355, %c0_356], %520 {strides = array<i32>} : memref<256x64xf32, #tpu.memory_space<vmem>>, vector<16x64xf32>,
    %c240_357 = arith.constant 240 : index
    %c0_358 = arith.constant 0 : index
    %522 = vector.load %arg45[%c240_357, %c0_358] : memref<256x64xf32, #tpu.memory_space<vmem>>, vector<16x64xf32>
    %523 = arith.mulf %522, %520 : vector<16x64xf32>
    %c240_359 = arith.constant 240 : index
    %c0_360 = arith.constant 0 : index
    %524 = vector.load %arg46[%c240_359, %c0_360] : memref<256x64xf32, #tpu.memory_space<vmem>>, vector<16x64xf32>
    %525 = arith.addf %523, %524 : vector<16x64xf32>
    %c240_361 = arith.constant 240 : index
    %c0_362 = arith.constant 0 : index
    %526 = vector.load %arg47[%c240_361, %c0_362] : memref<256x64xf32, #tpu.memory_space<vmem>>, vector<16x64xf32>
    tpu.vector_store %arg47[%c240_361, %c0_362], %525 {strides = array<i32>} : memref<256x64xf32, #tpu.memory_space<vmem>>, vector<16x64xf32>,
    %cst_363 = arith.constant dense<0.000000e+00> : vector<16x256xf32>
    %527 = tpu.matmul %430, %43, %cst_363 {dimension_numbers = #tpu.dot_dimension_numbers<[1], [0], [0], [1], [0, 0, 1, 1], [], []>} : vector<16x16xf32>, vector<16x256xf32>, vector<16x256xf32> -> vector<16x256xf32>
    %cst_364 = arith.constant 0.000000e+00 : f32
    %528 = vector.broadcast %cst_364 : f32 to vector<16x256xf32>
    %529 = arith.select %48, %527, %528 : vector<16x256xi1>, vector<16x256xf32>
    %c0_365 = arith.constant 0 : index
    %c0_366 = arith.constant 0 : index
    %530 = vector.load %arg47[%c0_365, %c0_366] : memref<256x64xf32, #tpu.memory_space<vmem>>, vector<256x64xf32>
    %cst_367 = arith.constant dense<0.000000e+00> : vector<16x64xf32>
    %531 = tpu.matmul %529, %530, %cst_367 {dimension_numbers = #tpu.dot_dimension_numbers<[1], [0], [0], [1], [0, 0, 1, 1], [], []>} : vector<16x256xf32>, vector<256x64xf32>, vector<16x64xf32> -> vector<16x64xf32>
    %c1_368 = arith.constant 1 : index
    %c0_369 = arith.constant 0 : index
    %c0_370 = arith.constant 0 : index
    %532 = vector.load %arg23[%c1_368, %c0_369, %c0_370] : memref<2x1x64xf32, #tpu.memory_space<vmem>>, vector<1x1x64xf32>
    %533 = vector.shape_cast %532 : vector<1x1x64xf32> to vector<1x64xf32>
    %534 = vector.broadcast %533 : vector<1x64xf32> to vector<16x64xf32>
    %535 = arith.mulf %403, %534 : vector<16x64xf32>
    %536 = arith.addf %531, %535 : vector<16x64xf32>
    %537 = arith.mulf %536, %404 : vector<16x64xf32>
    %c1_371 = arith.constant 1 : index
    %c0_372 = arith.constant 0 : index
    %c0_373 = arith.constant 0 : index
    %538 = vector.load %arg24[%c1_371, %c0_372, %c0_373] : memref<2x64x32xf32, #tpu.memory_space<vmem>>, vector<1x64x32xf32>
    %539 = vector.shape_cast %538 : vector<1x64x32xf32> to vector<64x32xf32>
    %cst_374 = arith.constant dense<0.000000e+00> : vector<16x32xf32>
    %540 = tpu.matmul %537, %539, %cst_374 {dimension_numbers = #tpu.dot_dimension_numbers<[1], [0], [0], [1], [0, 0, 1, 1], [], []>} : vector<16x64xf32>, vector<64x32xf32>, vector<16x32xf32> -> vector<16x32xf32>
    %541 = arith.addf %540, %345 : vector<16x32xf32>
    %c0_375 = arith.constant 0 : index
    %c0_376 = arith.constant 0 : index
    %542 = vector.load %arg25[%c0_375, %c0_376] : memref<1x32xf32, #tpu.memory_space<vmem>>, vector<1x32xf32>
    %c0_377 = arith.constant 0 : index
    %c0_378 = arith.constant 0 : index
    %543 = vector.load %arg26[%c0_377, %c0_378] : memref<1x32xf32, #tpu.memory_space<vmem>>, vector<1x32xf32>
    %cst_379 = arith.constant dense<0.000000e+00> : vector<16xf32>
    %544 = vector.multi_reduction <add>, %541, %cst_379 [1] : vector<16x32xf32> to vector<16xf32>
    %545 = vector.shape_cast %544 : vector<16xf32> to vector<16x1xf32>
    %cst_380 = arith.constant 3.200000e+01 : f32
    %546 = vector.broadcast %cst_380 : f32 to vector<16x1xf32>
    %547 = arith.divf %545, %546 : vector<16x1xf32>
    %548 = vector.broadcast %547 : vector<16x1xf32> to vector<16x32xf32>
    %549 = arith.subf %541, %548 : vector<16x32xf32>
    %550 = arith.mulf %549, %549 : vector<16x32xf32>
    %cst_381 = arith.constant dense<0.000000e+00> : vector<16xf32>
    %551 = vector.multi_reduction <add>, %550, %cst_381 [1] : vector<16x32xf32> to vector<16xf32>
    %552 = vector.shape_cast %551 : vector<16xf32> to vector<16x1xf32>
    %cst_382 = arith.constant 3.200000e+01 : f32
    %553 = vector.broadcast %cst_382 : f32 to vector<16x1xf32>
    %554 = arith.divf %552, %553 : vector<16x1xf32>
    %cst_383 = arith.constant 9.99999974E-6 : f32
    %555 = vector.broadcast %cst_383 : f32 to vector<16x1xf32>
    %556 = arith.addf %554, %555 : vector<16x1xf32>
    %557 = math.rsqrt %556 : vector<16x1xf32>
    %558 = vector.broadcast %557 : vector<16x1xf32> to vector<16x32xf32>
    %559 = arith.mulf %549, %558 : vector<16x32xf32>
    %560 = vector.broadcast %542 : vector<1x32xf32> to vector<16x32xf32>
    %561 = arith.mulf %559, %560 : vector<16x32xf32>
    %562 = vector.broadcast %543 : vector<1x32xf32> to vector<16x32xf32>
    %563 = arith.addf %561, %562 : vector<16x32xf32>
    %c0_384 = arith.constant 0 : index
    %c0_385 = arith.constant 0 : index
    %564 = vector.load %arg27[%c0_384, %c0_385] : memref<32x32xf32, #tpu.memory_space<vmem>>, vector<32x32xf32>
    %cst_386 = arith.constant dense<0.000000e+00> : vector<16x32xf32>
    %565 = tpu.matmul %563, %564, %cst_386 {dimension_numbers = #tpu.dot_dimension_numbers<[1], [0], [0], [1], [0, 0, 1, 1], [], []>} : vector<16x32xf32>, vector<32x32xf32>, vector<16x32xf32> -> vector<16x32xf32>
    %c0_387 = arith.constant 0 : index
    %c0_388 = arith.constant 0 : index
    %566 = vector.load %arg28[%c0_387, %c0_388] : memref<1x32xf32, #tpu.memory_space<vmem>>, vector<1x32xf32>
    %c0_389 = arith.constant 0 : index
    %c0_390 = arith.constant 0 : index
    %567 = vector.load %arg29[%c0_389, %c0_390] : memref<1x32xf32, #tpu.memory_space<vmem>>, vector<1x32xf32>
    %cst_391 = arith.constant dense<0.000000e+00> : vector<16xf32>
    %568 = vector.multi_reduction <add>, %565, %cst_391 [1] : vector<16x32xf32> to vector<16xf32>
    %569 = vector.shape_cast %568 : vector<16xf32> to vector<16x1xf32>
    %cst_392 = arith.constant 3.200000e+01 : f32
    %570 = vector.broadcast %cst_392 : f32 to vector<16x1xf32>
    %571 = arith.divf %569, %570 : vector<16x1xf32>
    %572 = vector.broadcast %571 : vector<16x1xf32> to vector<16x32xf32>
    %573 = arith.subf %565, %572 : vector<16x32xf32>
    %574 = arith.mulf %573, %573 : vector<16x32xf32>
    %cst_393 = arith.constant dense<0.000000e+00> : vector<16xf32>
    %575 = vector.multi_reduction <add>, %574, %cst_393 [1] : vector<16x32xf32> to vector<16xf32>
    %576 = vector.shape_cast %575 : vector<16xf32> to vector<16x1xf32>
    %cst_394 = arith.constant 3.200000e+01 : f32
    %577 = vector.broadcast %cst_394 : f32 to vector<16x1xf32>
    %578 = arith.divf %576, %577 : vector<16x1xf32>
    %cst_395 = arith.constant 9.99999974E-6 : f32
    %579 = vector.broadcast %cst_395 : f32 to vector<16x1xf32>
    %580 = arith.addf %578, %579 : vector<16x1xf32>
    %581 = math.rsqrt %580 : vector<16x1xf32>
    %582 = vector.broadcast %581 : vector<16x1xf32> to vector<16x32xf32>
    %583 = arith.mulf %573, %582 : vector<16x32xf32>
    %584 = vector.broadcast %566 : vector<1x32xf32> to vector<16x32xf32>
    %585 = arith.mulf %583, %584 : vector<16x32xf32>
    %586 = vector.broadcast %567 : vector<1x32xf32> to vector<16x32xf32>
    %587 = arith.addf %585, %586 : vector<16x32xf32>
    %c0_396 = arith.constant 0 : index
    %c0_397 = arith.constant 0 : index
    %588 = vector.load %arg30[%c0_396, %c0_397] : memref<32x128xf32, #tpu.memory_space<vmem>>, vector<32x128xf32>
    %cst_398 = arith.constant dense<0.000000e+00> : vector<16x128xf32>
    %589 = tpu.matmul %587, %588, %cst_398 {dimension_numbers = #tpu.dot_dimension_numbers<[1], [0], [0], [1], [0, 0, 1, 1], [], []>} : vector<16x32xf32>, vector<32x128xf32>, vector<16x128xf32> -> vector<16x128xf32>
    %c0_399 = arith.constant 0 : index
    %c0_400 = arith.constant 0 : index
    %590 = vector.load %arg31[%c0_399, %c0_400] : memref<1x128xf32, #tpu.memory_space<vmem>>, vector<1x128xf32>
    %591 = vector.broadcast %590 : vector<1x128xf32> to vector<16x128xf32>
    %592 = arith.addf %589, %591 : vector<16x128xf32>
    %c0_401 = arith.constant 0 : index
    %c0_402 = arith.constant 0 : index
    %593 = vector.load %arg32[%c0_401, %c0_402] : memref<1x128xf32, #tpu.memory_space<vmem>>, vector<1x128xf32>
    %c0_403 = arith.constant 0 : index
    %c0_404 = arith.constant 0 : index
    %594 = vector.load %arg33[%c0_403, %c0_404] : memref<1x128xf32, #tpu.memory_space<vmem>>, vector<1x128xf32>
    %cst_405 = arith.constant dense<0.000000e+00> : vector<16xf32>
    %595 = vector.multi_reduction <add>, %592, %cst_405 [1] : vector<16x128xf32> to vector<16xf32>
    %596 = vector.shape_cast %595 : vector<16xf32> to vector<16x1xf32>
    %cst_406 = arith.constant 1.280000e+02 : f32
    %597 = vector.broadcast %cst_406 : f32 to vector<16x1xf32>
    %598 = arith.divf %596, %597 : vector<16x1xf32>
    %599 = vector.broadcast %598 : vector<16x1xf32> to vector<16x128xf32>
    %600 = arith.subf %592, %599 : vector<16x128xf32>
    %601 = arith.mulf %600, %600 : vector<16x128xf32>
    %cst_407 = arith.constant dense<0.000000e+00> : vector<16xf32>
    %602 = vector.multi_reduction <add>, %601, %cst_407 [1] : vector<16x128xf32> to vector<16xf32>
    %603 = vector.shape_cast %602 : vector<16xf32> to vector<16x1xf32>
    %cst_408 = arith.constant 1.280000e+02 : f32
    %604 = vector.broadcast %cst_408 : f32 to vector<16x1xf32>
    %605 = arith.divf %603, %604 : vector<16x1xf32>
    %cst_409 = arith.constant 9.99999974E-6 : f32
    %606 = vector.broadcast %cst_409 : f32 to vector<16x1xf32>
    %607 = arith.addf %605, %606 : vector<16x1xf32>
    %608 = math.rsqrt %607 : vector<16x1xf32>
    %609 = vector.broadcast %608 : vector<16x1xf32> to vector<16x128xf32>
    %610 = arith.mulf %600, %609 : vector<16x128xf32>
    %611 = vector.broadcast %593 : vector<1x128xf32> to vector<16x128xf32>
    %612 = arith.mulf %610, %611 : vector<16x128xf32>
    %613 = vector.broadcast %594 : vector<1x128xf32> to vector<16x128xf32>
    %614 = arith.addf %612, %613 : vector<16x128xf32>
    %cst_410 = arith.constant 0.000000e+00 : f32
    %615 = vector.broadcast %cst_410 : f32 to vector<16x128xf32>
    %616 = arith.maximumf %614, %615 : vector<16x128xf32>
    %c0_411 = arith.constant 0 : index
    %c0_412 = arith.constant 0 : index
    %617 = vector.load %arg34[%c0_411, %c0_412] : memref<128x128xf32, #tpu.memory_space<vmem>>, vector<128x128xf32>
    %cst_413 = arith.constant dense<0.000000e+00> : vector<16x128xf32>
    %618 = tpu.matmul %616, %617, %cst_413 {dimension_numbers = #tpu.dot_dimension_numbers<[1], [0], [0], [1], [0, 0, 1, 1], [], []>} : vector<16x128xf32>, vector<128x128xf32>, vector<16x128xf32> -> vector<16x128xf32>
    %c0_414 = arith.constant 0 : index
    %c0_415 = arith.constant 0 : index
    %619 = vector.load %arg35[%c0_414, %c0_415] : memref<1x128xf32, #tpu.memory_space<vmem>>, vector<1x128xf32>
    %620 = vector.broadcast %619 : vector<1x128xf32> to vector<16x128xf32>
    %621 = arith.addf %618, %620 : vector<16x128xf32>
    %c0_416 = arith.constant 0 : index
    %c0_417 = arith.constant 0 : index
    %622 = vector.load %arg36[%c0_416, %c0_417] : memref<1x128xf32, #tpu.memory_space<vmem>>, vector<1x128xf32>
    %c0_418 = arith.constant 0 : index
    %c0_419 = arith.constant 0 : index
    %623 = vector.load %arg37[%c0_418, %c0_419] : memref<1x128xf32, #tpu.memory_space<vmem>>, vector<1x128xf32>
    %cst_420 = arith.constant dense<0.000000e+00> : vector<16xf32>
    %624 = vector.multi_reduction <add>, %621, %cst_420 [1] : vector<16x128xf32> to vector<16xf32>
    %625 = vector.shape_cast %624 : vector<16xf32> to vector<16x1xf32>
    %cst_421 = arith.constant 1.280000e+02 : f32
    %626 = vector.broadcast %cst_421 : f32 to vector<16x1xf32>
    %627 = arith.divf %625, %626 : vector<16x1xf32>
    %628 = vector.broadcast %627 : vector<16x1xf32> to vector<16x128xf32>
    %629 = arith.subf %621, %628 : vector<16x128xf32>
    %630 = arith.mulf %629, %629 : vector<16x128xf32>
    %cst_422 = arith.constant dense<0.000000e+00> : vector<16xf32>
    %631 = vector.multi_reduction <add>, %630, %cst_422 [1] : vector<16x128xf32> to vector<16xf32>
    %632 = vector.shape_cast %631 : vector<16xf32> to vector<16x1xf32>
    %cst_423 = arith.constant 1.280000e+02 : f32
    %633 = vector.broadcast %cst_423 : f32 to vector<16x1xf32>
    %634 = arith.divf %632, %633 : vector<16x1xf32>
    %cst_424 = arith.constant 9.99999974E-6 : f32
    %635 = vector.broadcast %cst_424 : f32 to vector<16x1xf32>
    %636 = arith.addf %634, %635 : vector<16x1xf32>
    %637 = math.rsqrt %636 : vector<16x1xf32>
    %638 = vector.broadcast %637 : vector<16x1xf32> to vector<16x128xf32>
    %639 = arith.mulf %629, %638 : vector<16x128xf32>
    %640 = vector.broadcast %622 : vector<1x128xf32> to vector<16x128xf32>
    %641 = arith.mulf %639, %640 : vector<16x128xf32>
    %642 = vector.broadcast %623 : vector<1x128xf32> to vector<16x128xf32>
    %643 = arith.addf %641, %642 : vector<16x128xf32>
    %cst_425 = arith.constant 0.000000e+00 : f32
    %644 = vector.broadcast %cst_425 : f32 to vector<16x128xf32>
    %645 = arith.maximumf %643, %644 : vector<16x128xf32>
    %c0_426 = arith.constant 0 : index
    %c0_427 = arith.constant 0 : index
    %646 = vector.load %arg38[%c0_426, %c0_427] : memref<128x128xf32, #tpu.memory_space<vmem>>, vector<128x128xf32>
    %cst_428 = arith.constant dense<0.000000e+00> : vector<16x128xf32>
    %647 = tpu.matmul %645, %646, %cst_428 {dimension_numbers = #tpu.dot_dimension_numbers<[1], [0], [0], [1], [0, 0, 1, 1], [], []>} : vector<16x128xf32>, vector<128x128xf32>, vector<16x128xf32> -> vector<16x128xf32>
    %c0_429 = arith.constant 0 : index
    %c0_430 = arith.constant 0 : index
    %648 = vector.load %arg39[%c0_429, %c0_430] : memref<1x128xf32, #tpu.memory_space<vmem>>, vector<1x128xf32>
    %649 = vector.broadcast %648 : vector<1x128xf32> to vector<16x128xf32>
    %650 = arith.addf %647, %649 : vector<16x128xf32>
    %c0_431 = arith.constant 0 : index
    %c0_432 = arith.constant 0 : index
    %651 = vector.load %arg40[%c0_431, %c0_432] : memref<1x128xf32, #tpu.memory_space<vmem>>, vector<1x128xf32>
    %c0_433 = arith.constant 0 : index
    %c0_434 = arith.constant 0 : index
    %652 = vector.load %arg41[%c0_433, %c0_434] : memref<1x128xf32, #tpu.memory_space<vmem>>, vector<1x128xf32>
    %cst_435 = arith.constant dense<0.000000e+00> : vector<16xf32>
    %653 = vector.multi_reduction <add>, %650, %cst_435 [1] : vector<16x128xf32> to vector<16xf32>
    %654 = vector.shape_cast %653 : vector<16xf32> to vector<16x1xf32>
    %cst_436 = arith.constant 1.280000e+02 : f32
    %655 = vector.broadcast %cst_436 : f32 to vector<16x1xf32>
    %656 = arith.divf %654, %655 : vector<16x1xf32>
    %657 = vector.broadcast %656 : vector<16x1xf32> to vector<16x128xf32>
    %658 = arith.subf %650, %657 : vector<16x128xf32>
    %659 = arith.mulf %658, %658 : vector<16x128xf32>
    %cst_437 = arith.constant dense<0.000000e+00> : vector<16xf32>
    %660 = vector.multi_reduction <add>, %659, %cst_437 [1] : vector<16x128xf32> to vector<16xf32>
    %661 = vector.shape_cast %660 : vector<16xf32> to vector<16x1xf32>
    %cst_438 = arith.constant 1.280000e+02 : f32
    %662 = vector.broadcast %cst_438 : f32 to vector<16x1xf32>
    %663 = arith.divf %661, %662 : vector<16x1xf32>
    %cst_439 = arith.constant 9.99999974E-6 : f32
    %664 = vector.broadcast %cst_439 : f32 to vector<16x1xf32>
    %665 = arith.addf %663, %664 : vector<16x1xf32>
    %666 = math.rsqrt %665 : vector<16x1xf32>
    %667 = vector.broadcast %666 : vector<16x1xf32> to vector<16x128xf32>
    %668 = arith.mulf %658, %667 : vector<16x128xf32>
    %669 = vector.broadcast %651 : vector<1x128xf32> to vector<16x128xf32>
    %670 = arith.mulf %668, %669 : vector<16x128xf32>
    %671 = vector.broadcast %652 : vector<1x128xf32> to vector<16x128xf32>
    %672 = arith.addf %670, %671 : vector<16x128xf32>
    %cst_440 = arith.constant 0.000000e+00 : f32
    %673 = vector.broadcast %cst_440 : f32 to vector<16x128xf32>
    %674 = arith.maximumf %672, %673 : vector<16x128xf32>
    %c0_441 = arith.constant 0 : index
    %c0_442 = arith.constant 0 : index
    %675 = vector.load %arg42[%c0_441, %c0_442] : memref<128x32xf32, #tpu.memory_space<vmem>>, vector<128x32xf32>
    %cst_443 = arith.constant dense<0.000000e+00> : vector<16x32xf32>
    %676 = tpu.matmul %674, %675, %cst_443 {dimension_numbers = #tpu.dot_dimension_numbers<[1], [0], [0], [1], [0, 0, 1, 1], [], []>} : vector<16x128xf32>, vector<128x32xf32>, vector<16x32xf32> -> vector<16x32xf32>
    %c0_444 = arith.constant 0 : index
    %c0_445 = arith.constant 0 : index
    %677 = vector.load %arg43[%c0_444, %c0_445] : memref<1x32xf32, #tpu.memory_space<vmem>>, vector<1x32xf32>
    %678 = vector.broadcast %677 : vector<1x32xf32> to vector<16x32xf32>
    %679 = arith.addf %676, %678 : vector<16x32xf32>
    %680 = arith.addf %587, %679 : vector<16x32xf32>
    %c0_446 = arith.constant 0 : index
    %c0_447 = arith.constant 0 : index
    %681 = vector.load %arg44[%c0_446, %c0_447] : memref<16x32xf32, #tpu.memory_space<vmem>>, vector<16x32xf32>
    tpu.vector_store %arg44[%c0_446, %c0_447], %680 {strides = array<i32>} : memref<16x32xf32, #tpu.memory_space<vmem>>, vector<16x32xf32>,
    return
  }
}

</mosaic_0001>

<bundles_post_ra>
// kernel: hmamba_forward.1
= control target key start
LH: loop header
LB: loop body
LE: loop exit
PB: predicated region body
PF: predicated region fallthrough
CT: control target
= control target key end

     0   :  { %s10028_s6 = smov 1   ;;  %s10029_s10 = smov 2   ;;  %s12267_s0 = inlined_call_operand.smem [shape: u32[45], index: -1, kind: input, shape index: {}] }
   0x1   :  { %s10100_s5 = sld [smem:[%s12267_s0]]   ;;  %s10030_s14 = smov 3  }
   0x2   :  { %s10105_s9 = sld [smem:[%s12267_s0 + %s10028_s6]]   ;;  %s10031_s18 = smov 4  }
   0x3   :  { %s10110_s13 = sld [smem:[%s12267_s0 + %s10029_s10]]   ;;  %s10032_s22 = smov 5  }
   0x4   :  { %s10115_s17 = sld [smem:[%s12267_s0 + %s10030_s14]]   ;;  %s10033_s26 = smov 6  }
   0x5   :  { %s10120_s21 = sld [smem:[%s12267_s0 + %s10031_s18]]   ;;  %s10034_s30 = smov 7  }
   0x6   :  { %s10125_s25 = sld [smem:[%s12267_s0 + %s10032_s22]]   ;;  %s10035_s4 = smov 8  }
   0x7   :  { %s10130_s29 = sld [smem:[%s12267_s0 + %s10033_s26]]   ;;  %s10036_s10 = smov 9  }
   0x8   :  { %12435 = sst [smem:[#allocation27_spill]] %s10105_s9  ;;  %s10037_s15 = smov 10  }
   0x9   :  { %s10135_s3 = sld [smem:[%s12267_s0 + %s10034_s30]]   ;;  %s10038_s20 = smov 11  }
   0xa   :  { %s10140_s8 = sld [smem:[%s12267_s0 + %s10035_s4]]   ;;  %s10039_s26 = smov 12  }
   0xb   :  { %s10145_s14 = sld [smem:[%s12267_s0 + %s10036_s10]]   ;;  %s10040_s1 = smov 13  }
   0xc   :  { %s10150_s19 = sld [smem:[%s12267_s0 + %s10037_s15]]   ;;  %s10041_s7 = smov 14  }
   0xd   :  { %s10155_s24 = sld [smem:[%s12267_s0 + %s10038_s20]]   ;;  %s10042_s15 = smov 15  }
   0xe   :  { %s10160_s30 = sld [smem:[%s12267_s0 + %s10039_s26]]   ;;  %s10043_s22 = smov 16  }
   0xf   :  { %s10165_s6 = sld [smem:[%s12267_s0 + %s10040_s1]]   ;;  %s10044_s28 = smov 17  }
  0x10   :  { %s10170_s12 = sld [smem:[%s12267_s0 + %s10041_s7]]   ;;  %s10045_s7 = smov 18  }
  0x11   :  { %s10175_s20 = sld [smem:[%s12267_s0 + %s10042_s15]]   ;;  %s10046_s15 = smov 19  }
  0x12   :  { %12436 = sst [smem:[#allocation28_spill]] %s10150_s19 }
  0x13   :  { %12437 = sst [smem:[#allocation29_spill]] %s10155_s24 }
  0x14   :  { %s10180_s27 = sld [smem:[%s12267_s0 + %s10043_s22]]   ;;  %s10047_s22 = smov 20  }
  0x15   :  { %12438 = sst [smem:[#allocation30_spill]] %s10165_s6 }
  0x16   :  { %12439 = sst [smem:[#allocation31_spill]] %s10170_s12 }
  0x17   :  { %12440 = sst [smem:[#allocation32_spill]] %s10175_s20 }
  0x18   :  { %s10185_s4 = sld [smem:[%s12267_s0 + %s10044_s28]]   ;;  %s10048_s28 = smov 21  }
  0x19   :  { %s10190_s12 = sld [smem:[%s12267_s0 + %s10045_s7]]   ;;  %s10049_s7 = smov 22  }
  0x1a   :  { %12441 = sst [smem:[#allocation33_spill]] %s10180_s27 }
  0x1b   :  { %s10195_s6 = sld [smem:[%s12267_s0 + %s10046_s15]]   ;;  %s10050_s15 = smov 23  }
  0x1c   :  { %s10200_s27 = sld [smem:[%s12267_s0 + %s10047_s22]]   ;;  %s10051_s22 = smov 24  }
  0x1d   :  { %s10205_s20 = sld [smem:[%s12267_s0 + %s10048_s28]]   ;;  %s10052_s28 = smov 25  }
  0x1e   :  { %s10225_s24 = sld [smem:[%s12267_s0 + %s10052_s28]]   ;;  %s10056_s28 = smov 29  }
  0x1f   :  { %12442 = sst [smem:[#allocation34_spill]] %s10190_s12 }
  0x20   :  { %s10210_s12 = sld [smem:[%s12267_s0 + %s10049_s7]]   ;;  %s10053_s7 = smov 26  }
  0x21   :  { %12443 = sst [smem:[#allocation35_spill]] %s10195_s6 }
  0x22   :  { %12444 = sst [smem:[#allocation36_spill]] %s10200_s27 }
  0x23   :  { %s10215_s6 = sld [smem:[%s12267_s0 + %s10050_s15]]   ;;  %s10054_s15 = smov 27  }
  0x24   :  { %s10220_s27 = sld [smem:[%s12267_s0 + %s10051_s22]]   ;;  %s10055_s22 = smov 28  }
  0x25   :  { %12447 = sst [smem:[#allocation39_spill]] %s10225_s24 }
  0x26   :  { %12445 = sst [smem:[#allocation37_spill]] %s10210_s12 }
  0x27   :  { %s10230_s12 = sld [smem:[%s12267_s0 + %s10053_s7]]   ;;  %s10057_s7 = smov 30  }
  0x28   :  { %s10235_s9 = sld [smem:[%s12267_s0 + %s10054_s15]]   ;;  %s10058_s15 = smov 31  }
  0x29   :  { %s10245_s24 = sld [smem:[%s12267_s0 + %s10056_s28]]   ;;  %s10060_s28 = smov 33  }
  0x2a   :  { %12446 = sst [smem:[#allocation38_spill]] %s10220_s27 }
  0x2b   :  { %s10240_s27 = sld [smem:[%s12267_s0 + %s10055_s22]]   ;;  %s10059_s22 = smov 32  }
  0x2c   :  { %s10255_s19 = sld [smem:[%s12267_s0 + %s10058_s15]]   ;;  %s10062_s15 = smov 35  }
  0x2d   :  { %12448 = sst [smem:[#allocation40_spill]] %s10230_s12 }
  0x2e   :  { %s10250_s12 = sld [smem:[%s12267_s0 + %s10057_s7]]   ;;  %s10061_s7 = smov 34  }
  0x2f   :  { %12450 = sst [smem:[#allocation42_spill]] %s10245_s24 }
  0x30   :  { %s10265_s24 = sld [smem:[%s12267_s0 + %s10060_s28]]   ;;  %s10064_s28 = smov 37  }
  0x31   :  { %12449 = sst [smem:[#allocation41_spill]] %s10240_s27 }
  0x32   :  { %12452 = sst [smem:[#allocation44_spill]] %s10255_s19 }
  0x33   :  { %s10260_s27 = sld [smem:[%s12267_s0 + %s10059_s22]]   ;;  %s10063_s22 = smov 36  }
  0x34   :  { %12451 = sst [smem:[#allocation43_spill]] %s10250_s12 }
  0x35   :  { %s10270_s12 = sld [smem:[%s12267_s0 + %s10061_s7]]   ;;  %s10065_s7 = smov 38  }
  0x36   :  { %12454 = sst [smem:[#allocation46_spill]] %s10265_s24 }
  0x37   :  { %s10275_s19 = sld [smem:[%s12267_s0 + %s10062_s15]]   ;;  %s10066_s15 = smov 39  }
  0x38   :  { %s10285_s24 = sld [smem:[%s12267_s0 + %s10064_s28]]   ;;  %s10068_s28 = smov 41  }
  0x39   :  { %12453 = sst [smem:[#allocation45_spill]] %s10260_s27 }
  0x3a   :  { %s10280_s27 = sld [smem:[%s12267_s0 + %s10063_s22]]   ;;  %s10067_s22 = smov 40  }
  0x3b   :  { %12455 = sst [smem:[#allocation47_spill]] %s10270_s12 }
  0x3c   :  { %s10290_s12 = sld [smem:[%s12267_s0 + %s10065_s7]]   ;;  %s10069_s7 = smov 42  }
  0x3d   :  { %12456 = sst [smem:[#allocation48_spill]] %s10275_s19 }
  0x3e   :  { %12458 = sst [smem:[#allocation50_spill]] %s10285_s24 }
  0x3f   :  { %s10295_s19 = sld [smem:[%s12267_s0 + %s10066_s15]]   ;;  %s10070_s15 = smov 43  }
  0x40   :  { %12457 = sst [smem:[#allocation49_spill]] %s10280_s27 }
  0x41   :  { %s10300_s27 = sld [smem:[%s12267_s0 + %s10067_s22]]   ;;  %s10071_s22 = smov 44  }
  0x42   :  { %12459 = sst [smem:[#allocation51_spill]] %s10290_s12 }
  0x43   :  { %s10305_s24 = sld [smem:[%s12267_s0 + %s10068_s28]]  }
  0x44   :  { %s10310_s12 = sld [smem:[%s12267_s0 + %s10069_s7]]  }
  0x45   :  { %12460 = sst [smem:[#allocation52_spill]] %s10295_s19 }
  0x46   :  { %s10315_s19 = sld [smem:[%s12267_s0 + %s10070_s15]]  }
  0x47   :  { %12461 = sst [smem:[#allocation53_spill]] %s10300_s27 }
  0x48   :  { %s10320_s27 = sld [smem:[%s12267_s0 + %s10071_s22]]  }
  0x49   :  { %94 = vsyncpa [#allocation6], 0 }
  0x4a   :  { %95 = vsyncpa [#allocation9], 0 }
  0x4b   :  { %96 = vsyncpa [#allocation12], 0 }
  0x4c   :  { %97 = vsyncpa [#allocation15], 0 }
  0x4d   :  { %98 = vsyncpa [#allocation18], 0 }
  0x4e   :  { %99 = vsyncpa [#allocation7], 0  ;;  %s10072_s28 = smov [#allocation8]   ;;  %s10073_s2 = smov [#allocation11]  }
  0x4f   :  { %s120_s1 = sshll.u32 %s10072_s28, 4  ;;  %s144_s7 = sshll.u32 %s10073_s2, 4  ;;  %s121_s1 = int_to_ptr.vmem [resolvable:$true] %s120_s1  ;;  %s145_s7 = int_to_ptr.vmem [resolvable:$true] %s144_s7 }
  0x50   :  { %s9796_s10 = scalar_lea.hbm %s10115_s17, 16 }
  0x51   :  { %p9797_p0 = scmp.ne.s32.totalorder %s10115_s17, %s9796_s10  ;;  %p9800_p1 = scmp.lt.u32.totalorder %s9796_s10, %s10115_s17 }
  0x53   :  { %p9802_p2 = pnand %p9800_p1, %p9797_p0 }
  0x55   :  { %9805 = shalt.err (!%p9802_p2)
}
  0x56   :  { %s9806_s0 = scalar_lea.vmem %s121_s1, 16  ;;  %s9810_s11 = scalar_lea.vmem %s121_s1, 32 }
  0x57   :  { %p9807_p3 = scmp.ne.s32.totalorder %s121_s1, %s9806_s0  ;;  %p9811_p4 = scmp.lt.s32.totalorder %s121_s1, %s121_s1 }
  0x58   :  { %p9812_p5 = scmp.lt.s32.totalorder %s9810_s11, %s9806_s0 }
  0x5a   :  { %p9813_p6 = por %p9812_p5, %p9811_p4 }
  0x5c   :  { %p9814_p7 = pnand %p9813_p6, %p9807_p3 }
  0x5e   :  { %9817 = shalt.err (!%p9814_p7)
}
  0x5f   :  { %123 = dma.hbm_to_vmem [thread:$0]  %s10115_s17, 16, %s121_s1, [#allocation9]  }
  0x60   :  { %s9818_s15 = scalar_lea.hbm %s10135_s3, 16 }
  0x61   :  { %p9819_p8 = scmp.ne.s32.totalorder %s10135_s3, %s9818_s15  ;;  %p9822_p9 = scmp.lt.u32.totalorder %s9818_s15, %s10135_s3 }
  0x63   :  { %p9824_p10 = pnand %p9822_p9, %p9819_p8 }
  0x65   :  { %9827 = shalt.err (!%p9824_p10)
}
  0x66   :  { %s9828_s16 = scalar_lea.vmem %s145_s7, 16  ;;  %s9832_s18 = scalar_lea.vmem %s145_s7, 32 }
  0x67   :  { %p9829_p11 = scmp.ne.s32.totalorder %s145_s7, %s9828_s16  ;;  %p9833_p12 = scmp.lt.s32.totalorder %s145_s7, %s145_s7 }
  0x68   :  { %p9834_p13 = scmp.lt.s32.totalorder %s9832_s18, %s9828_s16 }
  0x6a   :  { %p9835_p0 = por %p9834_p13, %p9833_p12 }
  0x6c   :  { %p9836_p1 = pnand %p9835_p0, %p9829_p11 }
  0x6e   :  { %9839 = shalt.err (!%p9836_p1)
}
  0x6f   :  { %147 = dma.hbm_to_vmem [thread:$0]  %s10135_s3, 16, %s145_s7, [#allocation12]  }
  0x70   :  { %s10074_s22 = smov [#allocation14]   ;;  %s9840_s23 = scalar_lea.hbm %s10185_s4, 32 }
  0x71   :  { %s179_s17 = sshll.u32 %s10074_s22, 4  ;;  %p9841_p2 = scmp.ne.s32.totalorder %s10185_s4, %s9840_s23  ;;  %s180_s17 = int_to_ptr.vmem [resolvable:$true] %s179_s17 }
  0x72   :  { %p9844_p3 = scmp.lt.u32.totalorder %s9840_s23, %s10185_s4 }
  0x74   :  { %p9846_p4 = pnand %p9844_p3, %p9841_p2 }
  0x76   :  { %9849 = shalt.err (!%p9846_p4)
}
  0x77   :  { %s9850_s26 = scalar_lea.vmem %s180_s17, 32  ;;  %p9855_p6 = scmp.lt.s32.totalorder %s180_s17, %s180_s17 }
  0x78   :  { %p9851_p5 = scmp.ne.s32.totalorder %s180_s17, %s9850_s26  ;;  %p9856_p7 = scmp.lt.s32.totalorder %s9850_s26, %s9850_s26 }
  0x7a   :  { %p9857_p8 = por %p9856_p7, %p9855_p6 }
  0x7c   :  { %p9858_p9 = pnand %p9857_p8, %p9851_p5 }
  0x7e   :  { %9861 = shalt.err (!%p9858_p9)
}
  0x7f   :  { %s10075_s28 = smov 16   ;;  %s10076_s3 = smov 1  }
  0x80   :  { %185 = dma.hbm_to_vmem [thread:$0]  %s10185_s4, 32, %s180_s17, [#allocation15], %s10075_s28, %s10075_s28, %s10076_s3  }
  0x81   :  { %s10077_s1 = smov [#allocation17]   ;;  %s10078_s7 = smov [#allocation5]  }
  0x82   :  { %s211_s2 = sshll.u32 %s10077_s1, 4  ;;  %s110_s10 = sshll.u32 %s10078_s7, 4  ;;  %s212_s2 = int_to_ptr.vmem [resolvable:$true] %s211_s2  ;;  %s111_s10 = int_to_ptr.vmem [resolvable:$true] %s110_s10 }
  0x83   :  { %s9862_s0 = scalar_lea.hbm %s10215_s6, 32 }
  0x84   :  { %p9863_p10 = scmp.ne.s32.totalorder %s10215_s6, %s9862_s0  ;;  %p9866_p11 = scmp.lt.u32.totalorder %s9862_s0, %s10215_s6 }
  0x86   :  { %p9868_p12 = pnand %p9866_p11, %p9863_p10 }
  0x88   :  { %9871 = shalt.err (!%p9868_p12)
}
  0x89   :  { %s9872_s11 = scalar_lea.vmem %s212_s2, 32  ;;  %p9877_p0 = scmp.lt.s32.totalorder %s212_s2, %s212_s2 }
  0x8a   :  { %p9873_p13 = scmp.ne.s32.totalorder %s212_s2, %s9872_s11  ;;  %p9878_p1 = scmp.lt.s32.totalorder %s9872_s11, %s9872_s11 }
  0x8c   :  { %p9879_p2 = por %p9878_p1, %p9877_p0 }
  0x8e   :  { %p9880_p3 = pnand %p9879_p2, %p9873_p13 }
  0x90   :  { %9883 = shalt.err (!%p9880_p3)
}
  0x91   :  { %217 = dma.hbm_to_vmem [thread:$0]  %s10215_s6, 32, %s212_s2, [#allocation18], %s10075_s28, %s10075_s28, %s10076_s3  }
  0x92   :  { %s9884_s4 = scalar_lea.hbm %s10110_s13, 128 }
  0x93   :  { %p9885_p4 = scmp.ne.s32.totalorder %s10110_s13, %s9884_s4  ;;  %p9888_p5 = scmp.lt.u32.totalorder %s9884_s4, %s10110_s13 }
  0x95   :  { %p9890_p6 = pnand %p9888_p5, %p9885_p4 }
  0x97   :  { %9893 = shalt.err (!%p9890_p6)
}
  0x98   :  { %s9894_s15 = scalar_lea.vmem %s111_s10, 128  ;;  %p9899_p8 = scmp.lt.s32.totalorder %s111_s10, %s111_s10 }
  0x99   :  { %p9895_p7 = scmp.ne.s32.totalorder %s111_s10, %s9894_s15  ;;  %p9900_p9 = scmp.lt.s32.totalorder %s9894_s15, %s9894_s15 }
  0x9b   :  { %p9901_p10 = por %p9900_p9, %p9899_p8 }
  0x9d   :  { %p9902_p11 = pnand %p9901_p10, %p9895_p7 }
  0x9f   :  { %9905 = shalt.err (!%p9902_p11)
}
  0xa0   :  { %113 = dma.hbm_to_vmem [thread:$0]  %s10110_s13, 128, %s111_s10, [#allocation6]  }
  0xa1   :  { %s10079_s16 = smov [#allocation10]   ;;  %s10080_s18 = smov [#allocation13]  }
  0xa2   :  { %s134_s6 = sshll.u32 %s10079_s16, 4  ;;  %s162_s22 = sshll.u32 %s10080_s18, 4  ;;  %s135_s6 = int_to_ptr.vmem [resolvable:$true] %s134_s6  ;;  %s163_s22 = int_to_ptr.vmem [resolvable:$true] %s162_s22 }
  0xa3   :  { %s9906_s17 = scalar_lea.hbm %s10130_s29, 16 }
  0xa4   :  { %p9907_p12 = scmp.ne.s32.totalorder %s10130_s29, %s9906_s17  ;;  %p9910_p13 = scmp.lt.u32.totalorder %s9906_s17, %s10130_s29 }
  0xa6   :  { %p9912_p0 = pnand %p9910_p13, %p9907_p12 }
  0xa8   :  { %9915 = shalt.err (!%p9912_p0)
}
  0xa9   :  { %s9916_s23 = scalar_lea.vmem %s135_s6, 16  ;;  %s9920_s26 = scalar_lea.vmem %s135_s6, 32 }
  0xaa   :  { %p9917_p1 = scmp.ne.s32.totalorder %s135_s6, %s9916_s23  ;;  %p9921_p2 = scmp.lt.s32.totalorder %s135_s6, %s135_s6 }
  0xab   :  { %p9922_p3 = scmp.lt.s32.totalorder %s9920_s26, %s9916_s23 }
  0xad   :  { %p9923_p4 = por %p9922_p3, %p9921_p2 }
  0xaf   :  { %p9924_p5 = pnand %p9923_p4, %p9917_p1 }
  0xb1   :  { %9927 = shalt.err (!%p9924_p5)
}
  0xb2   :  { %137 = dma.hbm_to_vmem [thread:$0]  %s10130_s29, 16, %s135_s6, [#allocation9]  }
  0xb3   :  { %s9928_s13 = scalar_lea.hbm %s10160_s30, 16 }
  0xb4   :  { %p9929_p6 = scmp.ne.s32.totalorder %s10160_s30, %s9928_s13  ;;  %p9932_p7 = scmp.lt.u32.totalorder %s9928_s13, %s10160_s30 }
  0xb6   :  { %p9934_p8 = pnand %p9932_p7, %p9929_p6 }
  0xb8   :  { %9937 = shalt.err (!%p9934_p8)
}
  0xb9   :  { %s9938_s1 = scalar_lea.vmem %s163_s22, 16  ;;  %s9942_s2 = scalar_lea.vmem %s163_s22, 32 }
  0xba   :  { %p9939_p9 = scmp.ne.s32.totalorder %s163_s22, %s9938_s1  ;;  %p9943_p10 = scmp.lt.s32.totalorder %s163_s22, %s163_s22 }
  0xbb   :  { %p9944_p11 = scmp.lt.s32.totalorder %s9942_s2, %s9938_s1 }
  0xbd   :  { %p9945_p12 = por %p9944_p11, %p9943_p10 }
  0xbf   :  { %p9946_p13 = pnand %p9945_p12, %p9939_p9 }
  0xc1   :  { %9949 = shalt.err (!%p9946_p13)
}
  0xc2   :  { %165 = dma.hbm_to_vmem [thread:$0]  %s10160_s30, 16, %s163_s22, [#allocation12]  }
  0xc3   :  { %s10081_s29 = smov [#allocation16]   ;;  %s10082_s10 = smov [#allocation19]  }
  0xc4   :  { %s197_s7 = sshll.u32 %s10081_s29, 4  ;;  %s229_s0 = sshll.u32 %s10082_s10, 4  ;;  %s198_s7 = int_to_ptr.vmem [resolvable:$true] %s197_s7  ;;  %s230_s0 = int_to_ptr.vmem [resolvable:$true] %s229_s0 }
  0xc5   :  { %s9950_s11 = scalar_lea.hbm %s10205_s20, 32 }
  0xc6   :  { %p9951_p0 = scmp.ne.s32.totalorder %s10205_s20, %s9950_s11  ;;  %p9954_p1 = scmp.lt.u32.totalorder %s9950_s11, %s10205_s20 }
  0xc8   :  { %p9956_p2 = pnand %p9954_p1, %p9951_p0 }
  0xca   :  { %9959 = shalt.err (!%p9956_p2)
}
  0xcb   :  { %s9960_s4 = scalar_lea.vmem %s198_s7, 32  ;;  %p9965_p4 = scmp.lt.s32.totalorder %s198_s7, %s198_s7 }
  0xcc   :  { %p9961_p3 = scmp.ne.s32.totalorder %s198_s7, %s9960_s4  ;;  %p9966_p5 = scmp.lt.s32.totalorder %s9960_s4, %s9960_s4 }
  0xce   :  { %p9967_p6 = por %p9966_p5, %p9965_p4 }
  0xd0   :  { %p9968_p7 = pnand %p9967_p6, %p9961_p3 }
  0xd2   :  { %9971 = shalt.err (!%p9968_p7)
}
  0xd3   :  { %203 = dma.hbm_to_vmem [thread:$0]  %s10205_s20, 32, %s198_s7, [#allocation15], %s10075_s28, %s10075_s28, %s10076_s3  }
  0xd4   :  { %s9972_s30 = scalar_lea.hbm %s10235_s9, 512 }
  0xd5   :  { %p9973_p8 = scmp.ne.s32.totalorder %s10235_s9, %s9972_s30  ;;  %p9976_p9 = scmp.lt.u32.totalorder %s9972_s30, %s10235_s9 }
  0xd7   :  { %p9978_p10 = pnand %p9976_p9, %p9973_p8 }
  0xd9   :  { %9981 = shalt.err (!%p9978_p10)
}
  0xda   :  { %s9982_s15 = scalar_lea.vmem %s230_s0, 512  ;;  %p9987_p12 = scmp.lt.s32.totalorder %s230_s0, %s230_s0 }
  0xdb   :  { %p9983_p11 = scmp.ne.s32.totalorder %s230_s0, %s9982_s15  ;;  %p9988_p13 = scmp.lt.s32.totalorder %s9982_s15, %s9982_s15 }
  0xdd   :  { %p9989_p0 = por %p9988_p13, %p9987_p12 }
  0xdf   :  { %p9990_p1 = pnand %p9989_p0, %p9983_p11 }
  0xe1   :  { %9993 = shalt.err (!%p9990_p1)
}
  0xe2   :  { %s10083_s16 = smov 128   ;;  %s10084_s6 = smov 8  }
  0xe3   :  { %235 = dma.hbm_to_vmem [thread:$0]  %s10235_s9, 512, %s230_s0, [#allocation18], %s10083_s16, %s10083_s16, %s10084_s6  }
  0xe4   :  { %10016 = dma.done.wait [#allocation6], 128  }
  0xe5   :  { %10017 = vsyncadd [#allocation6], 4294967168 }
  0xe6   :  { %10018 = dma.done.wait [#allocation9], 32  }
  0xe7   :  { %10019 = vsyncadd [#allocation9], 4294967264 }
  0xe8   :  { %10020 = dma.done.wait [#allocation12], 32  }
  0xe9   :  { %10021 = vsyncadd [#allocation12], 4294967264 }
  0xea   :  { %10022 = dma.done.wait [#allocation15], 64  }
  0xeb   :  { %10023 = vsyncadd [#allocation15], 4294967232 }
  0xec   :  { %10024 = dma.done.wait [#allocation18], 544  }
  0xed   :  { %10025 = vsyncadd [#allocation18], 4294966752  ;;  %vm575_vm0 = vcmask 1045504   ;;  %vm568_vm1 = vcmask 48128   ;;  %v560_v0 = vld [vmem:[#allocation5] sm:$0x3f] }
  0xee   :  { %v558_v1 = vld [vmem:[%s10100_s5] sm:$0xff]  ;;  %v559_v2 = vld [vmem:[%s10100_s5 + $0x8] sm:$0xff]  ;;  %8304 = vmatprep.subr.msk.mxu0 %vm575_vm0, %v560_v0  ;;  %v658_v6 = vld [vmem:[%s10120_s21 + $0x10] sm:$0xff]  ;;  %vm667_vm2 = vcmask 261120   ;;  %s12462_s5 = sld [smem:[#allocation28_spill]]  ;;  %s10085_s9 = smov 96  }
  0xef   :  { %8306 = vmatprep.mubr.msk.f32.mxu0 %vm568_vm1, %v558_v1  ;;  %v656_v3 = vld [vmem:[%s10120_s21] sm:$0xff]  ;;  %v657_v4 = vld [vmem:[%s10120_s21 + $0x8] sm:$0xff]  ;;  %8305 = vmatpush3.msk.msra.mxu0 %vm575_vm0, %v560_v0  ;;  %v659_v7 = vld [vmem:[%s10120_s21 + $0x18] sm:$0xff]  ;;  %s12465_s21 = sld [smem:[#allocation27_spill]]  ;;  %vm1151_vm6 = vcmask 130048   ;;  %s12475_s20 = sld [smem:[#allocation31_spill]] }
  0xf0   :  { %v9110_v5 = vpack.c.bf16 %v657_v4, %v656_v3  ;;  %8307 = vmatmul.mubr.msk.f32.vlgmr.msra.gmra.mrb[0].mxu0 %vm568_vm1, %v559_v2  ;;  %v9114_v8 = vpack.c.bf16 %v659_v7, %v658_v6  ;;  %v7339_v9 = vld [vmem:[#allocation8] ss:$0 sm:$0xff]  ;;  %v7343_v16 = vld [vmem:[%s10125_s25] ss:$0 sm:$0xff]  ;;  %v796_v39 = vld [vmem:[%s10140_s8 + $0x10] sm:$0xff]  ;;  %s12470_s25 = sld [smem:[#allocation29_spill]] }
  0xf1   :  { %v794_v33 = vld [vmem:[%s10140_s8] sm:$0xff]  ;;  %v795_v34 = vld [vmem:[%s10140_s8 + $0x8] sm:$0xff]  ;;  %v797_v40 = vld [vmem:[%s10140_s8 + $0x18] sm:$0xff]  ;;  %s12473_s8 = sld [smem:[#allocation32_spill]]  ;;  %s12480_s28 = sld [smem:[#allocation34_spill]]  ;;  %vm2160_vm13 = vcmask 1041408  }
  0xf2   :  { %9111 = vmatprep.subr.bf16.mxu1 %v9110_v5  ;;  %v9118_v35 = vpack.c.bf16 %v795_v34, %v794_v33  ;;  %v879_v36 = vld [vmem:[%s10145_s14] sm:$0xff]  ;;  %v880_v37 = vld [vmem:[%s10145_s14 + $0x8] sm:$0xff]  ;;  %v9122_v41 = vpack.c.bf16 %v797_v40, %v796_v39  ;;  %v881_v42 = vld [vmem:[%s10145_s14 + $0x10] sm:$0xff]  ;;  %s12485_s3 = sld [smem:[#allocation36_spill]]  ;;  %s12486_s18 = sld [smem:[#allocation33_spill]]  ;;  %vm2063_vm14 = vcmask 523264  }
  0xf3   :  { %9113 = vmatpush3.bf16.msra.mxu1 %v9110_v5  ;;  %v9126_v38 = vpack.c.bf16 %v880_v37, %v879_v36  ;;  %v882_v43 = vld [vmem:[%s10145_s14 + $0x18] sm:$0xff]  ;;  %v7346_v55 = vld [vmem:[#allocation10] ss:$0 sm:$0xff]  ;;  %v7347_v57 = vld [vmem:[#allocation11] ss:$0 sm:$0xff]  ;;  %s12474_s14 = sld [smem:[#allocation30_spill]] }
  0xf4   :  { %9115 = vmatprep.subr.bf16.mxu1 %v9114_v8  ;;  %9119 = vmatprep.subr.bf16.mxu0 %v9118_v35  ;;  %v9130_v44 = vpack.c.bf16 %v882_v43, %v881_v42  ;;  %v958_v45 = vld [vmem:[%s12462_s5] sm:$0xff]  ;;  %v959_v46 = vld [vmem:[%s12462_s5 + $0x8] sm:$0xff]  ;;  %v960_v62 = vld [vmem:[%s12462_s5 + $0x10] sm:$0xff]  ;;  %s12487_s22 = sld [smem:[#allocation37_spill]]  ;;  %s12488_s17 = sld [smem:[#allocation35_spill]]  ;;  %vm2153_vm0 = vcmask 15360  }
  0xf5   :  { %9121 = vmatpush3.bf16.msra.mxu0 %v9118_v35  ;;  %v9134_v47 = vpack.c.bf16 %v959_v46, %v958_v45  ;;  %v961_v63 = vld [vmem:[%s12462_s5 + $0x18] sm:$0xff]  ;;  %vm10403_vm3 = vmpackc.low %vm667_vm2, %vm667_vm2  ;;  %s10088_s23 = smov 126   ;;  %s10089_s26 = smov 64  }
  0xf6   :  { %9123 = vmatprep.subr.bf16.mxu0 %v9122_v41  ;;  %v9138_v2 = vpack.c.bf16 %v961_v63, %v960_v62  ;;  %vm10574_vm15 = vmpackc.low %vm2063_vm14, %vm2063_vm14  ;;  %s12614_s13 = sld [smem:[#allocation38_spill]]  ;;  %s12728_s1 = sld [smem:[#allocation39_spill]] }
  0xf7   :  { %9117 = vmatpush3.bf16.msra.mxu1 %v9114_v8  ;;  %s12729_s2 = sld [smem:[#allocation40_spill]]  ;;  %s12730_s29 = sld [smem:[#allocation43_spill]] }
  0xf8   :  { %9127 = vmatprep.subr.bf16.mxu1 %v9126_v38  ;;  %s12731_s7 = sld [smem:[#allocation41_spill]]  ;;  %s12732_s10 = sld [smem:[#allocation42_spill]] }
  0xf9   :  { %9125 = vmatpush3.bf16.msra.mxu0 %v9122_v41  ;;  %s12733_s0 = sld [smem:[#allocation44_spill]]  ;;  %s12734_s11 = sld [smem:[#allocation47_spill]] }
  0xfa   :  { %9135 = vmatprep.subr.bf16.mxu0 %v9134_v47  ;;  %s12735_s4 = sld [smem:[#allocation45_spill]]  ;;  %s12736_s30 = sld [smem:[#allocation46_spill]] }
  0xfb   :  { %s12737_s15 = sld [smem:[#allocation48_spill]]  ;;  %s12738_s5 = sld [smem:[#allocation51_spill]] }
 0x1c3   :  { %v8308_v10 = vpop.f32.mrb[0].mxu0 }
 0x1c4   :  { %v651_v11 = vadd.f32 %v8308_v10, %v7339_v9  ;;  %v645_v12 = vpop.f32.mrb[1].mxu0 }
 0x1c5   :  { %v646_v13 = vadd.f32 %v7339_v9, %v645_v12 }
 0x1c6   :  { %v655_v15 = vmax.f32 %v651_v11, 0.0 }
 0x1c7   :  { %v654_v14 = vmax.f32 %v646_v13, 0.0 }
 0x1c9   :  { %8317 = vmatprep.mubr.msk.f32.mxu1 %vm667_vm2, %v654_v14 }
 0x1ca   :  { %8318 = vmatmul.mubr.msk.f32.vlgmr.msra.gmra.mrb[0].mxu1 %vm667_vm2, %v655_v15 }
 0x1cb   :  { %9129 = vmatpush3.bf16.msra.mxu1 %v9126_v38 }
 0x1cc   :  { %9131 = vmatprep.subr.bf16.mxu1 %v9130_v44 }
 0x1cf   :  { %9133 = vmatpush3.bf16.msra.mxu1 %v9130_v44 }
 0x29d   :  { %v8319_v17 = vpop.f32.mrb[0].mxu1 }
 0x29e   :  { %v740_v18 = vpop.f32.mrb[1].mxu1  ;;  %v746_v20 = vadd.f32 %v8319_v17, %v7343_v16 }
 0x29f   :  { %v741_v19 = vadd.f32 %v7343_v16, %v740_v18 }
 0x2a0   :  { %v754_v22 = vsel %vm667_vm2, %v746_v20, 0.0 }
 0x2a1   :  { %v751_v21 = vsel %vm667_vm2, %v741_v19, 0.0 }
 0x2a2   :  { %752 = vadd.xlane.f32.xlu0 %v751_v21  ;;  %v557_v21 = vld [vmem:[%s12465_s21] sm:$0x1]  ;;  %s12740_s21 = sld [smem:[#allocation50_spill]] }
 0x2a3   :  { %vm1142_vm4 = vcmp.gt.f32.partialorder %v557_v21, 0.5 }
 0x2a6   :  { %755 = vadd.xlane.f32.xlu0 %v754_v22 }
 0x32f   :  { %v753_v23 = vpop.xlane.xlu0 %752 }
 0x330   :  { %v758_v24 = vmul.f32 0.03125, %v753_v23 }
 0x332   :  { %v760_v25 = vsub.f32 %v741_v19, %v758_v24  ;;  %v10086_v24 = vmov 0  }
 0x333   :  { %v756_v26 = vpop.xlane.xlu0 %755 }
 0x334   :  { %v759_v27 = vmul.f32 0.03125, %v756_v26  ;;  %v762_v28 = vmul.f32 %v760_v25, %v760_v25 }
 0x336   :  { %v761_v29 = vsub.f32 %v746_v20, %v759_v27  ;;  %v764_v30 = vsel %vm667_vm2, %v762_v28, 0.0  ;;  %v295_v20 = vlaneseq }
 0x337   :  { %765 = vadd.xlane.f32.xlu1 %v764_v30 }
 0x338   :  { %v763_v31 = vmul.f32 %v761_v29, %v761_v29  ;;  %v10432_v22 = vshrl.u32 %v295_v20, 7 }
 0x33a   :  { %v767_v32 = vsel %vm667_vm2, %v763_v31, 0.0  ;;  %12466 = vst [vmem:[#allocation54_spill] sm:$0xff] %v10432_v22  ;;  %v10435_v23 = vsub.s32 0, %v10432_v22 }
 0x33b   :  { %768 = vadd.xlane.f32.xlu1 %v767_v32 }
 0x33c   :  { %12467 = vst [vmem:[#allocation55_spill] sm:$0xff] %v10435_v23 }
 0x3c4   :  { %v766_v48 = vpop.xlane.xlu1 %765 }
 0x3c5   :  { %v770_v49 = vmul.f32 0.03125, %v766_v48 }
 0x3c7   :  { %v772_v50 = vadd.f32 1e-05, %v770_v49 }
 0x3c8   :  { %v769_v51 = vpop.xlane.xlu1 %768 }
 0x3c9   :  { %9588 = vrsqrt.f32 %v772_v50  ;;  %v771_v52 = vmul.f32 0.03125, %v769_v51 }
 0x3cb   :  { %v773_v53 = vadd.f32 1e-05, %v771_v52 }
 0x3cd   :  { %9590 = vrsqrt.f32 %v773_v53 }
 0x3d3   :  { %v9589_v54 = vpop.eup %9588 }
 0x3d4   :  { %v776_v56 = vmul.f32 %v9589_v54, %v760_v25  ;;  %v1143_v25 = vsel %vm1142_vm4, 1, %v10086_v24 }
 0x3d5   :  { %v1147_v26 = vrot.slane %v1143_v25, %v10435_v23 }
 0x3d6   :  { %v784_v58 = vmul.f32 %v7346_v55, %v776_v56 }
 0x3d7   :  { %v9591_v59 = vpop.eup %9590  ;;  %vm10438_vm5 = vcmp.eq.s32.totalorder %v1147_v26, 1 }
 0x3d8   :  { %v777_v60 = vmul.f32 %v9591_v59, %v761_v29  ;;  %v792_v61 = vadd.f32 %v7347_v57, %v784_v58  ;;  %v1037_v59 = vld [vmem:[%s12470_s25] sm:$0xff] }
 0x3da   :  { %v785_v0 = vmul.f32 %v7346_v55, %v777_v60  ;;  %8328 = vmatprep.mubr.msk.f32.mxu0 %vm667_vm2, %v792_v61  ;;  %8339 = vmatprep.mubr.msk.f32.mxu1 %vm667_vm2, %v792_v61  ;;  %v1038_v60 = vld [vmem:[%s12470_s25 + $0x8] sm:$0xff] }
 0x3dc   :  { %v793_v1 = vadd.f32 %v7347_v57, %v785_v0 }
 0x3de   :  { %8329 = vmatmul.mubr.msk.f32.vlgmr.msra.gmra.mrb[2].mxu0 %vm667_vm2, %v793_v1  ;;  %8340 = vmatmul.mubr.msk.f32.vlgmr.msra.gmra.mrb[2].mxu1 %vm667_vm2, %v793_v1 }
 0x3df   :  { %9137 = vmatpush3.bf16.msra.mxu0 %v9134_v47  ;;  %8350 = vmatprep.mubr.msk.f32.mxu0 %vm667_vm2, %v792_v61  ;;  %v9152_v61 = vpack.c.bf16 %v1038_v60, %v1037_v59 }
 0x3e0   :  { %9139 = vmatprep.subr.bf16.mxu0 %v9138_v2 }
 0x3e3   :  { %9141 = vmatpush3.bf16.msra.mxu0 %v9138_v2 }
 0x3e6   :  { %8351 = vmatmul.mubr.msk.f32.vlgmr.msra.gmra.mrb[4].mxu0 %vm667_vm2, %v793_v1 }
 0x4b1   :  { %v8330_v3 = vpop.f32.mrb[2].mxu0  ;;  %v8341_v4 = vpop.f32.mrb[2].mxu1 }
 0x4b2   :  { %v870_v5 = vpop.f32.mrb[3].mxu0  ;;  %v949_v6 = vpop.f32.mrb[3].mxu1 }
 0x4b3   :  { %v9578_v8 = vpack.i.bf16 %v8341_v4, %v949_v6  ;;  %v9142_v9 = vpack.c.bf16 %v8341_v4, %v949_v6  ;;  %1338 = vrot.lane.b32.xlu1 %v870_v5, %s10085_s9  ;;  %8357 = vmatprep.mubr.msk.f32.mxu1 %vm667_vm2, %v870_v5  ;;  %v1039_v5 = vld [vmem:[%s12470_s25 + $0x10] sm:$0xff]  ;;  %v1040_v6 = vld [vmem:[%s12470_s25 + $0x18] sm:$0xff] }
 0x4b5   :  { %9579 = vrot.lane.b32.xlu0 %v9578_v8, %s10085_s9  ;;  %9144 = vmatprep.subr.msk.bf16.mxu1 %vm10403_vm3, %v9142_v9 }
 0x4b6   :  { %9147 = vmatpush3.bf16.xpose.msk.msra.mxu1 %vm10403_vm3, %v9142_v9  ;;  %v9156_v9 = vpack.c.bf16 %v1040_v6, %v1039_v5 }
 0x4b7   :  { %1340 = vrot.lane.b32.xlu1 %v8330_v3, %s10085_s9 }
 0x4b9   :  { %v10415_v10 = vpop.f32.mrb[4].mxu0 }
 0x4ba   :  { %v10417_v11 = vpop.f32.mrb[5].mxu0 }
 0x4bb   :  { %v9583_v12 = vpack.i.bf16 %v10415_v10, %v10417_v11  ;;  %v9148_v13 = vpack.c.bf16 %v10415_v10, %v10417_v11 }
 0x4bd   :  { %9149 = vmatprep.subr.bf16.mxu0 %v9148_v13  ;;  %8358 = vmatmul.mubr.msk.f32.vlgmr.msra.gmra.mrb[4].mxu1 %vm667_vm2, %v8330_v3 }
 0x4be   :  { %9151 = vmatpush3.bf16.msra.mxu0 %v9148_v13 }
 0x4bf   :  { %9153 = vmatprep.subr.bf16.mxu0 %v9152_v61 }
 0x525   :  { %v1339_v14 = vpop.permute.xlu1 %1338 }
 0x526   :  { %8382 = vmatprep.mubr.msk.f32.mxu1 %vm667_vm2, %v1339_v14 }
 0x527   :  { %v9580_v15 = vpop.permute.xlu0 %9579 }
 0x528   :  { %v9582_v16 = vunpack.i.h.bf16 %v9580_v15  ;;  %v9581_v17 = vunpack.i.l.bf16 %v9580_v15 }
 0x529   :  { %v1341_v19 = vpop.permute.xlu1 %1340 }
 0x52a   :  { %v9160_v18 = vpack.c.bf16 %v9582_v16, %v9581_v17 }
 0x52c   :  { %9162 = vmatprep.subr.msk.bf16.mxu1 %vm10403_vm3, %v9160_v18 }
 0x52d   :  { %9165 = vmatpush3.bf16.xpose.msk.msra.mxu1 %vm10403_vm3, %v9160_v18  ;;  %v1041_v18 = vld [vmem:[%s12470_s25 + $0x20] sm:$0xff] }
 0x534   :  { %8383 = vmatmul.mubr.msk.f32.vlgmr.msra.gmra.mrb[6].mxu1 %vm667_vm2, %v1341_v19  ;;  %v1042_v19 = vld [vmem:[%s12470_s25 + $0x28] sm:$0xff] }
 0x535   :  { %v9170_v26 = vpack.c.bf16 %v1042_v19, %v1041_v18  ;;  %v7337_v18 = vadd.s32 4294967293, %v10432_v22 }
 0x590   :  { %v8359_v27 = vpop.f32.mrb[4].mxu1 }
 0x591   :  { %v1141_v29 = vmul.f32 0.17677669, %v8359_v27  ;;  %v1131_v30 = vpop.f32.mrb[5].mxu1 }
 0x592   :  { %v1140_v31 = vmul.f32 0.17677669, %v1131_v30  ;;  %v1044_v30 = vld [vmem:[%s12470_s25 + $0x38] sm:$0xff] }
 0x593   :  { %v1150_v32 = vsel %vm10438_vm5, %v1141_v29, -1e+30  ;;  %v1043_v29 = vld [vmem:[%s12470_s25 + $0x30] sm:$0xff]  ;;  %s12741_s25 = sld [smem:[#allocation52_spill]] }
 0x594   :  { %v1155_v33 = vsel %vm1151_vm6, %v1150_v32, -inf  ;;  %v1149_v34 = vsel %vm10438_vm5, %v1140_v31, -1e+30 }
 0x595   :  { %1156 = vmax.xlane.f32.xlu0 %v1155_v33  ;;  %v1152_v35 = vsel %vm1151_vm6, %v1149_v34, -inf }
 0x596   :  { %1153 = vmax.xlane.f32.xlu1 %v1152_v35  ;;  %v7354_v35 = vld [vmem:[#allocation13] ss:$0 sm:$0xff] }
 0x607   :  { %v8384_v36 = vpop.f32.mrb[6].mxu1 }
 0x608   :  { %v1420_v37 = vpop.f32.mrb[7].mxu1  ;;  %v1430_v50 = vmul.f32 0.17677669, %v8384_v36 }
 0x609   :  { %v1429_v38 = vmul.f32 0.17677669, %v1420_v37 }
 0x60a   :  { %v1432_v52 = vsel %vm10438_vm5, %v1430_v50, -1e+30 }
 0x60b   :  { %v1431_v39 = vsel %vm10438_vm5, %v1429_v38, -1e+30  ;;  %v1436_v53 = vsel %vm1151_vm6, %v1432_v52, -inf }
 0x60c   :  { %v1433_v40 = vsel %vm1151_vm6, %v1431_v39, -inf }
 0x60d   :  { %1434 = vmax.xlane.f32.xlu1 %v1433_v40 }
 0x622   :  { %v1157_v41 = vpop.xlane.xlu0 %1156 }
 0x623   :  { %v1159_v42 = vsub.f32 %v1150_v32, %v1157_v41  ;;  %v1154_v43 = vpop.xlane.xlu1 %1153  ;;  %v9174_v32 = vpack.c.bf16 %v1044_v30, %v1043_v29  ;;  %v2055_v30 = vld [vmem:[%s12480_s28] sm:$0xff] }
 0x624   :  { %v1158_v44 = vsub.f32 %v1149_v34, %v1154_v43 }
 0x625   :  { %v1162_v45 = vmul.f32 1.442695, %v1159_v42 }
 0x626   :  { %v1160_v46 = vmul.f32 1.442695, %v1158_v44 }
 0x628   :  { %9592 = vpow2.f32 %v1160_v46 }
 0x629   :  { %9594 = vpow2.f32 %v1162_v45 }
 0x632   :  { %v9593_v47 = vpop.eup %9592 }
 0x633   :  { %v1164_v48 = vsel %vm1151_vm6, %v9593_v47, 0.0  ;;  %v9595_v49 = vpop.eup %9594 }
 0x634   :  { %1165 = vadd.xlane.f32.xlu0 %v1164_v48  ;;  %v1167_v51 = vsel %vm1151_vm6, %v9595_v49, 0.0 }
 0x638   :  { %1168 = vadd.xlane.f32.xlu0 %v1167_v51 }
 0x63c   :  { %1437 = vmax.xlane.f32.xlu0 %v1436_v53  ;;  %v1674_v53 = vld [vmem:[%s12473_s8 + $0x8] sm:$0xff] }
 0x69a   :  { %v1435_v54 = vpop.xlane.xlu1 %1434 }
 0x69b   :  { %v1439_v55 = vsub.f32 %v1431_v39, %v1435_v54 }
 0x69d   :  { %v1441_v56 = vmul.f32 1.442695, %v1439_v55  ;;  %v1675_v55 = vld [vmem:[%s12473_s8 + $0x10] sm:$0xff] }
 0x69f   :  { %9596 = vpow2.f32 %v1441_v56  ;;  %v1676_v56 = vld [vmem:[%s12473_s8 + $0x18] sm:$0xff] }
 0x6a9   :  { %v9597_v57 = vpop.eup %9596 }
 0x6aa   :  { %v1445_v58 = vsel %vm1151_vm6, %v9597_v57, 0.0 }
 0x6ab   :  { %1446 = vadd.xlane.f32.xlu1 %v1445_v58 }
 0x6bc   :  { %9584 = vrot.lane.b32.xlu1 %v9583_v12, %s10085_s9  ;;  %s12739_s9 = sld [smem:[#allocation49_spill]] }
 0x6c1   :  { %v1166_v62 = vpop.xlane.xlu0 %1165 }
 0x6c2   :  { %9598 = vrcp.f32 %v1166_v62 }
 0x6c5   :  { %v1169_v63 = vpop.xlane.xlu0 %1168 }
 0x6c6   :  { %9600 = vrcp.f32 %v1169_v63 }
 0x6c9   :  { %v1438_v0 = vpop.xlane.xlu0 %1437 }
 0x6ca   :  { %v1440_v1 = vsub.f32 %v1432_v52, %v1438_v0  ;;  %v1673_v52 = vld [vmem:[%s12473_s8] sm:$0xff] }
 0x6cb   :  { %v9178_v54 = vpack.c.bf16 %v1674_v53, %v1673_v52  ;;  %v7375_v53 = vld [vmem:[#allocation14] ss:$0 sm:$0xff] }
 0x6cc   :  { %v9599_v2 = vpop.eup %9598  ;;  %v1443_v3 = vmul.f32 1.442695, %v1440_v1  ;;  %v7371_v1 = vld [vmem:[%s12474_s14] ss:$0 sm:$0xff] }
 0x6cd   :  { %v1172_v4 = vmul.f32 %v9599_v2, %v9593_v47  ;;  %9179 = vmatprep.subr.bf16.mxu1 %v9178_v54 }
 0x6ce   :  { %9602 = vpow2.f32 %v1443_v3  ;;  %9181 = vmatpush3.bf16.msra.mxu1 %v9178_v54  ;;  %v7372_v3 = vld [vmem:[%s12475_s20] ss:$0 sm:$0xff] }
 0x6cf   :  { %8364 = vmatprep.mubr.msk.f32.mxu0 %vm1151_vm6, %v1172_v4 }
 0x6d0   :  { %v9601_v7 = vpop.eup %9600 }
 0x6d1   :  { %v1173_v8 = vmul.f32 %v9601_v7, %v9595_v49 }
 0x6d3   :  { %8365 = vmatmul.mubr.msk.f32.vlgmr.msra.gmra.mrb[6].mxu0 %vm1151_vm6, %v1173_v8 }
 0x6d4   :  { %9155 = vmatpush3.bf16.msra.mxu0 %v9152_v61 }
 0x6d5   :  { %9157 = vmatprep.subr.bf16.mxu0 %v9156_v9 }
 0x6d8   :  { %v9603_v10 = vpop.eup %9602  ;;  %9159 = vmatpush3.bf16.msra.mxu0 %v9156_v9 }
 0x6d9   :  { %v1448_v11 = vsel %vm1151_vm6, %v9603_v10, 0.0 }
 0x6da   :  { %1449 = vadd.xlane.f32.xlu0 %v1448_v11  ;;  %v7333_v11 = vadd.s32 4294967295, %v10432_v22 }
 0x738   :  { %v1447_v12 = vpop.xlane.xlu1 %1446 }
 0x739   :  { %9604 = vrcp.f32 %v1447_v12  ;;  %v7335_v12 = vadd.s32 4294967294, %v10432_v22 }
 0x73c   :  { %v9585_v13 = vpop.permute.xlu1 %9584 }
 0x73d   :  { %v9587_v14 = vunpack.i.h.bf16 %v9585_v13  ;;  %v9586_v15 = vunpack.i.l.bf16 %v9585_v13  ;;  %v12311_v13 = vmov 0.0  }
 0x73f   :  { %v9166_v16 = vpack.c.bf16 %v9587_v14, %v9586_v15 }
 0x741   :  { %9167 = vmatprep.subr.bf16.mxu0 %v9166_v16 }
 0x743   :  { %v9605_v21 = vpop.eup %9604 }
 0x744   :  { %v1453_v28 = vmul.f32 %v9605_v21, %v9597_v57  ;;  %v9182_v57 = vpack.c.bf16 %v1676_v56, %v1675_v55 }
 0x746   :  { %9183 = vmatprep.subr.bf16.mxu1 %v9182_v57 }
 0x747   :  { %9185 = vmatpush3.bf16.msra.mxu1 %v9182_v57 }
 0x767   :  { %v1450_v17 = vpop.xlane.xlu0 %1449 }
 0x768   :  { %9606 = vrcp.f32 %v1450_v17 }
 0x772   :  { %v9607_v27 = vpop.eup %9606 }
 0x773   :  { %v1454_v31 = vmul.f32 %v9607_v27, %v9603_v10  ;;  %v10499_v10 = vand.u32 127, %v295_v20  ;;  %v10516_v20 = vadd.s32 8, %v10432_v22 }
 0x775   :  { %12476 = vst [vmem:[#allocation58_spill] sm:$0xff] %v10499_v10  ;;  %vm302_vm7 = vcmp.eq.s32.totalorder %v10499_v10, %v7333_v11  ;;  %vm308_vm8 = vcmp.eq.s32.totalorder %v10499_v10, %v7335_v12  ;;  %12479 = vst [vmem:[#allocation61_spill] sm:$0xff] %v10516_v20  ;;  %v7336_v17 = vadd.s32 4294967294, %v10516_v20  ;;  %vm314_vm11 = vcmp.eq.s32.totalorder %v10499_v10, %v7337_v18 }
 0x776   :  { %v10505_v14 = vsel %vm302_vm7, 1.0, %v12311_v13  ;;  %v10511_v15 = vsel %vm308_vm8, 1.0, %v12311_v13 }
 0x777   :  { %12477 = vst [vmem:[#allocation59_spill] sm:$0xff] %v10505_v14  ;;  %12478 = vst [vmem:[#allocation60_spill] sm:$0xff] %v10511_v15  ;;  %vm309_vm10 = vcmp.eq.s32.totalorder %v10499_v10, %v7336_v17 }
 0x778   :  { %v10529_v27 = vsel %vm309_vm10, 1.0, %v12311_v13 }
 0x779   :  { %12482 = vst [vmem:[#allocation63_spill] sm:$0xff] %v10529_v27 }
 0x7a6   :  { %v8366_v24 = vpop.f32.mrb[6].mxu0 }
 0x7a7   :  { %v1246_v25 = vpop.f32.mrb[7].mxu0 }
 0x7a8   :  { %8375 = vmatprep.mubr.msk.f32.mxu0 %vm667_vm2, %v1246_v25  ;;  %v7338_v25 = vadd.s32 4294967293, %v10516_v20 }
 0x7a9   :  { %8376 = vmatmul.mubr.msk.f32.vlgmr.msra.gmra.mrb[8].mxu0 %vm667_vm2, %v8366_v24 }
 0x7aa   :  { %9169 = vmatpush3.bf16.msra.mxu0 %v9166_v16  ;;  %8389 = vmatprep.mubr.msk.f32.mxu0 %vm1151_vm6, %v1453_v28  ;;  %v7334_v16 = vadd.s32 4294967295, %v10516_v20  ;;  %v10532_v28 = vsel %vm314_vm11, 1.0, %v12311_v13  ;;  %vm315_vm12 = vcmp.eq.s32.totalorder %v10499_v10, %v7338_v25 }
 0x7ab   :  { %9171 = vmatprep.subr.bf16.mxu0 %v9170_v26  ;;  %12483 = vst [vmem:[#allocation64_spill] sm:$0xff] %v10532_v28  ;;  %v10542_v29 = vsel %vm315_vm12, 1.0, %v12311_v13 }
 0x7ac   :  { %vm303_vm9 = vcmp.eq.s32.totalorder %v10499_v10, %v7334_v16  ;;  %12484 = vst [vmem:[#allocation65_spill] sm:$0xff] %v10542_v29 }
 0x7ad   :  { %8390 = vmatmul.mubr.msk.f32.vlgmr.msra.gmra.mrb[10].mxu0 %vm1151_vm6, %v1454_v31  ;;  %v2056_v31 = vld [vmem:[%s12480_s28 + $0x8] sm:$0xff] }
 0x7ae   :  { %9173 = vmatpush3.bf16.msra.mxu0 %v9170_v26  ;;  %v10526_v26 = vsel %vm303_vm9, 1.0, %v12311_v13 }
 0x7af   :  { %9175 = vmatprep.subr.bf16.mxu0 %v9174_v32  ;;  %12481 = vst [vmem:[#allocation62_spill] sm:$0xff] %v10526_v26 }
 0x7b2   :  { %9177 = vmatpush3.bf16.msra.mxu0 %v9174_v32  ;;  %v9198_v32 = vpack.c.bf16 %v2056_v31, %v2055_v30 }
 0x880   :  { %v8391_v33 = vpop.f32.mrb[10].mxu0 }
 0x881   :  { %v1535_v34 = vpop.f32.mrb[11].mxu0 }
 0x882   :  { %8400 = vmatprep.mubr.msk.f32.mxu0 %vm667_vm2, %v1535_v34  ;;  %v2058_v34 = vld [vmem:[%s12480_s28 + $0x18] sm:$0xff] }
 0x883   :  { %8401 = vmatmul.mubr.msk.f32.vlgmr.msra.gmra.mrb[8].mxu0 %vm667_vm2, %v8391_v33  ;;  %v2057_v33 = vld [vmem:[%s12480_s28 + $0x10] sm:$0xff] }
 0x884   :  { %8425 = vmatprep.mubr.msk.f32.mxu0 %vm1151_vm6, %v10511_v15 }
 0x956   :  { %v8402_v36 = vpop.f32.mrb[8].mxu0 }
 0x957   :  { %v1616_v37 = vpop.f32.mrb[9].mxu0  ;;  %v10480_v39 = vadd.f32 %v8402_v36, %v7354_v35  ;;  %v2059_v36 = vld [vmem:[%s12480_s28 + $0x20] sm:$0xff] }
 0x958   :  { %v10478_v38 = vadd.f32 %v7354_v35, %v1616_v37  ;;  %v9202_v35 = vpack.c.bf16 %v2058_v34, %v2057_v33  ;;  %v2060_v37 = vld [vmem:[%s12480_s28 + $0x28] sm:$0xff]  ;;  %v12491_v33 = vmov 0 }
 0x959   :  { %12472 = vst [vmem:[#allocation57_spill] sm:$0xff] %v10480_v39  ;;  %v1634_v41 = vsel %vm667_vm2, %v10480_v39, 0.0  ;;  %v12492_v33 = vsel %vm10574_vm15, 4294967295, %v12491_v33 }
 0x95a   :  { %12471 = vst [vmem:[#allocation56_spill] sm:$0xff] %v10478_v38  ;;  %v1631_v40 = vsel %vm667_vm2, %v10478_v38, 0.0  ;;  %12493 = vst [vmem:[#allocation68_spill] sm:$0xff] %v12492_v33 }
 0x95b   :  { %1632 = vadd.xlane.f32.xlu0 %v1631_v40  ;;  %v9206_v40 = vpack.c.bf16 %v2060_v37, %v2059_v36  ;;  %v2361_v36 = vld [vmem:[%s12487_s22 + $0x8] sm:$0xff] }
 0x95f   :  { %1635 = vadd.xlane.f32.xlu0 %v1634_v41  ;;  %v2061_v41 = vld [vmem:[%s12480_s28 + $0x30] sm:$0xff] }
 0x9e8   :  { %v1633_v42 = vpop.xlane.xlu0 %1632 }
 0x9e9   :  { %v1637_v43 = vmul.f32 0.03125, %v1633_v42  ;;  %v2062_v42 = vld [vmem:[%s12480_s28 + $0x38] sm:$0xff] }
 0x9eb   :  { %v1639_v44 = vsub.f32 %v10478_v38, %v1637_v43  ;;  %v9210_v43 = vpack.c.bf16 %v2062_v42, %v2061_v41  ;;  %v2275_v41 = vld [vmem:[%s12488_s17] sm:$0xff] }
 0x9ec   :  { %v1636_v45 = vpop.xlane.xlu0 %1635 }
 0x9ed   :  { %v1638_v46 = vmul.f32 0.03125, %v1636_v45  ;;  %v1641_v47 = vmul.f32 %v1639_v44, %v1639_v44  ;;  %v12284_v45 = vsub.s32 3, %v10432_v22 }
 0x9ef   :  { %v1640_v48 = vsub.f32 %v10480_v39, %v1638_v46  ;;  %v1643_v49 = vsel %vm667_vm2, %v1641_v47, 0.0  ;;  %v1758_v46 = vld [vmem:[%s12486_s18] sm:$0xf]  ;;  %v10873_v39 = vadd.s32 232, %v10432_v22 }
 0x9f0   :  { %1644 = vadd.xlane.f32.xlu0 %v1643_v49  ;;  %v1762_v47 = vrot.slane %v1758_v46, %v12284_v45  ;;  %v12282_v49 = vsub.s32 1, %v10432_v22  ;;  %v10819_v45 = vadd.s32 200, %v10432_v22 }
 0x9f1   :  { %v1642_v50 = vmul.f32 %v1640_v48, %v1640_v48  ;;  %12532 = vst [vmem:[#allocation107_spill] sm:$0xff] %v10873_v39 }
 0x9f2   :  { %v1947_v52 = vrot.slane %v1758_v46, %v12282_v49  ;;  %v10804_v49 = vadd.s32 192, %v10432_v22  ;;  %12522 = vst [vmem:[#allocation97_spill] sm:$0xff] %v10819_v45 }
 0x9f3   :  { %v1646_v51 = vsel %vm667_vm2, %v1642_v50, 0.0 }
 0x9f4   :  { %1647 = vadd.xlane.f32.xlu0 %v1646_v51  ;;  %12519 = vst [vmem:[#allocation94_spill] sm:$0xff] %v10804_v49  ;;  %v468_v33 = vand.u32 15, %v10804_v49 }
 0xa7d   :  { %v1645_v58 = vpop.xlane.xlu0 %1644 }
 0xa7e   :  { %v1649_v59 = vmul.f32 0.03125, %v1645_v58 }
 0xa80   :  { %v1651_v60 = vadd.f32 1e-05, %v1649_v59 }
 0xa81   :  { %v1648_v61 = vpop.xlane.xlu0 %1647 }
 0xa82   :  { %9608 = vrsqrt.f32 %v1651_v60  ;;  %v1650_v62 = vmul.f32 0.03125, %v1648_v61 }
 0xa84   :  { %v1652_v63 = vadd.f32 1e-05, %v1650_v62  ;;  %v2036_v62 = vrot.slane %v1758_v46, %v10435_v23 }
 0xa86   :  { %9610 = vrsqrt.f32 %v1652_v63 }
 0xa8c   :  { %v9609_v0 = vpop.eup %9608 }
 0xa8d   :  { %v1655_v2 = vmul.f32 %v9609_v0, %v1639_v44  ;;  %v2145_v44 = vld [vmem:[%s12485_s3] sm:$0x3] }
 0xa8f   :  { %v1663_v4 = vmul.f32 %v7371_v1, %v1655_v2 }
 0xa90   :  { %v9611_v5 = vpop.eup %9610 }
 0xa91   :  { %v1656_v6 = vmul.f32 %v9611_v5, %v1640_v48  ;;  %v1671_v7 = vadd.f32 %v7372_v3, %v1663_v4  ;;  %v12283_v48 = vsub.s32 2, %v10432_v22 }
 0xa93   :  { %v1664_v8 = vmul.f32 %v7371_v1, %v1656_v6  ;;  %8411 = vmatprep.mubr.msk.f32.mxu1 %vm667_vm2, %v1671_v7  ;;  %v1858_v51 = vrot.slane %v1758_v46, %v12283_v48  ;;  %v445_v46 = vand.u32 15, %v10516_v20 }
 0xa95   :  { %v1672_v9 = vadd.f32 %v7372_v3, %v1664_v8  ;;  %vm477_vm3 = vcmp.eq.s32.totalorder %v445_v46, %v10499_v10 }
 0xa97   :  { %8412 = vmatmul.mubr.msk.f32.vlgmr.msra.gmra.mrb[8].mxu1 %vm667_vm2, %v1672_v9 }
 0xa98   :  { %8418 = vmatprep.mubr.msk.f32.mxu1 %vm1151_vm6, %v10505_v14  ;;  %v10866_v14 = vadd.s32 224, %v10432_v22 }
 0xa9a   :  { %12530 = vst [vmem:[#allocation105_spill] sm:$0xff] %v10866_v14 }
 0xb6a   :  { %v8413_v19 = vpop.f32.mrb[8].mxu1 }
 0xb6b   :  { %v1749_v21 = vpop.f32.mrb[9].mxu1  ;;  %v1764_v50 = vmul.f32 %v8413_v19, %v1762_v47 }
 0xb6c   :  { %v9186_v24 = vpack.c.bf16 %v8413_v19, %v1749_v21  ;;  %v1763_v54 = vmul.f32 %v1762_v47, %v1749_v21  ;;  %v10602_v47 = vadd.s32 24, %v10432_v22 }
 0xb6d   :  { %v1773_v57 = vadd.f32 %v7375_v53, %v1764_v50 }
 0xb6e   :  { %9187 = vmatprep.subr.bf16.mxu1 %v9186_v24  ;;  %9191 = vmatprep.subr.bf16.mxu0 %v9186_v24  ;;  %v1772_v63 = vadd.f32 %v7375_v53, %v1763_v54  ;;  %v447_v54 = vand.u32 15, %v10602_v47 }
 0xb6f   :  { %9189 = vmatpush3.bf16.msra.mxu1 %v9186_v24  ;;  %9193 = vmatpush3.bf16.msra.mxu0 %v9186_v24 }
 0xb70   :  { %9195 = vmatprep.subr.bf16.mxu1 %v9186_v24  ;;  %9199 = vmatprep.subr.bf16.mxu0 %v9198_v32  ;;  %vm479_vm5 = vcmp.eq.s32.totalorder %v447_v54, %v10499_v10 }
 0xb72   :  { %8419 = vmatmul.mubr.msk.f32.vlgmr.msra.gmra.mrb[10].mxu1 %vm1151_vm6, %v10526_v26  ;;  %8426 = vmatmul.mubr.msk.f32.vlgmr.msra.gmra.mrb[12].mxu0 %vm1151_vm6, %v10529_v27  ;;  %v469_v27 = vand.u32 15, %v10819_v45  ;;  %v10893_v45 = vadd.s32 248, %v10432_v22 }
 0xb73   :  { %9197 = vmatpush3.bf16.msra.mxu1 %v9186_v24  ;;  %8432 = vmatprep.mubr.msk.f32.mxu1 %vm1151_vm6, %v10532_v28 }
 0xb74   :  { %9201 = vmatpush3.bf16.msra.mxu0 %v9198_v32  ;;  %8454 = vmatprep.subr.msk.mxu1 %vm2160_vm13, %v2145_v44  ;;  %12536 = vst [vmem:[#allocation111_spill] sm:$0xff] %v10893_v45 }
 0xb75   :  { %9203 = vmatprep.subr.bf16.mxu0 %v9202_v35 }
 0xb76   :  { %8433 = vmatmul.mubr.msk.f32.vlgmr.msra.gmra.mrb[12].mxu1 %vm1151_vm6, %v10542_v29  ;;  %v10860_v29 = vadd.s32 216, %v10432_v22 }
 0xb77   :  { %8455 = vmatpush3.msk.msra.mxu1 %vm2160_vm13, %v2145_v44  ;;  %v10594_v44 = vadd.s32 16, %v10432_v22 }
 0xb78   :  { %9205 = vmatpush3.bf16.msra.mxu0 %v9202_v35  ;;  %v2360_v35 = vld [vmem:[%s12487_s22] sm:$0xff]  ;;  %12529 = vst [vmem:[#allocation104_spill] sm:$0xff] %v10860_v29  ;;  %v471_v26 = vand.u32 15, %v10860_v29  ;;  %v472_v29 = vand.u32 15, %v10866_v14 }
 0xb79   :  { %9207 = vmatprep.subr.bf16.mxu0 %v9206_v40  ;;  %v9220_v42 = vpack.c.bf16 %v2361_v36, %v2360_v35  ;;  %v446_v50 = vand.u32 15, %v10594_v44  ;;  %v10719_v35 = vadd.s32 120, %v10432_v22 }
 0xb7b   :  { %vm478_vm4 = vcmp.eq.s32.totalorder %v446_v50, %v10499_v10  ;;  %v10744_v50 = vadd.s32 144, %v10432_v22 }
 0xb7c   :  { %9209 = vmatpush3.bf16.msra.mxu0 %v9206_v40 }
 0xb7d   :  { %9211 = vmatprep.subr.bf16.mxu0 %v9210_v43  ;;  %12507 = vst [vmem:[#allocation82_spill] sm:$0xff] %v10744_v50 }
 0xb80   :  { %9213 = vmatpush3.bf16.msra.mxu0 %v9210_v43  ;;  %v444_v43 = vand.u32 15, %v10432_v22 }
 0xb82   :  { %vm476_vm1 = vcmp.eq.s32.totalorder %v444_v43, %v10499_v10  ;;  %v10739_v43 = vadd.s32 136, %v10432_v22 }
 0xb83   :  { %v10613_v53 = vsel %vm476_vm1, 1.0, %v12311_v13 }
 0xb84   :  { %12494 = vst [vmem:[#allocation69_spill] sm:$0xff] %v10613_v53 }
 0xc45   :  { %v8420_v55 = vpop.f32.mrb[10].mxu1  ;;  %v8427_v56 = vpop.f32.mrb[12].mxu0 }
 0xc46   :  { %v1860_v58 = vmul.f32 %v8420_v55, %v1858_v51  ;;  %v1846_v59 = vpop.f32.mrb[11].mxu1  ;;  %v1949_v60 = vmul.f32 %v8427_v56, %v1947_v52  ;;  %v1935_v61 = vpop.f32.mrb[13].mxu0  ;;  %v10618_v55 = vadd.s32 40, %v10432_v22 }
 0xc47   :  { %v1859_v0 = vmul.f32 %v1858_v51, %v1846_v59  ;;  %v1948_v1 = vmul.f32 %v1947_v52, %v1935_v61  ;;  %v10609_v51 = vadd.s32 32, %v10432_v22  ;;  %v2276_v52 = vld [vmem:[%s12488_s17 + $0x8] sm:$0xff]  ;;  %v10634_v59 = vsel %vm478_vm4, 1.0, %v12311_v13 }
 0xc48   :  { %v1862_v2 = vadd.f32 %v1860_v58, %v1773_v57  ;;  %v10625_v57 = vadd.s32 48, %v10432_v22  ;;  %v10631_v58 = vsel %vm477_vm3, 1.0, %v12311_v13  ;;  %12496 = vst [vmem:[#allocation71_spill] sm:$0xff] %v10634_v59  ;;  %v10639_v61 = vadd.s32 56, %v10432_v22 }
 0xc49   :  { %v1861_v3 = vadd.f32 %v1859_v0, %v1772_v63  ;;  %v8434_v4 = vpop.f32.mrb[12].mxu1  ;;  %v448_v56 = vand.u32 15, %v10609_v51  ;;  %12495 = vst [vmem:[#allocation70_spill] sm:$0xff] %v10631_v58  ;;  %v10644_v63 = vadd.s32 64, %v10432_v22  ;;  %v10651_v0 = vsel %vm479_vm5, 1.0, %v12311_v13 }
 0xc4a   :  { %v1951_v5 = vadd.f32 %v1949_v60, %v1862_v2  ;;  %v2038_v6 = vmul.f32 %v8434_v4, %v2036_v62  ;;  %v2024_v7 = vpop.f32.mrb[13].mxu1  ;;  %v449_v60 = vand.u32 15, %v10618_v55  ;;  %12497 = vst [vmem:[#allocation72_spill] sm:$0xff] %v10651_v0  ;;  %v451_v2 = vand.u32 15, %v10639_v61 }
 0xc4b   :  { %v1950_v8 = vadd.f32 %v1948_v1, %v1861_v3  ;;  %v2037_v9 = vmul.f32 %v2036_v62, %v2024_v7  ;;  %vm480_vm7 = vcmp.eq.s32.totalorder %v448_v56, %v10499_v10  ;;  %v450_v62 = vand.u32 15, %v10625_v57 }
 0xc4c   :  { %v2040_v11 = vadd.f32 %v2038_v6, %v1951_v5  ;;  %v10654_v1 = vsel %vm480_vm7, 1.0, %v12311_v13  ;;  %vm481_vm8 = vcmp.eq.s32.totalorder %v449_v60, %v10499_v10  ;;  %v10659_v3 = vadd.s32 72, %v10432_v22 }
 0xc4d   :  { %v2039_v12 = vadd.f32 %v2037_v9, %v1950_v8  ;;  %12498 = vst [vmem:[#allocation73_spill] sm:$0xff] %v10654_v1  ;;  %vm482_vm9 = vcmp.eq.s32.totalorder %v450_v62, %v10499_v10  ;;  %v452_v4 = vand.u32 15, %v10644_v63  ;;  %v10664_v5 = vadd.s32 80, %v10432_v22 }
 0xc4e   :  { %v7383_v16 = vmul.f32 -1.442695, %v2040_v11  ;;  %v10671_v6 = vsel %vm481_vm8, 1.0, %v12311_v13  ;;  %v10674_v7 = vsel %vm482_vm9, 1.0, %v12311_v13  ;;  %vm483_vm10 = vcmp.eq.s32.totalorder %v451_v2, %v10499_v10 }
 0xc4f   :  { %v7382_v17 = vmul.f32 -1.442695, %v2039_v12  ;;  %12499 = vst [vmem:[#allocation74_spill] sm:$0xff] %v10671_v6  ;;  %12500 = vst [vmem:[#allocation75_spill] sm:$0xff] %v10674_v7  ;;  %v453_v8 = vand.u32 15, %v10659_v3  ;;  %v10679_v9 = vadd.s32 88, %v10432_v22  ;;  %vm484_vm11 = vcmp.eq.s32.totalorder %v452_v4, %v10499_v10 }
 0xc50   :  { %9612 = vpow2.f32 %v7383_v16  ;;  %v10691_v16 = vsel %vm483_vm10, 1.0, %v12311_v13  ;;  %v461_v56 = vand.u32 15, %v10739_v43  ;;  %v10759_v60 = vadd.s32 152, %v10432_v22 }
 0xc51   :  { %9614 = vpow2.f32 %v7382_v17  ;;  %12501 = vst [vmem:[#allocation76_spill] sm:$0xff] %v10691_v16  ;;  %v10694_v17 = vsel %vm484_vm11, 1.0, %v12311_v13  ;;  %vm485_vm12 = vcmp.eq.s32.totalorder %v453_v8, %v10499_v10  ;;  %v462_v62 = vand.u32 15, %v10744_v50 }
 0xc52   :  { %12502 = vst [vmem:[#allocation77_spill] sm:$0xff] %v10694_v17  ;;  %12510 = vst [vmem:[#allocation85_spill] sm:$0xff] %v10759_v60  ;;  %v10764_v2 = vadd.s32 160, %v10432_v22  ;;  %vm493_vm10 = vcmp.eq.s32.totalorder %v461_v56, %v10499_v10  ;;  %v10799_v56 = vadd.s32 184, %v10432_v22 }
 0xc53   :  { %vm494_vm11 = vcmp.eq.s32.totalorder %v462_v62, %v10499_v10 }
 0xc54   :  { %12511 = vst [vmem:[#allocation86_spill] sm:$0xff] %v10764_v2  ;;  %12518 = vst [vmem:[#allocation93_spill] sm:$0xff] %v10799_v56 }
 0xc5a   :  { %v9613_v18 = vpop.eup %9612 }
 0xc5b   :  { %v9615_v19 = vpop.eup %9614  ;;  %v2048_v21 = vadd.f32 1.0, %v9613_v18  ;;  %v455_v18 = vand.u32 15, %v10679_v9 }
 0xc5c   :  { %v2047_v24 = vadd.f32 1.0, %v9615_v19  ;;  %v10699_v19 = vadd.s32 104, %v10432_v22 }
 0xc5d   :  { %9616 = vrcp.f32 %v2048_v21  ;;  %vm487_vm3 = vcmp.eq.s32.totalorder %v455_v18, %v10499_v10  ;;  %v10779_v18 = vadd.s32 168, %v10432_v22 }
 0xc5e   :  { %9618 = vrcp.f32 %v2047_v24  ;;  %v10704_v24 = vadd.s32 112, %v10432_v22 }
 0xc5f   :  { %12514 = vst [vmem:[#allocation89_spill] sm:$0xff] %v10779_v18 }
 0xc60   :  { %v458_v36 = vand.u32 15, %v10704_v24 }
 0xc62   :  { %vm490_vm7 = vcmp.eq.s32.totalorder %v458_v36, %v10499_v10  ;;  %v10791_v36 = vsel %vm493_vm10, 1.0, %v12311_v13  ;;  %vm503_vm10 = vcmp.eq.s32.totalorder %v471_v26, %v10499_v10  ;;  %v10886_v26 = vadd.s32 240, %v10432_v22 }
 0xc63   :  { %v10754_v54 = vsel %vm490_vm7, 1.0, %v12311_v13  ;;  %12516 = vst [vmem:[#allocation91_spill] sm:$0xff] %v10791_v36  ;;  %vm500_vm7 = vcmp.eq.s32.totalorder %v468_v33, %v10499_v10  ;;  %v10878_v28 = vsel %vm503_vm10, 1.0, %v12311_v13 }
 0xc64   :  { %12509 = vst [vmem:[#allocation84_spill] sm:$0xff] %v10754_v54  ;;  %v10844_v15 = vsel %vm500_vm7, 1.0, %v12311_v13  ;;  %12533 = vst [vmem:[#allocation108_spill] sm:$0xff] %v10878_v28 }
 0xc65   :  { %12526 = vst [vmem:[#allocation101_spill] sm:$0xff] %v10844_v15  ;;  %12534 = vst [vmem:[#allocation109_spill] sm:$0xff] %v10886_v26 }
 0xc67   :  { %v9617_v25 = vpop.eup %9616 }
 0xc68   :  { %v9619_v30 = vpop.eup %9618  ;;  %v10568_v31 = vmul.f32 %v9617_v25, %v2040_v11  ;;  %v454_v11 = vand.u32 15, %v10664_v5  ;;  %v10711_v25 = vsel %vm485_vm12, 1.0, %v12311_v13 }
 0xc69   :  { %v10570_v32 = vmul.f32 %v9619_v30, %v2039_v12  ;;  %v10684_v12 = vadd.s32 96, %v10432_v22  ;;  %12503 = vst [vmem:[#allocation78_spill] sm:$0xff] %v10711_v25 }
 0xc6a   :  { %12489 = vst [vmem:[#allocation66_spill] sm:$0xff] %v10568_v31  ;;  %vm486_vm1 = vcmp.eq.s32.totalorder %v454_v11, %v10499_v10  ;;  %v463_v11 = vand.u32 15, %v10759_v60 }
 0xc6b   :  { %12490 = vst [vmem:[#allocation67_spill] sm:$0xff] %v10570_v32  ;;  %8451 = vmatprep.mubr.msk.f32.mxu0 %vm2063_vm14, %v10570_v32  ;;  %v9214_v34 = vpack.c.bf16 %v10568_v31, %v10570_v32  ;;  %v456_v21 = vand.u32 15, %v10684_v12  ;;  %v10714_v30 = vsel %vm486_vm1, 1.0, %v12311_v13 }
 0xc6c   :  { %8452 = vmatmul.mubr.msk.f32.vlgmr.msra.gmra.mrb[14].mxu0 %vm2063_vm14, %v10568_v31  ;;  %12504 = vst [vmem:[#allocation79_spill] sm:$0xff] %v10714_v30  ;;  %vm495_vm12 = vcmp.eq.s32.totalorder %v463_v11, %v10499_v10 }
 0xc6d   :  { %9216 = vmatprep.subr.msk.bf16.mxu1 %vm10574_vm15, %v9214_v34  ;;  %vm488_vm4 = vcmp.eq.s32.totalorder %v456_v21, %v10499_v10  ;;  %v464_v21 = vand.u32 15, %v10764_v2  ;;  %v10811_v11 = vsel %vm495_vm12, 1.0, %v12311_v13 }
 0xc6e   :  { %12520 = vst [vmem:[#allocation95_spill] sm:$0xff] %v10811_v11 }
 0xc6f   :  { %vm496_vm1 = vcmp.eq.s32.totalorder %v464_v21, %v10499_v10  ;;  %v467_v21 = vand.u32 15, %v10799_v56  ;;  %v10926_v56 = vadd.s32 128, %v10499_v10 }
 0xc70   :  { %v10814_v48 = vsel %vm496_vm1, 1.0, %v12311_v13 }
 0xc71   :  { %12521 = vst [vmem:[#allocation96_spill] sm:$0xff] %v10814_v48  ;;  %12541 = vst [vmem:[#allocation116_spill] sm:$0xff] %v10926_v56 }
 0xd3f   :  { %v8453_v37 = vpop.f32.mrb[14].mxu0 }
 0xd40   :  { %3904 = vrot.lane.b32.xlu0 %v8453_v37, %s10088_s23  ;;  %v2136_v40 = vpop.f32.mrb[15].mxu0 }
 0xd41   :  { %3902 = vrot.lane.b32.xlu1 %v2136_v40, %s10088_s23  ;;  %8456 = vmatprep.mubr.msk.f32.mxu1 %vm2153_vm0, %v2136_v40  ;;  %v10731_v40 = vsel %vm487_vm3, 1.0, %v12311_v13 }
 0xd42   :  { %8457 = vmatmul.mubr.msk.f32.vlgmr.msra.gmra.mrb[14].mxu1 %vm2153_vm0, %v8453_v37  ;;  %v10724_v37 = vadd.s32 128, %v10432_v22  ;;  %12505 = vst [vmem:[#allocation80_spill] sm:$0xff] %v10731_v40 }
 0xd43   :  { %9219 = vmatpush3.bf16.xpose.msk.msra.mxu1 %vm10574_vm15, %v9214_v34  ;;  %8463 = vmatprep.mubr.msk.f32.mxu1 %vm2063_vm14, %v2275_v41  ;;  %v457_v34 = vand.u32 15, %v10699_v19  ;;  %v10734_v41 = vsel %vm488_vm4, 1.0, %v12311_v13 }
 0xd44   :  { %9221 = vmatprep.subr.bf16.mxu1 %v9220_v42  ;;  %12506 = vst [vmem:[#allocation81_spill] sm:$0xff] %v10734_v41  ;;  %v460_v46 = vand.u32 15, %v10724_v37 }
 0xd45   :  { %4107 = vrot.lane.b32.xlu1 %v10570_v32, %s10089_s26  ;;  %vm489_vm5 = vcmp.eq.s32.totalorder %v457_v34, %v10499_v10  ;;  %v10784_v34 = vadd.s32 176, %v10432_v22 }
 0xd46   :  { %vm492_vm9 = vcmp.eq.s32.totalorder %v460_v46, %v10499_v10  ;;  %v465_v46 = vand.u32 15, %v10779_v18 }
 0xd47   :  { %v10774_v8 = vsel %vm492_vm9, 1.0, %v12311_v13  ;;  %12515 = vst [vmem:[#allocation90_spill] sm:$0xff] %v10784_v34  ;;  %v466_v62 = vand.u32 15, %v10784_v34 }
 0xd48   :  { %12513 = vst [vmem:[#allocation88_spill] sm:$0xff] %v10774_v8  ;;  %vm497_vm3 = vcmp.eq.s32.totalorder %v465_v46, %v10499_v10 }
 0xd49   :  { %4109 = vrot.lane.b32.xlu1 %v10568_v31, %s10089_s26  ;;  %vm498_vm4 = vcmp.eq.s32.totalorder %v466_v62, %v10499_v10  ;;  %v10828_v23 = vsel %vm497_vm3, 1.0, %v12311_v13 }
 0xd4a   :  { %8464 = vmatmul.mubr.msk.f32.vlgmr.msra.gmra.mrb[16].mxu1 %vm2063_vm14, %v2276_v52  ;;  %v10751_v52 = vsel %vm489_vm5, 1.0, %v12311_v13  ;;  %12523 = vst [vmem:[#allocation98_spill] sm:$0xff] %v10828_v23  ;;  %v10831_v46 = vsel %vm498_vm4, 1.0, %v12311_v13  ;;  %vm499_vm5 = vcmp.eq.s32.totalorder %v467_v21, %v10499_v10  ;;  %v10857_v21 = vadd.s32 208, %v10432_v22 }
 0xd4b   :  { %9223 = vmatpush3.bf16.msra.mxu1 %v9220_v42  ;;  %8470 = vmatprep.mubr.msk.f32.mxu1 %vm1151_vm6, %v10613_v53  ;;  %v459_v42 = vand.u32 15, %v10719_v35  ;;  %12508 = vst [vmem:[#allocation83_spill] sm:$0xff] %v10751_v52  ;;  %12524 = vst [vmem:[#allocation99_spill] sm:$0xff] %v10831_v46  ;;  %v10841_v62 = vsel %vm499_vm5, 1.0, %v12311_v13 }
 0xd4c   :  { %12525 = vst [vmem:[#allocation100_spill] sm:$0xff] %v10841_v62  ;;  %12528 = vst [vmem:[#allocation103_spill] sm:$0xff] %v10857_v21 }
 0xd4d   :  { %vm491_vm8 = vcmp.eq.s32.totalorder %v459_v42, %v10499_v10  ;;  %v10794_v42 = vsel %vm494_vm11, 1.0, %v12311_v13  ;;  %vm504_vm11 = vcmp.eq.s32.totalorder %v472_v29, %v10499_v10  ;;  %v475_v29 = vand.u32 15, %v10893_v45 }
 0xd4e   :  { %8471 = vmatmul.mubr.msk.f32.vlgmr.msra.gmra.mrb[18].mxu1 %vm1151_vm6, %v10631_v58  ;;  %v10771_v4 = vsel %vm491_vm8, 1.0, %v12311_v13  ;;  %12517 = vst [vmem:[#allocation92_spill] sm:$0xff] %v10794_v42  ;;  %vm501_vm8 = vcmp.eq.s32.totalorder %v469_v27, %v10499_v10  ;;  %v470_v27 = vand.u32 15, %v10857_v21  ;;  %v10889_v21 = vsel %vm504_vm11, 1.0, %v12311_v13 }
 0xd4f   :  { %8473 = vmatprep.mubr.msk.f32.mxu1 %vm1151_vm6, %v10634_v59  ;;  %12512 = vst [vmem:[#allocation87_spill] sm:$0xff] %v10771_v4  ;;  %v10852_v33 = vsel %vm501_vm8, 1.0, %v12311_v13  ;;  %12535 = vst [vmem:[#allocation110_spill] sm:$0xff] %v10889_v21  ;;  %vm507_vm3 = vcmp.eq.s32.totalorder %v475_v29, %v10499_v10  ;;  %v348_v45 = vshra.s32 %v10432_v22, 4  ;;  %v7386_v29 = vld [vmem:[#allocation16] ss:$0 sm:$0xff] }
 0xd50   :  { %12527 = vst [vmem:[#allocation102_spill] sm:$0xff] %v10852_v33  ;;  %vm502_vm9 = vcmp.eq.s32.totalorder %v470_v27, %v10499_v10  ;;  %v473_v27 = vand.u32 15, %v10873_v39  ;;  %v474_v39 = vand.u32 15, %v10886_v26  ;;  %v10912_v49 = vsel %vm507_vm3, 1.0, %v12311_v13 }
 0xd51   :  { %v10869_v38 = vsel %vm502_vm9, 1.0, %v12311_v13  ;;  %12539 = vst [vmem:[#allocation114_spill] sm:$0xff] %v10912_v49  ;;  %vm380_vm4 = vcmp.eq.s32.totalorder %v348_v45, %v10499_v10 }
 0xd52   :  { %8474 = vmatmul.mubr.msk.f32.gmra.mrb[20].mxu1 %vm1151_vm6, %v10651_v0  ;;  %12531 = vst [vmem:[#allocation106_spill] sm:$0xff] %v10869_v38  ;;  %vm505_vm12 = vcmp.eq.s32.totalorder %v473_v27, %v10499_v10  ;;  %vm506_vm1 = vcmp.eq.s32.totalorder %v474_v39, %v10499_v10  ;;  %v10921_v39 = vsel %vm380_vm4, 1.0, %v12311_v13 }
 0xd53   :  { %8476 = vmatprep.mubr.msk.f32.mxu1 %vm1151_vm6, %v10654_v1  ;;  %v10898_v14 = vsel %vm505_vm12, 1.0, %v12311_v13  ;;  %v10906_v27 = vsel %vm506_vm1, 1.0, %v12311_v13  ;;  %12540 = vst [vmem:[#allocation115_spill] sm:$0xff] %v10921_v39  ;;  %8522 = vmatprep.mubr.msk.f32.mxu0 %vm1151_vm6, %v10921_v39  ;;  %v542_v13 = vand.u32 15, %v10926_v56  ;;  %v541_v39 = vand.u32 15, %v10499_v10 }
 0xd54   :  { %12537 = vst [vmem:[#allocation112_spill] sm:$0xff] %v10898_v14  ;;  %12538 = vst [vmem:[#allocation113_spill] sm:$0xff] %v10906_v27 }
 0xd55   :  { %vm10937_vm5 = vcmp.eq.s32.totalorder %v10432_v22, %v542_v13  ;;  %vm10942_vm7 = vcmp.eq.s32.totalorder %v10516_v20, %v542_v13  ;;  %vm10951_vm9 = vcmp.eq.s32.totalorder %v10432_v22, %v541_v39  ;;  %vm10956_vm10 = vcmp.eq.s32.totalorder %v10516_v20, %v541_v39 }
 0xd56   :  { %8477 = vmatmul.mubr.msk.f32.gmra.mrb[22].mxu1 %vm1151_vm6, %v10671_v6  ;;  %vm9236_vm8 = vmpackc.low %vm10942_vm7, %vm10937_vm5  ;;  %v12551_v13 = vmov 0 }
 0xd57   :  { %8479 = vmatprep.mubr.msk.f32.mxu1 %vm1151_vm6, %v10674_v7  ;;  %v12552_v13 = vsel %vm10956_vm10, 4294967295, %v12551_v13  ;;  %vm9238_vm11 = vmpackc.low %vm10956_vm10, %vm10951_vm9 }
 0xd58   :  { %12553 = vst [vmem:[#allocation120_spill] sm:$0xff] %v12552_v13 }
 0xd5a   :  { %8480 = vmatmul.mubr.msk.f32.gmra.mrb[24].mxu1 %vm1151_vm6, %v10691_v16 }
 0xd5b   :  { %8482 = vmatprep.mubr.msk.f32.mxu1 %vm1151_vm6, %v10694_v17 }
 0xd5e   :  { %8483 = vmatmul.mubr.msk.f32.gmra.mrb[26].mxu1 %vm1151_vm6, %v10711_v25 }
 0xd5f   :  { %8485 = vmatprep.mubr.msk.f32.mxu1 %vm1151_vm6, %v10714_v30 }
 0xd62   :  { %8486 = vmatmul.mubr.msk.f32.gmra.mrb[28].mxu1 %vm1151_vm6, %v10731_v40 }
 0xd63   :  { %8488 = vmatprep.mubr.msk.f32.mxu1 %vm1151_vm6, %v10734_v41 }
 0xd66   :  { %8489 = vmatmul.mubr.msk.f32.gmra.mrb[30].mxu1 %vm1151_vm6, %v10751_v52 }
 0xd67   :  { %8491 = vmatprep.mubr.msk.f32.mxu1 %vm1151_vm6, %v10754_v54 }
 0xd6a   :  { %8492 = vmatmul.mubr.msk.f32.gmra.mrb[32].mxu1 %vm1151_vm6, %v10771_v4 }
 0xd6b   :  { %8494 = vmatprep.mubr.msk.f32.mxu1 %vm1151_vm6, %v10774_v8 }
 0xd6e   :  { %8495 = vmatmul.mubr.msk.f32.gmra.mrb[34].mxu1 %vm1151_vm6, %v10791_v36 }
 0xd6f   :  { %8497 = vmatprep.mubr.msk.f32.mxu1 %vm1151_vm6, %v10794_v42 }
 0xd72   :  { %8498 = vmatmul.mubr.msk.f32.gmra.mrb[36].mxu1 %vm1151_vm6, %v10811_v11 }
 0xd73   :  { %8500 = vmatprep.mubr.msk.f32.mxu1 %vm1151_vm6, %v10814_v48 }
 0xd76   :  { %8501 = vmatmul.mubr.msk.f32.gmra.mrb[38].mxu1 %vm1151_vm6, %v10828_v23 }
 0xd77   :  { %8503 = vmatprep.mubr.msk.f32.mxu1 %vm1151_vm6, %v10831_v46 }
 0xd7a   :  { %8504 = vmatmul.mubr.msk.f32.gmra.mrb[40].mxu1 %vm1151_vm6, %v10841_v62 }
 0xd7b   :  { %8506 = vmatprep.mubr.msk.f32.mxu1 %vm1151_vm6, %v10844_v15 }
 0xd7e   :  { %8507 = vmatmul.mubr.msk.f32.gmra.mrb[42].mxu1 %vm1151_vm6, %v10852_v33 }
 0xd7f   :  { %8509 = vmatprep.mubr.msk.f32.mxu1 %vm1151_vm6, %v10869_v38 }
 0xd82   :  { %8510 = vmatmul.mubr.msk.f32.gmra.mrb[44].mxu1 %vm1151_vm6, %v10878_v28 }
 0xd83   :  { %8512 = vmatprep.mubr.msk.f32.mxu1 %vm1151_vm6, %v10889_v21 }
 0xd86   :  { %8513 = vmatmul.mubr.msk.f32.gmra.mrb[46].mxu1 %vm1151_vm6, %v10898_v14 }
 0xd87   :  { %8515 = vmatprep.mubr.msk.f32.mxu1 %vm1151_vm6, %v10906_v27 }
 0xd8a   :  { %8516 = vmatmul.mubr.msk.f32.gmra.mrb[48].mxu1 %vm1151_vm6, %v10912_v49 }
 0xd8b   :  { %8574 = vmatprep.mubr.msk.f32.mxu1 %vm1151_vm6, %v10613_v53 }
 0xe15   :  { %v8458_v26 = vpop.f32.mrb[14].mxu1 }
 0xe16   :  { %v10928_v34 = vadd.f32 %v8458_v26, %v7386_v29  ;;  %v2230_v18 = vpop.f32.mrb[15].mxu1  ;;  %v12542_v26 = vmov 0 }
 0xe17   :  { %v10930_v49 = vadd.f32 %v7386_v29, %v2230_v18  ;;  %v12543_v26 = vsel %vm10937_vm5, 4294967295, %v12542_v26  ;;  %v12545_v18 = vmov 0 }
 0xe18   :  { %v2246_v53 = vand.u32 2147483647, %v10928_v34  ;;  %12544 = vst [vmem:[#allocation117_spill] sm:$0xff] %v12543_v26  ;;  %v12546_v18 = vsel %vm10942_vm7, 4294967295, %v12545_v18  ;;  %vm2242_vm3 = vcmp.ne.f32.partialorder %v10928_v34, %v10928_v34 }
 0xe19   :  { %v2245_v45 = vand.u32 2147483647, %v10930_v49  ;;  %12547 = vst [vmem:[#allocation118_spill] sm:$0xff] %v12546_v18  ;;  %vm2241_vm4 = vcmp.ne.f32.partialorder %v10930_v49, %v10930_v49 }
 0xe1a   :  { %v2248_v2 = vsub.f32 0.0, %v2246_v53 }
 0xe1b   :  { %v2247_v27 = vsub.f32 0.0, %v2245_v45 }
 0xe1c   :  { %v2251_v60 = vmul.f32 1.442695, %v2248_v2  ;;  %v12548_v2 = vmov 0 }
 0xe1d   :  { %v2249_v14 = vmul.f32 1.442695, %v2247_v27  ;;  %v8465_v50 = vpop.f32.mrb[16].mxu1  ;;  %v12549_v2 = vsel %vm10951_vm9, 4294967295, %v12548_v2 }
 0xe1e   :  { %9620 = vpow2.f32 %v2251_v60  ;;  %v2349_v29 = vpop.f32.mrb[17].mxu1  ;;  %12550 = vst [vmem:[#allocation119_spill] sm:$0xff] %v12549_v2 }
 0xe1f   :  { %9622 = vpow2.f32 %v2249_v14  ;;  %v9228_v53 = vpack.c.bf16 %v8465_v50, %v2349_v29  ;;  %v12326_v50 = vmov 1.0|1.0  }
 0xe21   :  { %9229 = vmatprep.subr.bf16.mxu1 %v9228_v53  ;;  %v10960_v60 = vpop.f32.mrb[18].mxu1 }
 0xe22   :  { %9231 = vmatpush3.bf16.msra.mxu1 %v9228_v53  ;;  %v10962_v14 = vpop.f32.mrb[19].mxu1 }
 0xe23   :  { %9237 = vmatprep.subr.msk.bf16.mxu1 %vm9236_vm8, %v12326_v50 }
 0xe25   :  { %8575 = vmatmul.mubr.msk.f32.vlgmr.msra.gmra.mrb[50].mxu1 %vm1151_vm6, %v10631_v58  ;;  %v10976_v27 = vpop.f32.mrb[20].mxu1 }
 0xe26   :  { %8577 = vmatprep.mubr.msk.f32.mxu1 %vm1151_vm6, %v10634_v59  ;;  %9239 = vmatpush1.bf16.msk.msra.mxu1 %vm9238_vm11, %v12326_v50  ;;  %v10986_v39 = vpop.f32.mrb[21].mxu1 }
 0xe28   :  { %v9621_v45 = vpop.eup %9620 }
 0xe29   :  { %v9623_v29 = vpop.eup %9622  ;;  %8578 = vmatmul.mubr.msk.f32.gmra.mrb[52].mxu1 %vm1151_vm6, %v10651_v0  ;;  %v2262_v53 = vadd.f32 1.0, %v9621_v45  ;;  %v10990_v26 = vpop.f32.mrb[22].mxu1  ;;  %v2265_v2 = vmul.f32 -0.5, %v9621_v45  ;;  %v2268_v58 = vand.u32 2147483647, %v9621_v45 }
 0xe2a   :  { %8580 = vmatprep.mubr.msk.f32.mxu1 %vm1151_vm6, %v10654_v1  ;;  %v2253_v18 = vadd.f32 1.0, %v9623_v29  ;;  %v10994_v59 = vpop.f32.mrb[23].mxu1  ;;  %v2256_v0 = vmul.f32 -0.5, %v9623_v29  ;;  %v2259_v22 = vand.u32 2147483647, %v9623_v29 }
 0xe2b   :  { %12554 = vst [vmem:[#allocation121_spill] sm:$0xff] %v10994_v59  ;;  %9624 = vlog2.f32 %v2262_v53  ;;  %vm2269_vm12 = vcmp.lt.f32.partialorder %v2268_v58, 0.0004427343 }
 0xe2c   :  { %9626 = vlog2.f32 %v2253_v18  ;;  %v2266_v18 = vadd.f32 1.0, %v2265_v2  ;;  %v2240_v2 = vmax.f32 %v10928_v34, 0.0  ;;  %vm2260_vm1 = vcmp.lt.f32.partialorder %v2259_v22, 0.0004427343 }
 0xe2d   :  { %8581 = vmatmul.mubr.msk.f32.gmra.mrb[54].mxu1 %vm1151_vm6, %v10671_v6  ;;  %v10998_v50 = vpop.f32.mrb[24].mxu1  ;;  %v2257_v6 = vadd.f32 1.0, %v2256_v0 }
 0xe2e   :  { %12555 = vst [vmem:[#allocation122_spill] sm:$0xff] %v10998_v50  ;;  %8583 = vmatprep.mubr.msk.f32.mxu1 %vm1151_vm6, %v10674_v7  ;;  %v11002_v13 = vpop.f32.mrb[25].mxu1 }
 0xe2f   :  { %12556 = vst [vmem:[#allocation123_spill] sm:$0xff] %v11002_v13  ;;  %v2258_v0 = vmul.f32 %v9623_v29, %v2257_v6  ;;  %v350_v6 = vshra.s32 %v10594_v44, 4  ;;  %v351_v44 = vshra.s32 %v10602_v47, 4 }
 0xe31   :  { %8584 = vmatmul.mubr.msk.f32.gmra.mrb[56].mxu1 %vm1151_vm6, %v10691_v16  ;;  %v11006_v1 = vpop.f32.mrb[26].mxu1 }
 0xe32   :  { %12557 = vst [vmem:[#allocation124_spill] sm:$0xff] %v11006_v1  ;;  %8586 = vmatprep.mubr.msk.f32.mxu1 %vm1151_vm6, %v10694_v17  ;;  %v11010_v53 = vpop.f32.mrb[27].mxu1  ;;  %v2267_v1 = vmul.f32 %v9621_v45, %v2266_v18  ;;  %v12560_v45 = vmov 0.0   ;;  %v354_v18 = vshra.s32 %v10625_v57, 4  ;;  %v355_v57 = vshra.s32 %v10639_v61, 4 }
 0xe33   :  { %12558 = vst [vmem:[#allocation125_spill] sm:$0xff] %v11010_v53  ;;  %v2239_v53 = vmax.f32 %v10930_v49, 0.0 }
 0xe35   :  { %v9625_v56 = vpop.eup %9624  ;;  %8587 = vmatmul.mubr.msk.f32.gmra.mrb[58].mxu1 %vm1151_vm6, %v10711_v25  ;;  %v11014_v7 = vpop.f32.mrb[28].mxu1 }
 0xe36   :  { %12559 = vst [vmem:[#allocation126_spill] sm:$0xff] %v11014_v7  ;;  %v9627_v13 = vpop.eup %9626  ;;  %8589 = vmatprep.mubr.msk.f32.mxu1 %vm1151_vm6, %v10714_v30  ;;  %v2264_v16 = vmul.f32 0.6931472, %v9625_v56  ;;  %v11018_v50 = vpop.f32.mrb[29].mxu1  ;;  %v349_v30 = vshra.s32 %v10516_v20, 4 }
 0xe37   :  { %v2255_v17 = vmul.f32 0.6931472, %v9627_v13 }
 0xe38   :  { %v2270_v59 = vsel %vm2269_vm12, %v2267_v1, %v2264_v16  ;;  %vm381_vm12 = vcmp.eq.s32.totalorder %v349_v30, %v10499_v10  ;;  %v353_v30 = vshra.s32 %v10618_v55, 4 }
 0xe39   :  { %8590 = vmatmul.mubr.msk.f32.gmra.mrb[60].mxu1 %vm1151_vm6, %v10731_v40  ;;  %v2261_v25 = vsel %vm2260_vm1, %v2258_v0, %v2255_v17  ;;  %v2272_v7 = vadd.f32 %v2270_v59, %v2240_v2  ;;  %v11025_v56 = vpop.f32.mrb[30].mxu1  ;;  %vm382_vm1 = vcmp.eq.s32.totalorder %v350_v6, %v10499_v10  ;;  %v11053_v29 = vsel %vm381_vm12, 1.0, %v12560_v45 }
 0xe3a   :  { %8592 = vmatprep.mubr.msk.f32.mxu1 %vm1151_vm6, %v10734_v41  ;;  %v2271_v58 = vadd.f32 %v2261_v25, %v2239_v53  ;;  %v11032_v22 = vpop.f32.mrb[31].mxu1  ;;  %12561 = vst [vmem:[#allocation127_spill] sm:$0xff] %v11053_v29  ;;  %v11058_v47 = vsel %vm382_vm1, 1.0, %v12560_v45  ;;  %vm385_vm12 = vcmp.eq.s32.totalorder %v353_v30, %v10499_v10  ;;  %vm386_vm1 = vcmp.eq.s32.totalorder %v354_v18, %v10499_v10 }
 0xe3b   :  { %v2274_v59 = vsel %vm2242_vm3, %v10928_v34, %v2272_v7  ;;  %vm383_vm3 = vcmp.eq.s32.totalorder %v351_v44, %v10499_v10  ;;  %v11102_v61 = vsel %vm386_vm1, 1.0, %v12560_v45 }
 0xe3c   :  { %v2273_v1 = vsel %vm2241_vm4, %v10930_v49, %v2271_v58  ;;  %v2359_v16 = vmul.f32 %v2274_v59, %v10568_v31  ;;  %v352_v49 = vshra.s32 %v10609_v51, 4  ;;  %v11075_v55 = vsel %vm383_vm3, 1.0, %v12560_v45 }
 0xe3d   :  { %8593 = vmatmul.mubr.msk.f32.gmra.mrb[62].mxu1 %vm1151_vm6, %v10751_v52  ;;  %v9224_v17 = vpack.c.bf16 %v2274_v59, %v2273_v1  ;;  %v2358_v13 = vmul.f32 %v2273_v1, %v10570_v32  ;;  %v11044_v25 = vpop.f32.mrb[32].mxu1  ;;  %v356_v58 = vshra.s32 %v10644_v63, 4  ;;  %v11097_v59 = vsel %vm385_vm12, 1.0, %v12560_v45  ;;  %v12598_v32 = vld [vmem:[#allocation115_spill] sm:$0xff] }
 0xe3e   :  { %8595 = vmatprep.mubr.msk.f32.mxu1 %vm1151_vm6, %v10754_v54  ;;  %v11050_v7 = vpop.f32.mrb[33].mxu1  ;;  %vm384_vm4 = vcmp.eq.s32.totalorder %v352_v49, %v10499_v10  ;;  %vm387_vm3 = vcmp.eq.s32.totalorder %v355_v57, %v10499_v10  ;;  %v357_v63 = vshra.s32 %v10659_v3, 4  ;;  %v360_v49 = vshra.s32 %v10684_v12, 4 }
 0xe3f   :  { %9225 = vmatprep.subr.bf16.mxu0 %v9224_v17  ;;  %v9232_v34 = vpack.c.bf16 %v2359_v16, %v2358_v13  ;;  %v11080_v2 = vsel %vm384_vm4, 1.0, %v12560_v45  ;;  %vm388_vm4 = vcmp.eq.s32.totalorder %v356_v58, %v10499_v10  ;;  %v358_v16 = vshra.s32 %v10664_v5, 4 }
 0xe40   :  { %9227 = vmatpush3.bf16.msra.mxu0 %v9224_v17  ;;  %v11119_v13 = vsel %vm387_vm3, 1.0, %v12560_v45  ;;  %v11124_v3 = vsel %vm388_vm4, 1.0, %v12560_v45  ;;  %vm389_vm12 = vcmp.eq.s32.totalorder %v357_v63, %v10499_v10  ;;  %v359_v5 = vshra.s32 %v10679_v9, 4 }
 0xe41   :  { %8596 = vmatmul.mubr.msk.f32.gmra.mrb[64].mxu1 %vm1151_vm6, %v10771_v4  ;;  %9233 = vmatprep.subr.bf16.mxu0 %v9232_v34  ;;  %v11062_v51 = vpop.f32.mrb[34].mxu1  ;;  %vm390_vm1 = vcmp.eq.s32.totalorder %v358_v16, %v10499_v10  ;;  %v11141_v30 = vsel %vm389_vm12, 1.0, %v12560_v45  ;;  %v361_v12 = vshra.s32 %v10699_v19, 4  ;;  %vm392_vm4 = vcmp.eq.s32.totalorder %v360_v49, %v10499_v10 }
 0xe42   :  { %8598 = vmatprep.mubr.msk.f32.mxu1 %vm1151_vm6, %v10774_v8  ;;  %v11068_v53 = vpop.f32.mrb[35].mxu1  ;;  %v11146_v9 = vsel %vm390_vm1, 1.0, %v12560_v45  ;;  %vm391_vm3 = vcmp.eq.s32.totalorder %v359_v5, %v10499_v10  ;;  %v362_v57 = vshra.s32 %v10704_v24, 4  ;;  %v11168_v19 = vsel %vm392_vm4, 1.0, %v12560_v45 }
 0xe43   :  { %8523 = vmatmul.mubr.msk.f32.vlgmr.msra.gmra.mrb[16].mxu0 %vm1151_vm6, %v11053_v29  ;;  %12562 = vst [vmem:[#allocation128_spill] sm:$0xff] %v11146_v9  ;;  %v11163_v63 = vsel %vm391_vm3, 1.0, %v12560_v45  ;;  %vm393_vm12 = vcmp.eq.s32.totalorder %v361_v12, %v10499_v10  ;;  %v363_v24 = vshra.s32 %v10719_v35, 4  ;;  %v364_v16 = vshra.s32 %v10724_v37, 4  ;;  %v12565_v37 = vld [vmem:[#allocation82_spill] sm:$0xff] }
 0xe44   :  { %9235 = vmatpush3.bf16.msra.mxu0 %v9232_v34  ;;  %8525 = vmatprep.mubr.msk.f32.mxu0 %vm1151_vm6, %v11058_v47  ;;  %12563 = vst [vmem:[#allocation129_spill] sm:$0xff] %v11163_v63  ;;  %vm394_vm1 = vcmp.eq.s32.totalorder %v362_v57, %v10499_v10  ;;  %v11181_v5 = vsel %vm393_vm12, 1.0, %v12560_v45  ;;  %v365_v49 = vshra.s32 %v10739_v43, 4  ;;  %v366_v12 = vshra.s32 %v12565_v37, 4  ;;  %v12568_v37 = vld [vmem:[#allocation113_spill] sm:$0xff] }
 0xe45   :  { %8599 = vmatmul.mubr.msk.f32.gmra.mrb[66].mxu1 %vm1151_vm6, %v10791_v36  ;;  %v11084_v0 = vpop.f32.mrb[36].mxu1  ;;  %12564 = vst [vmem:[#allocation130_spill] sm:$0xff] %v11181_v5  ;;  %v11186_v35 = vsel %vm394_vm1, 1.0, %v12560_v45  ;;  %vm395_vm3 = vcmp.eq.s32.totalorder %v363_v24, %v10499_v10  ;;  %vm396_vm4 = vcmp.eq.s32.totalorder %v364_v16, %v10499_v10  ;;  %v12567_v24 = vld [vmem:[#allocation85_spill] sm:$0xff] }
 0xe46   :  { %8601 = vmatprep.mubr.msk.f32.mxu1 %vm1151_vm6, %v10794_v42  ;;  %v11090_v6 = vpop.f32.mrb[37].mxu1  ;;  %v11199_v57 = vsel %vm395_vm3, 1.0, %v12560_v45  ;;  %v11204_v43 = vsel %vm396_vm4, 1.0, %v12560_v45  ;;  %vm397_vm12 = vcmp.eq.s32.totalorder %v365_v49, %v10499_v10  ;;  %v367_v16 = vshra.s32 %v12567_v24, 4 }
 0xe47   :  { %8526 = vmatmul.mubr.msk.f32.gmra.mrb[18].mxu0 %vm1151_vm6, %v11075_v55  ;;  %vm398_vm1 = vcmp.eq.s32.totalorder %v366_v12, %v10499_v10  ;;  %v12571_v12 = vld [vmem:[#allocation89_spill] sm:$0xff] }
 0xe48   :  { %8528 = vmatprep.mubr.msk.f32.mxu0 %vm1151_vm6, %v11080_v2  ;;  %v11222_v49 = vsel %vm398_vm1, 1.0, %v12560_v45  ;;  %vm399_vm3 = vcmp.eq.s32.totalorder %v367_v16, %v10499_v10  ;;  %v369_v24 = vshra.s32 %v12571_v12, 4 }
 0xe49   :  { %8602 = vmatmul.mubr.msk.f32.gmra.mrb[68].mxu1 %vm1151_vm6, %v10811_v11  ;;  %v11106_v1 = vpop.f32.mrb[38].mxu1 }
 0xe4a   :  { %8604 = vmatprep.mubr.msk.f32.mxu1 %vm1151_vm6, %v10814_v48  ;;  %v11112_v17 = vpop.f32.mrb[39].mxu1 }
 0xe4b   :  { %8529 = vmatmul.mubr.msk.f32.gmra.mrb[20].mxu0 %vm1151_vm6, %v11097_v59 }
 0xe4c   :  { %8531 = vmatprep.mubr.msk.f32.mxu0 %vm1151_vm6, %v11102_v61 }
 0xe4d   :  { %8605 = vmatmul.mubr.msk.f32.gmra.mrb[70].mxu1 %vm1151_vm6, %v10828_v23  ;;  %v11128_v44 = vpop.f32.mrb[40].mxu1 }
 0xe4e   :  { %8607 = vmatprep.mubr.msk.f32.mxu1 %vm1151_vm6, %v10831_v46  ;;  %v11134_v34 = vpop.f32.mrb[41].mxu1  ;;  %v3905_v46 = vpop.permute.xlu0 %3904 }
 0xe4f   :  { %8532 = vmatmul.mubr.msk.f32.gmra.mrb[22].mxu0 %vm1151_vm6, %v11119_v13 }
 0xe50   :  { %8534 = vmatprep.mubr.msk.f32.mxu0 %vm1151_vm6, %v11124_v3 }
 0xe51   :  { %8608 = vmatmul.mubr.msk.f32.gmra.mrb[72].mxu1 %vm1151_vm6, %v10841_v62  ;;  %v11150_v18 = vpop.f32.mrb[42].mxu1 }
 0xe52   :  { %8610 = vmatprep.mubr.msk.f32.mxu1 %vm1151_vm6, %v10844_v15  ;;  %v11156_v58 = vpop.f32.mrb[43].mxu1  ;;  %v3903_v15 = vpop.permute.xlu1 %3902 }
 0xe53   :  { %8535 = vmatmul.mubr.msk.f32.gmra.mrb[24].mxu0 %vm1151_vm6, %v11141_v30 }
 0xe54   :  { %8537 = vmatprep.mubr.msk.f32.mxu0 %vm1151_vm6, %v11146_v9 }
 0xe55   :  { %8611 = vmatmul.mubr.msk.f32.gmra.mrb[74].mxu1 %vm1151_vm6, %v10852_v33  ;;  %v12570_v33 = vld [vmem:[#allocation114_spill] sm:$0xff]  ;;  %v11262_v48 = vpop.f32.mrb[44].mxu1 }
 0xe56   :  { %8613 = vmatprep.mubr.msk.f32.mxu1 %vm1151_vm6, %v10869_v38  ;;  %v11269_v11 = vpop.f32.mrb[45].mxu1 }
 0xe57   :  { %8538 = vmatmul.mubr.msk.f32.gmra.mrb[26].mxu0 %vm1151_vm6, %v11163_v63 }
 0xe58   :  { %8540 = vmatprep.mubr.msk.f32.mxu0 %vm1151_vm6, %v11168_v19 }
 0xe59   :  { %8614 = vmatmul.mubr.msk.f32.gmra.mrb[76].mxu1 %vm1151_vm6, %v10878_v28  ;;  %v12566_v28 = vld [vmem:[#allocation112_spill] sm:$0xff]  ;;  %v11280_v36 = vpop.f32.mrb[46].mxu1 }
 0xe5a   :  { %8616 = vmatprep.mubr.msk.f32.mxu1 %vm1151_vm6, %v10889_v21  ;;  %v12569_v21 = vld [vmem:[#allocation86_spill] sm:$0xff]  ;;  %v11287_v4 = vpop.f32.mrb[47].mxu1 }
 0xe5b   :  { %8541 = vmatmul.mubr.msk.f32.gmra.mrb[28].mxu0 %vm1151_vm6, %v11181_v5  ;;  %v368_v38 = vshra.s32 %v12569_v21, 4  ;;  %v12572_v21 = vld [vmem:[#allocation90_spill] sm:$0xff] }
 0xe5c   :  { %8543 = vmatprep.mubr.msk.f32.mxu0 %vm1151_vm6, %v11186_v35 }
 0xe5d   :  { %8617 = vmatmul.mubr.msk.f32.gmra.mrb[78].mxu1 %vm1151_vm6, %v12566_v28  ;;  %v11217_v28 = vsel %vm397_vm12, 1.0, %v12560_v45  ;;  %vm400_vm4 = vcmp.eq.s32.totalorder %v368_v38, %v10499_v10  ;;  %vm401_vm12 = vcmp.eq.s32.totalorder %v369_v24, %v10499_v10  ;;  %v12574_v38 = vld [vmem:[#allocation93_spill] sm:$0xff]  ;;  %v11298_v52 = vpop.f32.mrb[48].mxu1 }
 0xe5e   :  { %8619 = vmatprep.mubr.msk.f32.mxu1 %vm1151_vm6, %v12568_v37  ;;  %v370_v37 = vshra.s32 %v12572_v21, 4  ;;  %v11238_v16 = vsel %vm400_vm4, 1.0, %v12560_v45  ;;  %v371_v12 = vshra.s32 %v12574_v38, 4  ;;  %v12575_v21 = vld [vmem:[#allocation94_spill] sm:$0xff]  ;;  %12584 = vst [vmem:[#allocation93_spill] sm:$0xff] %v11280_v36  ;;  %v11305_v40 = vpop.f32.mrb[49].mxu1 }
 0xe5f   :  { %8544 = vmatmul.mubr.msk.f32.gmra.mrb[30].mxu0 %vm1151_vm6, %v11199_v57  ;;  %12573 = vst [vmem:[#allocation82_spill] sm:$0xff] %v11238_v16  ;;  %v372_v62 = vshra.s32 %v12575_v21, 4  ;;  %v12579_v21 = vld [vmem:[#allocation103_spill] sm:$0xff] }
 0xe60   :  { %8546 = vmatprep.mubr.msk.f32.mxu0 %vm1151_vm6, %v11204_v43  ;;  %vm402_vm1 = vcmp.eq.s32.totalorder %v370_v37, %v10499_v10  ;;  %v12578_v37 = vld [vmem:[#allocation97_spill] sm:$0xff]  ;;  %v374_v23 = vshra.s32 %v12579_v21, 4 }
 0xe61   :  { %8620 = vmatmul.mubr.msk.f32.gmra.mrb[80].mxu1 %vm1151_vm6, %v12570_v33  ;;  %v11234_v33 = vsel %vm399_vm3, 1.0, %v12560_v45  ;;  %v11254_v24 = vsel %vm402_vm1, 1.0, %v12560_v45  ;;  %vm403_vm3 = vcmp.eq.s32.totalorder %v371_v12, %v10499_v10  ;;  %v373_v38 = vshra.s32 %v12578_v37, 4  ;;  %v12583_v21 = vld [vmem:[#allocation105_spill] sm:$0xff]  ;;  %12586 = vst [vmem:[#allocation97_spill] sm:$0xff] %v11287_v4 }
 0xe62   :  { %3974 = vmatprep.mubr.f32.mxu1 %v12560_v45  ;;  %12577 = vst [vmem:[#allocation86_spill] sm:$0xff] %v11254_v24  ;;  %vm404_vm4 = vcmp.eq.s32.totalorder %v372_v62, %v10499_v10  ;;  %v12582_v62 = vld [vmem:[#allocation104_spill] sm:$0xff]  ;;  %vm406_vm1 = vcmp.eq.s32.totalorder %v374_v23, %v10499_v10  ;;  %v376_v42 = vshra.s32 %v12583_v21, 4  ;;  %v12588_v23 = vld [vmem:[#allocation107_spill] sm:$0xff]  ;;  %v12589_v21 = vld [vmem:[#allocation109_spill] sm:$0xff] }
 0xe63   :  { %8547 = vmatmul.mubr.msk.f32.gmra.mrb[32].mxu0 %vm1151_vm6, %v11217_v28  ;;  %v11272_v12 = vsel %vm404_vm4, 1.0, %v12560_v45  ;;  %v375_v37 = vshra.s32 %v12582_v62, 4  ;;  %v377_v62 = vshra.s32 %v12588_v23, 4  ;;  %v378_v54 = vshra.s32 %v12589_v21, 4  ;;  %12590 = vst [vmem:[#allocation104_spill] sm:$0xff] %v11298_v52  ;;  %12592 = vst [vmem:[#allocation107_spill] sm:$0xff] %v11305_v40 }
 0xe64   :  { %8549 = vmatprep.mubr.msk.f32.mxu0 %vm1151_vm6, %v11222_v49  ;;  %12581 = vst [vmem:[#allocation90_spill] sm:$0xff] %v11272_v12  ;;  %vm408_vm4 = vcmp.eq.s32.totalorder %v376_v42, %v10499_v10  ;;  %v12594_v42 = vld [vmem:[#allocation111_spill] sm:$0xff] }
 0xe65   :  { %7526 = vmatmul.mubr.msk.f32.vlgmr.msra.gmra.mrb[82].mxu1 %vm1151_vm6, %v3903_v15  ;;  %v11250_v15 = vsel %vm401_vm12, 1.0, %v12560_v45  ;;  %vm405_vm12 = vcmp.eq.s32.totalorder %v373_v38, %v10499_v10  ;;  %v11290_v38 = vsel %vm406_vm1, 1.0, %v12560_v45  ;;  %v379_v23 = vshra.s32 %v12594_v42, 4 }
 0xe66   :  { %3980 = vmatprep.mubr.f32.mxu1 %v12560_v45  ;;  %12576 = vst [vmem:[#allocation85_spill] sm:$0xff] %v11250_v15  ;;  %v11285_v8 = vsel %vm405_vm12, 1.0, %v12560_v45  ;;  %12587 = vst [vmem:[#allocation103_spill] sm:$0xff] %v11290_v38  ;;  %vm409_vm12 = vcmp.eq.s32.totalorder %v377_v62, %v10499_v10  ;;  %vm410_vm1 = vcmp.eq.s32.totalorder %v378_v54, %v10499_v10 }
 0xe67   :  { %8550 = vmatmul.mubr.msk.f32.gmra.mrb[34].mxu0 %vm1151_vm6, %v11234_v33  ;;  %12585 = vst [vmem:[#allocation94_spill] sm:$0xff] %v11285_v8  ;;  %v11318_v21 = vsel %vm409_vm12, 1.0, %v12560_v45  ;;  %v11321_v31 = vsel %vm410_vm1, 1.0, %v12560_v45 }
 0xe68   :  { %8552 = vmatprep.mubr.msk.f32.mxu0 %vm1151_vm6, %v11238_v16  ;;  %12595 = vst [vmem:[#allocation111_spill] sm:$0xff] %v11318_v21  ;;  %12596 = vst [vmem:[#allocation131_spill] sm:$0xff] %v11321_v31 }
 0xe69   :  { %7527 = vmatmul.mubr.msk.f32.gmra.mrb[84].mxu1 %vm1151_vm6, %v3905_v46  ;;  %v11267_v46 = vsel %vm403_vm3, 1.0, %v12560_v45  ;;  %vm407_vm3 = vcmp.eq.s32.totalorder %v375_v37, %v10499_v10  ;;  %v11308_v37 = vsel %vm408_vm4, 1.0, %v12560_v45 }
 0xe6a   :  { %12580 = vst [vmem:[#allocation89_spill] sm:$0xff] %v11267_v46  ;;  %v11303_v41 = vsel %vm407_vm3, 1.0, %v12560_v45  ;;  %12593 = vst [vmem:[#allocation109_spill] sm:$0xff] %v11308_v37  ;;  %vm411_vm3 = vcmp.eq.s32.totalorder %v379_v23, %v10499_v10 }
 0xe6b   :  { %8553 = vmatmul.mubr.msk.f32.gmra.mrb[36].mxu0 %vm1151_vm6, %v11250_v15  ;;  %12591 = vst [vmem:[#allocation105_spill] sm:$0xff] %v11303_v41  ;;  %v11329_v54 = vsel %vm411_vm3, 1.0, %v12560_v45 }
 0xe6c   :  { %8555 = vmatprep.mubr.msk.f32.mxu0 %vm1151_vm6, %v11254_v24  ;;  %12597 = vst [vmem:[#allocation132_spill] sm:$0xff] %v11329_v54 }
 0xe6f   :  { %8556 = vmatmul.mubr.msk.f32.gmra.mrb[38].mxu0 %vm1151_vm6, %v11267_v46 }
 0xe70   :  { %8558 = vmatprep.mubr.msk.f32.mxu0 %vm1151_vm6, %v11272_v12 }
 0xe73   :  { %8559 = vmatmul.mubr.msk.f32.gmra.mrb[40].mxu0 %vm1151_vm6, %v11285_v8 }
 0xe74   :  { %8561 = vmatprep.mubr.msk.f32.mxu0 %vm1151_vm6, %v11290_v38 }
 0xe77   :  { %8562 = vmatmul.mubr.msk.f32.gmra.mrb[42].mxu0 %vm1151_vm6, %v11303_v41 }
 0xe78   :  { %8564 = vmatprep.mubr.msk.f32.mxu0 %vm1151_vm6, %v11308_v37 }
 0xe7b   :  { %8565 = vmatmul.mubr.msk.f32.gmra.mrb[44].mxu0 %vm1151_vm6, %v11318_v21 }
 0xe7c   :  { %8567 = vmatprep.mubr.msk.f32.mxu0 %vm1151_vm6, %v11321_v31 }
 0xe7f   :  { %8568 = vmatmul.mubr.msk.f32.gmra.mrb[46].mxu0 %vm1151_vm6, %v11329_v54 }
 0xef8   :  { %v8576_v62 = vpop.f32.mrb[50].mxu1 }
 0xef9   :  { %v3198_v42 = vpop.f32.mrb[51].mxu1  ;;  %v3358_v40 = vmul.f32 %v8576_v62, %v11053_v29 }
 0xefa   :  { %v3357_v20 = vmul.f32 %v3198_v42, %v12598_v32 }
 0xefc   :  { %v8579_v52 = vpop.f32.mrb[52].mxu1  ;;  %8626 = vmatprep.mubr.msk.f32.mxu0 %vm1151_vm6, %v3357_v20 }
 0xefd   :  { %v3208_v23 = vpop.f32.mrb[53].mxu1  ;;  %8627 = vmatmul.mubr.msk.f32.vlgmr.msra.gmra.mrb[48].mxu0 %vm1151_vm6, %v3358_v40  ;;  %v3360_v45 = vmul.f32 %v8579_v52, %v11075_v55 }
 0xefe   :  { %v3359_v10 = vmul.f32 %v3208_v23, %v11058_v47 }
 0xf00   :  { %v8582_v4 = vpop.f32.mrb[54].mxu1  ;;  %8629 = vmatprep.mubr.msk.f32.mxu0 %vm1151_vm6, %v3359_v10 }
 0xf01   :  { %v3218_v36 = vpop.f32.mrb[55].mxu1  ;;  %8630 = vmatmul.mubr.msk.f32.gmra.mrb[50].mxu0 %vm1151_vm6, %v3360_v45  ;;  %v3362_v62 = vmul.f32 %v8582_v4, %v11097_v59 }
 0xf02   :  { %v3361_v42 = vmul.f32 %v3218_v36, %v11080_v2 }
 0xf04   :  { %v8585_v29 = vpop.f32.mrb[56].mxu1  ;;  %8632 = vmatprep.mubr.msk.f32.mxu0 %vm1151_vm6, %v3361_v42 }
 0xf05   :  { %v3228_v20 = vpop.f32.mrb[57].mxu1  ;;  %8633 = vmatmul.mubr.msk.f32.gmra.mrb[52].mxu0 %vm1151_vm6, %v3362_v62  ;;  %v3364_v52 = vmul.f32 %v8585_v29, %v11119_v13 }
 0xf06   :  { %v3363_v40 = vmul.f32 %v3228_v20, %v11102_v61 }
 0xf08   :  { %v8588_v23 = vpop.f32.mrb[58].mxu1  ;;  %8635 = vmatprep.mubr.msk.f32.mxu0 %vm1151_vm6, %v3363_v40 }
 0xf09   :  { %v3238_v10 = vpop.f32.mrb[59].mxu1  ;;  %8636 = vmatmul.mubr.msk.f32.gmra.mrb[54].mxu0 %vm1151_vm6, %v3364_v52  ;;  %v3366_v4 = vmul.f32 %v8588_v23, %v11141_v30 }
 0xf0a   :  { %v3365_v36 = vmul.f32 %v3238_v10, %v11124_v3 }
 0xf0c   :  { %v8591_v45 = vpop.f32.mrb[60].mxu1  ;;  %8638 = vmatprep.mubr.msk.f32.mxu0 %vm1151_vm6, %v3365_v36 }
 0xf0d   :  { %v3248_v42 = vpop.f32.mrb[61].mxu1  ;;  %8639 = vmatmul.mubr.msk.f32.gmra.mrb[56].mxu0 %vm1151_vm6, %v3366_v4  ;;  %v3368_v29 = vmul.f32 %v8591_v45, %v11163_v63 }
 0xf0e   :  { %v3367_v62 = vmul.f32 %v3248_v42, %v11146_v9 }
 0xf10   :  { %v8594_v20 = vpop.f32.mrb[62].mxu1  ;;  %8641 = vmatprep.mubr.msk.f32.mxu0 %vm1151_vm6, %v3367_v62 }
 0xf11   :  { %v3258_v40 = vpop.f32.mrb[63].mxu1  ;;  %8642 = vmatmul.mubr.msk.f32.gmra.mrb[58].mxu0 %vm1151_vm6, %v3368_v29  ;;  %v3370_v23 = vmul.f32 %v8594_v20, %v11181_v5 }
 0xf12   :  { %v3369_v52 = vmul.f32 %v3258_v40, %v11168_v19 }
 0xf14   :  { %v8597_v10 = vpop.f32.mrb[64].mxu1  ;;  %8644 = vmatprep.mubr.msk.f32.mxu0 %vm1151_vm6, %v3369_v52 }
 0xf15   :  { %v3268_v36 = vpop.f32.mrb[65].mxu1  ;;  %8645 = vmatmul.mubr.msk.f32.gmra.mrb[60].mxu0 %vm1151_vm6, %v3370_v23  ;;  %v3372_v45 = vmul.f32 %v8597_v10, %v11199_v57 }
 0xf16   :  { %v3371_v4 = vmul.f32 %v3268_v36, %v11186_v35  ;;  %v8524_v42 = vpop.f32.mrb[16].mxu0 }
 0xf17   :  { %v3005_v62 = vmul.f32 %v8524_v42, %v10960_v60  ;;  %v2845_v63 = vpop.f32.mrb[17].mxu0 }
 0xf18   :  { %v3004_v29 = vmul.f32 %v2845_v63, %v10962_v14  ;;  %v8600_v9 = vpop.f32.mrb[66].mxu1  ;;  %8647 = vmatprep.mubr.msk.f32.mxu0 %vm1151_vm6, %v3371_v4 }
 0xf19   :  { %v3038_v20 = vmul.f32 1.442695, %v3005_v62  ;;  %v3278_v40 = vpop.f32.mrb[67].mxu1  ;;  %8648 = vmatmul.mubr.msk.f32.gmra.mrb[62].mxu0 %vm1151_vm6, %v3372_v45  ;;  %v3374_v36 = vmul.f32 %v8600_v9, %v11217_v28 }
 0xf1a   :  { %v3036_v52 = vmul.f32 1.442695, %v3004_v29  ;;  %v3373_v23 = vmul.f32 %v3278_v40, %v11204_v43  ;;  %v8527_v5 = vpop.f32.mrb[18].mxu0 }
 0xf1b   :  { %9628 = vpow2.f32 %v3038_v20  ;;  %v3007_v10 = vmul.f32 %v8527_v5, %v10976_v27  ;;  %v2855_v60 = vpop.f32.mrb[19].mxu0  ;;  %v12599_v20 = vld [vmem:[#allocation121_spill] sm:$0xff] }
 0xf1c   :  { %9630 = vpow2.f32 %v3036_v52  ;;  %v3006_v14 = vmul.f32 %v2855_v60, %v10986_v39  ;;  %v8603_v63 = vpop.f32.mrb[68].mxu1  ;;  %8650 = vmatprep.mubr.msk.f32.mxu0 %vm1151_vm6, %v3373_v23 }
 0xf1d   :  { %v3042_v4 = vmul.f32 1.442695, %v3007_v10  ;;  %v3288_v42 = vpop.f32.mrb[69].mxu1  ;;  %8651 = vmatmul.mubr.msk.f32.gmra.mrb[64].mxu0 %vm1151_vm6, %v3374_v36  ;;  %v3376_v9 = vmul.f32 %v8603_v63, %v11234_v33  ;;  %v12600_v63 = vld [vmem:[#allocation122_spill] sm:$0xff] }
 0xf1e   :  { %v3040_v45 = vmul.f32 1.442695, %v3006_v14  ;;  %v3375_v62 = vmul.f32 %v3288_v42, %v11222_v49  ;;  %v8530_v29 = vpop.f32.mrb[20].mxu0  ;;  %v12601_v42 = vld [vmem:[#allocation123_spill] sm:$0xff] }
 0xf1f   :  { %9632 = vpow2.f32 %v3042_v4  ;;  %v3009_v27 = vmul.f32 %v8530_v29, %v10990_v26  ;;  %v2865_v5 = vpop.f32.mrb[21].mxu0 }
 0xf20   :  { %9634 = vpow2.f32 %v3040_v45  ;;  %v3008_v39 = vmul.f32 %v2865_v5, %v12599_v20  ;;  %v8606_v40 = vpop.f32.mrb[70].mxu1  ;;  %8653 = vmatprep.mubr.msk.f32.mxu0 %vm1151_vm6, %v3375_v62 }
 0xf21   :  { %v3046_v52 = vmul.f32 1.442695, %v3009_v27  ;;  %v3298_v23 = vpop.f32.mrb[71].mxu1  ;;  %8654 = vmatmul.mubr.msk.f32.gmra.mrb[66].mxu0 %vm1151_vm6, %v3376_v9  ;;  %v3378_v14 = vmul.f32 %v8606_v40, %v11250_v15 }
 0xf22   :  { %v3044_v36 = vmul.f32 1.442695, %v3008_v39  ;;  %v3377_v10 = vmul.f32 %v3298_v23, %v11238_v16  ;;  %v8533_v60 = vpop.f32.mrb[22].mxu0  ;;  %v12602_v23 = vld [vmem:[#allocation124_spill] sm:$0xff] }
 0xf23   :  { %9636 = vpow2.f32 %v3046_v52  ;;  %v3011_v26 = vmul.f32 %v8533_v60, %v12600_v63  ;;  %v2875_v4 = vpop.f32.mrb[23].mxu0  ;;  %v12603_v60 = vld [vmem:[#allocation125_spill] sm:$0xff] }
 0xf24   :  { %9638 = vpow2.f32 %v3044_v36  ;;  %v3010_v45 = vmul.f32 %v2875_v4, %v12601_v42  ;;  %v8609_v29 = vpop.f32.mrb[72].mxu1  ;;  %8656 = vmatprep.mubr.msk.f32.mxu0 %vm1151_vm6, %v3377_v10 }
 0xf25   :  { %v9629_v62 = vpop.eup %9628  ;;  %v3050_v27 = vmul.f32 1.442695, %v3011_v26  ;;  %v3308_v5 = vpop.f32.mrb[73].mxu1  ;;  %8657 = vmatmul.mubr.msk.f32.gmra.mrb[68].mxu0 %vm1151_vm6, %v3378_v14  ;;  %v3380_v52 = vmul.f32 %v8609_v29, %v11267_v46 }
 0xf26   :  { %v9631_v9 = vpop.eup %9630  ;;  %3101 = vst.msk [vmem:[#allocation2 + $0x8] sm:$0xff] %vm2063_vm14, %v9629_v62  ;;  %v3048_v20 = vmul.f32 1.442695, %v3010_v45  ;;  %v3379_v39 = vmul.f32 %v3308_v5, %v11254_v24  ;;  %v8536_v40 = vpop.f32.mrb[24].mxu0 }
 0xf27   :  { %3100 = vst.msk [vmem:[#allocation2] sm:$0xff] %vm2063_vm14, %v9631_v9  ;;  %9640 = vpow2.f32 %v3050_v27  ;;  %v3013_v36 = vmul.f32 %v8536_v40, %v12602_v23  ;;  %v2885_v10 = vpop.f32.mrb[25].mxu0  ;;  %v12604_v9 = vld [vmem:[#allocation126_spill] sm:$0xff] }
 0xf28   :  { %9642 = vpow2.f32 %v3048_v20  ;;  %v3012_v63 = vmul.f32 %v2885_v10, %v12603_v60  ;;  %v8612_v26 = vpop.f32.mrb[74].mxu1  ;;  %8659 = vmatprep.mubr.msk.f32.mxu0 %vm1151_vm6, %v3379_v39 }
 0xf29   :  { %v9633_v14 = vpop.eup %9632  ;;  %v3054_v4 = vmul.f32 1.442695, %v3013_v36  ;;  %v3318_v42 = vpop.f32.mrb[75].mxu1  ;;  %8660 = vmatmul.mubr.msk.f32.gmra.mrb[70].mxu0 %vm1151_vm6, %v3380_v52  ;;  %v3382_v5 = vmul.f32 %v8612_v26, %v11285_v8 }
 0xf2a   :  { %v9635_v45 = vpop.eup %9634  ;;  %3103 = vst.msk [vmem:[#allocation2 + $0x18] sm:$0xff] %vm2063_vm14, %v9633_v14  ;;  %v3052_v62 = vmul.f32 1.442695, %v3012_v63  ;;  %v3381_v29 = vmul.f32 %v3318_v42, %v11272_v12  ;;  %v8539_v27 = vpop.f32.mrb[26].mxu0 }
 0xf2b   :  { %3102 = vst.msk [vmem:[#allocation2 + $0x10] sm:$0xff] %vm2063_vm14, %v9635_v45  ;;  %9644 = vpow2.f32 %v3054_v4  ;;  %v3015_v20 = vmul.f32 %v8539_v27, %v12604_v9  ;;  %v2895_v39 = vpop.f32.mrb[27].mxu0 }
 0xf2c   :  { %9646 = vpow2.f32 %v3052_v62  ;;  %v3014_v40 = vmul.f32 %v2895_v39, %v11018_v50  ;;  %v8615_v23 = vpop.f32.mrb[76].mxu1  ;;  %8662 = vmatprep.mubr.msk.f32.mxu0 %vm1151_vm6, %v3381_v29 }
 0xf2d   :  { %v9637_v52 = vpop.eup %9636  ;;  %v3058_v36 = vmul.f32 1.442695, %v3015_v20  ;;  %v3328_v10 = vpop.f32.mrb[77].mxu1  ;;  %8663 = vmatmul.mubr.msk.f32.gmra.mrb[72].mxu0 %vm1151_vm6, %v3382_v5  ;;  %v3384_v50 = vmul.f32 %v8615_v23, %v11303_v41 }
 0xf2e   :  { %v9639_v60 = vpop.eup %9638  ;;  %3105 = vst.msk [vmem:[#allocation2 + $0x28] sm:$0xff] %vm2063_vm14, %v9637_v52  ;;  %v3056_v63 = vmul.f32 1.442695, %v3014_v40  ;;  %v3383_v26 = vmul.f32 %v3328_v10, %v11290_v38  ;;  %v8542_v14 = vpop.f32.mrb[28].mxu0  ;;  %v12605_v52 = vld [vmem:[#allocation116_spill] sm:$0xff] }
 0xf2f   :  { %3104 = vst.msk [vmem:[#allocation2 + $0x20] sm:$0xff] %vm2063_vm14, %v9639_v60  ;;  %9648 = vpow2.f32 %v3058_v36  ;;  %v3017_v4 = vmul.f32 %v8542_v14, %v11025_v56  ;;  %v2905_v42 = vpop.f32.mrb[29].mxu0  ;;  %v552_v36 = vshra.s32 %v12605_v52, 4  ;;  %v4117_v52 = vld [vmem:[%s12614_s13 + $0x10] sm:$0xff] }
 0xf30   :  { %9650 = vpow2.f32 %v3056_v63  ;;  %v3016_v45 = vmul.f32 %v2905_v42, %v11032_v22  ;;  %v8618_v62 = vpop.f32.mrb[78].mxu1  ;;  %8665 = vmatprep.mubr.msk.f32.mxu0 %vm1151_vm6, %v3383_v26 }
 0xf31   :  { %v9641_v29 = vpop.eup %9640  ;;  %v3062_v27 = vmul.f32 1.442695, %v3017_v4  ;;  %v3338_v5 = vpop.f32.mrb[79].mxu1  ;;  %8666 = vmatmul.mubr.msk.f32.gmra.mrb[74].mxu0 %vm1151_vm6, %v3384_v50  ;;  %v3386_v56 = vmul.f32 %v8618_v62, %v11318_v21 }
 0xf32   :  { %v9643_v9 = vpop.eup %9642  ;;  %3107 = vst.msk [vmem:[#allocation2 + $0x38] sm:$0xff] %vm2063_vm14, %v9641_v29  ;;  %v3060_v20 = vmul.f32 1.442695, %v3016_v45  ;;  %v3385_v39 = vmul.f32 %v3338_v5, %v11308_v37  ;;  %v8545_v40 = vpop.f32.mrb[30].mxu0  ;;  %v12606_v29 = vld [vmem:[#allocation54_spill] sm:$0xff] }
 0xf33   :  { %3106 = vst.msk [vmem:[#allocation2 + $0x30] sm:$0xff] %vm2063_vm14, %v9643_v9  ;;  %9652 = vpow2.f32 %v3062_v27  ;;  %v3019_v22 = vmul.f32 %v8545_v40, %v11044_v25  ;;  %v2915_v23 = vpop.f32.mrb[31].mxu0  ;;  %vm11426_vm4 = vcmp.eq.s32.totalorder %v552_v36, %v12606_v29  ;;  %v12607_v27 = vmov 0 }
 0xf34   :  { %9654 = vpow2.f32 %v3060_v20  ;;  %v3018_v10 = vmul.f32 %v2915_v23, %v11050_v7  ;;  %v8621_v60 = vpop.f32.mrb[80].mxu1  ;;  %8668 = vmatprep.mubr.msk.f32.mxu0 %vm1151_vm6, %v3385_v39  ;;  %v12608_v27 = vsel %vm11426_vm4, 4294967295, %v12607_v27 }
 0xf35   :  { %v9645_v63 = vpop.eup %9644  ;;  %v3066_v26 = vmul.f32 1.442695, %v3019_v22  ;;  %v3348_v14 = vpop.f32.mrb[81].mxu1  ;;  %8669 = vmatmul.mubr.msk.f32.gmra.mrb[76].mxu0 %vm1151_vm6, %v3386_v56  ;;  %v3388_v7 = vmul.f32 %v8621_v60, %v11329_v54  ;;  %12609 = vst [vmem:[#allocation121_spill] sm:$0xff] %v12608_v27 }
 0xf36   :  { %v9647_v50 = vpop.eup %9646  ;;  %3109 = vst.msk [vmem:[#allocation2 + $0x48] sm:$0xff] %vm2063_vm14, %v9645_v63  ;;  %v3064_v4 = vmul.f32 1.442695, %v3018_v10  ;;  %v3387_v25 = vmul.f32 %v3348_v14, %v11321_v31  ;;  %v8548_v42 = vpop.f32.mrb[32].mxu0 }
 0xf37   :  { %3108 = vst.msk [vmem:[#allocation2 + $0x40] sm:$0xff] %vm2063_vm14, %v9647_v50  ;;  %9656 = vpow2.f32 %v3066_v26  ;;  %v3021_v45 = vmul.f32 %v8548_v42, %v11062_v51  ;;  %v2925_v62 = vpop.f32.mrb[33].mxu0 }
 0xf38   :  { %9658 = vpow2.f32 %v3064_v4  ;;  %v3020_v5 = vmul.f32 %v2925_v62, %v11068_v53  ;;  %8671 = vmatprep.mubr.msk.f32.mxu0 %vm1151_vm6, %v3387_v25  ;;  %v11432_v9 = vpop.f32.mrb[82].mxu1 }
 0xf39   :  { %v9649_v20 = vpop.eup %9648  ;;  %v3070_v39 = vmul.f32 1.442695, %v3021_v45  ;;  %8672 = vmatmul.mubr.msk.f32.gmra.mrb[78].mxu0 %vm1151_vm6, %v3388_v7  ;;  %v3978_v51 = vpop.f32.mrb[83].mxu1 }
 0xf3a   :  { %v9651_v40 = vpop.eup %9650  ;;  %3111 = vst.msk [vmem:[#allocation2 + $0x58] sm:$0xff] %vm2063_vm14, %v9649_v20  ;;  %v3068_v56 = vmul.f32 1.442695, %v3020_v5  ;;  %7529 = vmatprep.mubr.msk.f32.mxu0 %vm11426_vm4, %v3978_v51  ;;  %v8551_v22 = vpop.f32.mrb[34].mxu0 }
 0xf3b   :  { %3110 = vst.msk [vmem:[#allocation2 + $0x50] sm:$0xff] %vm2063_vm14, %v9651_v40  ;;  %9660 = vpow2.f32 %v3070_v39  ;;  %v3023_v53 = vmul.f32 %v8551_v22, %v11084_v0  ;;  %v2935_v23 = vpop.f32.mrb[35].mxu0 }
 0xf3c   :  { %9662 = vpow2.f32 %v3068_v56  ;;  %v3022_v10 = vmul.f32 %v2935_v23, %v11090_v6  ;;  %v11441_v60 = vpop.f32.mrb[84].mxu1 }
 0xf3d   :  { %v9653_v63 = vpop.eup %9652  ;;  %v3074_v26 = vmul.f32 1.442695, %v3023_v53  ;;  %v11443_v14 = vpop.f32.mrb[85].mxu1 }
 0xf3e   :  { %v9655_v50 = vpop.eup %9654  ;;  %3113 = vst.msk [vmem:[#allocation2 + $0x68] sm:$0xff] %vm2063_vm14, %v9653_v63  ;;  %v3072_v4 = vmul.f32 1.442695, %v3022_v10  ;;  %v8554_v25 = vpop.f32.mrb[36].mxu0 }
 0xf3f   :  { %3112 = vst.msk [vmem:[#allocation2 + $0x60] sm:$0xff] %vm2063_vm14, %v9655_v50  ;;  %9664 = vpow2.f32 %v3074_v26  ;;  %v3025_v0 = vmul.f32 %v8554_v25, %v11106_v1  ;;  %v2945_v42 = vpop.f32.mrb[37].mxu0 }
 0xf40   :  { %9666 = vpow2.f32 %v3072_v4  ;;  %v3024_v6 = vmul.f32 %v2945_v42, %v11112_v17 }
 0xf41   :  { %v9657_v7 = vpop.eup %9656  ;;  %v3078_v45 = vmul.f32 1.442695, %v3025_v0 }
 0xf42   :  { %v9659_v62 = vpop.eup %9658  ;;  %3115 = vst.msk [vmem:[#allocation2 + $0x78] sm:$0xff] %vm2063_vm14, %v9657_v7  ;;  %v3076_v5 = vmul.f32 1.442695, %v3024_v6  ;;  %v8557_v20 = vpop.f32.mrb[38].mxu0 }
 0xf43   :  { %3114 = vst.msk [vmem:[#allocation2 + $0x70] sm:$0xff] %vm2063_vm14, %v9659_v62  ;;  %9668 = vpow2.f32 %v3078_v45  ;;  %v3027_v39 = vmul.f32 %v8557_v20, %v11128_v44  ;;  %v2955_v51 = vpop.f32.mrb[39].mxu0  ;;  %v12610_v62 = vld [vmem:[#allocation93_spill] sm:$0xff] }
 0xf44   :  { %9670 = vpow2.f32 %v3076_v5  ;;  %v3026_v1 = vmul.f32 %v2955_v51, %v11134_v34 }
 0xf45   :  { %v9661_v40 = vpop.eup %9660  ;;  %v3082_v56 = vmul.f32 1.442695, %v3027_v39  ;;  %v12611_v39 = vld [vmem:[#allocation97_spill] sm:$0xff] }
 0xf46   :  { %v9663_v22 = vpop.eup %9662  ;;  %3117 = vst.msk [vmem:[#allocation2 + $0x88] sm:$0xff] %vm2063_vm14, %v9661_v40  ;;  %v3080_v17 = vmul.f32 1.442695, %v3026_v1  ;;  %v8560_v53 = vpop.f32.mrb[40].mxu0 }
 0xf47   :  { %3116 = vst.msk [vmem:[#allocation2 + $0x80] sm:$0xff] %vm2063_vm14, %v9663_v22  ;;  %9672 = vpow2.f32 %v3082_v56  ;;  %v3029_v23 = vmul.f32 %v8560_v53, %v11150_v18  ;;  %v2965_v10 = vpop.f32.mrb[41].mxu0  ;;  %v12612_v22 = vld [vmem:[#allocation104_spill] sm:$0xff] }
 0xf48   :  { %9674 = vpow2.f32 %v3080_v17  ;;  %v3028_v44 = vmul.f32 %v2965_v10, %v11156_v58 }
 0xf49   :  { %v9665_v63 = vpop.eup %9664  ;;  %v3086_v26 = vmul.f32 1.442695, %v3029_v23  ;;  %v12613_v23 = vld [vmem:[#allocation107_spill] sm:$0xff] }
 0xf4a   :  { %v9667_v50 = vpop.eup %9666  ;;  %3119 = vst.msk [vmem:[#allocation2 + $0x98] sm:$0xff] %vm2063_vm14, %v9665_v63  ;;  %v3084_v34 = vmul.f32 1.442695, %v3028_v44  ;;  %v8563_v4 = vpop.f32.mrb[42].mxu0 }
 0xf4b   :  { %3118 = vst.msk [vmem:[#allocation2 + $0x90] sm:$0xff] %vm2063_vm14, %v9667_v50  ;;  %9676 = vpow2.f32 %v3086_v26  ;;  %v3031_v25 = vmul.f32 %v8563_v4, %v11262_v48  ;;  %v2975_v0 = vpop.f32.mrb[43].mxu0 }
 0xf4c   :  { %9678 = vpow2.f32 %v3084_v34  ;;  %v3030_v18 = vmul.f32 %v2975_v0, %v11269_v11 }
 0xf4d   :  { %v9669_v42 = vpop.eup %9668  ;;  %v3090_v6 = vmul.f32 1.442695, %v3031_v25 }
 0xf4e   :  { %v9671_v7 = vpop.eup %9670  ;;  %3121 = vst.msk [vmem:[#allocation2 + $0xa8] sm:$0xff] %vm2063_vm14, %v9669_v42  ;;  %v3088_v58 = vmul.f32 1.442695, %v3030_v18  ;;  %v8566_v45 = vpop.f32.mrb[44].mxu0 }
 0xf4f   :  { %3120 = vst.msk [vmem:[#allocation2 + $0xa0] sm:$0xff] %vm2063_vm14, %v9671_v7  ;;  %9680 = vpow2.f32 %v3090_v6  ;;  %v3033_v5 = vmul.f32 %v8566_v45, %v12610_v62  ;;  %v2985_v20 = vpop.f32.mrb[45].mxu0  ;;  %v4115_v6 = vld [vmem:[%s12614_s13] sm:$0xff]  ;;  %v4116_v7 = vld [vmem:[%s12614_s13 + $0x8] sm:$0xff] }
 0xf50   :  { %9682 = vpow2.f32 %v3088_v58  ;;  %v3032_v48 = vmul.f32 %v2985_v20, %v12611_v39  ;;  %v9272_v58 = vpack.c.bf16 %v4116_v7, %v4115_v6  ;;  %v3742_v39 = vld [vmem:[#allocation2] sm:$0xff] }
 0xf51   :  { %v9673_v51 = vpop.eup %9672  ;;  %v3094_v1 = vmul.f32 1.442695, %v3033_v5  ;;  %v3743_v5 = vld [vmem:[#allocation2 + $0x8] sm:$0xff]  ;;  %v3762_v6 = vld [vmem:[#allocation2 + $0x20] sm:$0xff] }
 0xf52   :  { %v9675_v40 = vpop.eup %9674  ;;  %3123 = vst.msk [vmem:[#allocation2 + $0xb8] sm:$0xff] %vm2063_vm14, %v9673_v51  ;;  %v3092_v11 = vmul.f32 1.442695, %v3032_v48  ;;  %v8569_v56 = vpop.f32.mrb[46].mxu0  ;;  %9273 = vmatprep.subr.bf16.mxu1 %v9272_v58  ;;  %v3745_v51 = vmul.f32 0.0, %v3743_v5 }
 0xf53   :  { %3122 = vst.msk [vmem:[#allocation2 + $0xb0] sm:$0xff] %vm2063_vm14, %v9675_v40  ;;  %9684 = vpow2.f32 %v3094_v1  ;;  %v3035_v17 = vmul.f32 %v8569_v56, %v12612_v22  ;;  %v2995_v53 = vpop.f32.mrb[47].mxu0  ;;  %9275 = vmatpush3.bf16.msra.mxu1 %v9272_v58  ;;  %v3744_v40 = vmul.f32 0.0, %v3742_v39 }
 0xf54   :  { %9686 = vpow2.f32 %v3092_v11  ;;  %v3034_v10 = vmul.f32 %v2995_v53, %v12613_v23  ;;  %v3753_v23 = vld [vmem:[#allocation2 + $0x18] sm:$0xff] }
 0xf55   :  { %v9677_v44 = vpop.eup %9676  ;;  %v3098_v63 = vmul.f32 1.442695, %v3035_v17 }
 0xf56   :  { %v9679_v26 = vpop.eup %9678  ;;  %3125 = vst.msk [vmem:[#allocation2 + $0xc8] sm:$0xff] %vm2063_vm14, %v9677_v44  ;;  %v3096_v50 = vmul.f32 1.442695, %v3034_v10  ;;  %v3752_v44 = vld [vmem:[#allocation2 + $0x10] sm:$0xff] }
 0xf57   :  { %3124 = vst.msk [vmem:[#allocation2 + $0xc0] sm:$0xff] %vm2063_vm14, %v9679_v26  ;;  %9688 = vpow2.f32 %v3098_v63 }
 0xf58   :  { %9690 = vpow2.f32 %v3096_v50 }
 0xf59   :  { %v9681_v34 = vpop.eup %9680 }
 0xf5a   :  { %v9683_v4 = vpop.eup %9682  ;;  %3127 = vst.msk [vmem:[#allocation2 + $0xd8] sm:$0xff] %vm2063_vm14, %v9681_v34 }
 0xf5b   :  { %3126 = vst.msk [vmem:[#allocation2 + $0xd0] sm:$0xff] %vm2063_vm14, %v9683_v4 }
 0xf5d   :  { %v9685_v25 = vpop.eup %9684 }
 0xf5e   :  { %v9687_v0 = vpop.eup %9686  ;;  %3129 = vst.msk [vmem:[#allocation2 + $0xe8] sm:$0xff] %vm2063_vm14, %v9685_v25 }
 0xf5f   :  { %3128 = vst.msk [vmem:[#allocation2 + $0xe0] sm:$0xff] %vm2063_vm14, %v9687_v0 }
 0xf61   :  { %v9689_v18 = vpop.eup %9688 }
 0xf62   :  { %v9691_v42 = vpop.eup %9690  ;;  %3131 = vst.msk [vmem:[#allocation2 + $0xf8] sm:$0xff] %vm2063_vm14, %v9689_v18  ;;  %v3763_v18 = vld [vmem:[#allocation2 + $0x28] sm:$0xff] }
 0xf63   :  { %3130 = vst.msk [vmem:[#allocation2 + $0xf0] sm:$0xff] %vm2063_vm14, %v9691_v42 }
 0xfd0   :  { %v8628_v45 = vpop.f32.mrb[48].mxu0 }
 0xfd1   :  { %3711 = vst.msk [vmem:[#allocation3 + $0x8] sm:$0xff] %vm2063_vm14, %v8628_v45  ;;  %v3551_v62 = vpop.f32.mrb[49].mxu0 }
 0xfd2   :  { %3710 = vst.msk [vmem:[#allocation3] sm:$0xff] %vm2063_vm14, %v3551_v62 }
 0xfd4   :  { %v8631_v20 = vpop.f32.mrb[50].mxu0 }
 0xfd5   :  { %3713 = vst.msk [vmem:[#allocation3 + $0x18] sm:$0xff] %vm2063_vm14, %v8631_v20  ;;  %v3561_v48 = vpop.f32.mrb[51].mxu0 }
 0xfd6   :  { %3712 = vst.msk [vmem:[#allocation3 + $0x10] sm:$0xff] %vm2063_vm14, %v3561_v48  ;;  %v3773_v48 = vld [vmem:[#allocation2 + $0x38] sm:$0xff] }
 0xfd8   :  { %v3747_v1 = vld [vmem:[#allocation3 + $0x8] sm:$0xff]  ;;  %v8634_v11 = vpop.f32.mrb[52].mxu0 }
 0xfd9   :  { %v3749_v56 = vadd.f32 %v3747_v1, %v3745_v51  ;;  %v3746_v22 = vld [vmem:[#allocation3] sm:$0xff]  ;;  %3715 = vst.msk [vmem:[#allocation3 + $0x28] sm:$0xff] %vm2063_vm14, %v8634_v11  ;;  %v3571_v17 = vpop.f32.mrb[53].mxu0  ;;  %v3772_v1 = vld [vmem:[#allocation2 + $0x30] sm:$0xff] }
 0xfda   :  { %v3748_v53 = vadd.f32 %v3746_v22, %v3744_v40  ;;  %3714 = vst.msk [vmem:[#allocation3 + $0x20] sm:$0xff] %vm2063_vm14, %v3571_v17 }
 0xfdb   :  { %3751 = vst.msk [vmem:[#allocation4 + $0x8] sm:$0xff] %vm2063_vm14, %v3749_v56  ;;  %v3755_v10 = vmul.f32 %v3753_v23, %v3749_v56 }
 0xfdc   :  { %3750 = vst.msk [vmem:[#allocation4] sm:$0xff] %vm2063_vm14, %v3748_v53  ;;  %v3757_v63 = vld [vmem:[#allocation3 + $0x18] sm:$0xff]  ;;  %v3754_v26 = vmul.f32 %v3752_v44, %v3748_v53  ;;  %v8637_v50 = vpop.f32.mrb[54].mxu0 }
 0xfdd   :  { %v3759_v34 = vadd.f32 %v3757_v63, %v3755_v10  ;;  %v3756_v4 = vld [vmem:[#allocation3 + $0x10] sm:$0xff]  ;;  %3717 = vst.msk [vmem:[#allocation3 + $0x38] sm:$0xff] %vm2063_vm14, %v8637_v50  ;;  %v3581_v25 = vpop.f32.mrb[55].mxu0  ;;  %v3783_v10 = vld [vmem:[#allocation2 + $0x48] sm:$0xff]  ;;  %v3782_v63 = vld [vmem:[#allocation2 + $0x40] sm:$0xff] }
 0xfde   :  { %v3758_v0 = vadd.f32 %v3756_v4, %v3754_v26  ;;  %3716 = vst.msk [vmem:[#allocation3 + $0x30] sm:$0xff] %vm2063_vm14, %v3581_v25 }
 0xfdf   :  { %3761 = vst.msk [vmem:[#allocation4 + $0x18] sm:$0xff] %vm2063_vm14, %v3759_v34  ;;  %v3765_v42 = vmul.f32 %v3763_v18, %v3759_v34 }
 0xfe0   :  { %3760 = vst.msk [vmem:[#allocation4 + $0x10] sm:$0xff] %vm2063_vm14, %v3758_v0  ;;  %v3767_v7 = vld [vmem:[#allocation3 + $0x28] sm:$0xff]  ;;  %v3764_v58 = vmul.f32 %v3762_v6, %v3758_v0  ;;  %v8640_v45 = vpop.f32.mrb[56].mxu0 }
 0xfe1   :  { %v3769_v62 = vadd.f32 %v3767_v7, %v3765_v42  ;;  %v3766_v5 = vld [vmem:[#allocation3 + $0x20] sm:$0xff]  ;;  %3719 = vst.msk [vmem:[#allocation3 + $0x48] sm:$0xff] %vm2063_vm14, %v8640_v45  ;;  %v3591_v20 = vpop.f32.mrb[57].mxu0  ;;  %v3793_v42 = vld [vmem:[#allocation2 + $0x58] sm:$0xff]  ;;  %v3792_v7 = vld [vmem:[#allocation2 + $0x50] sm:$0xff] }
 0xfe2   :  { %v3768_v39 = vadd.f32 %v3766_v5, %v3764_v58  ;;  %3718 = vst.msk [vmem:[#allocation3 + $0x40] sm:$0xff] %vm2063_vm14, %v3591_v20 }
 0xfe3   :  { %3771 = vst.msk [vmem:[#allocation4 + $0x28] sm:$0xff] %vm2063_vm14, %v3769_v62  ;;  %v3775_v51 = vmul.f32 %v3773_v48, %v3769_v62 }
 0xfe4   :  { %3770 = vst.msk [vmem:[#allocation4 + $0x20] sm:$0xff] %vm2063_vm14, %v3768_v39  ;;  %v3777_v40 = vld [vmem:[#allocation3 + $0x38] sm:$0xff]  ;;  %v3774_v11 = vmul.f32 %v3772_v1, %v3768_v39  ;;  %v8643_v56 = vpop.f32.mrb[58].mxu0 }
 0xfe5   :  { %v3779_v22 = vadd.f32 %v3777_v40, %v3775_v51  ;;  %v3776_v17 = vld [vmem:[#allocation3 + $0x30] sm:$0xff]  ;;  %3721 = vst.msk [vmem:[#allocation3 + $0x58] sm:$0xff] %vm2063_vm14, %v8643_v56  ;;  %v3601_v53 = vpop.f32.mrb[59].mxu0  ;;  %v3803_v51 = vld [vmem:[#allocation2 + $0x68] sm:$0xff]  ;;  %v3802_v40 = vld [vmem:[#allocation2 + $0x60] sm:$0xff] }
 0xfe6   :  { %v3778_v23 = vadd.f32 %v3776_v17, %v3774_v11  ;;  %3720 = vst.msk [vmem:[#allocation3 + $0x50] sm:$0xff] %vm2063_vm14, %v3601_v53 }
 0xfe7   :  { %3781 = vst.msk [vmem:[#allocation4 + $0x38] sm:$0xff] %vm2063_vm14, %v3779_v22  ;;  %v3785_v44 = vmul.f32 %v3783_v10, %v3779_v22 }
 0xfe8   :  { %3780 = vst.msk [vmem:[#allocation4 + $0x30] sm:$0xff] %vm2063_vm14, %v3778_v23  ;;  %v3787_v26 = vld [vmem:[#allocation3 + $0x48] sm:$0xff]  ;;  %v3784_v50 = vmul.f32 %v3782_v63, %v3778_v23  ;;  %v8646_v34 = vpop.f32.mrb[60].mxu0 }
 0xfe9   :  { %v3789_v4 = vadd.f32 %v3787_v26, %v3785_v44  ;;  %v3786_v25 = vld [vmem:[#allocation3 + $0x40] sm:$0xff]  ;;  %3723 = vst.msk [vmem:[#allocation3 + $0x68] sm:$0xff] %vm2063_vm14, %v8646_v34  ;;  %v3611_v0 = vpop.f32.mrb[61].mxu0  ;;  %v3813_v44 = vld [vmem:[#allocation2 + $0x78] sm:$0xff]  ;;  %v3812_v26 = vld [vmem:[#allocation2 + $0x70] sm:$0xff] }
 0xfea   :  { %v3788_v18 = vadd.f32 %v3786_v25, %v3784_v50  ;;  %3722 = vst.msk [vmem:[#allocation3 + $0x60] sm:$0xff] %vm2063_vm14, %v3611_v0 }
 0xfeb   :  { %3791 = vst.msk [vmem:[#allocation4 + $0x48] sm:$0xff] %vm2063_vm14, %v3789_v4  ;;  %v3795_v6 = vmul.f32 %v3793_v42, %v3789_v4 }
 0xfec   :  { %3790 = vst.msk [vmem:[#allocation4 + $0x40] sm:$0xff] %vm2063_vm14, %v3788_v18  ;;  %v3797_v58 = vld [vmem:[#allocation3 + $0x58] sm:$0xff]  ;;  %v3794_v45 = vmul.f32 %v3792_v7, %v3788_v18  ;;  %v8649_v62 = vpop.f32.mrb[62].mxu0 }
 0xfed   :  { %v3799_v5 = vadd.f32 %v3797_v58, %v3795_v6  ;;  %v3796_v20 = vld [vmem:[#allocation3 + $0x50] sm:$0xff]  ;;  %3725 = vst.msk [vmem:[#allocation3 + $0x78] sm:$0xff] %vm2063_vm14, %v8649_v62  ;;  %v3621_v39 = vpop.f32.mrb[63].mxu0  ;;  %v3823_v6 = vld [vmem:[#allocation2 + $0x88] sm:$0xff]  ;;  %v3822_v58 = vld [vmem:[#allocation2 + $0x80] sm:$0xff] }
 0xfee   :  { %v3798_v48 = vadd.f32 %v3796_v20, %v3794_v45  ;;  %3724 = vst.msk [vmem:[#allocation3 + $0x70] sm:$0xff] %vm2063_vm14, %v3621_v39 }
 0xfef   :  { %3801 = vst.msk [vmem:[#allocation4 + $0x58] sm:$0xff] %vm2063_vm14, %v3799_v5  ;;  %v3805_v1 = vmul.f32 %v3803_v51, %v3799_v5 }
 0xff0   :  { %3800 = vst.msk [vmem:[#allocation4 + $0x50] sm:$0xff] %vm2063_vm14, %v3798_v48  ;;  %v3807_v11 = vld [vmem:[#allocation3 + $0x68] sm:$0xff]  ;;  %v3804_v56 = vmul.f32 %v3802_v40, %v3798_v48  ;;  %v8652_v22 = vpop.f32.mrb[64].mxu0 }
 0xff1   :  { %v3809_v17 = vadd.f32 %v3807_v11, %v3805_v1  ;;  %v3806_v53 = vld [vmem:[#allocation3 + $0x60] sm:$0xff]  ;;  %3727 = vst.msk [vmem:[#allocation3 + $0x88] sm:$0xff] %vm2063_vm14, %v8652_v22  ;;  %v3631_v23 = vpop.f32.mrb[65].mxu0  ;;  %v3833_v1 = vld [vmem:[#allocation2 + $0x98] sm:$0xff]  ;;  %v3832_v11 = vld [vmem:[#allocation2 + $0x90] sm:$0xff] }
 0xff2   :  { %v3808_v10 = vadd.f32 %v3806_v53, %v3804_v56  ;;  %3726 = vst.msk [vmem:[#allocation3 + $0x80] sm:$0xff] %vm2063_vm14, %v3631_v23 }
 0xff3   :  { %3811 = vst.msk [vmem:[#allocation4 + $0x68] sm:$0xff] %vm2063_vm14, %v3809_v17  ;;  %v3815_v63 = vmul.f32 %v3813_v44, %v3809_v17 }
 0xff4   :  { %3810 = vst.msk [vmem:[#allocation4 + $0x60] sm:$0xff] %vm2063_vm14, %v3808_v10  ;;  %v3817_v50 = vld [vmem:[#allocation3 + $0x78] sm:$0xff]  ;;  %v3814_v34 = vmul.f32 %v3812_v26, %v3808_v10  ;;  %v8655_v4 = vpop.f32.mrb[66].mxu0 }
 0xff5   :  { %v3819_v25 = vadd.f32 %v3817_v50, %v3815_v63  ;;  %v3816_v0 = vld [vmem:[#allocation3 + $0x70] sm:$0xff]  ;;  %3729 = vst.msk [vmem:[#allocation3 + $0x98] sm:$0xff] %vm2063_vm14, %v8655_v4  ;;  %v3641_v18 = vpop.f32.mrb[67].mxu0  ;;  %v3843_v63 = vld [vmem:[#allocation2 + $0xa8] sm:$0xff]  ;;  %v3842_v50 = vld [vmem:[#allocation2 + $0xa0] sm:$0xff] }
 0xff6   :  { %v3818_v42 = vadd.f32 %v3816_v0, %v3814_v34  ;;  %3728 = vst.msk [vmem:[#allocation3 + $0x90] sm:$0xff] %vm2063_vm14, %v3641_v18 }
 0xff7   :  { %3821 = vst.msk [vmem:[#allocation4 + $0x78] sm:$0xff] %vm2063_vm14, %v3819_v25  ;;  %v3825_v7 = vmul.f32 %v3823_v6, %v3819_v25 }
 0xff8   :  { %3820 = vst.msk [vmem:[#allocation4 + $0x70] sm:$0xff] %vm2063_vm14, %v3818_v42  ;;  %v3827_v45 = vld [vmem:[#allocation3 + $0x88] sm:$0xff]  ;;  %v3824_v62 = vmul.f32 %v3822_v58, %v3818_v42  ;;  %v8658_v5 = vpop.f32.mrb[68].mxu0  ;;  %v3853_v42 = vld [vmem:[#allocation2 + $0xb8] sm:$0xff] }
 0xff9   :  { %v3829_v20 = vadd.f32 %v3827_v45, %v3825_v7  ;;  %v3826_v39 = vld [vmem:[#allocation3 + $0x80] sm:$0xff]  ;;  %3731 = vst.msk [vmem:[#allocation3 + $0xa8] sm:$0xff] %vm2063_vm14, %v8658_v5  ;;  %v3651_v48 = vpop.f32.mrb[69].mxu0 }
 0xffa   :  { %v3828_v51 = vadd.f32 %v3826_v39, %v3824_v62  ;;  %3730 = vst.msk [vmem:[#allocation3 + $0xa0] sm:$0xff] %vm2063_vm14, %v3651_v48  ;;  %v3991_v45 = vld [vmem:[#allocation4] sm:$0xff]  ;;  %v3992_v62 = vld [vmem:[#allocation4 + $0x8] sm:$0xff] }
 0xffb   :  { %3831 = vst.msk [vmem:[#allocation4 + $0x88] sm:$0xff] %vm2063_vm14, %v3829_v20  ;;  %v3835_v40 = vmul.f32 %v3833_v1, %v3829_v20  ;;  %v3852_v20 = vld [vmem:[#allocation2 + $0xb0] sm:$0xff] }
 0xffc   :  { %3830 = vst.msk [vmem:[#allocation4 + $0x80] sm:$0xff] %vm2063_vm14, %v3828_v51  ;;  %v3837_v56 = vld [vmem:[#allocation3 + $0x98] sm:$0xff]  ;;  %v3834_v22 = vmul.f32 %v3832_v11, %v3828_v51  ;;  %v8661_v17 = vpop.f32.mrb[70].mxu0 }
 0xffd   :  { %v3839_v53 = vadd.f32 %v3837_v56, %v3835_v40  ;;  %v3836_v23 = vld [vmem:[#allocation3 + $0x90] sm:$0xff]  ;;  %3733 = vst.msk [vmem:[#allocation3 + $0xb8] sm:$0xff] %vm2063_vm14, %v8661_v17  ;;  %v3661_v10 = vpop.f32.mrb[71].mxu0 }
 0xffe   :  { %v3838_v44 = vadd.f32 %v3836_v23, %v3834_v22  ;;  %3732 = vst.msk [vmem:[#allocation3 + $0xb0] sm:$0xff] %vm2063_vm14, %v3661_v10  ;;  %v3863_v22 = vld [vmem:[#allocation2 + $0xc8] sm:$0xff] }
 0xfff   :  { %3841 = vst.msk [vmem:[#allocation4 + $0x98] sm:$0xff] %vm2063_vm14, %v3839_v53  ;;  %v3845_v26 = vmul.f32 %v3843_v63, %v3839_v53  ;;  %v9242_v53 = vpack.c.bf16 %v3992_v62, %v3991_v45  ;;  %v3994_v63 = vld [vmem:[#allocation4 + $0x18] sm:$0xff] }
0x1000   :  { %3840 = vst.msk [vmem:[#allocation4 + $0x90] sm:$0xff] %vm2063_vm14, %v3838_v44  ;;  %v3847_v34 = vld [vmem:[#allocation3 + $0xa8] sm:$0xff]  ;;  %v3844_v4 = vmul.f32 %v3842_v50, %v3838_v44  ;;  %v8664_v25 = vpop.f32.mrb[72].mxu0  ;;  %v3993_v44 = vld [vmem:[#allocation4 + $0x10] sm:$0xff]  ;;  %v3862_v50 = vld [vmem:[#allocation2 + $0xc0] sm:$0xff] }
0x1001   :  { %v3849_v0 = vadd.f32 %v3847_v34, %v3845_v26  ;;  %v3846_v18 = vld [vmem:[#allocation3 + $0xa0] sm:$0xff]  ;;  %3735 = vst.msk [vmem:[#allocation3 + $0xc8] sm:$0xff] %vm2063_vm14, %v8664_v25  ;;  %v3671_v6 = vpop.f32.mrb[73].mxu0  ;;  %v9246_v45 = vpack.c.bf16 %v3994_v63, %v3993_v44 }
0x1002   :  { %v3848_v7 = vadd.f32 %v3846_v18, %v3844_v4  ;;  %3734 = vst.msk [vmem:[#allocation3 + $0xc0] sm:$0xff] %vm2063_vm14, %v3671_v6  ;;  %v4008_v58 = vld [vmem:[#allocation4 + $0x88] sm:$0xff] }
0x1003   :  { %3851 = vst.msk [vmem:[#allocation4 + $0xa8] sm:$0xff] %vm2063_vm14, %v3849_v0  ;;  %v3855_v5 = vmul.f32 %v3853_v42, %v3849_v0  ;;  %v4007_v39 = vld [vmem:[#allocation4 + $0x80] sm:$0xff] }
0x1004   :  { %3850 = vst.msk [vmem:[#allocation4 + $0xa0] sm:$0xff] %vm2063_vm14, %v3848_v7  ;;  %v3857_v48 = vld [vmem:[#allocation3 + $0xb8] sm:$0xff]  ;;  %v3854_v51 = vmul.f32 %v3852_v20, %v3848_v7  ;;  %v8667_v1 = vpop.f32.mrb[74].mxu0  ;;  %v9240_v40 = vpack.c.bf16 %v4008_v58, %v4007_v39  ;;  %v3995_v20 = vld [vmem:[#allocation4 + $0x20] sm:$0xff]  ;;  %v3996_v39 = vld [vmem:[#allocation4 + $0x28] sm:$0xff] }
0x1005   :  { %v3859_v11 = vadd.f32 %v3857_v48, %v3855_v5  ;;  %v3856_v56 = vld [vmem:[#allocation3 + $0xb0] sm:$0xff]  ;;  %3737 = vst.msk [vmem:[#allocation3 + $0xd8] sm:$0xff] %vm2063_vm14, %v8667_v1  ;;  %v3681_v17 = vpop.f32.mrb[75].mxu0  ;;  %v3873_v7 = vld [vmem:[#allocation2 + $0xd8] sm:$0xff]  ;;  %v9250_v44 = vpack.c.bf16 %v3996_v39, %v3995_v20  ;;  %v3999_v39 = vld [vmem:[#allocation4 + $0x40] sm:$0xff] }
0x1006   :  { %v3858_v23 = vadd.f32 %v3856_v56, %v3854_v51  ;;  %3736 = vst.msk [vmem:[#allocation3 + $0xd0] sm:$0xff] %vm2063_vm14, %v3681_v17  ;;  %9241 = vmatprep.subr.bf16.mxu0 %v9240_v40  ;;  %v4010_v10 = vld [vmem:[#allocation4 + $0x98] sm:$0xff]  ;;  %v3872_v51 = vld [vmem:[#allocation2 + $0xd0] sm:$0xff] }
0x1007   :  { %3861 = vst.msk [vmem:[#allocation4 + $0xb8] sm:$0xff] %vm2063_vm14, %v3859_v11  ;;  %v3865_v26 = vmul.f32 %v3863_v22, %v3859_v11  ;;  %9243 = vmatpush3.bf16.msra.mxu0 %v9242_v53  ;;  %v4009_v34 = vld [vmem:[#allocation4 + $0x90] sm:$0xff] }
0x1008   :  { %3860 = vst.msk [vmem:[#allocation4 + $0xb0] sm:$0xff] %vm2063_vm14, %v3858_v23  ;;  %v3867_v4 = vld [vmem:[#allocation3 + $0xc8] sm:$0xff]  ;;  %v3864_v25 = vmul.f32 %v3862_v50, %v3858_v23  ;;  %v8670_v0 = vpop.f32.mrb[76].mxu0  ;;  %v9244_v18 = vpack.c.bf16 %v4010_v10, %v4009_v34  ;;  %v3997_v50 = vld [vmem:[#allocation4 + $0x30] sm:$0xff]  ;;  %v3998_v34 = vld [vmem:[#allocation4 + $0x38] sm:$0xff] }
0x1009   :  { %v3869_v42 = vadd.f32 %v3867_v4, %v3865_v26  ;;  %v3866_v6 = vld [vmem:[#allocation3 + $0xc0] sm:$0xff]  ;;  %3739 = vst.msk [vmem:[#allocation3 + $0xe8] sm:$0xff] %vm2063_vm14, %v8670_v0  ;;  %v3691_v58 = vpop.f32.mrb[77].mxu0  ;;  %v3883_v23 = vld [vmem:[#allocation2 + $0xe8] sm:$0xff] }
0x100a   :  { %v3868_v62 = vadd.f32 %v3866_v6, %v3864_v25  ;;  %3738 = vst.msk [vmem:[#allocation3 + $0xe0] sm:$0xff] %vm2063_vm14, %v3691_v58  ;;  %9245 = vmatprep.subr.bf16.mxu0 %v9244_v18  ;;  %v4012_v5 = vld [vmem:[#allocation4 + $0xa8] sm:$0xff]  ;;  %v3882_v25 = vld [vmem:[#allocation2 + $0xe0] sm:$0xff] }
0x100b   :  { %3871 = vst.msk [vmem:[#allocation4 + $0xc8] sm:$0xff] %vm2063_vm14, %v3869_v42  ;;  %v3875_v48 = vmul.f32 %v3873_v7, %v3869_v42  ;;  %9247 = vmatpush3.bf16.msra.mxu0 %v9246_v45  ;;  %v4011_v1 = vld [vmem:[#allocation4 + $0xa0] sm:$0xff]  ;;  %v3893_v45 = vld [vmem:[#allocation2 + $0xf8] sm:$0xff] }
0x100c   :  { %3870 = vst.msk [vmem:[#allocation4 + $0xc0] sm:$0xff] %vm2063_vm14, %v3868_v62  ;;  %v3877_v40 = vld [vmem:[#allocation3 + $0xd8] sm:$0xff]  ;;  %v3874_v11 = vmul.f32 %v3872_v51, %v3868_v62  ;;  %v8673_v56 = vpop.f32.mrb[78].mxu0  ;;  %v9248_v22 = vpack.c.bf16 %v4012_v5, %v4011_v1  ;;  %v9254_v62 = vpack.c.bf16 %v3998_v34, %v3997_v50  ;;  %v3892_v1 = vld [vmem:[#allocation2 + $0xf0] sm:$0xff] }
0x100d   :  { %v3879_v17 = vadd.f32 %v3877_v40, %v3875_v48  ;;  %v3876_v53 = vld [vmem:[#allocation3 + $0xd0] sm:$0xff]  ;;  %3741 = vst.msk [vmem:[#allocation3 + $0xf8] sm:$0xff] %vm2063_vm14, %v8673_v56  ;;  %v3701_v10 = vpop.f32.mrb[79].mxu0  ;;  %v4000_v48 = vld [vmem:[#allocation4 + $0x48] sm:$0xff] }
0x100e   :  { %v3878_v63 = vadd.f32 %v3876_v53, %v3874_v11  ;;  %3740 = vst.msk [vmem:[#allocation3 + $0xf0] sm:$0xff] %vm2063_vm14, %v3701_v10  ;;  %9249 = vmatprep.subr.bf16.mxu0 %v9248_v22  ;;  %v4014_v26 = vld [vmem:[#allocation4 + $0xb8] sm:$0xff] }
0x100f   :  { %3881 = vst.msk [vmem:[#allocation4 + $0xd8] sm:$0xff] %vm2063_vm14, %v3879_v17  ;;  %v3885_v4 = vmul.f32 %v3883_v23, %v3879_v17  ;;  %9251 = vmatpush3.bf16.msra.mxu0 %v9250_v44  ;;  %v4013_v0 = vld [vmem:[#allocation4 + $0xb0] sm:$0xff]  ;;  %v9258_v23 = vpack.c.bf16 %v4000_v48, %v3999_v39 }
0x1010   :  { %3880 = vst.msk [vmem:[#allocation4 + $0xd0] sm:$0xff] %vm2063_vm14, %v3878_v63  ;;  %v3887_v18 = vld [vmem:[#allocation3 + $0xe8] sm:$0xff]  ;;  %v3884_v42 = vmul.f32 %v3882_v25, %v3878_v63  ;;  %v9252_v6 = vpack.c.bf16 %v4014_v26, %v4013_v0  ;;  %v4001_v63 = vld [vmem:[#allocation4 + $0x50] sm:$0xff]  ;;  %v4002_v26 = vld [vmem:[#allocation4 + $0x58] sm:$0xff] }
0x1011   :  { %v3889_v7 = vadd.f32 %v3887_v18, %v3885_v4  ;;  %v3886_v58 = vld [vmem:[#allocation3 + $0xe0] sm:$0xff]  ;;  %v9262_v4 = vpack.c.bf16 %v4002_v26, %v4001_v63  ;;  %v4004_v18 = vld [vmem:[#allocation4 + $0x68] sm:$0xff] }
0x1012   :  { %v3888_v5 = vadd.f32 %v3886_v58, %v3884_v42  ;;  %9253 = vmatprep.subr.bf16.mxu0 %v9252_v6  ;;  %v4016_v20 = vld [vmem:[#allocation4 + $0xc8] sm:$0xff]  ;;  %v4003_v0 = vld [vmem:[#allocation4 + $0x60] sm:$0xff] }
0x1013   :  { %3891 = vst.msk [vmem:[#allocation4 + $0xe8] sm:$0xff] %vm2063_vm14, %v3889_v7  ;;  %v3895_v51 = vmul.f32 %v3893_v45, %v3889_v7  ;;  %9255 = vmatpush3.bf16.msra.mxu0 %v9254_v62  ;;  %v4015_v40 = vld [vmem:[#allocation4 + $0xc0] sm:$0xff]  ;;  %v9266_v7 = vpack.c.bf16 %v4004_v18, %v4003_v0  ;;  %v4005_v45 = vld [vmem:[#allocation4 + $0x70] sm:$0xff]  ;;  %v4006_v62 = vld [vmem:[#allocation4 + $0x78] sm:$0xff] }
0x1014   :  { %3890 = vst.msk [vmem:[#allocation4 + $0xe0] sm:$0xff] %vm2063_vm14, %v3888_v5  ;;  %v3897_v11 = vld [vmem:[#allocation3 + $0xf8] sm:$0xff]  ;;  %v3894_v56 = vmul.f32 %v3892_v1, %v3888_v5  ;;  %v9256_v22 = vpack.c.bf16 %v4016_v20, %v4015_v40  ;;  %v12615_v20 = vld [vmem:[#allocation58_spill] sm:$0xff]  ;;  %v12616_v1 = vmov 0 }
0x1015   :  { %v3899_v17 = vadd.f32 %v3897_v11, %v3895_v51  ;;  %v3896_v53 = vld [vmem:[#allocation3 + $0xf0] sm:$0xff]  ;;  %v551_v39 = vshra.s32 %v12615_v20, 4  ;;  %v9270_v51 = vpack.c.bf16 %v4006_v62, %v4005_v45  ;;  %v12619_v40 = vld [vmem:[#allocation61_spill] sm:$0xff]  ;;  %v12620_v11 = vmov 0 }
0x1016   :  { %v3898_v10 = vadd.f32 %v3896_v53, %v3894_v56  ;;  %9257 = vmatprep.subr.bf16.mxu0 %v9256_v22  ;;  %v4018_v44 = vld [vmem:[#allocation4 + $0xd8] sm:$0xff]  ;;  %vm11552_vm1 = vcmp.eq.s32.totalorder %v552_v36, %v12619_v40  ;;  %v12623_v56 = vmov 0 }
0x1017   :  { %3901 = vst.msk [vmem:[#allocation4 + $0xf8] sm:$0xff] %vm2063_vm14, %v3899_v17  ;;  %9259 = vmatpush3.bf16.msra.mxu0 %v9258_v23  ;;  %v4017_v50 = vld [vmem:[#allocation4 + $0xd0] sm:$0xff]  ;;  %vm11545_vm12 = vcmp.eq.s32.totalorder %v551_v39, %v12606_v29  ;;  %v12621_v11 = vsel %vm11552_vm1, 4294967295, %v12620_v11  ;;  %vm11563_vm3 = vcmp.eq.s32.totalorder %v551_v39, %v12619_v40  ;;  %v4118_v36 = vld [vmem:[%s12614_s13 + $0x18] sm:$0xff]  ;;  %v4119_v17 = vld [vmem:[%s12614_s13 + $0x20] sm:$0xff] }
0x1018   :  { %3900 = vst.msk [vmem:[#allocation4 + $0xf0] sm:$0xff] %vm2063_vm14, %v3898_v10  ;;  %v9260_v34 = vpack.c.bf16 %v4018_v44, %v4017_v50  ;;  %v12617_v1 = vsel %vm11545_vm12, 4294967295, %v12616_v1  ;;  %12622 = vst [vmem:[#allocation123_spill] sm:$0xff] %v12621_v11  ;;  %v12624_v56 = vsel %vm11563_vm3, 4294967295, %v12623_v56  ;;  %v9276_v22 = vpack.c.bf16 %v4118_v36, %v4117_v52  ;;  %v4122_v23 = vld [vmem:[%s12614_s13 + $0x38] sm:$0xff]  ;;  %v12626_v50 = vld [vmem:[#allocation67_spill] sm:$0xff] }
0x1019   :  { %12618 = vst [vmem:[#allocation122_spill] sm:$0xff] %v12617_v1  ;;  %12625 = vst [vmem:[#allocation124_spill] sm:$0xff] %v12624_v56  ;;  %v7528_v44 = vld [vmem:[#allocation17] ss:$0 sm:$0xff]  ;;  %v12628_v20 = vld [vmem:[#allocation64_spill] sm:$0xff] }
0x101a   :  { %9261 = vmatprep.subr.bf16.mxu0 %v9260_v34  ;;  %v4020_v25 = vld [vmem:[#allocation4 + $0xe8] sm:$0xff]  ;;  %9277 = vmatprep.subr.bf16.mxu1 %v9276_v22  ;;  %v12631_v52 = vld [vmem:[#allocation56_spill] sm:$0xff]  ;;  %v12675_v56 = vld [vmem:[#allocation113_spill] sm:$0xff] }
0x101b   :  { %9263 = vmatpush3.bf16.msra.mxu0 %v9262_v4  ;;  %v4019_v42 = vld [vmem:[#allocation4 + $0xe0] sm:$0xff]  ;;  %9279 = vmatpush3.bf16.msra.mxu1 %v9276_v22  ;;  %v4108_v4 = vpop.permute.xlu1 %4107  ;;  %v7566_v1 = vld [vmem:[#allocation16 + $0x1] ss:$0 sm:$0xff] }
0x101c   :  { %v9264_v6 = vpack.c.bf16 %v4020_v25, %v4019_v42  ;;  %v12676_v11 = vld [vmem:[#allocation114_spill] sm:$0xff] }
0x101e   :  { %9265 = vmatprep.subr.bf16.mxu0 %v9264_v6  ;;  %v4022_v58 = vld [vmem:[#allocation4 + $0xf8] sm:$0xff]  ;;  %v12627_v6 = vld [vmem:[#allocation66_spill] sm:$0xff] }
0x101f   :  { %9267 = vmatpush3.bf16.msra.mxu0 %v9266_v7  ;;  %v4021_v5 = vld [vmem:[#allocation4 + $0xf0] sm:$0xff]  ;;  %v4031_v7 = vmul.f32 %v7528_v44, %v12627_v6  ;;  %v4110_v62 = vpop.permute.xlu1 %4109 }
0x1020   :  { %v9268_v48 = vpack.c.bf16 %v4022_v58, %v4021_v5 }
0x1022   :  { %9269 = vmatprep.subr.bf16.mxu0 %v9268_v48  ;;  %v12629_v48 = vld [vmem:[#allocation57_spill] sm:$0xff] }
0x1023   :  { %9271 = vmatpush3.bf16.msra.mxu0 %v9270_v51 }
0x1026   :  { %7530 = vmatmul.mubr.msk.f32.vlgmr.msra.gmra.mrb[80].mxu0 %vm11545_vm12, %v11432_v9  ;;  %v4120_v9 = vld [vmem:[%s12614_s13 + $0x28] sm:$0xff] }
0x1027   :  { %7531 = vmatprep.mubr.msk.f32.mxu0 %vm11552_vm1, %v11443_v14  ;;  %v9280_v53 = vpack.c.bf16 %v4120_v9, %v4119_v17  ;;  %v4121_v14 = vld [vmem:[%s12614_s13 + $0x30] sm:$0xff] }
0x1028   :  { %v9284_v10 = vpack.c.bf16 %v4122_v23, %v4121_v14 }
0x1029   :  { %9281 = vmatprep.subr.bf16.mxu1 %v9280_v53 }
0x102a   :  { %7532 = vmatmul.mubr.msk.f32.gmra.mrb[82].mxu0 %vm11563_vm3, %v11441_v60  ;;  %9283 = vmatpush3.bf16.msra.mxu1 %v9280_v53  ;;  %v4030_v60 = vmul.f32 %v7528_v44, %v12626_v50 }
0x102b   :  { %9285 = vmatprep.subr.bf16.mxu1 %v9284_v10 }
0x102e   :  { %9287 = vmatpush3.bf16.msra.mxu1 %v9284_v10 }
0x10f9   :  { %v8003_v63 = vpop.f32.mrb[80].mxu0 }
0x10fa   :  { %v8004_v26 = vpop.f32.mrb[81].mxu0 }
0x10fb   :  { %v8005_v34 = vadd.f32 %v8004_v26, %v8003_v63 }
0x10fd   :  { %v4099_v25 = vadd.f32 %v8005_v34, %v4030_v60  ;;  %v8006_v0 = vpop.f32.mrb[82].mxu0  ;;  %v7539_v34 = vld [vmem:[%s12473_s8 + $0x20] sm:$0xff] }
0x10fe   :  { %v8007_v18 = vpop.f32.mrb[83].mxu0 }
0x10ff   :  { %v4113_v42 = vmul.f32 %v4108_v4, %v4099_v25  ;;  %v8008_v58 = vadd.f32 %v8007_v18, %v8006_v0  ;;  %v7540_v4 = vld [vmem:[%s12473_s8 + $0x28] sm:$0xff]  ;;  %v7541_v0 = vld [vmem:[%s12473_s8 + $0x30] sm:$0xff]  ;;  %v7542_v18 = vld [vmem:[%s12473_s8 + $0x38] sm:$0xff]  ;;  %s12742_s8 = sld [smem:[#allocation53_spill]] }
0x1100   :  { %v9288_v25 = vpack.c.bf16 %v7540_v4, %v7539_v34  ;;  %v12637_v34 = vld [vmem:[#allocation63_spill] sm:$0xff]  ;;  %v7555_v4 = vld [vmem:[%s12480_s28 + $0x40] sm:$0xff] }
0x1101   :  { %v4104_v45 = vadd.f32 %v8008_v58, %v4031_v7  ;;  %8690 = vmatprep.mubr.msk.f32.mxu1 %vm2063_vm14, %v4113_v42  ;;  %v9292_v42 = vpack.c.bf16 %v7542_v18, %v7541_v0  ;;  %v7557_v18 = vld [vmem:[%s12480_s28 + $0x50] sm:$0xff] }
0x1102   :  { %9289 = vmatprep.subr.bf16.mxu0 %v9288_v25 }
0x1103   :  { %v4114_v5 = vmul.f32 %v4110_v62, %v4104_v45  ;;  %9291 = vmatpush3.bf16.msra.mxu0 %v9288_v25  ;;  %v7556_v25 = vld [vmem:[%s12480_s28 + $0x48] sm:$0xff] }
0x1104   :  { %9293 = vmatprep.subr.bf16.mxu0 %v9292_v42  ;;  %v9308_v0 = vpack.c.bf16 %v7556_v25, %v7555_v4  ;;  %v12641_v25 = vld [vmem:[#allocation55_spill] sm:$0xff] }
0x1105   :  { %8691 = vmatmul.mubr.msk.f32.vlgmr.msra.gmra.mrb[86].mxu1 %vm2063_vm14, %v4114_v5 }
0x1106   :  { %8722 = vmatprep.mubr.msk.f32.mxu1 %vm1151_vm6, %v12628_v20 }
0x1107   :  { %9295 = vmatpush3.bf16.msra.mxu0 %v9292_v42  ;;  %v7558_v42 = vld [vmem:[%s12480_s28 + $0x58] sm:$0xff] }
0x11d8   :  { %v8692_v39 = vpop.f32.mrb[86].mxu1 }
0x11d9   :  { %v11583_v51 = vadd.f32 %v12629_v48, %v8692_v39  ;;  %v4195_v40 = vpop.f32.mrb[87].mxu1  ;;  %v7537_v39 = vld [vmem:[%s12474_s14 + $0x1] ss:$0 sm:$0xff] }
0x11da   :  { %v11586_v36 = vadd.f32 %v12631_v52, %v4195_v40  ;;  %v7538_v40 = vld [vmem:[%s12475_s20 + $0x1] ss:$0 sm:$0xff] }
0x11db   :  { %12630 = vst [vmem:[#allocation125_spill] sm:$0xff] %v11583_v51  ;;  %v4211_v22 = vsel %vm667_vm2, %v11583_v51, 0.0 }
0x11dc   :  { %12632 = vst [vmem:[#allocation126_spill] sm:$0xff] %v11586_v36  ;;  %4212 = vadd.xlane.f32.xlu0 %v4211_v22  ;;  %v4208_v17 = vsel %vm667_vm2, %v11586_v36, 0.0 }
0x11dd   :  { %4209 = vadd.xlane.f32.xlu1 %v4208_v17 }
0x1269   :  { %v4213_v9 = vpop.xlane.xlu0 %4212 }
0x126a   :  { %v4215_v53 = vmul.f32 0.03125, %v4213_v9  ;;  %v4210_v14 = vpop.xlane.xlu1 %4209 }
0x126b   :  { %v4214_v23 = vmul.f32 0.03125, %v4210_v14 }
0x126c   :  { %v4217_v10 = vsub.f32 %v11583_v51, %v4215_v53  ;;  %v12674_v51 = vld [vmem:[#allocation112_spill] sm:$0xff] }
0x126d   :  { %v4216_v44 = vsub.f32 %v11586_v36, %v4214_v23  ;;  %v12633_v23 = vld [vmem:[#allocation59_spill] sm:$0xff]  ;;  %v12673_v36 = vld [vmem:[#allocation110_spill] sm:$0xff] }
0x126e   :  { %v4219_v50 = vmul.f32 %v4217_v10, %v4217_v10 }
0x126f   :  { %v4218_v63 = vmul.f32 %v4216_v44, %v4216_v44 }
0x1270   :  { %v4223_v60 = vsel %vm667_vm2, %v4219_v50, 0.0 }
0x1271   :  { %v4220_v26 = vsel %vm667_vm2, %v4218_v63, 0.0 }
0x1272   :  { %4221 = vadd.xlane.f32.xlu1 %v4220_v26 }
0x1276   :  { %4224 = vadd.xlane.f32.xlu1 %v4223_v60  ;;  %v12636_v60 = vld [vmem:[#allocation60_spill] sm:$0xff] }
0x12ff   :  { %v4222_v6 = vpop.xlane.xlu1 %4221 }
0x1300   :  { %v4226_v7 = vmul.f32 0.03125, %v4222_v6  ;;  %v9312_v6 = vpack.c.bf16 %v7558_v42, %v7557_v18 }
0x1302   :  { %v4228_v58 = vadd.f32 1e-05, %v4226_v7  ;;  %v7559_v7 = vld [vmem:[%s12480_s28 + $0x60] sm:$0xff] }
0x1303   :  { %v4225_v45 = vpop.xlane.xlu1 %4224 }
0x1304   :  { %9692 = vrsqrt.f32 %v4228_v58  ;;  %v4227_v62 = vmul.f32 0.03125, %v4225_v45  ;;  %v7560_v58 = vld [vmem:[%s12480_s28 + $0x68] sm:$0xff] }
0x1305   :  { %v9316_v45 = vpack.c.bf16 %v7560_v58, %v7559_v7 }
0x1306   :  { %v4229_v5 = vadd.f32 1e-05, %v4227_v62  ;;  %v7561_v62 = vld [vmem:[%s12480_s28 + $0x70] sm:$0xff] }
0x1308   :  { %9694 = vrsqrt.f32 %v4229_v5  ;;  %v7562_v5 = vld [vmem:[%s12480_s28 + $0x78] sm:$0xff] }
0x130e   :  { %v9693_v20 = vpop.eup %9692 }
0x130f   :  { %v4232_v48 = vmul.f32 %v9693_v20, %v4216_v44  ;;  %v12635_v44 = vld [vmem:[#allocation65_spill] sm:$0xff]  ;;  %v9320_v20 = vpack.c.bf16 %v7562_v5, %v7561_v62 }
0x1311   :  { %v4240_v52 = vmul.f32 %v7537_v39, %v4232_v48  ;;  %v7545_v48 = vld [vmem:[%s12486_s18 + $0x4] sm:$0xf] }
0x1312   :  { %v9695_v22 = vpop.eup %9694 }
0x1313   :  { %v4233_v17 = vmul.f32 %v9695_v22, %v4217_v10  ;;  %v4248_v9 = vadd.f32 %v7538_v40, %v4240_v52  ;;  %v12634_v10 = vld [vmem:[#allocation62_spill] sm:$0xff] }
0x1315   :  { %v4241_v53 = vmul.f32 %v7537_v39, %v4233_v17  ;;  %8701 = vmatprep.mubr.msk.f32.mxu0 %vm667_vm2, %v4248_v9  ;;  %v7565_v39 = vld [vmem:[%s12485_s3 + $0x2] sm:$0x3]  ;;  %v12639_v17 = vsub.s32 2, %v12606_v29 }
0x1317   :  { %v4249_v14 = vadd.f32 %v7538_v40, %v4241_v53  ;;  %v12638_v40 = vsub.s32 3, %v12606_v29  ;;  %v4432_v9 = vrot.slane %v7545_v48, %v12639_v17  ;;  %v7546_v53 = vld [vmem:[#allocation14 + $0x1] ss:$0 sm:$0xff] }
0x1319   :  { %8702 = vmatmul.mubr.msk.f32.vlgmr.msra.gmra.mrb[84].mxu0 %vm667_vm2, %v4249_v14  ;;  %v4341_v52 = vrot.slane %v7545_v48, %v12638_v40 }
0x131a   :  { %8708 = vmatprep.mubr.msk.f32.mxu0 %vm1151_vm6, %v12633_v23 }
0x13ec   :  { %v8703_v63 = vpop.f32.mrb[84].mxu0 }
0x13ed   :  { %v4327_v26 = vpop.f32.mrb[85].mxu0  ;;  %v4343_v22 = vmul.f32 %v8703_v63, %v4341_v52 }
0x13ee   :  { %v9296_v50 = vpack.c.bf16 %v8703_v63, %v4327_v26  ;;  %v4342_v14 = vmul.f32 %v4341_v52, %v4327_v26 }
0x13f0   :  { %9297 = vmatprep.subr.bf16.mxu0 %v9296_v50  ;;  %9305 = vmatprep.subr.bf16.mxu1 %v9296_v50  ;;  %v4352_v42 = vadd.f32 %v7546_v53, %v4342_v14 }
0x13f1   :  { %9299 = vmatpush3.bf16.msra.mxu0 %v9296_v50  ;;  %9307 = vmatpush3.bf16.msra.mxu1 %v9296_v50 }
0x13f2   :  { %9301 = vmatprep.subr.bf16.mxu0 %v9296_v50  ;;  %8744 = vmatprep.subr.msk.mxu1 %vm2160_vm13, %v7565_v39 }
0x13f4   :  { %8709 = vmatmul.mubr.msk.f32.vlgmr.msra.gmra.mrb[86].mxu0 %vm1151_vm6, %v12634_v10  ;;  %8723 = vmatmul.mubr.msk.f32.vlgmr.msra.gmra.mrb[88].mxu1 %vm1151_vm6, %v12635_v44  ;;  %v4353_v10 = vadd.f32 %v7546_v53, %v4343_v22 }
0x13f5   :  { %9303 = vmatpush3.bf16.msra.mxu0 %v9296_v50  ;;  %8715 = vmatprep.mubr.msk.f32.mxu0 %vm1151_vm6, %v12636_v60 }
0x13f6   :  { %9309 = vmatprep.subr.bf16.mxu0 %v9308_v0  ;;  %8745 = vmatpush3.msk.msra.mxu1 %vm2160_vm13, %v7565_v39 }
0x13f8   :  { %8716 = vmatmul.mubr.msk.f32.vlgmr.msra.gmra.mrb[88].mxu0 %vm1151_vm6, %v12637_v34  ;;  %v12640_v34 = vsub.s32 1, %v12606_v29 }
0x13f9   :  { %9311 = vmatpush3.bf16.msra.mxu0 %v9308_v0  ;;  %v4598_v0 = vrot.slane %v7545_v48, %v12641_v25  ;;  %v7577_v25 = vld [vmem:[%s12487_s22 + $0x18] sm:$0xff] }
0x13fa   :  { %9313 = vmatprep.subr.bf16.mxu0 %v9312_v6  ;;  %v4515_v4 = vrot.slane %v7545_v48, %v12640_v34  ;;  %v12665_v34 = vld [vmem:[#allocation96_spill] sm:$0xff] }
0x13fd   :  { %9315 = vmatpush3.bf16.msra.mxu0 %v9312_v6 }
0x13fe   :  { %9317 = vmatprep.subr.bf16.mxu0 %v9316_v45 }
0x1401   :  { %9319 = vmatpush3.bf16.msra.mxu0 %v9316_v45 }
0x1402   :  { %9321 = vmatprep.subr.bf16.mxu0 %v9320_v20 }
0x1405   :  { %9323 = vmatpush3.bf16.msra.mxu0 %v9320_v20 }
0x14c7   :  { %v8710_v23 = vpop.f32.mrb[86].mxu0  ;;  %v8724_v50 = vpop.f32.mrb[88].mxu1 }
0x14c8   :  { %v4434_v44 = vmul.f32 %v8710_v23, %v4432_v9  ;;  %v4420_v60 = vpop.f32.mrb[87].mxu0  ;;  %v4586_v18 = vpop.f32.mrb[89].mxu1  ;;  %v4600_v5 = vmul.f32 %v8724_v50, %v4598_v0 }
0x14c9   :  { %v4433_v6 = vmul.f32 %v4432_v9, %v4420_v60  ;;  %v4599_v20 = vmul.f32 %v4598_v0, %v4586_v18 }
0x14ca   :  { %v4436_v7 = vadd.f32 %v4434_v44, %v4353_v10 }
0x14cb   :  { %v4435_v63 = vadd.f32 %v4433_v6, %v4352_v42  ;;  %v8717_v58 = vpop.f32.mrb[88].mxu0  ;;  %v7570_v42 = vld [vmem:[%s12488_s17 + $0x10] sm:$0xff] }
0x14cc   :  { %v4517_v45 = vmul.f32 %v8717_v58, %v4515_v4  ;;  %v4503_v62 = vpop.f32.mrb[89].mxu0  ;;  %v12646_v58 = vld [vmem:[#allocation70_spill] sm:$0xff] }
0x14cd   :  { %v4516_v26 = vmul.f32 %v4515_v4, %v4503_v62  ;;  %v7576_v4 = vld [vmem:[%s12487_s22 + $0x10] sm:$0xff] }
0x14ce   :  { %v4519_v39 = vadd.f32 %v4517_v45, %v4436_v7  ;;  %v9330_v6 = vpack.c.bf16 %v7577_v25, %v7576_v4  ;;  %v7571_v7 = vld [vmem:[%s12488_s17 + $0x18] sm:$0xff]  ;;  %v12647_v45 = vld [vmem:[#allocation71_spill] sm:$0xff]  ;;  %v12666_v4 = vld [vmem:[#allocation98_spill] sm:$0xff] }
0x14cf   :  { %v4518_v40 = vadd.f32 %v4516_v26, %v4435_v63  ;;  %v12645_v63 = vld [vmem:[#allocation69_spill] sm:$0xff]  ;;  %v12648_v62 = vld [vmem:[#allocation72_spill] sm:$0xff]  ;;  %v12650_v26 = vld [vmem:[#allocation74_spill] sm:$0xff] }
0x14d0   :  { %v4602_v52 = vadd.f32 %v4600_v5, %v4519_v39  ;;  %v12649_v5 = vld [vmem:[#allocation73_spill] sm:$0xff]  ;;  %v12652_v39 = vld [vmem:[#allocation76_spill] sm:$0xff]  ;;  %v12667_v25 = vld [vmem:[#allocation99_spill] sm:$0xff] }
0x14d1   :  { %v4601_v22 = vadd.f32 %v4599_v20, %v4518_v40  ;;  %v12651_v20 = vld [vmem:[#allocation75_spill] sm:$0xff]  ;;  %v12653_v40 = vld [vmem:[#allocation77_spill] sm:$0xff] }
0x14d2   :  { %v7554_v17 = vmul.f32 -1.442695, %v4602_v52 }
0x14d3   :  { %v7553_v29 = vmul.f32 -1.442695, %v4601_v22 }
0x14d4   :  { %9696 = vpow2.f32 %v7554_v17  ;;  %v12656_v17 = vld [vmem:[#allocation80_spill] sm:$0xff] }
0x14d5   :  { %9698 = vpow2.f32 %v7553_v29  ;;  %v12657_v29 = vld [vmem:[#allocation81_spill] sm:$0xff] }
0x14de   :  { %v9697_v48 = vpop.eup %9696 }
0x14df   :  { %v9699_v9 = vpop.eup %9698  ;;  %v4610_v53 = vadd.f32 1.0, %v9697_v48  ;;  %v12658_v48 = vld [vmem:[#allocation83_spill] sm:$0xff] }
0x14e0   :  { %v4609_v14 = vadd.f32 1.0, %v9699_v9  ;;  %v12659_v9 = vld [vmem:[#allocation84_spill] sm:$0xff] }
0x14e1   :  { %9700 = vrcp.f32 %v4610_v53  ;;  %v12660_v53 = vld [vmem:[#allocation87_spill] sm:$0xff] }
0x14e2   :  { %9702 = vrcp.f32 %v4609_v14  ;;  %v12661_v14 = vld [vmem:[#allocation88_spill] sm:$0xff] }
0x14eb   :  { %v9701_v23 = vpop.eup %9700 }
0x14ec   :  { %v9703_v50 = vpop.eup %9702  ;;  %v11633_v10 = vmul.f32 %v9701_v23, %v4602_v52  ;;  %v12654_v52 = vld [vmem:[#allocation78_spill] sm:$0xff]  ;;  %v12662_v23 = vld [vmem:[#allocation91_spill] sm:$0xff] }
0x14ed   :  { %v11635_v44 = vmul.f32 %v9703_v50, %v4601_v22  ;;  %v12655_v22 = vld [vmem:[#allocation79_spill] sm:$0xff]  ;;  %v12663_v50 = vld [vmem:[#allocation92_spill] sm:$0xff] }
0x14ee   :  { %12642 = vst [vmem:[#allocation116_spill] sm:$0xff] %v11633_v10 }
0x14ef   :  { %12643 = vst [vmem:[#allocation54_spill] sm:$0xff] %v11635_v44  ;;  %8741 = vmatprep.mubr.msk.f32.mxu0 %vm2063_vm14, %v11635_v44  ;;  %v9324_v60 = vpack.c.bf16 %v11633_v10, %v11635_v44 }
0x14f0   :  { %8742 = vmatmul.mubr.msk.f32.vlgmr.msra.gmra.mrb[90].mxu0 %vm2063_vm14, %v11633_v10 }
0x14f1   :  { %9326 = vmatprep.subr.msk.bf16.mxu1 %vm10574_vm15, %v9324_v60  ;;  %8812 = vmatprep.mubr.msk.f32.mxu0 %vm1151_vm6, %v12598_v32 }
0x15c3   :  { %v8743_v0 = vpop.f32.mrb[90].mxu0 }
0x15c4   :  { %6276 = vrot.lane.b32.xlu1 %v8743_v0, %s10088_s23  ;;  %v4698_v18 = vpop.f32.mrb[91].mxu0 }
0x15c5   :  { %6274 = vrot.lane.b32.xlu0 %v4698_v18, %s10088_s23  ;;  %8746 = vmatprep.mubr.msk.f32.mxu1 %vm2153_vm0, %v4698_v18  ;;  %v12669_v18 = vld [vmem:[#allocation101_spill] sm:$0xff] }
0x15c6   :  { %8747 = vmatmul.mubr.msk.f32.vlgmr.msra.gmra.mrb[90].mxu1 %vm2153_vm0, %v8743_v0  ;;  %v12668_v0 = vld [vmem:[#allocation100_spill] sm:$0xff] }
0x15c7   :  { %9329 = vmatpush3.bf16.xpose.msk.msra.mxu1 %vm10574_vm15, %v9324_v60  ;;  %8753 = vmatprep.mubr.msk.f32.mxu1 %vm2063_vm14, %v7570_v42  ;;  %v12664_v60 = vld [vmem:[#allocation95_spill] sm:$0xff]  ;;  %v12670_v42 = vld [vmem:[#allocation102_spill] sm:$0xff] }
0x15c8   :  { %6480 = vrot.lane.b32.xlu1 %v11635_v44, %s10089_s26  ;;  %9331 = vmatprep.subr.bf16.mxu1 %v9330_v6 }
0x15cc   :  { %6482 = vrot.lane.b32.xlu1 %v11633_v10, %s10089_s26 }
0x15ce   :  { %8754 = vmatmul.mubr.msk.f32.vlgmr.msra.gmra.mrb[92].mxu1 %vm2063_vm14, %v7571_v7  ;;  %v12672_v7 = vld [vmem:[#allocation108_spill] sm:$0xff] }
0x15cf   :  { %9333 = vmatpush3.bf16.msra.mxu1 %v9330_v6  ;;  %8760 = vmatprep.mubr.msk.f32.mxu1 %vm1151_vm6, %v12645_v63  ;;  %v12671_v6 = vld [vmem:[#allocation106_spill] sm:$0xff] }
0x15d2   :  { %8761 = vmatmul.mubr.msk.f32.vlgmr.msra.gmra.mrb[94].mxu1 %vm1151_vm6, %v12646_v58 }
0x15d3   :  { %8763 = vmatprep.mubr.msk.f32.mxu1 %vm1151_vm6, %v12647_v45 }
0x15d6   :  { %8764 = vmatmul.mubr.msk.f32.gmra.mrb[96].mxu1 %vm1151_vm6, %v12648_v62 }
0x15d7   :  { %8766 = vmatprep.mubr.msk.f32.mxu1 %vm1151_vm6, %v12649_v5 }
0x15da   :  { %8767 = vmatmul.mubr.msk.f32.gmra.mrb[98].mxu1 %vm1151_vm6, %v12650_v26 }
0x15db   :  { %8769 = vmatprep.mubr.msk.f32.mxu1 %vm1151_vm6, %v12651_v20 }
0x15de   :  { %8770 = vmatmul.mubr.msk.f32.gmra.mrb[100].mxu1 %vm1151_vm6, %v12652_v39 }
0x15df   :  { %8772 = vmatprep.mubr.msk.f32.mxu1 %vm1151_vm6, %v12653_v40 }
0x15e2   :  { %8773 = vmatmul.mubr.msk.f32.gmra.mrb[102].mxu1 %vm1151_vm6, %v12654_v52 }
0x15e3   :  { %8775 = vmatprep.mubr.msk.f32.mxu1 %vm1151_vm6, %v12655_v22 }
0x15e6   :  { %8776 = vmatmul.mubr.msk.f32.gmra.mrb[104].mxu1 %vm1151_vm6, %v12656_v17 }
0x15e7   :  { %8778 = vmatprep.mubr.msk.f32.mxu1 %vm1151_vm6, %v12657_v29 }
0x15ea   :  { %8779 = vmatmul.mubr.msk.f32.gmra.mrb[106].mxu1 %vm1151_vm6, %v12658_v48 }
0x15eb   :  { %8781 = vmatprep.mubr.msk.f32.mxu1 %vm1151_vm6, %v12659_v9 }
0x15ee   :  { %8782 = vmatmul.mubr.msk.f32.gmra.mrb[108].mxu1 %vm1151_vm6, %v12660_v53 }
0x15ef   :  { %8784 = vmatprep.mubr.msk.f32.mxu1 %vm1151_vm6, %v12661_v14 }
0x15f2   :  { %8785 = vmatmul.mubr.msk.f32.gmra.mrb[110].mxu1 %vm1151_vm6, %v12662_v23 }
0x15f3   :  { %8787 = vmatprep.mubr.msk.f32.mxu1 %vm1151_vm6, %v12663_v50 }
0x15f6   :  { %8788 = vmatmul.mubr.msk.f32.gmra.mrb[112].mxu1 %vm1151_vm6, %v12664_v60 }
0x15f7   :  { %8790 = vmatprep.mubr.msk.f32.mxu1 %vm1151_vm6, %v12665_v34 }
0x15fa   :  { %8791 = vmatmul.mubr.msk.f32.gmra.mrb[114].mxu1 %vm1151_vm6, %v12666_v4 }
0x15fb   :  { %8793 = vmatprep.mubr.msk.f32.mxu1 %vm1151_vm6, %v12667_v25 }
0x15fe   :  { %8794 = vmatmul.mubr.msk.f32.gmra.mrb[116].mxu1 %vm1151_vm6, %v12668_v0 }
0x15ff   :  { %8796 = vmatprep.mubr.msk.f32.mxu1 %vm1151_vm6, %v12669_v18 }
0x1602   :  { %8797 = vmatmul.mubr.msk.f32.gmra.mrb[118].mxu1 %vm1151_vm6, %v12670_v42 }
0x1603   :  { %8799 = vmatprep.mubr.msk.f32.mxu1 %vm1151_vm6, %v12671_v6 }
0x1606   :  { %8800 = vmatmul.mubr.msk.f32.gmra.mrb[120].mxu1 %vm1151_vm6, %v12672_v7 }
0x1607   :  { %8802 = vmatprep.mubr.msk.f32.mxu1 %vm1151_vm6, %v12673_v36 }
0x160a   :  { %8803 = vmatmul.mubr.msk.f32.gmra.mrb[122].mxu1 %vm1151_vm6, %v12674_v51 }
0x160b   :  { %8805 = vmatprep.mubr.msk.f32.mxu1 %vm1151_vm6, %v12675_v56 }
0x160e   :  { %8806 = vmatmul.mubr.msk.f32.gmra.mrb[124].mxu1 %vm1151_vm6, %v12676_v11 }
0x160f   :  { %8864 = vmatprep.mubr.msk.f32.mxu1 %vm1151_vm6, %v12645_v63 }
0x1699   :  { %v8748_v27 = vpop.f32.mrb[90].mxu1 }
0x169a   :  { %v11729_v32 = vadd.f32 %v8748_v27, %v7566_v1  ;;  %v4792_v54 = vpop.f32.mrb[91].mxu1 }
0x169b   :  { %v11731_v31 = vadd.f32 %v7566_v1, %v4792_v54  ;;  %v12677_v54 = vmov 1.0|1.0  }
0x169c   :  { %v4808_v21 = vand.u32 2147483647, %v11729_v32  ;;  %vm4804_vm0 = vcmp.ne.f32.partialorder %v11729_v32, %v11729_v32 }
0x169d   :  { %v4807_v37 = vand.u32 2147483647, %v11731_v31  ;;  %vm4803_vm5 = vcmp.ne.f32.partialorder %v11731_v31, %v11731_v31 }
0x169e   :  { %v4810_v41 = vsub.f32 0.0, %v4808_v21 }
0x169f   :  { %v4809_v38 = vsub.f32 0.0, %v4807_v37 }
0x16a0   :  { %v4813_v8 = vmul.f32 1.442695, %v4810_v41 }
0x16a1   :  { %v4811_v12 = vmul.f32 1.442695, %v4809_v38  ;;  %v8755_v46 = vpop.f32.mrb[92].mxu1 }
0x16a2   :  { %9704 = vpow2.f32 %v4813_v8  ;;  %v4912_v24 = vpop.f32.mrb[93].mxu1 }
0x16a3   :  { %9706 = vpow2.f32 %v4811_v12  ;;  %v9338_v63 = vpack.c.bf16 %v8755_v46, %v4912_v24 }
0x16a5   :  { %9339 = vmatprep.subr.bf16.mxu1 %v9338_v63  ;;  %v11735_v15 = vpop.f32.mrb[94].mxu1 }
0x16a6   :  { %9341 = vmatpush3.bf16.msra.mxu1 %v9338_v63  ;;  %v11737_v27 = vpop.f32.mrb[95].mxu1 }
0x16a7   :  { %9347 = vmatprep.subr.msk.bf16.mxu1 %vm9236_vm8, %v12677_v54 }
0x16a9   :  { %8865 = vmatmul.mubr.msk.f32.vlgmr.msra.gmra.mrb[126].mxu1 %vm1151_vm6, %v12646_v58  ;;  %v11747_v41 = vpop.f32.mrb[96].mxu1 }
0x16aa   :  { %8867 = vmatprep.mubr.msk.f32.mxu1 %vm1151_vm6, %v12647_v45  ;;  %9349 = vmatpush1.bf16.msk.msra.mxu1 %vm9238_vm11, %v12677_v54  ;;  %v11757_v46 = vpop.f32.mrb[97].mxu1 }
0x16ac   :  { %v9705_v16 = vpop.eup %9704 }
0x16ad   :  { %v9707_v12 = vpop.eup %9706  ;;  %8868 = vmatmul.mubr.msk.f32.gmra.mrb[128].mxu1 %vm1151_vm6, %v12648_v62  ;;  %v4824_v38 = vadd.f32 1.0, %v9705_v16  ;;  %v11761_v37 = vpop.f32.mrb[98].mxu1  ;;  %v4827_v62 = vmul.f32 -0.5, %v9705_v16  ;;  %v4830_v24 = vand.u32 2147483647, %v9705_v16 }
0x16ae   :  { %12682 = vst [vmem:[#allocation93_spill] sm:$0xff] %v11761_v37  ;;  %8870 = vmatprep.mubr.msk.f32.mxu1 %vm1151_vm6, %v12649_v5  ;;  %v4815_v21 = vadd.f32 1.0, %v9707_v12  ;;  %v11765_v58 = vpop.f32.mrb[99].mxu1  ;;  %v4818_v54 = vmul.f32 -0.5, %v9707_v12 }
0x16af   :  { %12683 = vst [vmem:[#allocation97_spill] sm:$0xff] %v11765_v58  ;;  %9708 = vlog2.f32 %v4824_v38  ;;  %v4828_v1 = vadd.f32 1.0, %v4827_v62  ;;  %v4821_v38 = vand.u32 2147483647, %v9707_v12  ;;  %vm4831_vm13 = vcmp.lt.f32.partialorder %v4830_v24, 0.0004427343 }
0x16b0   :  { %9710 = vlog2.f32 %v4815_v21  ;;  %v12691_v24 = vld [vmem:[#allocation129_spill] sm:$0xff] }
0x16b1   :  { %8871 = vmatmul.mubr.msk.f32.gmra.mrb[130].mxu1 %vm1151_vm6, %v12650_v26  ;;  %v11769_v45 = vpop.f32.mrb[100].mxu1  ;;  %v4819_v26 = vadd.f32 1.0, %v4818_v54  ;;  %vm4822_vm15 = vcmp.lt.f32.partialorder %v4821_v38, 0.0004427343  ;;  %v12693_v38 = vld [vmem:[#allocation130_spill] sm:$0xff] }
0x16b2   :  { %12684 = vst [vmem:[#allocation104_spill] sm:$0xff] %v11769_v45  ;;  %8873 = vmatprep.mubr.msk.f32.mxu1 %vm1151_vm6, %v12651_v20  ;;  %v11773_v63 = vpop.f32.mrb[101].mxu1 }
0x16b3   :  { %12685 = vst [vmem:[#allocation107_spill] sm:$0xff] %v11773_v63  ;;  %v4820_v54 = vmul.f32 %v9707_v12, %v4819_v26 }
0x16b5   :  { %8874 = vmatmul.mubr.msk.f32.gmra.mrb[132].mxu1 %vm1151_vm6, %v12652_v39  ;;  %v11777_v5 = vpop.f32.mrb[102].mxu1 }
0x16b6   :  { %12686 = vst [vmem:[#allocation58_spill] sm:$0xff] %v11777_v5  ;;  %8876 = vmatprep.mubr.msk.f32.mxu1 %vm1151_vm6, %v12653_v40  ;;  %v11781_v8 = vpop.f32.mrb[103].mxu1  ;;  %v4829_v5 = vmul.f32 %v9705_v16, %v4828_v1  ;;  %v4802_v40 = vmax.f32 %v11729_v32, 0.0 }
0x16b7   :  { %12687 = vst [vmem:[#allocation61_spill] sm:$0xff] %v11781_v8  ;;  %v4801_v8 = vmax.f32 %v11731_v31, 0.0 }
0x16b9   :  { %v9709_v21 = vpop.eup %9708  ;;  %8877 = vmatmul.mubr.msk.f32.gmra.mrb[134].mxu1 %vm1151_vm6, %v12654_v52  ;;  %v11785_v20 = vpop.f32.mrb[104].mxu1 }
0x16ba   :  { %12688 = vst [vmem:[#allocation67_spill] sm:$0xff] %v11785_v20  ;;  %v9711_v63 = vpop.eup %9710  ;;  %8879 = vmatprep.mubr.msk.f32.mxu1 %vm1151_vm6, %v12655_v22  ;;  %v4826_v39 = vmul.f32 0.6931472, %v9709_v21  ;;  %v11789_v45 = vpop.f32.mrb[105].mxu1  ;;  %v12697_v21 = vld [vmem:[#allocation82_spill] sm:$0xff] }
0x16bb   :  { %v4817_v62 = vmul.f32 0.6931472, %v9711_v63 }
0x16bc   :  { %v4832_v58 = vsel %vm4831_vm13, %v4829_v5, %v4826_v39  ;;  %v12700_v39 = vld [vmem:[#allocation89_spill] sm:$0xff] }
0x16bd   :  { %8880 = vmatmul.mubr.msk.f32.gmra.mrb[136].mxu1 %vm1151_vm6, %v12656_v17  ;;  %v4823_v52 = vsel %vm4822_vm15, %v4820_v54, %v4817_v62  ;;  %v4834_v20 = vadd.f32 %v4832_v58, %v4802_v40  ;;  %v11795_v37 = vpop.f32.mrb[106].mxu1  ;;  %v12701_v40 = vld [vmem:[#allocation90_spill] sm:$0xff]  ;;  %v12703_v54 = vld [vmem:[#allocation103_spill] sm:$0xff] }
0x16be   :  { %8882 = vmatprep.mubr.msk.f32.mxu1 %vm1151_vm6, %v12657_v29  ;;  %v4833_v22 = vadd.f32 %v4823_v52, %v4801_v8  ;;  %v11801_v16 = vpop.f32.mrb[107].mxu1  ;;  %v12702_v62 = vld [vmem:[#allocation94_spill] sm:$0xff]  ;;  %v12704_v52 = vld [vmem:[#allocation105_spill] sm:$0xff] }
0x16bf   :  { %v4836_v12 = vsel %vm4804_vm0, %v11729_v32, %v4834_v20  ;;  %v12699_v20 = vld [vmem:[#allocation86_spill] sm:$0xff] }
0x16c0   :  { %v4835_v17 = vsel %vm4803_vm5, %v11731_v31, %v4833_v22  ;;  %v4922_v58 = vmul.f32 %v4836_v12, %v11633_v10  ;;  %v12705_v22 = vld [vmem:[#allocation109_spill] sm:$0xff] }
0x16c1   :  { %8883 = vmatmul.mubr.msk.f32.gmra.mrb[138].mxu1 %vm1151_vm6, %v12658_v48  ;;  %v9334_v63 = vpack.c.bf16 %v4836_v12, %v4835_v17  ;;  %v4921_v29 = vmul.f32 %v4835_v17, %v11635_v44  ;;  %v11811_v5 = vpop.f32.mrb[108].mxu1  ;;  %v12689_v48 = vld [vmem:[#allocation127_spill] sm:$0xff] }
0x16c2   :  { %8885 = vmatprep.mubr.msk.f32.mxu1 %vm1151_vm6, %v12659_v9  ;;  %v11815_v1 = vpop.f32.mrb[109].mxu1  ;;  %v12706_v12 = vld [vmem:[#allocation111_spill] sm:$0xff] }
0x16c3   :  { %9335 = vmatprep.subr.bf16.mxu0 %v9334_v63  ;;  %v9342_v8 = vpack.c.bf16 %v4922_v58, %v4921_v29  ;;  %v12707_v17 = vld [vmem:[#allocation131_spill] sm:$0xff]  ;;  %v12708_v58 = vld [vmem:[#allocation132_spill] sm:$0xff] }
0x16c4   :  { %9337 = vmatpush3.bf16.msra.mxu0 %v9334_v63 }
0x16c5   :  { %8886 = vmatmul.mubr.msk.f32.gmra.mrb[140].mxu1 %vm1151_vm6, %v12660_v53  ;;  %9343 = vmatprep.subr.bf16.mxu0 %v9342_v8  ;;  %v11819_v31 = vpop.f32.mrb[110].mxu1 }
0x16c6   :  { %8888 = vmatprep.mubr.msk.f32.mxu1 %vm1151_vm6, %v12661_v14  ;;  %v11823_v32 = vpop.f32.mrb[111].mxu1 }
0x16c7   :  { %8813 = vmatmul.mubr.msk.f32.vlgmr.msra.gmra.mrb[92].mxu0 %vm1151_vm6, %v12689_v48 }
0x16c8   :  { %9345 = vmatpush3.bf16.msra.mxu0 %v9342_v8  ;;  %8815 = vmatprep.mubr.msk.f32.mxu0 %vm1151_vm6, %v11058_v47  ;;  %v12709_v8 = vld [vmem:[#allocation115_spill] sm:$0xff] }
0x16c9   :  { %8889 = vmatmul.mubr.msk.f32.gmra.mrb[142].mxu1 %vm1151_vm6, %v12662_v23  ;;  %v11831_v9 = vpop.f32.mrb[112].mxu1 }
0x16ca   :  { %8891 = vmatprep.mubr.msk.f32.mxu1 %vm1151_vm6, %v12663_v50  ;;  %v11835_v53 = vpop.f32.mrb[113].mxu1 }
0x16cb   :  { %8816 = vmatmul.mubr.msk.f32.gmra.mrb[94].mxu0 %vm1151_vm6, %v11075_v55 }
0x16cc   :  { %8818 = vmatprep.mubr.msk.f32.mxu0 %vm1151_vm6, %v11080_v2 }
0x16cd   :  { %8892 = vmatmul.mubr.msk.f32.gmra.mrb[144].mxu1 %vm1151_vm6, %v12664_v60  ;;  %v11843_v14 = vpop.f32.mrb[114].mxu1 }
0x16ce   :  { %8894 = vmatprep.mubr.msk.f32.mxu1 %vm1151_vm6, %v12665_v34  ;;  %v11847_v23 = vpop.f32.mrb[115].mxu1 }
0x16cf   :  { %8819 = vmatmul.mubr.msk.f32.gmra.mrb[96].mxu0 %vm1151_vm6, %v11097_v59 }
0x16d0   :  { %8821 = vmatprep.mubr.msk.f32.mxu0 %vm1151_vm6, %v11102_v61 }
0x16d1   :  { %8895 = vmatmul.mubr.msk.f32.gmra.mrb[146].mxu1 %vm1151_vm6, %v12666_v4  ;;  %v11855_v50 = vpop.f32.mrb[116].mxu1 }
0x16d2   :  { %8897 = vmatprep.mubr.msk.f32.mxu1 %vm1151_vm6, %v12667_v25  ;;  %v11859_v60 = vpop.f32.mrb[117].mxu1  ;;  %v12690_v25 = vld [vmem:[#allocation128_spill] sm:$0xff] }
0x16d3   :  { %8822 = vmatmul.mubr.msk.f32.gmra.mrb[98].mxu0 %vm1151_vm6, %v11119_v13 }
0x16d4   :  { %8824 = vmatprep.mubr.msk.f32.mxu0 %vm1151_vm6, %v11124_v3 }
0x16d5   :  { %8898 = vmatmul.mubr.msk.f32.gmra.mrb[148].mxu1 %vm1151_vm6, %v12668_v0  ;;  %v11867_v34 = vpop.f32.mrb[118].mxu1 }
0x16d6   :  { %8900 = vmatprep.mubr.msk.f32.mxu1 %vm1151_vm6, %v12669_v18  ;;  %v11871_v4 = vpop.f32.mrb[119].mxu1 }
0x16d7   :  { %8825 = vmatmul.mubr.msk.f32.gmra.mrb[100].mxu0 %vm1151_vm6, %v11141_v30 }
0x16d8   :  { %8827 = vmatprep.mubr.msk.f32.mxu0 %vm1151_vm6, %v12690_v25 }
0x16d9   :  { %8901 = vmatmul.mubr.msk.f32.gmra.mrb[150].mxu1 %vm1151_vm6, %v12670_v42  ;;  %v11879_v26 = vpop.f32.mrb[120].mxu1 }
0x16da   :  { %8903 = vmatprep.mubr.msk.f32.mxu1 %vm1151_vm6, %v12671_v6  ;;  %v11883_v0 = vpop.f32.mrb[121].mxu1 }
0x16db   :  { %8828 = vmatmul.mubr.msk.f32.gmra.mrb[102].mxu0 %vm1151_vm6, %v12691_v24 }
0x16dc   :  { %8830 = vmatprep.mubr.msk.f32.mxu0 %vm1151_vm6, %v11168_v19 }
0x16dd   :  { %8904 = vmatmul.mubr.msk.f32.gmra.mrb[152].mxu1 %vm1151_vm6, %v12672_v7  ;;  %v11891_v18 = vpop.f32.mrb[122].mxu1 }
0x16de   :  { %8906 = vmatprep.mubr.msk.f32.mxu1 %vm1151_vm6, %v12673_v36  ;;  %v11895_v42 = vpop.f32.mrb[123].mxu1  ;;  %v12696_v36 = vmov 0.0  }
0x16df   :  { %12692 = vst [vmem:[#allocation66_spill] sm:$0xff] %v11895_v42  ;;  %8831 = vmatmul.mubr.msk.f32.gmra.mrb[104].mxu0 %vm1151_vm6, %v12693_v38 }
0x16e0   :  { %8833 = vmatprep.mubr.msk.f32.mxu0 %vm1151_vm6, %v11186_v35 }
0x16e1   :  { %8907 = vmatmul.mubr.msk.f32.gmra.mrb[154].mxu1 %vm1151_vm6, %v12674_v51  ;;  %v11903_v6 = vpop.f32.mrb[124].mxu1  ;;  %v6275_v51 = vpop.permute.xlu0 %6274 }
0x16e2   :  { %12694 = vst [vmem:[#allocation64_spill] sm:$0xff] %v11903_v6  ;;  %8909 = vmatprep.mubr.msk.f32.mxu1 %vm1151_vm6, %v12675_v56  ;;  %v11907_v7 = vpop.f32.mrb[125].mxu1  ;;  %v6277_v56 = vpop.permute.xlu1 %6276 }
0x16e3   :  { %12695 = vst [vmem:[#allocation57_spill] sm:$0xff] %v11907_v7  ;;  %8834 = vmatmul.mubr.msk.f32.gmra.mrb[106].mxu0 %vm1151_vm6, %v11199_v57 }
0x16e4   :  { %8836 = vmatprep.mubr.msk.f32.mxu0 %vm1151_vm6, %v11204_v43 }
0x16e5   :  { %8910 = vmatmul.mubr.msk.f32.gmra.mrb[156].mxu1 %vm1151_vm6, %v12676_v11  ;;  %v12698_v11 = vld [vmem:[#allocation85_spill] sm:$0xff] }
0x16e6   :  { %6346 = vmatprep.mubr.f32.mxu1 %v12696_v36 }
0x16e7   :  { %8837 = vmatmul.mubr.msk.f32.gmra.mrb[108].mxu0 %vm1151_vm6, %v11217_v28 }
0x16e8   :  { %8839 = vmatprep.mubr.msk.f32.mxu0 %vm1151_vm6, %v11222_v49 }
0x16e9   :  { %7710 = vmatmul.mubr.msk.f32.vlgmr.msra.gmra.mrb[158].mxu1 %vm1151_vm6, %v6275_v51 }
0x16ea   :  { %6352 = vmatprep.mubr.f32.mxu1 %v12696_v36 }
0x16eb   :  { %8840 = vmatmul.mubr.msk.f32.gmra.mrb[110].mxu0 %vm1151_vm6, %v11234_v33 }
0x16ec   :  { %8842 = vmatprep.mubr.msk.f32.mxu0 %vm1151_vm6, %v12697_v21 }
0x16ed   :  { %7711 = vmatmul.mubr.msk.f32.gmra.mrb[160].mxu1 %vm1151_vm6, %v6277_v56 }
0x16ef   :  { %8843 = vmatmul.mubr.msk.f32.gmra.mrb[112].mxu0 %vm1151_vm6, %v12698_v11 }
0x16f0   :  { %8845 = vmatprep.mubr.msk.f32.mxu0 %vm1151_vm6, %v12699_v20 }
0x16f3   :  { %8846 = vmatmul.mubr.msk.f32.gmra.mrb[114].mxu0 %vm1151_vm6, %v12700_v39 }
0x16f4   :  { %8848 = vmatprep.mubr.msk.f32.mxu0 %vm1151_vm6, %v12701_v40 }
0x16f7   :  { %8849 = vmatmul.mubr.msk.f32.gmra.mrb[116].mxu0 %vm1151_vm6, %v12702_v62 }
0x16f8   :  { %8851 = vmatprep.mubr.msk.f32.mxu0 %vm1151_vm6, %v12703_v54 }
0x16fb   :  { %8852 = vmatmul.mubr.msk.f32.gmra.mrb[118].mxu0 %vm1151_vm6, %v12704_v52 }
0x16fc   :  { %8854 = vmatprep.mubr.msk.f32.mxu0 %vm1151_vm6, %v12705_v22 }
0x16ff   :  { %8855 = vmatmul.mubr.msk.f32.gmra.mrb[120].mxu0 %vm1151_vm6, %v12706_v12 }
0x1700   :  { %8857 = vmatprep.mubr.msk.f32.mxu0 %vm1151_vm6, %v12707_v17 }
0x1703   :  { %8858 = vmatmul.mubr.msk.f32.gmra.mrb[122].mxu0 %vm1151_vm6, %v12708_v58 }
0x177c   :  { %v8866_v63 = vpop.f32.mrb[126].mxu1 }
0x177d   :  { %v5570_v29 = vpop.f32.mrb[127].mxu1  ;;  %v5730_v51 = vmul.f32 %v8866_v63, %v12689_v48 }
0x177e   :  { %v5729_v36 = vmul.f32 %v5570_v29, %v12709_v8 }
0x1780   :  { %v8869_v56 = vpop.f32.mrb[128].mxu1  ;;  %8916 = vmatprep.mubr.msk.f32.mxu0 %vm1151_vm6, %v5729_v36 }
0x1781   :  { %v5580_v10 = vpop.f32.mrb[129].mxu1  ;;  %8917 = vmatmul.mubr.msk.f32.vlgmr.msra.gmra.mrb[124].mxu0 %vm1151_vm6, %v5730_v51  ;;  %v5732_v7 = vmul.f32 %v8869_v56, %v11075_v55 }
0x1782   :  { %v5731_v44 = vmul.f32 %v5580_v10, %v11058_v47 }
0x1784   :  { %v8872_v6 = vpop.f32.mrb[130].mxu1  ;;  %8919 = vmatprep.mubr.msk.f32.mxu0 %vm1151_vm6, %v5731_v44 }
0x1785   :  { %v5590_v42 = vpop.f32.mrb[131].mxu1  ;;  %8920 = vmatmul.mubr.msk.f32.gmra.mrb[126].mxu0 %vm1151_vm6, %v5732_v7  ;;  %v5734_v48 = vmul.f32 %v8872_v6, %v11097_v59 }
0x1786   :  { %v5733_v29 = vmul.f32 %v5590_v42, %v11080_v2 }
0x1788   :  { %v8875_v63 = vpop.f32.mrb[132].mxu1  ;;  %8922 = vmatprep.mubr.msk.f32.mxu0 %vm1151_vm6, %v5733_v29 }
0x1789   :  { %v5600_v8 = vpop.f32.mrb[133].mxu1  ;;  %8923 = vmatmul.mubr.msk.f32.gmra.mrb[128].mxu0 %vm1151_vm6, %v5734_v48  ;;  %v5736_v55 = vmul.f32 %v8875_v63, %v11119_v13 }
0x178a   :  { %v5735_v47 = vmul.f32 %v5600_v8, %v11102_v61 }
0x178c   :  { %v8878_v10 = vpop.f32.mrb[134].mxu1  ;;  %8925 = vmatprep.mubr.msk.f32.mxu0 %vm1151_vm6, %v5735_v47 }
0x178d   :  { %v5610_v44 = vpop.f32.mrb[135].mxu1  ;;  %8926 = vmatmul.mubr.msk.f32.gmra.mrb[130].mxu0 %vm1151_vm6, %v5736_v55  ;;  %v5738_v59 = vmul.f32 %v8878_v10, %v11141_v30 }
0x178e   :  { %v5737_v2 = vmul.f32 %v5610_v44, %v11124_v3 }
0x1790   :  { %v8881_v42 = vpop.f32.mrb[136].mxu1  ;;  %8928 = vmatprep.mubr.msk.f32.mxu0 %vm1151_vm6, %v5737_v2 }
0x1791   :  { %v5620_v6 = vpop.f32.mrb[137].mxu1  ;;  %8929 = vmatmul.mubr.msk.f32.gmra.mrb[132].mxu0 %vm1151_vm6, %v5738_v59  ;;  %v5740_v13 = vmul.f32 %v8881_v42, %v12691_v24 }
0x1792   :  { %v5739_v61 = vmul.f32 %v5620_v6, %v12690_v25 }
0x1794   :  { %v8884_v7 = vpop.f32.mrb[138].mxu1  ;;  %8931 = vmatprep.mubr.msk.f32.mxu0 %vm1151_vm6, %v5739_v61 }
0x1795   :  { %v5630_v36 = vpop.f32.mrb[139].mxu1  ;;  %8932 = vmatmul.mubr.msk.f32.gmra.mrb[134].mxu0 %vm1151_vm6, %v5740_v13  ;;  %v5742_v30 = vmul.f32 %v8884_v7, %v12693_v38  ;;  %v12710_v13 = vld [vmem:[#allocation93_spill] sm:$0xff] }
0x1796   :  { %v5741_v3 = vmul.f32 %v5630_v36, %v11168_v19  ;;  %v12711_v36 = vld [vmem:[#allocation97_spill] sm:$0xff] }
0x1798   :  { %v8887_v51 = vpop.f32.mrb[140].mxu1  ;;  %8934 = vmatprep.mubr.msk.f32.mxu0 %vm1151_vm6, %v5741_v3 }
0x1799   :  { %v5640_v56 = vpop.f32.mrb[141].mxu1  ;;  %8935 = vmatmul.mubr.msk.f32.gmra.mrb[136].mxu0 %vm1151_vm6, %v5742_v30  ;;  %v5744_v24 = vmul.f32 %v8887_v51, %v11199_v57 }
0x179a   :  { %v5743_v25 = vmul.f32 %v5640_v56, %v11186_v35  ;;  %v8814_v29 = vpop.f32.mrb[92].mxu0 }
0x179b   :  { %v5377_v48 = vmul.f32 %v8814_v29, %v11735_v15  ;;  %v5217_v63 = vpop.f32.mrb[93].mxu0  ;;  %v12712_v29 = vld [vmem:[#allocation104_spill] sm:$0xff] }
0x179c   :  { %v5376_v8 = vmul.f32 %v5217_v63, %v11737_v27  ;;  %v8890_v47 = vpop.f32.mrb[142].mxu1  ;;  %8937 = vmatprep.mubr.msk.f32.mxu0 %vm1151_vm6, %v5743_v25  ;;  %v12713_v63 = vld [vmem:[#allocation107_spill] sm:$0xff] }
0x179d   :  { %v5410_v19 = vmul.f32 1.442695, %v5377_v48  ;;  %v5650_v38 = vpop.f32.mrb[143].mxu1  ;;  %8938 = vmatmul.mubr.msk.f32.gmra.mrb[138].mxu0 %vm1151_vm6, %v5744_v24  ;;  %v5746_v35 = vmul.f32 %v8890_v47, %v11217_v28 }
0x179e   :  { %v5408_v55 = vmul.f32 1.442695, %v5376_v8  ;;  %v5745_v10 = vmul.f32 %v5650_v38, %v11204_v43  ;;  %v8817_v44 = vpop.f32.mrb[94].mxu0 }
0x179f   :  { %9712 = vpow2.f32 %v5410_v19  ;;  %v5379_v57 = vmul.f32 %v8817_v44, %v11747_v41  ;;  %v5227_v15 = vpop.f32.mrb[95].mxu0 }
0x17a0   :  { %9714 = vpow2.f32 %v5408_v55  ;;  %v5378_v27 = vmul.f32 %v5227_v15, %v11757_v46  ;;  %v8893_v2 = vpop.f32.mrb[144].mxu1  ;;  %8940 = vmatprep.mubr.msk.f32.mxu0 %vm1151_vm6, %v5745_v10 }
0x17a1   :  { %v5414_v59 = vmul.f32 1.442695, %v5379_v57  ;;  %v5660_v42 = vpop.f32.mrb[145].mxu1  ;;  %8941 = vmatmul.mubr.msk.f32.gmra.mrb[140].mxu0 %vm1151_vm6, %v5746_v35  ;;  %v5748_v28 = vmul.f32 %v8893_v2, %v11234_v33  ;;  %v12714_v57 = vld [vmem:[#allocation58_spill] sm:$0xff]  ;;  %v12715_v2 = vld [vmem:[#allocation61_spill] sm:$0xff] }
0x17a2   :  { %v5412_v6 = vmul.f32 1.442695, %v5378_v27  ;;  %v5747_v43 = vmul.f32 %v5660_v42, %v11222_v49  ;;  %v8820_v61 = vpop.f32.mrb[96].mxu0 }
0x17a3   :  { %9716 = vpow2.f32 %v5414_v59  ;;  %v5381_v41 = vmul.f32 %v8820_v61, %v12710_v13  ;;  %v5237_v7 = vpop.f32.mrb[97].mxu0 }
0x17a4   :  { %9718 = vpow2.f32 %v5412_v6  ;;  %v5380_v46 = vmul.f32 %v5237_v7, %v12711_v36  ;;  %v8896_v3 = vpop.f32.mrb[146].mxu1  ;;  %8943 = vmatprep.mubr.msk.f32.mxu0 %vm1151_vm6, %v5747_v43  ;;  %v12716_v7 = vld [vmem:[#allocation67_spill] sm:$0xff] }
0x17a5   :  { %v5418_v30 = vmul.f32 1.442695, %v5381_v41  ;;  %v5670_v51 = vpop.f32.mrb[147].mxu1  ;;  %8944 = vmatmul.mubr.msk.f32.gmra.mrb[142].mxu0 %vm1151_vm6, %v5748_v28  ;;  %v5750_v33 = vmul.f32 %v8896_v3, %v12698_v11 }
0x17a6   :  { %v5416_v56 = vmul.f32 1.442695, %v5380_v46  ;;  %v5749_v49 = vmul.f32 %v5670_v51, %v12697_v21  ;;  %v8823_v25 = vpop.f32.mrb[98].mxu0 }
0x17a7   :  { %9720 = vpow2.f32 %v5418_v30  ;;  %v5383_v24 = vmul.f32 %v8823_v25, %v12712_v29  ;;  %v5247_v48 = vpop.f32.mrb[99].mxu0 }
0x17a8   :  { %9722 = vpow2.f32 %v5416_v56  ;;  %v5382_v8 = vmul.f32 %v5247_v48, %v12713_v63  ;;  %v8899_v47 = vpop.f32.mrb[148].mxu1  ;;  %8946 = vmatprep.mubr.msk.f32.mxu0 %vm1151_vm6, %v5749_v49 }
0x17a9   :  { %v9713_v19 = vpop.eup %9712  ;;  %v5422_v38 = vmul.f32 1.442695, %v5383_v24  ;;  %v5680_v55 = vpop.f32.mrb[149].mxu1  ;;  %8947 = vmatmul.mubr.msk.f32.gmra.mrb[144].mxu0 %vm1151_vm6, %v5750_v33  ;;  %v5752_v35 = vmul.f32 %v8899_v47, %v12700_v39 }
0x17aa   :  { %v9715_v10 = vpop.eup %9714  ;;  %5473 = vst.msk [vmem:[#allocation2 + $0x8] sm:$0xff] %vm2063_vm14, %v9713_v19  ;;  %v5420_v21 = vmul.f32 1.442695, %v5382_v8  ;;  %v5751_v11 = vmul.f32 %v5680_v55, %v12699_v20  ;;  %v8826_v44 = vpop.f32.mrb[100].mxu0 }
0x17ab   :  { %5472 = vst.msk [vmem:[#allocation2] sm:$0xff] %vm2063_vm14, %v9715_v10  ;;  %9724 = vpow2.f32 %v5422_v38  ;;  %v5385_v15 = vmul.f32 %v8826_v44, %v12714_v57  ;;  %v5257_v27 = vpop.f32.mrb[101].mxu0 }
0x17ac   :  { %9726 = vpow2.f32 %v5420_v21  ;;  %v5384_v59 = vmul.f32 %v5257_v27, %v12715_v2  ;;  %v8902_v42 = vpop.f32.mrb[150].mxu1  ;;  %8949 = vmatprep.mubr.msk.f32.mxu0 %vm1151_vm6, %v5751_v11 }
0x17ad   :  { %v9717_v6 = vpop.eup %9716  ;;  %v5426_v43 = vmul.f32 1.442695, %v5385_v15  ;;  %v5690_v61 = vpop.f32.mrb[151].mxu1  ;;  %8950 = vmatmul.mubr.msk.f32.gmra.mrb[146].mxu0 %vm1151_vm6, %v5752_v35  ;;  %v5754_v41 = vmul.f32 %v8902_v42, %v12702_v62 }
0x17ae   :  { %v9719_v20 = vpop.eup %9718  ;;  %5475 = vst.msk [vmem:[#allocation2 + $0x18] sm:$0xff] %vm2063_vm14, %v9717_v6  ;;  %v5424_v28 = vmul.f32 1.442695, %v5384_v59  ;;  %v5753_v39 = vmul.f32 %v5690_v61, %v12701_v40  ;;  %v8829_v13 = vpop.f32.mrb[102].mxu0 }
0x17af   :  { %5474 = vst.msk [vmem:[#allocation2 + $0x10] sm:$0xff] %vm2063_vm14, %v9719_v20  ;;  %9728 = vpow2.f32 %v5426_v43  ;;  %v5387_v36 = vmul.f32 %v8829_v13, %v12716_v7  ;;  %v5267_v46 = vpop.f32.mrb[103].mxu0 }
0x17b0   :  { %9730 = vpow2.f32 %v5424_v28  ;;  %v5386_v3 = vmul.f32 %v5267_v46, %v11789_v45  ;;  %v8905_v30 = vpop.f32.mrb[152].mxu1  ;;  %8952 = vmatprep.mubr.msk.f32.mxu0 %vm1151_vm6, %v5753_v39 }
0x17b1   :  { %v9721_v51 = vpop.eup %9720  ;;  %v5430_v56 = vmul.f32 1.442695, %v5387_v36  ;;  %v5700_v49 = vpop.f32.mrb[153].mxu1  ;;  %8953 = vmatmul.mubr.msk.f32.gmra.mrb[148].mxu0 %vm1151_vm6, %v5754_v41  ;;  %v5756_v45 = vmul.f32 %v8905_v30, %v12704_v52 }
0x17b2   :  { %v9723_v40 = vpop.eup %9722  ;;  %5477 = vst.msk [vmem:[#allocation2 + $0x28] sm:$0xff] %vm2063_vm14, %v9721_v51  ;;  %v5428_v25 = vmul.f32 1.442695, %v5386_v3  ;;  %v5755_v62 = vmul.f32 %v5700_v49, %v12703_v54  ;;  %v8832_v33 = vpop.f32.mrb[104].mxu0 }
0x17b3   :  { %5476 = vst.msk [vmem:[#allocation2 + $0x20] sm:$0xff] %vm2063_vm14, %v9723_v40  ;;  %9732 = vpow2.f32 %v5430_v56  ;;  %v5389_v29 = vmul.f32 %v8832_v33, %v11795_v37  ;;  %v5277_v24 = vpop.f32.mrb[105].mxu0 }
0x17b4   :  { %9734 = vpow2.f32 %v5428_v25  ;;  %v5388_v48 = vmul.f32 %v5277_v24, %v11801_v16  ;;  %v8908_v63 = vpop.f32.mrb[154].mxu1  ;;  %8955 = vmatprep.mubr.msk.f32.mxu0 %vm1151_vm6, %v5755_v62 }
0x17b5   :  { %v9725_v8 = vpop.eup %9724  ;;  %v5434_v47 = vmul.f32 1.442695, %v5389_v29  ;;  %v5710_v19 = vpop.f32.mrb[155].mxu1  ;;  %8956 = vmatmul.mubr.msk.f32.gmra.mrb[150].mxu0 %vm1151_vm6, %v5756_v45  ;;  %v5758_v37 = vmul.f32 %v8908_v63, %v12706_v12 }
0x17b6   :  { %v9727_v54 = vpop.eup %9726  ;;  %5479 = vst.msk [vmem:[#allocation2 + $0x38] sm:$0xff] %vm2063_vm14, %v9725_v8  ;;  %v5432_v38 = vmul.f32 1.442695, %v5388_v48  ;;  %v5757_v52 = vmul.f32 %v5710_v19, %v12705_v22  ;;  %v8835_v55 = vpop.f32.mrb[106].mxu0 }
0x17b7   :  { %5478 = vst.msk [vmem:[#allocation2 + $0x30] sm:$0xff] %vm2063_vm14, %v9727_v54  ;;  %9736 = vpow2.f32 %v5434_v47  ;;  %v5391_v16 = vmul.f32 %v8835_v55, %v11811_v5  ;;  %v5287_v10 = vpop.f32.mrb[107].mxu0 }
0x17b8   :  { %9738 = vpow2.f32 %v5432_v38  ;;  %v5390_v21 = vmul.f32 %v5287_v10, %v11815_v1  ;;  %v8911_v11 = vpop.f32.mrb[156].mxu1  ;;  %8958 = vmatprep.mubr.msk.f32.mxu0 %vm1151_vm6, %v5757_v52 }
0x17b9   :  { %v9729_v44 = vpop.eup %9728  ;;  %v5438_v35 = vmul.f32 1.442695, %v5391_v16  ;;  %v5720_v57 = vpop.f32.mrb[157].mxu1  ;;  %8959 = vmatmul.mubr.msk.f32.gmra.mrb[152].mxu0 %vm1151_vm6, %v5758_v37  ;;  %v5760_v5 = vmul.f32 %v8911_v11, %v12708_v58 }
0x17ba   :  { %v9731_v22 = vpop.eup %9730  ;;  %5481 = vst.msk [vmem:[#allocation2 + $0x48] sm:$0xff] %vm2063_vm14, %v9729_v44  ;;  %v5436_v15 = vmul.f32 1.442695, %v5390_v21  ;;  %v5759_v12 = vmul.f32 %v5720_v57, %v12707_v17  ;;  %v8838_v27 = vpop.f32.mrb[108].mxu0  ;;  %v12718_v57 = vld [vmem:[#allocation66_spill] sm:$0xff] }
0x17bb   :  { %5480 = vst.msk [vmem:[#allocation2 + $0x40] sm:$0xff] %vm2063_vm14, %v9731_v22  ;;  %9740 = vpow2.f32 %v5438_v35  ;;  %v5393_v1 = vmul.f32 %v8838_v27, %v11819_v31  ;;  %v5297_v2 = vpop.f32.mrb[109].mxu0 }
0x17bc   :  { %9742 = vpow2.f32 %v5436_v15  ;;  %v5392_v59 = vmul.f32 %v5297_v2, %v11823_v32  ;;  %8961 = vmatprep.mubr.msk.f32.mxu0 %vm1151_vm6, %v5759_v12  ;;  %v12040_v42 = vpop.f32.mrb[158].mxu1 }
0x17bd   :  { %v9733_v6 = vpop.eup %9732  ;;  %v5442_v43 = vmul.f32 1.442695, %v5393_v1  ;;  %8962 = vmatmul.mubr.msk.f32.gmra.mrb[154].mxu0 %vm1151_vm6, %v5760_v5  ;;  %v6350_v17 = vpop.f32.mrb[159].mxu1  ;;  %v12719_v5 = vld [vmem:[#allocation64_spill] sm:$0xff] }
0x17be   :  { %v9735_v61 = vpop.eup %9734  ;;  %5483 = vst.msk [vmem:[#allocation2 + $0x58] sm:$0xff] %vm2063_vm14, %v9733_v6  ;;  %v5440_v20 = vmul.f32 1.442695, %v5392_v59  ;;  %7713 = vmatprep.mubr.msk.f32.mxu0 %vm11426_vm4, %v6350_v17  ;;  %v8841_v31 = vpop.f32.mrb[110].mxu0  ;;  %v12720_v59 = vld [vmem:[#allocation57_spill] sm:$0xff] }
0x17bf   :  { %5482 = vst.msk [vmem:[#allocation2 + $0x50] sm:$0xff] %vm2063_vm14, %v9735_v61  ;;  %9744 = vpow2.f32 %v5442_v43  ;;  %v5395_v32 = vmul.f32 %v8841_v31, %v11831_v9  ;;  %v5307_v28 = vpop.f32.mrb[111].mxu0 }
0x17c0   :  { %9746 = vpow2.f32 %v5440_v20  ;;  %v5394_v39 = vmul.f32 %v5307_v28, %v11835_v53  ;;  %v12049_v13 = vpop.f32.mrb[160].mxu1 }
0x17c1   :  { %v9737_v41 = vpop.eup %9736  ;;  %v5446_v7 = vmul.f32 1.442695, %v5395_v32  ;;  %v12051_v36 = vpop.f32.mrb[161].mxu1 }
0x17c2   :  { %v9739_v46 = vpop.eup %9738  ;;  %5485 = vst.msk [vmem:[#allocation2 + $0x68] sm:$0xff] %vm2063_vm14, %v9737_v41  ;;  %v5444_v3 = vmul.f32 1.442695, %v5394_v39  ;;  %v8844_v30 = vpop.f32.mrb[112].mxu0 }
0x17c3   :  { %5484 = vst.msk [vmem:[#allocation2 + $0x60] sm:$0xff] %vm2063_vm14, %v9739_v46  ;;  %9748 = vpow2.f32 %v5446_v7  ;;  %v5397_v9 = vmul.f32 %v8844_v30, %v11843_v14  ;;  %v5317_v51 = vpop.f32.mrb[113].mxu0  ;;  %v6115_v46 = vld [vmem:[#allocation2 + $0x8] sm:$0xff]  ;;  %v6114_v30 = vld [vmem:[#allocation2] sm:$0xff] }
0x17c4   :  { %9750 = vpow2.f32 %v5444_v3  ;;  %v5396_v53 = vmul.f32 %v5317_v51, %v11847_v23  ;;  %v6117_v51 = vmul.f32 0.0, %v6115_v46 }
0x17c5   :  { %v9741_v56 = vpop.eup %9740  ;;  %v5450_v49 = vmul.f32 1.442695, %v5397_v9 }
0x17c6   :  { %v9743_v40 = vpop.eup %9742  ;;  %5487 = vst.msk [vmem:[#allocation2 + $0x78] sm:$0xff] %vm2063_vm14, %v9741_v56  ;;  %v5448_v25 = vmul.f32 1.442695, %v5396_v53  ;;  %v8847_v62 = vpop.f32.mrb[114].mxu0  ;;  %v6116_v56 = vmul.f32 0.0, %v6114_v30 }
0x17c7   :  { %5486 = vst.msk [vmem:[#allocation2 + $0x70] sm:$0xff] %vm2063_vm14, %v9743_v40  ;;  %9752 = vpow2.f32 %v5450_v49  ;;  %v5399_v33 = vmul.f32 %v8847_v62, %v11855_v50  ;;  %v5327_v45 = vpop.f32.mrb[115].mxu0 }
0x17c8   :  { %9754 = vpow2.f32 %v5448_v25  ;;  %v5398_v14 = vmul.f32 %v5327_v45, %v11859_v60  ;;  %v6125_v45 = vld [vmem:[#allocation2 + $0x18] sm:$0xff] }
0x17c9   :  { %v9745_v29 = vpop.eup %9744  ;;  %v5454_v24 = vmul.f32 1.442695, %v5399_v33 }
0x17ca   :  { %v9747_v48 = vpop.eup %9746  ;;  %5489 = vst.msk [vmem:[#allocation2 + $0x88] sm:$0xff] %vm2063_vm14, %v9745_v29  ;;  %v5452_v23 = vmul.f32 1.442695, %v5398_v14  ;;  %v8850_v63 = vpop.f32.mrb[116].mxu0  ;;  %v6124_v29 = vld [vmem:[#allocation2 + $0x10] sm:$0xff] }
0x17cb   :  { %5488 = vst.msk [vmem:[#allocation2 + $0x80] sm:$0xff] %vm2063_vm14, %v9747_v48  ;;  %9756 = vpow2.f32 %v5454_v24  ;;  %v5401_v8 = vmul.f32 %v8850_v63, %v11867_v34  ;;  %v5337_v47 = vpop.f32.mrb[117].mxu0 }
0x17cc   :  { %9758 = vpow2.f32 %v5452_v23  ;;  %v5400_v50 = vmul.f32 %v5337_v47, %v11871_v4 }
0x17cd   :  { %v9749_v19 = vpop.eup %9748  ;;  %v5458_v54 = vmul.f32 1.442695, %v5401_v8 }
0x17ce   :  { %v9751_v38 = vpop.eup %9750  ;;  %5491 = vst.msk [vmem:[#allocation2 + $0x98] sm:$0xff] %vm2063_vm14, %v9749_v19  ;;  %v5456_v60 = vmul.f32 1.442695, %v5400_v50  ;;  %v8853_v52 = vpop.f32.mrb[118].mxu0  ;;  %v6135_v19 = vld [vmem:[#allocation2 + $0x28] sm:$0xff] }
0x17cf   :  { %5490 = vst.msk [vmem:[#allocation2 + $0x90] sm:$0xff] %vm2063_vm14, %v9751_v38  ;;  %9760 = vpow2.f32 %v5458_v54  ;;  %v5403_v55 = vmul.f32 %v8853_v52, %v11879_v26  ;;  %v5347_v37 = vpop.f32.mrb[119].mxu0  ;;  %v6134_v38 = vld [vmem:[#allocation2 + $0x20] sm:$0xff] }
0x17d0   :  { %9762 = vpow2.f32 %v5456_v60  ;;  %v5402_v34 = vmul.f32 %v5347_v37, %v11883_v0 }
0x17d1   :  { %v9753_v16 = vpop.eup %9752  ;;  %v5462_v10 = vmul.f32 1.442695, %v5403_v55 }
0x17d2   :  { %v9755_v21 = vpop.eup %9754  ;;  %5493 = vst.msk [vmem:[#allocation2 + $0xa8] sm:$0xff] %vm2063_vm14, %v9753_v16  ;;  %v5460_v4 = vmul.f32 1.442695, %v5402_v34  ;;  %v8856_v11 = vpop.f32.mrb[120].mxu0 }
0x17d3   :  { %5492 = vst.msk [vmem:[#allocation2 + $0xa0] sm:$0xff] %vm2063_vm14, %v9755_v21  ;;  %9764 = vpow2.f32 %v5462_v10  ;;  %v5405_v44 = vmul.f32 %v8856_v11, %v11891_v18  ;;  %v5357_v35 = vpop.f32.mrb[121].mxu0  ;;  %v6145_v21 = vld [vmem:[#allocation2 + $0x38] sm:$0xff]  ;;  %v6144_v11 = vld [vmem:[#allocation2 + $0x30] sm:$0xff] }
0x17d4   :  { %9766 = vpow2.f32 %v5460_v4  ;;  %v5404_v26 = vmul.f32 %v5357_v35, %v12718_v57 }
0x17d5   :  { %v9757_v22 = vpop.eup %9756  ;;  %v5466_v15 = vmul.f32 1.442695, %v5405_v44 }
0x17d6   :  { %v9759_v12 = vpop.eup %9758  ;;  %5495 = vst.msk [vmem:[#allocation2 + $0xb8] sm:$0xff] %vm2063_vm14, %v9757_v22  ;;  %v5464_v0 = vmul.f32 1.442695, %v5404_v26  ;;  %v8859_v27 = vpop.f32.mrb[122].mxu0 }
0x17d7   :  { %5494 = vst.msk [vmem:[#allocation2 + $0xb0] sm:$0xff] %vm2063_vm14, %v9759_v12  ;;  %9768 = vpow2.f32 %v5466_v15  ;;  %v5407_v1 = vmul.f32 %v8859_v27, %v12719_v5  ;;  %v5367_v2 = vpop.f32.mrb[123].mxu0  ;;  %v6154_v5 = vld [vmem:[#allocation2 + $0x40] sm:$0xff] }
0x17d8   :  { %9770 = vpow2.f32 %v5464_v0  ;;  %v5406_v18 = vmul.f32 %v5367_v2, %v12720_v59  ;;  %v6155_v0 = vld [vmem:[#allocation2 + $0x48] sm:$0xff] }
0x17d9   :  { %v9761_v6 = vpop.eup %9760  ;;  %v5470_v43 = vmul.f32 1.442695, %v5407_v1 }
0x17da   :  { %v9763_v17 = vpop.eup %9762  ;;  %5497 = vst.msk [vmem:[#allocation2 + $0xc8] sm:$0xff] %vm2063_vm14, %v9761_v6  ;;  %v5468_v61 = vmul.f32 1.442695, %v5406_v18 }
0x17db   :  { %5496 = vst.msk [vmem:[#allocation2 + $0xc0] sm:$0xff] %vm2063_vm14, %v9763_v17  ;;  %9772 = vpow2.f32 %v5470_v43 }
0x17dc   :  { %9774 = vpow2.f32 %v5468_v61  ;;  %v6165_v61 = vld [vmem:[#allocation2 + $0x58] sm:$0xff] }
0x17dd   :  { %v9765_v20 = vpop.eup %9764 }
0x17de   :  { %v9767_v58 = vpop.eup %9766  ;;  %5499 = vst.msk [vmem:[#allocation2 + $0xd8] sm:$0xff] %vm2063_vm14, %v9765_v20 }
0x17df   :  { %5498 = vst.msk [vmem:[#allocation2 + $0xd0] sm:$0xff] %vm2063_vm14, %v9767_v58  ;;  %v6164_v58 = vld [vmem:[#allocation2 + $0x50] sm:$0xff] }
0x17e1   :  { %v9769_v31 = vpop.eup %9768 }
0x17e2   :  { %v9771_v32 = vpop.eup %9770  ;;  %5501 = vst.msk [vmem:[#allocation2 + $0xe8] sm:$0xff] %vm2063_vm14, %v9769_v31 }
0x17e3   :  { %5500 = vst.msk [vmem:[#allocation2 + $0xe0] sm:$0xff] %vm2063_vm14, %v9771_v32 }
0x17e5   :  { %v9773_v28 = vpop.eup %9772 }
0x17e6   :  { %v9775_v39 = vpop.eup %9774  ;;  %5503 = vst.msk [vmem:[#allocation2 + $0xf8] sm:$0xff] %vm2063_vm14, %v9773_v28 }
0x17e7   :  { %5502 = vst.msk [vmem:[#allocation2 + $0xf0] sm:$0xff] %vm2063_vm14, %v9775_v39 }
0x1854   :  { %v8918_v41 = vpop.f32.mrb[124].mxu0 }
0x1855   :  { %6083 = vst.msk [vmem:[#allocation3 + $0x8] sm:$0xff] %vm2063_vm14, %v8918_v41  ;;  %v5923_v7 = vpop.f32.mrb[125].mxu0 }
0x1856   :  { %6082 = vst.msk [vmem:[#allocation3] sm:$0xff] %vm2063_vm14, %v5923_v7 }
0x1858   :  { %v8921_v3 = vpop.f32.mrb[126].mxu0 }
0x1859   :  { %6085 = vst.msk [vmem:[#allocation3 + $0x18] sm:$0xff] %vm2063_vm14, %v8921_v3  ;;  %v5933_v9 = vpop.f32.mrb[127].mxu0  ;;  %v6175_v3 = vld [vmem:[#allocation2 + $0x68] sm:$0xff] }
0x185a   :  { %6084 = vst.msk [vmem:[#allocation3 + $0x10] sm:$0xff] %vm2063_vm14, %v5933_v9  ;;  %v6174_v9 = vld [vmem:[#allocation2 + $0x60] sm:$0xff] }
0x185c   :  { %v6119_v53 = vld [vmem:[#allocation3 + $0x8] sm:$0xff]  ;;  %v8924_v49 = vpop.f32.mrb[128].mxu0 }
0x185d   :  { %v6121_v40 = vadd.f32 %v6119_v53, %v6117_v51  ;;  %v6118_v25 = vld [vmem:[#allocation3] sm:$0xff]  ;;  %6087 = vst.msk [vmem:[#allocation3 + $0x28] sm:$0xff] %vm2063_vm14, %v8924_v49  ;;  %v5943_v62 = vpop.f32.mrb[129].mxu0 }
0x185e   :  { %v6120_v33 = vadd.f32 %v6118_v25, %v6116_v56  ;;  %6086 = vst.msk [vmem:[#allocation3 + $0x20] sm:$0xff] %vm2063_vm14, %v5943_v62 }
0x185f   :  { %6123 = vst.msk [vmem:[#allocation4 + $0x8] sm:$0xff] %vm2063_vm14, %v6121_v40  ;;  %v6127_v14 = vmul.f32 %v6125_v45, %v6121_v40 }
0x1860   :  { %6122 = vst.msk [vmem:[#allocation4] sm:$0xff] %vm2063_vm14, %v6120_v33  ;;  %v6129_v24 = vld [vmem:[#allocation3 + $0x18] sm:$0xff]  ;;  %v6126_v48 = vmul.f32 %v6124_v29, %v6120_v33  ;;  %v8927_v23 = vpop.f32.mrb[130].mxu0 }
0x1861   :  { %v6131_v63 = vadd.f32 %v6129_v24, %v6127_v14  ;;  %v6128_v8 = vld [vmem:[#allocation3 + $0x10] sm:$0xff]  ;;  %6089 = vst.msk [vmem:[#allocation3 + $0x38] sm:$0xff] %vm2063_vm14, %v8927_v23  ;;  %v5953_v47 = vpop.f32.mrb[131].mxu0  ;;  %v6185_v33 = vld [vmem:[#allocation2 + $0x78] sm:$0xff] }
0x1862   :  { %v6130_v50 = vadd.f32 %v6128_v8, %v6126_v48  ;;  %6088 = vst.msk [vmem:[#allocation3 + $0x30] sm:$0xff] %vm2063_vm14, %v5953_v47  ;;  %v6184_v14 = vld [vmem:[#allocation2 + $0x70] sm:$0xff] }
0x1863   :  { %6133 = vst.msk [vmem:[#allocation4 + $0x18] sm:$0xff] %vm2063_vm14, %v6131_v63  ;;  %v6137_v54 = vmul.f32 %v6135_v19, %v6131_v63 }
0x1864   :  { %6132 = vst.msk [vmem:[#allocation4 + $0x10] sm:$0xff] %vm2063_vm14, %v6130_v50  ;;  %v6139_v60 = vld [vmem:[#allocation3 + $0x28] sm:$0xff]  ;;  %v6136_v52 = vmul.f32 %v6134_v38, %v6130_v50  ;;  %v8930_v55 = vpop.f32.mrb[132].mxu0 }
0x1865   :  { %v6141_v37 = vadd.f32 %v6139_v60, %v6137_v54  ;;  %v6138_v34 = vld [vmem:[#allocation3 + $0x20] sm:$0xff]  ;;  %6091 = vst.msk [vmem:[#allocation3 + $0x48] sm:$0xff] %vm2063_vm14, %v8930_v55  ;;  %v5963_v16 = vpop.f32.mrb[133].mxu0  ;;  %v6195_v50 = vld [vmem:[#allocation2 + $0x88] sm:$0xff] }
0x1866   :  { %v6140_v10 = vadd.f32 %v6138_v34, %v6136_v52  ;;  %6090 = vst.msk [vmem:[#allocation3 + $0x40] sm:$0xff] %vm2063_vm14, %v5963_v16  ;;  %v6194_v54 = vld [vmem:[#allocation2 + $0x80] sm:$0xff] }
0x1867   :  { %6143 = vst.msk [vmem:[#allocation4 + $0x28] sm:$0xff] %vm2063_vm14, %v6141_v37  ;;  %v6147_v4 = vmul.f32 %v6145_v21, %v6141_v37 }
0x1868   :  { %6142 = vst.msk [vmem:[#allocation4 + $0x20] sm:$0xff] %vm2063_vm14, %v6140_v10  ;;  %v6149_v44 = vld [vmem:[#allocation3 + $0x38] sm:$0xff]  ;;  %v6146_v35 = vmul.f32 %v6144_v11, %v6140_v10  ;;  %v8933_v57 = vpop.f32.mrb[134].mxu0 }
0x1869   :  { %v6151_v26 = vadd.f32 %v6149_v44, %v6147_v4  ;;  %v6148_v22 = vld [vmem:[#allocation3 + $0x30] sm:$0xff]  ;;  %6093 = vst.msk [vmem:[#allocation3 + $0x58] sm:$0xff] %vm2063_vm14, %v8933_v57  ;;  %v5973_v15 = vpop.f32.mrb[135].mxu0  ;;  %v6205_v10 = vld [vmem:[#allocation2 + $0x98] sm:$0xff] }
0x186a   :  { %v6150_v12 = vadd.f32 %v6148_v22, %v6146_v35  ;;  %6092 = vst.msk [vmem:[#allocation3 + $0x50] sm:$0xff] %vm2063_vm14, %v5973_v15  ;;  %v6204_v4 = vld [vmem:[#allocation2 + $0x90] sm:$0xff] }
0x186b   :  { %6153 = vst.msk [vmem:[#allocation4 + $0x38] sm:$0xff] %vm2063_vm14, %v6151_v26  ;;  %v6157_v27 = vmul.f32 %v6155_v0, %v6151_v26 }
0x186c   :  { %6152 = vst.msk [vmem:[#allocation4 + $0x30] sm:$0xff] %vm2063_vm14, %v6150_v12  ;;  %v6159_v1 = vld [vmem:[#allocation3 + $0x48] sm:$0xff]  ;;  %v6156_v2 = vmul.f32 %v6154_v5, %v6150_v12  ;;  %v8936_v59 = vpop.f32.mrb[136].mxu0 }
0x186d   :  { %v6161_v18 = vadd.f32 %v6159_v1, %v6157_v27  ;;  %v6158_v6 = vld [vmem:[#allocation3 + $0x40] sm:$0xff]  ;;  %6095 = vst.msk [vmem:[#allocation3 + $0x68] sm:$0xff] %vm2063_vm14, %v8936_v59  ;;  %v5983_v43 = vpop.f32.mrb[137].mxu0  ;;  %v6215_v12 = vld [vmem:[#allocation2 + $0xa8] sm:$0xff] }
0x186e   :  { %v6160_v17 = vadd.f32 %v6158_v6, %v6156_v2  ;;  %6094 = vst.msk [vmem:[#allocation3 + $0x60] sm:$0xff] %vm2063_vm14, %v5983_v43  ;;  %v6214_v27 = vld [vmem:[#allocation2 + $0xa0] sm:$0xff]  ;;  %v6225_v6 = vld [vmem:[#allocation2 + $0xb8] sm:$0xff] }
0x186f   :  { %6163 = vst.msk [vmem:[#allocation4 + $0x48] sm:$0xff] %vm2063_vm14, %v6161_v18  ;;  %v6167_v20 = vmul.f32 %v6165_v61, %v6161_v18 }
0x1870   :  { %6162 = vst.msk [vmem:[#allocation4 + $0x40] sm:$0xff] %vm2063_vm14, %v6160_v17  ;;  %v6169_v31 = vld [vmem:[#allocation3 + $0x58] sm:$0xff]  ;;  %v6166_v32 = vmul.f32 %v6164_v58, %v6160_v17  ;;  %v8939_v28 = vpop.f32.mrb[138].mxu0  ;;  %v6364_v58 = vld [vmem:[#allocation4 + $0x8] sm:$0xff] }
0x1871   :  { %v6171_v39 = vadd.f32 %v6169_v31, %v6167_v20  ;;  %v6168_v41 = vld [vmem:[#allocation3 + $0x50] sm:$0xff]  ;;  %6097 = vst.msk [vmem:[#allocation3 + $0x78] sm:$0xff] %vm2063_vm14, %v8939_v28  ;;  %v5993_v7 = vpop.f32.mrb[139].mxu0  ;;  %v6363_v20 = vld [vmem:[#allocation4] sm:$0xff] }
0x1872   :  { %v6170_v46 = vadd.f32 %v6168_v41, %v6166_v32  ;;  %6096 = vst.msk [vmem:[#allocation3 + $0x70] sm:$0xff] %vm2063_vm14, %v5993_v7  ;;  %v6224_v32 = vld [vmem:[#allocation2 + $0xb0] sm:$0xff] }
0x1873   :  { %6173 = vst.msk [vmem:[#allocation4 + $0x58] sm:$0xff] %vm2063_vm14, %v6171_v39  ;;  %v6177_v30 = vmul.f32 %v6175_v3, %v6171_v39 }
0x1874   :  { %6172 = vst.msk [vmem:[#allocation4 + $0x50] sm:$0xff] %vm2063_vm14, %v6170_v46  ;;  %v6179_v51 = vld [vmem:[#allocation3 + $0x68] sm:$0xff]  ;;  %v6176_v53 = vmul.f32 %v6174_v9, %v6170_v46  ;;  %v8942_v56 = vpop.f32.mrb[140].mxu0 }
0x1875   :  { %v6181_v49 = vadd.f32 %v6179_v51, %v6177_v30  ;;  %v6178_v40 = vld [vmem:[#allocation3 + $0x60] sm:$0xff]  ;;  %6099 = vst.msk [vmem:[#allocation3 + $0x88] sm:$0xff] %vm2063_vm14, %v8942_v56  ;;  %v6003_v25 = vpop.f32.mrb[141].mxu0  ;;  %v6235_v9 = vld [vmem:[#allocation2 + $0xc8] sm:$0xff] }
0x1876   :  { %v6180_v62 = vadd.f32 %v6178_v40, %v6176_v53  ;;  %6098 = vst.msk [vmem:[#allocation3 + $0x80] sm:$0xff] %vm2063_vm14, %v6003_v25  ;;  %v9352_v53 = vpack.c.bf16 %v6364_v58, %v6363_v20  ;;  %v6365_v40 = vld [vmem:[#allocation4 + $0x10] sm:$0xff]  ;;  %v6366_v25 = vld [vmem:[#allocation4 + $0x18] sm:$0xff] }
0x1877   :  { %6183 = vst.msk [vmem:[#allocation4 + $0x68] sm:$0xff] %vm2063_vm14, %v6181_v49  ;;  %v6187_v45 = vmul.f32 %v6185_v33, %v6181_v49  ;;  %v6234_v33 = vld [vmem:[#allocation2 + $0xc0] sm:$0xff] }
0x1878   :  { %6182 = vst.msk [vmem:[#allocation4 + $0x60] sm:$0xff] %vm2063_vm14, %v6180_v62  ;;  %v6189_v29 = vld [vmem:[#allocation3 + $0x78] sm:$0xff]  ;;  %v6186_v24 = vmul.f32 %v6184_v14, %v6180_v62  ;;  %v8945_v48 = vpop.f32.mrb[142].mxu0  ;;  %v6371_v58 = vld [vmem:[#allocation4 + $0x40] sm:$0xff] }
0x1879   :  { %v6191_v23 = vadd.f32 %v6189_v29, %v6187_v45  ;;  %v6188_v63 = vld [vmem:[#allocation3 + $0x70] sm:$0xff]  ;;  %6101 = vst.msk [vmem:[#allocation3 + $0x98] sm:$0xff] %vm2063_vm14, %v8945_v48  ;;  %v6013_v8 = vpop.f32.mrb[143].mxu0 }
0x187a   :  { %v6190_v47 = vadd.f32 %v6188_v63, %v6186_v24  ;;  %6100 = vst.msk [vmem:[#allocation3 + $0x90] sm:$0xff] %vm2063_vm14, %v6013_v8  ;;  %v6245_v8 = vld [vmem:[#allocation2 + $0xd8] sm:$0xff] }
0x187b   :  { %6193 = vst.msk [vmem:[#allocation4 + $0x78] sm:$0xff] %vm2063_vm14, %v6191_v23  ;;  %v6197_v19 = vmul.f32 %v6195_v50, %v6191_v23  ;;  %v9356_v50 = vpack.c.bf16 %v6366_v25, %v6365_v40 }
0x187c   :  { %6192 = vst.msk [vmem:[#allocation4 + $0x70] sm:$0xff] %vm2063_vm14, %v6190_v47  ;;  %v6199_v38 = vld [vmem:[#allocation3 + $0x88] sm:$0xff]  ;;  %v6196_v60 = vmul.f32 %v6194_v54, %v6190_v47  ;;  %v8948_v52 = vpop.f32.mrb[144].mxu0 }
0x187d   :  { %v6201_v55 = vadd.f32 %v6199_v38, %v6197_v19  ;;  %v6198_v37 = vld [vmem:[#allocation3 + $0x80] sm:$0xff]  ;;  %6103 = vst.msk [vmem:[#allocation3 + $0xa8] sm:$0xff] %vm2063_vm14, %v8948_v52  ;;  %v6023_v34 = vpop.f32.mrb[145].mxu0 }
0x187e   :  { %v6200_v16 = vadd.f32 %v6198_v37, %v6196_v60  ;;  %6102 = vst.msk [vmem:[#allocation3 + $0xa0] sm:$0xff] %vm2063_vm14, %v6023_v34  ;;  %v6367_v38 = vld [vmem:[#allocation4 + $0x20] sm:$0xff]  ;;  %v6368_v60 = vld [vmem:[#allocation4 + $0x28] sm:$0xff] }
0x187f   :  { %6203 = vst.msk [vmem:[#allocation4 + $0x88] sm:$0xff] %vm2063_vm14, %v6201_v55  ;;  %v6207_v21 = vmul.f32 %v6205_v10, %v6201_v55  ;;  %v6244_v55 = vld [vmem:[#allocation2 + $0xd0] sm:$0xff] }
0x1880   :  { %6202 = vst.msk [vmem:[#allocation4 + $0x80] sm:$0xff] %vm2063_vm14, %v6200_v16  ;;  %v6209_v11 = vld [vmem:[#allocation3 + $0x98] sm:$0xff]  ;;  %v6206_v44 = vmul.f32 %v6204_v4, %v6200_v16  ;;  %v8951_v35 = vpop.f32.mrb[146].mxu0 }
0x1881   :  { %v6211_v57 = vadd.f32 %v6209_v11, %v6207_v21  ;;  %v6208_v26 = vld [vmem:[#allocation3 + $0x90] sm:$0xff]  ;;  %6105 = vst.msk [vmem:[#allocation3 + $0xb8] sm:$0xff] %vm2063_vm14, %v8951_v35  ;;  %v6033_v22 = vpop.f32.mrb[147].mxu0 }
0x1882   :  { %v6210_v15 = vadd.f32 %v6208_v26, %v6206_v44  ;;  %6104 = vst.msk [vmem:[#allocation3 + $0xb0] sm:$0xff] %vm2063_vm14, %v6033_v22  ;;  %v6255_v44 = vld [vmem:[#allocation2 + $0xe8] sm:$0xff] }
0x1883   :  { %6213 = vst.msk [vmem:[#allocation4 + $0x98] sm:$0xff] %vm2063_vm14, %v6211_v57  ;;  %v6217_v0 = vmul.f32 %v6215_v12, %v6211_v57  ;;  %v9360_v57 = vpack.c.bf16 %v6368_v60, %v6367_v38  ;;  %v6370_v12 = vld [vmem:[#allocation4 + $0x38] sm:$0xff] }
0x1884   :  { %6212 = vst.msk [vmem:[#allocation4 + $0x90] sm:$0xff] %vm2063_vm14, %v6210_v15  ;;  %v6219_v5 = vld [vmem:[#allocation3 + $0xa8] sm:$0xff]  ;;  %v6216_v1 = vmul.f32 %v6214_v27, %v6210_v15  ;;  %v8954_v2 = vpop.f32.mrb[148].mxu0  ;;  %v6369_v15 = vld [vmem:[#allocation4 + $0x30] sm:$0xff]  ;;  %v6254_v27 = vld [vmem:[#allocation2 + $0xe0] sm:$0xff] }
0x1885   :  { %v6221_v59 = vadd.f32 %v6219_v5, %v6217_v0  ;;  %v6218_v18 = vld [vmem:[#allocation3 + $0xa0] sm:$0xff]  ;;  %6107 = vst.msk [vmem:[#allocation3 + $0xc8] sm:$0xff] %vm2063_vm14, %v8954_v2  ;;  %v6043_v43 = vpop.f32.mrb[149].mxu0 }
0x1886   :  { %v6220_v17 = vadd.f32 %v6218_v18, %v6216_v1  ;;  %6106 = vst.msk [vmem:[#allocation3 + $0xc0] sm:$0xff] %vm2063_vm14, %v6043_v43  ;;  %v6380_v61 = vld [vmem:[#allocation4 + $0x88] sm:$0xff]  ;;  %v6265_v43 = vld [vmem:[#allocation2 + $0xf8] sm:$0xff] }
0x1887   :  { %6223 = vst.msk [vmem:[#allocation4 + $0xa8] sm:$0xff] %vm2063_vm14, %v6221_v59  ;;  %v6227_v31 = vmul.f32 %v6225_v6, %v6221_v59  ;;  %v6379_v28 = vld [vmem:[#allocation4 + $0x80] sm:$0xff] }
0x1888   :  { %6222 = vst.msk [vmem:[#allocation4 + $0xa0] sm:$0xff] %vm2063_vm14, %v6220_v17  ;;  %v6229_v39 = vld [vmem:[#allocation3 + $0xb8] sm:$0xff]  ;;  %v6226_v41 = vmul.f32 %v6224_v32, %v6220_v17  ;;  %v8957_v7 = vpop.f32.mrb[150].mxu0  ;;  %v9350_v46 = vpack.c.bf16 %v6380_v61, %v6379_v28  ;;  %v9364_v17 = vpack.c.bf16 %v6370_v12, %v6369_v15  ;;  %v6264_v28 = vld [vmem:[#allocation2 + $0xf0] sm:$0xff]  ;;  %v6481_v12 = vpop.permute.xlu1 %6480 }
0x1889   :  { %v6231_v3 = vadd.f32 %v6229_v39, %v6227_v31  ;;  %v6228_v30 = vld [vmem:[#allocation3 + $0xb0] sm:$0xff]  ;;  %6109 = vst.msk [vmem:[#allocation3 + $0xd8] sm:$0xff] %vm2063_vm14, %v8957_v7  ;;  %v6053_v51 = vpop.f32.mrb[151].mxu0  ;;  %v6372_v31 = vld [vmem:[#allocation4 + $0x48] sm:$0xff] }
0x188a   :  { %v6230_v56 = vadd.f32 %v6228_v30, %v6226_v41  ;;  %6108 = vst.msk [vmem:[#allocation3 + $0xd0] sm:$0xff] %vm2063_vm14, %v6053_v51  ;;  %9351 = vmatprep.subr.bf16.mxu0 %v9350_v46  ;;  %v6382_v49 = vld [vmem:[#allocation4 + $0x98] sm:$0xff] }
0x188b   :  { %6233 = vst.msk [vmem:[#allocation4 + $0xb8] sm:$0xff] %vm2063_vm14, %v6231_v3  ;;  %v6237_v62 = vmul.f32 %v6235_v9, %v6231_v3  ;;  %9353 = vmatpush3.bf16.msra.mxu0 %v9352_v53  ;;  %v6381_v45 = vld [vmem:[#allocation4 + $0x90] sm:$0xff]  ;;  %v9368_v9 = vpack.c.bf16 %v6372_v31, %v6371_v58 }
0x188c   :  { %6232 = vst.msk [vmem:[#allocation4 + $0xb0] sm:$0xff] %vm2063_vm14, %v6230_v56  ;;  %v6239_v14 = vld [vmem:[#allocation3 + $0xc8] sm:$0xff]  ;;  %v6236_v29 = vmul.f32 %v6234_v33, %v6230_v56  ;;  %v8960_v24 = vpop.f32.mrb[152].mxu0  ;;  %v9354_v48 = vpack.c.bf16 %v6382_v49, %v6381_v45  ;;  %v6373_v56 = vld [vmem:[#allocation4 + $0x50] sm:$0xff]  ;;  %v6374_v49 = vld [vmem:[#allocation4 + $0x58] sm:$0xff] }
0x188d   :  { %v6241_v23 = vadd.f32 %v6239_v14, %v6237_v62  ;;  %v6238_v63 = vld [vmem:[#allocation3 + $0xc0] sm:$0xff]  ;;  %6111 = vst.msk [vmem:[#allocation3 + $0xe8] sm:$0xff] %vm2063_vm14, %v8960_v24  ;;  %v6063_v47 = vpop.f32.mrb[153].mxu0  ;;  %v9372_v62 = vpack.c.bf16 %v6374_v49, %v6373_v56  ;;  %v6376_v14 = vld [vmem:[#allocation4 + $0x68] sm:$0xff] }
0x188e   :  { %v6240_v19 = vadd.f32 %v6238_v63, %v6236_v29  ;;  %6110 = vst.msk [vmem:[#allocation3 + $0xe0] sm:$0xff] %vm2063_vm14, %v6063_v47  ;;  %9355 = vmatprep.subr.bf16.mxu0 %v9354_v48  ;;  %v6384_v54 = vld [vmem:[#allocation4 + $0xa8] sm:$0xff]  ;;  %v6375_v45 = vld [vmem:[#allocation4 + $0x60] sm:$0xff]  ;;  %v6377_v47 = vld [vmem:[#allocation4 + $0x70] sm:$0xff] }
0x188f   :  { %6243 = vst.msk [vmem:[#allocation4 + $0xc8] sm:$0xff] %vm2063_vm14, %v6241_v23  ;;  %v6247_v52 = vmul.f32 %v6245_v8, %v6241_v23  ;;  %9357 = vmatpush3.bf16.msra.mxu0 %v9356_v50  ;;  %v6383_v37 = vld [vmem:[#allocation4 + $0xa0] sm:$0xff]  ;;  %v9376_v48 = vpack.c.bf16 %v6376_v14, %v6375_v45  ;;  %v7718_v63 = vld [vmem:[%s12614_s13 + $0x48] sm:$0xff]  ;;  %v6378_v50 = vld [vmem:[#allocation4 + $0x78] sm:$0xff] }
0x1890   :  { %6242 = vst.msk [vmem:[#allocation4 + $0xc0] sm:$0xff] %vm2063_vm14, %v6240_v19  ;;  %v6249_v34 = vld [vmem:[#allocation3 + $0xd8] sm:$0xff]  ;;  %v6246_v16 = vmul.f32 %v6244_v55, %v6240_v19  ;;  %v8963_v10 = vpop.f32.mrb[154].mxu0  ;;  %v9358_v21 = vpack.c.bf16 %v6384_v54, %v6383_v37  ;;  %v7717_v23 = vld [vmem:[%s12614_s13 + $0x40] sm:$0xff]  ;;  %v9380_v60 = vpack.c.bf16 %v6378_v50, %v6377_v47  ;;  %v6625_v14 = vld [vmem:[#allocation19 + $0x18] sm:$0xff] }
0x1891   :  { %v6251_v4 = vadd.f32 %v6249_v34, %v6247_v52  ;;  %v6248_v11 = vld [vmem:[#allocation3 + $0xd0] sm:$0xff]  ;;  %6113 = vst.msk [vmem:[#allocation3 + $0xf8] sm:$0xff] %vm2063_vm14, %v8963_v10  ;;  %v6073_v35 = vpop.f32.mrb[155].mxu0  ;;  %v9382_v38 = vpack.c.bf16 %v7718_v63, %v7717_v23  ;;  %v6624_v45 = vld [vmem:[#allocation19 + $0x10] sm:$0xff] }
0x1892   :  { %v6250_v26 = vadd.f32 %v6248_v11, %v6246_v16  ;;  %6112 = vst.msk [vmem:[#allocation3 + $0xf0] sm:$0xff] %vm2063_vm14, %v6073_v35  ;;  %9359 = vmatprep.subr.bf16.mxu0 %v9358_v21  ;;  %v6386_v22 = vld [vmem:[#allocation4 + $0xb8] sm:$0xff]  ;;  %v7719_v34 = vld [vmem:[%s12614_s13 + $0x50] sm:$0xff]  ;;  %v7721_v21 = vld [vmem:[%s12614_s13 + $0x60] sm:$0xff] }
0x1893   :  { %6253 = vst.msk [vmem:[#allocation4 + $0xd8] sm:$0xff] %vm2063_vm14, %v6251_v4  ;;  %v6257_v0 = vmul.f32 %v6255_v44, %v6251_v4  ;;  %9361 = vmatpush3.bf16.msra.mxu0 %v9360_v57  ;;  %v6385_v5 = vld [vmem:[#allocation4 + $0xb0] sm:$0xff]  ;;  %v7720_v16 = vld [vmem:[%s12614_s13 + $0x58] sm:$0xff]  ;;  %v7722_v4 = vld [vmem:[%s12614_s13 + $0x68] sm:$0xff] }
0x1894   :  { %6252 = vst.msk [vmem:[#allocation4 + $0xd0] sm:$0xff] %vm2063_vm14, %v6250_v26  ;;  %v6259_v1 = vld [vmem:[#allocation3 + $0xe8] sm:$0xff]  ;;  %v6256_v2 = vmul.f32 %v6254_v27, %v6250_v26  ;;  %v9362_v59 = vpack.c.bf16 %v6386_v22, %v6385_v5  ;;  %v9386_v10 = vpack.c.bf16 %v7720_v16, %v7719_v34  ;;  %v9390_v11 = vpack.c.bf16 %v7722_v4, %v7721_v21  ;;  %v7724_v44 = vld [vmem:[%s12614_s13 + $0x78] sm:$0xff] }
0x1895   :  { %v6261_v18 = vadd.f32 %v6259_v1, %v6257_v0  ;;  %v6258_v6 = vld [vmem:[#allocation3 + $0xe0] sm:$0xff] }
0x1896   :  { %v6260_v61 = vadd.f32 %v6258_v6, %v6256_v2  ;;  %9363 = vmatprep.subr.bf16.mxu0 %v9362_v59  ;;  %v6388_v20 = vld [vmem:[#allocation4 + $0xc8] sm:$0xff]  ;;  %v12725_v2 = vld [vmem:[#allocation116_spill] sm:$0xff] }
0x1897   :  { %6263 = vst.msk [vmem:[#allocation4 + $0xe8] sm:$0xff] %vm2063_vm14, %v6261_v18  ;;  %v6267_v32 = vmul.f32 %v6265_v43, %v6261_v18  ;;  %9365 = vmatpush3.bf16.msra.mxu0 %v9364_v17  ;;  %v6387_v39 = vld [vmem:[#allocation4 + $0xc0] sm:$0xff]  ;;  %v6483_v43 = vpop.permute.xlu1 %6482 }
0x1898   :  { %6262 = vst.msk [vmem:[#allocation4 + $0xe0] sm:$0xff] %vm2063_vm14, %v6260_v61  ;;  %v6269_v41 = vld [vmem:[#allocation3 + $0xf8] sm:$0xff]  ;;  %v6266_v7 = vmul.f32 %v6264_v28, %v6260_v61  ;;  %v9366_v46 = vpack.c.bf16 %v6388_v20, %v6387_v39  ;;  %v12724_v22 = vld [vmem:[#allocation54_spill] sm:$0xff] }
0x1899   :  { %v6271_v3 = vadd.f32 %v6269_v41, %v6267_v32  ;;  %v6268_v30 = vld [vmem:[#allocation3 + $0xf0] sm:$0xff]  ;;  %v12726_v20 = vld [vmem:[#allocation125_spill] sm:$0xff]  ;;  %v12727_v32 = vld [vmem:[#allocation126_spill] sm:$0xff] }
0x189a   :  { %v6270_v51 = vadd.f32 %v6268_v30, %v6266_v7  ;;  %9367 = vmatprep.subr.bf16.mxu0 %v9366_v46  ;;  %v6390_v53 = vld [vmem:[#allocation4 + $0xd8] sm:$0xff] }
0x189b   :  { %6273 = vst.msk [vmem:[#allocation4 + $0xf8] sm:$0xff] %vm2063_vm14, %v6271_v3  ;;  %9369 = vmatpush3.bf16.msra.mxu0 %v9368_v9  ;;  %v6389_v40 = vld [vmem:[#allocation4 + $0xd0] sm:$0xff] }
0x189c   :  { %6272 = vst.msk [vmem:[#allocation4 + $0xf0] sm:$0xff] %vm2063_vm14, %v6270_v51  ;;  %v9370_v25 = vpack.c.bf16 %v6390_v53, %v6389_v40 }
0x189e   :  { %9371 = vmatprep.subr.bf16.mxu0 %v9370_v25  ;;  %v6392_v33 = vld [vmem:[#allocation4 + $0xe8] sm:$0xff]  ;;  %v6622_v25 = vld [vmem:[#allocation19] sm:$0xff] }
0x189f   :  { %9373 = vmatpush3.bf16.msra.mxu0 %v9372_v62  ;;  %v6391_v29 = vld [vmem:[#allocation4 + $0xe0] sm:$0xff] }
0x18a0   :  { %v9374_v24 = vpack.c.bf16 %v6392_v33, %v6391_v29  ;;  %v6623_v62 = vld [vmem:[#allocation19 + $0x8] sm:$0xff]  ;;  %v9402_v29 = vpack.c.bf16 %v6625_v14, %v6624_v45 }
0x18a1   :  { %v9398_v33 = vpack.c.bf16 %v6623_v62, %v6622_v25  ;;  %v6887_v25 = vld [vmem:[%s12734_s11 + $0x8] sm:$0xff]  ;;  %v6888_v62 = vld [vmem:[%s12734_s11 + $0x10] sm:$0xff]  ;;  %v6889_v45 = vld [vmem:[%s12734_s11 + $0x18] sm:$0xff] }
0x18a2   :  { %9375 = vmatprep.subr.bf16.mxu0 %v9374_v24  ;;  %v6394_v8 = vld [vmem:[#allocation4 + $0xf8] sm:$0xff]  ;;  %v9418_v14 = vpack.c.bf16 %v6889_v45, %v6888_v62 }
0x18a3   :  { %9377 = vmatpush3.bf16.msra.mxu0 %v9376_v48  ;;  %v6393_v19 = vld [vmem:[#allocation4 + $0xf0] sm:$0xff] }
0x18a4   :  { %v9378_v54 = vpack.c.bf16 %v6394_v8, %v6393_v19  ;;  %v7727_v19 = vld [vmem:[%s12728_s1] ss:$0 sm:$0xff] }
0x18a6   :  { %9379 = vmatprep.subr.bf16.mxu0 %v9378_v54 }
0x18a7   :  { %9381 = vmatpush3.bf16.msra.mxu0 %v9380_v60 }
0x18a8   :  { %9383 = vmatprep.subr.bf16.mxu0 %v9382_v38 }
0x18aa   :  { %7714 = vmatmul.mubr.msk.f32.vlgmr.msra.gmra.mrb[156].mxu0 %vm11545_vm12, %v12040_v42  ;;  %v7723_v42 = vld [vmem:[%s12614_s13 + $0x70] sm:$0xff] }
0x18ab   :  { %7715 = vmatprep.mubr.msk.f32.mxu0 %vm11552_vm1, %v12051_v36  ;;  %9385 = vmatpush3.bf16.msra.mxu0 %v9382_v38  ;;  %v9394_v35 = vpack.c.bf16 %v7724_v44, %v7723_v42  ;;  %v7712_v36 = vld [vmem:[#allocation17 + $0x1] ss:$0 sm:$0xff]  ;;  %v7728_v38 = vld [vmem:[%s12729_s2] ss:$0 sm:$0xff] }
0x18ac   :  { %9387 = vmatprep.subr.bf16.mxu0 %v9386_v10  ;;  %v6404_v59 = vmul.f32 %v7712_v36, %v12725_v2  ;;  %v6754_v2 = vld [vmem:[%s12730_s29 + $0x18] sm:$0xff] }
0x18ae   :  { %7716 = vmatmul.mubr.msk.f32.gmra.mrb[158].mxu0 %vm11563_vm3, %v12049_v13  ;;  %v6403_v13 = vmul.f32 %v7712_v36, %v12724_v22 }
0x18af   :  { %9389 = vmatpush3.bf16.msra.mxu0 %v9386_v10 }
0x18b0   :  { %9391 = vmatprep.subr.bf16.mxu0 %v9390_v11 }
0x18b3   :  { %9393 = vmatpush3.bf16.msra.mxu0 %v9390_v11 }
0x18b4   :  { %9395 = vmatprep.subr.bf16.mxu0 %v9394_v35 }
0x18b7   :  { %9397 = vmatpush3.bf16.msra.mxu0 %v9394_v35 }
0x18b8   :  { %9399 = vmatprep.subr.bf16.mxu0 %v9398_v33 }
0x197d   :  { %v8222_v57 = vpop.f32.mrb[156].mxu0 }
0x197e   :  { %v8223_v26 = vpop.f32.mrb[157].mxu0 }
0x197f   :  { %v8224_v15 = vadd.f32 %v8223_v26, %v8222_v57 }
0x1981   :  { %v6472_v0 = vadd.f32 %v8224_v15, %v6403_v13  ;;  %v8225_v27 = vpop.f32.mrb[158].mxu0 }
0x1982   :  { %v8226_v5 = vpop.f32.mrb[159].mxu0 }
0x1983   :  { %v6486_v1 = vmul.f32 %v6481_v12, %v6472_v0  ;;  %v8227_v18 = vadd.f32 %v8226_v5, %v8225_v27  ;;  %v6751_v0 = vld [vmem:[%s12730_s29] sm:$0xff]  ;;  %v6752_v27 = vld [vmem:[%s12730_s29 + $0x8] sm:$0xff] }
0x1984   :  { %v9406_v5 = vpack.c.bf16 %v6752_v27, %v6751_v0 }
0x1985   :  { %v6477_v6 = vadd.f32 %v8227_v18, %v6404_v59  ;;  %8980 = vmatprep.mubr.msk.f32.mxu0 %vm2063_vm14, %v6486_v1  ;;  %v6753_v1 = vld [vmem:[%s12730_s29 + $0x10] sm:$0xff] }
0x1986   :  { %v9410_v59 = vpack.c.bf16 %v6754_v2, %v6753_v1 }
0x1987   :  { %v6487_v17 = vmul.f32 %v6483_v43, %v6477_v6 }
0x1989   :  { %8981 = vmatmul.mubr.msk.f32.vlgmr.msra.gmra.mrb[160].mxu0 %vm2063_vm14, %v6487_v17 }
0x198a   :  { %9401 = vmatpush3.bf16.msra.mxu0 %v9398_v33 }
0x198b   :  { %9403 = vmatprep.subr.bf16.mxu0 %v9402_v29 }
0x198e   :  { %9405 = vmatpush3.bf16.msra.mxu0 %v9402_v29 }
0x198f   :  { %9407 = vmatprep.subr.bf16.mxu0 %v9406_v5 }
0x1a5c   :  { %v8982_v61 = vpop.f32.mrb[160].mxu0 }
0x1a5d   :  { %v6575_v58 = vadd.f32 %v8982_v61, %v12726_v20  ;;  %v6569_v31 = vpop.f32.mrb[161].mxu0 }
0x1a5e   :  { %v6570_v28 = vadd.f32 %v6569_v31, %v12727_v32  ;;  %v7731_v31 = vld [vmem:[%s12731_s7] ss:$0 sm:$0xff] }
0x1a5f   :  { %v6583_v39 = vsel %vm667_vm2, %v6575_v58, 0.0 }
0x1a60   :  { %6584 = vadd.xlane.f32.xlu1 %v6583_v39  ;;  %v6580_v41 = vsel %vm667_vm2, %v6570_v28, 0.0 }
0x1a61   :  { %6581 = vadd.xlane.f32.xlu0 %v6580_v41  ;;  %v7732_v41 = vld [vmem:[%s12732_s10] ss:$0 sm:$0xff] }
0x1aed   :  { %v6585_v7 = vpop.xlane.xlu1 %6584 }
0x1aee   :  { %v6587_v46 = vmul.f32 0.03125, %v6585_v7  ;;  %v6582_v3 = vpop.xlane.xlu0 %6581 }
0x1aef   :  { %v6586_v30 = vmul.f32 0.03125, %v6582_v3 }
0x1af0   :  { %v6589_v9 = vsub.f32 %v6575_v58, %v6587_v46 }
0x1af1   :  { %v6588_v51 = vsub.f32 %v6570_v28, %v6586_v30 }
0x1af2   :  { %v6591_v49 = vmul.f32 %v6589_v9, %v6589_v9 }
0x1af3   :  { %v6590_v53 = vmul.f32 %v6588_v51, %v6588_v51 }
0x1af4   :  { %v6595_v40 = vsel %vm667_vm2, %v6591_v49, 0.0 }
0x1af5   :  { %v6592_v56 = vsel %vm667_vm2, %v6590_v53, 0.0 }
0x1af6   :  { %6593 = vadd.xlane.f32.xlu0 %v6592_v56 }
0x1afa   :  { %6596 = vadd.xlane.f32.xlu0 %v6595_v40  ;;  %v6886_v40 = vld [vmem:[%s12734_s11] sm:$0xff] }
0x1afb   :  { %v9414_v33 = vpack.c.bf16 %v6887_v25, %v6886_v40 }
0x1afd   :  { %9415 = vmatprep.subr.bf16.mxu1 %v9414_v33 }
0x1afe   :  { %9417 = vmatpush3.bf16.msra.mxu1 %v9414_v33 }
0x1aff   :  { %9419 = vmatprep.subr.bf16.mxu1 %v9418_v14 }
0x1b02   :  { %9421 = vmatpush3.bf16.msra.mxu1 %v9418_v14 }
0x1b83   :  { %v6594_v24 = vpop.xlane.xlu0 %6593 }
0x1b84   :  { %v6598_v48 = vmul.f32 0.03125, %v6594_v24 }
0x1b86   :  { %v6600_v23 = vadd.f32 1e-05, %v6598_v48 }
0x1b87   :  { %v6597_v63 = vpop.xlane.xlu0 %6596 }
0x1b88   :  { %9776 = vrsqrt.f32 %v6600_v23  ;;  %v6599_v8 = vmul.f32 0.03125, %v6597_v63 }
0x1b8a   :  { %v6601_v47 = vadd.f32 1e-05, %v6599_v8 }
0x1b8c   :  { %9778 = vrsqrt.f32 %v6601_v47 }
0x1b92   :  { %v9777_v50 = vpop.eup %9776 }
0x1b93   :  { %v6604_v54 = vmul.f32 %v9777_v50, %v6588_v51 }
0x1b95   :  { %v6612_v60 = vmul.f32 %v7727_v19, %v6604_v54  ;;  %v6891_v54 = vld [vmem:[%s12734_s11 + $0x28] sm:$0xff] }
0x1b96   :  { %v9779_v52 = vpop.eup %9778 }
0x1b97   :  { %v6605_v55 = vmul.f32 %v9779_v52, %v6589_v9  ;;  %v6620_v37 = vadd.f32 %v7728_v38, %v6612_v60  ;;  %v7733_v9 = vld [vmem:[%s12733_s0] ss:$0 sm:$0xff]  ;;  %v6892_v60 = vld [vmem:[%s12734_s11 + $0x30] sm:$0xff]  ;;  %v6893_v52 = vld [vmem:[%s12734_s11 + $0x38] sm:$0xff] }
0x1b99   :  { %v6613_v34 = vmul.f32 %v7727_v19, %v6605_v55  ;;  %8991 = vmatprep.mubr.msk.f32.mxu0 %vm667_vm2, %v6620_v37  ;;  %v6890_v19 = vld [vmem:[%s12734_s11 + $0x20] sm:$0xff]  ;;  %v9426_v55 = vpack.c.bf16 %v6893_v52, %v6892_v60  ;;  %v7037_v60 = vld [vmem:[%s12738_s5 + $0x58] sm:$0xff] }
0x1b9a   :  { %v6894_v37 = vld [vmem:[%s12734_s11 + $0x40] sm:$0xff] }
0x1b9b   :  { %v6621_v16 = vadd.f32 %v7728_v38, %v6613_v34  ;;  %v9422_v38 = vpack.c.bf16 %v6891_v54, %v6890_v19  ;;  %v6895_v34 = vld [vmem:[%s12734_s11 + $0x48] sm:$0xff]  ;;  %v7036_v54 = vld [vmem:[%s12738_s5 + $0x50] sm:$0xff] }
0x1b9c   :  { %v7035_v19 = vld [vmem:[%s12738_s5 + $0x48] sm:$0xff]  ;;  %v9466_v52 = vpack.c.bf16 %v7037_v60, %v7036_v54  ;;  %v7180_v54 = vld [vmem:[%s10310_s12 + $0x70] sm:$0xff] }
0x1b9d   :  { %8992 = vmatmul.mubr.msk.f32.vlgmr.msra.gmra.mrb[162].mxu0 %vm667_vm2, %v6621_v16  ;;  %9423 = vmatprep.subr.bf16.mxu1 %v9422_v38  ;;  %v6896_v16 = vld [vmem:[%s12734_s11 + $0x50] sm:$0xff] }
0x1b9e   :  { %9409 = vmatpush3.bf16.msra.mxu0 %v9406_v5  ;;  %9425 = vmatpush3.bf16.msra.mxu1 %v9422_v38  ;;  %v7736_v5 = vld [vmem:[%s12735_s4] ss:$0 sm:$0xff] }
0x1b9f   :  { %9411 = vmatprep.subr.bf16.mxu0 %v9410_v59  ;;  %9427 = vmatprep.subr.bf16.mxu1 %v9426_v55 }
0x1ba2   :  { %9413 = vmatpush3.bf16.msra.mxu0 %v9410_v59  ;;  %9429 = vmatpush3.bf16.msra.mxu1 %v9426_v55  ;;  %v7737_v59 = vld [vmem:[%s12736_s30] ss:$0 sm:$0xff] }
0x1ba3   :  { %v7038_v55 = vld [vmem:[%s12738_s5 + $0x60] sm:$0xff] }
0x1c70   :  { %v8993_v10 = vpop.f32.mrb[162].mxu0 }
0x1c71   :  { %v6698_v21 = vpop.f32.mrb[163].mxu0  ;;  %v6712_v4 = vsel %vm667_vm2, %v8993_v10, 0.0 }
0x1c72   :  { %6713 = vadd.xlane.f32.xlu1 %v6712_v4  ;;  %v6709_v11 = vsel %vm667_vm2, %v6698_v21, 0.0 }
0x1c73   :  { %6710 = vadd.xlane.f32.xlu0 %v6709_v11  ;;  %v6898_v11 = vld [vmem:[%s12734_s11 + $0x60] sm:$0xff] }
0x1cff   :  { %v6714_v42 = vpop.xlane.xlu1 %6713 }
0x1d00   :  { %v6716_v44 = vmul.f32 0.03125, %v6714_v42  ;;  %v6711_v35 = vpop.xlane.xlu0 %6710  ;;  %v6899_v42 = vld [vmem:[%s12734_s11 + $0x68] sm:$0xff] }
0x1d01   :  { %v6715_v36 = vmul.f32 0.03125, %v6711_v35  ;;  %v6900_v35 = vld [vmem:[%s12734_s11 + $0x70] sm:$0xff] }
0x1d02   :  { %v6718_v57 = vsub.f32 %v8993_v10, %v6716_v44  ;;  %v9430_v10 = vpack.c.bf16 %v6895_v34, %v6894_v37  ;;  %v9438_v44 = vpack.c.bf16 %v6899_v42, %v6898_v11  ;;  %v7039_v37 = vld [vmem:[%s12738_s5 + $0x68] sm:$0xff] }
0x1d03   :  { %v6717_v26 = vsub.f32 %v6698_v21, %v6715_v36  ;;  %v6897_v21 = vld [vmem:[%s12734_s11 + $0x58] sm:$0xff]  ;;  %v9470_v34 = vpack.c.bf16 %v7039_v37, %v7038_v55 }
0x1d04   :  { %v6720_v22 = vmul.f32 %v6718_v57, %v6718_v57  ;;  %v9434_v4 = vpack.c.bf16 %v6897_v21, %v6896_v16  ;;  %9431 = vmatprep.subr.bf16.mxu1 %v9430_v10  ;;  %v6901_v36 = vld [vmem:[%s12734_s11 + $0x78] sm:$0xff]  ;;  %v7040_v16 = vld [vmem:[%s12738_s5 + $0x70] sm:$0xff] }
0x1d05   :  { %v6719_v13 = vmul.f32 %v6717_v26, %v6717_v26  ;;  %9433 = vmatpush3.bf16.msra.mxu1 %v9430_v10  ;;  %v7041_v10 = vld [vmem:[%s12738_s5 + $0x78] sm:$0xff] }
0x1d06   :  { %v6724_v15 = vsel %vm667_vm2, %v6720_v22, 0.0  ;;  %9435 = vmatprep.subr.bf16.mxu1 %v9434_v4  ;;  %v9474_v21 = vpack.c.bf16 %v7041_v10, %v7040_v16 }
0x1d07   :  { %6725 = vadd.xlane.f32.xlu1 %v6724_v15  ;;  %v6721_v12 = vsel %vm667_vm2, %v6719_v13, 0.0 }
0x1d08   :  { %6722 = vadd.xlane.f32.xlu0 %v6721_v12 }
0x1d09   :  { %9437 = vmatpush3.bf16.msra.mxu1 %v9434_v4 }
0x1d0a   :  { %9439 = vmatprep.subr.bf16.mxu1 %v9438_v44 }
0x1d0d   :  { %9441 = vmatpush3.bf16.msra.mxu1 %v9438_v44 }
0x1d94   :  { %v6726_v18 = vpop.xlane.xlu1 %6725 }
0x1d95   :  { %v6728_v6 = vmul.f32 0.03125, %v6726_v18  ;;  %v6723_v43 = vpop.xlane.xlu0 %6722 }
0x1d96   :  { %v6727_v17 = vmul.f32 0.03125, %v6723_v43 }
0x1d97   :  { %v6730_v61 = vadd.f32 1e-05, %v6728_v6 }
0x1d98   :  { %v6729_v20 = vadd.f32 1e-05, %v6727_v17 }
0x1d99   :  { %9780 = vrsqrt.f32 %v6730_v61 }
0x1d9a   :  { %9782 = vrsqrt.f32 %v6729_v20 }
0x1da3   :  { %v9781_v58 = vpop.eup %9780 }
0x1da4   :  { %v9783_v32 = vpop.eup %9782  ;;  %v6734_v28 = vmul.f32 %v9781_v58, %v6718_v57  ;;  %v9442_v57 = vpack.c.bf16 %v6901_v36, %v6900_v35 }
0x1da5   :  { %v6733_v39 = vmul.f32 %v9783_v32, %v6717_v26 }
0x1da6   :  { %v6742_v7 = vmul.f32 %v7731_v31, %v6734_v28  ;;  %9443 = vmatprep.subr.bf16.mxu1 %v9442_v57 }
0x1da7   :  { %v6741_v46 = vmul.f32 %v7731_v31, %v6733_v39  ;;  %9445 = vmatpush3.bf16.msra.mxu1 %v9442_v57  ;;  %v7738_v31 = vld [vmem:[%s12737_s15] ss:$0 sm:$0xff] }
0x1da8   :  { %v12192_v30 = vadd.f32 %v7732_v41, %v6742_v7  ;;  %v7026_v7 = vld [vmem:[%s12738_s5] sm:$0xff] }
0x1da9   :  { %v12190_v3 = vadd.f32 %v7732_v41, %v6741_v46  ;;  %v7027_v46 = vld [vmem:[%s12738_s5 + $0x8] sm:$0xff] }
0x1dab   :  { %9002 = vmatprep.mubr.msk.f32.mxu0 %vm667_vm2, %v12190_v3 }
0x1dac   :  { %9003 = vmatmul.mubr.msk.f32.vlgmr.msra.gmra.mrb[164].mxu0 %vm667_vm2, %v12192_v30 }
0x1e7f   :  { %v9004_v51 = vpop.f32.mrb[164].mxu0 }
0x1e80   :  { %v6840_v53 = vadd.f32 %v9004_v51, %v7733_v9  ;;  %v6834_v56 = vpop.f32.mrb[165].mxu0  ;;  %v9446_v51 = vpack.c.bf16 %v7027_v46, %v7026_v7 }
0x1e81   :  { %v6835_v49 = vadd.f32 %v7733_v9, %v6834_v56  ;;  %v7028_v9 = vld [vmem:[%s12738_s5 + $0x10] sm:$0xff] }
0x1e82   :  { %6847 = vadd.xlane.f32.xlu1 %v6840_v53  ;;  %9447 = vmatprep.subr.bf16.mxu0 %v9446_v51 }
0x1e83   :  { %6845 = vadd.xlane.f32.xlu0 %v6835_v49  ;;  %9449 = vmatpush3.bf16.msra.mxu0 %v9446_v51 }
0x1f0f   :  { %v6848_v29 = vpop.xlane.xlu1 %6847 }
0x1f10   :  { %v6851_v24 = vmul.f32 0.0078125, %v6848_v29  ;;  %v6846_v48 = vpop.xlane.xlu0 %6845 }
0x1f11   :  { %v6850_v23 = vmul.f32 0.0078125, %v6846_v48  ;;  %v7031_v48 = vld [vmem:[%s12738_s5 + $0x28] sm:$0xff] }
0x1f12   :  { %v6853_v63 = vsub.f32 %v6840_v53, %v6851_v24  ;;  %v7029_v53 = vld [vmem:[%s12738_s5 + $0x18] sm:$0xff]  ;;  %v7030_v24 = vld [vmem:[%s12738_s5 + $0x20] sm:$0xff] }
0x1f13   :  { %v6852_v8 = vsub.f32 %v6835_v49, %v6850_v23  ;;  %v9450_v56 = vpack.c.bf16 %v7029_v53, %v7028_v9  ;;  %v9454_v23 = vpack.c.bf16 %v7031_v48, %v7030_v24  ;;  %v7175_v24 = vld [vmem:[%s10310_s12 + $0x48] sm:$0xff]  ;;  %v7176_v48 = vld [vmem:[%s10310_s12 + $0x50] sm:$0xff] }
0x1f14   :  { %v6855_v47 = vmul.f32 %v6853_v63, %v6853_v63 }
0x1f15   :  { %v6854_v50 = vmul.f32 %v6852_v8, %v6852_v8  ;;  %9451 = vmatprep.subr.bf16.mxu0 %v9450_v56 }
0x1f16   :  { %6858 = vadd.xlane.f32.xlu1 %v6855_v47  ;;  %9453 = vmatpush3.bf16.msra.mxu0 %v9450_v56 }
0x1f17   :  { %6856 = vadd.xlane.f32.xlu0 %v6854_v50  ;;  %9455 = vmatprep.subr.bf16.mxu0 %v9454_v23  ;;  %v7034_v50 = vld [vmem:[%s12738_s5 + $0x40] sm:$0xff] }
0x1f18   :  { %v9462_v38 = vpack.c.bf16 %v7035_v19, %v7034_v50  ;;  %v7179_v50 = vld [vmem:[%s10310_s12 + $0x68] sm:$0xff] }
0x1f1a   :  { %9457 = vmatpush3.bf16.msra.mxu0 %v9454_v23 }
0x1fa3   :  { %v6859_v26 = vpop.xlane.xlu1 %6858 }
0x1fa4   :  { %v6861_v22 = vmul.f32 0.0078125, %v6859_v26  ;;  %v6857_v13 = vpop.xlane.xlu0 %6856  ;;  %v7739_v26 = vld [vmem:[%s12739_s9] ss:$0 sm:$0xff] }
0x1fa5   :  { %v6860_v15 = vmul.f32 0.0078125, %v6857_v13 }
0x1fa6   :  { %v6863_v12 = vadd.f32 1e-05, %v6861_v22 }
0x1fa7   :  { %v6862_v0 = vadd.f32 1e-05, %v6860_v15  ;;  %v7740_v15 = vld [vmem:[%s12740_s21] ss:$0 sm:$0xff] }
0x1fa8   :  { %9784 = vrsqrt.f32 %v6863_v12 }
0x1fa9   :  { %9786 = vrsqrt.f32 %v6862_v0 }
0x1fb2   :  { %v9785_v27 = vpop.eup %9784 }
0x1fb3   :  { %v9787_v1 = vpop.eup %9786  ;;  %v6867_v2 = vmul.f32 %v9785_v27, %v6853_v63  ;;  %v7032_v63 = vld [vmem:[%s12738_s5 + $0x30] sm:$0xff] }
0x1fb4   :  { %v6866_v18 = vmul.f32 %v9787_v1, %v6852_v8  ;;  %v7033_v8 = vld [vmem:[%s12738_s5 + $0x38] sm:$0xff] }
0x1fb5   :  { %v6875_v6 = vmul.f32 %v7736_v5, %v6867_v2  ;;  %v9458_v47 = vpack.c.bf16 %v7033_v8, %v7032_v63  ;;  %v7177_v63 = vld [vmem:[%s10310_s12 + $0x58] sm:$0xff] }
0x1fb6   :  { %v6874_v43 = vmul.f32 %v7736_v5, %v6866_v18  ;;  %v7741_v18 = vld [vmem:[%s12741_s25] ss:$0 sm:$0xff]  ;;  %v9498_v8 = vpack.c.bf16 %v7177_v63, %v7176_v48 }
0x1fb7   :  { %v6883_v17 = vadd.f32 %v7737_v59, %v6875_v6  ;;  %9459 = vmatprep.subr.bf16.mxu0 %v9458_v47 }
0x1fb8   :  { %v6882_v61 = vadd.f32 %v7737_v59, %v6874_v43  ;;  %9461 = vmatpush3.bf16.msra.mxu0 %v9458_v47  ;;  %v7178_v47 = vld [vmem:[%s10310_s12 + $0x60] sm:$0xff] }
0x1fb9   :  { %v6885_v58 = vmax.f32 %v6883_v17, 0.0  ;;  %9463 = vmatprep.subr.bf16.mxu0 %v9462_v38  ;;  %v9502_v19 = vpack.c.bf16 %v7179_v50, %v7178_v47 }
0x1fba   :  { %v6884_v20 = vmax.f32 %v6882_v61, 0.0 }
0x1fbc   :  { %9037 = vmatprep.mubr.f32.mxu1 %v6884_v20  ;;  %9465 = vmatpush3.bf16.msra.mxu0 %v9462_v38  ;;  %v7166_v20 = vld [vmem:[%s10310_s12] sm:$0xff]  ;;  %v7181_v38 = vld [vmem:[%s10310_s12 + $0x78] sm:$0xff] }
0x1fbd   :  { %9038 = vmatmul.mubr.f32.vlgmr.msra.gmra.mrb[162].mxu1 %v6885_v58  ;;  %9467 = vmatprep.subr.bf16.mxu0 %v9466_v52  ;;  %v7167_v58 = vld [vmem:[%s10310_s12 + $0x8] sm:$0xff]  ;;  %v9506_v60 = vpack.c.bf16 %v7181_v38, %v7180_v54 }
0x1fc0   :  { %9469 = vmatpush3.bf16.msra.mxu0 %v9466_v52 }
0x1fc1   :  { %9471 = vmatprep.subr.bf16.mxu0 %v9470_v34 }
0x1fc4   :  { %9473 = vmatpush3.bf16.msra.mxu0 %v9470_v34 }
0x1fc5   :  { %9475 = vmatprep.subr.bf16.mxu0 %v9474_v21 }
0x1fc8   :  { %9477 = vmatpush3.bf16.msra.mxu0 %v9474_v21 }
0x2090   :  { %v9039_v32 = vpop.f32.mrb[162].mxu1 }
0x2091   :  { %v6981_v28 = vadd.f32 %v9039_v32, %v7738_v31  ;;  %v6975_v39 = vpop.f32.mrb[163].mxu1  ;;  %v9478_v32 = vpack.c.bf16 %v7167_v58, %v7166_v20 }
0x2092   :  { %v6976_v41 = vadd.f32 %v7738_v31, %v6975_v39  ;;  %v7168_v31 = vld [vmem:[%s10310_s12 + $0x10] sm:$0xff] }
0x2093   :  { %6988 = vadd.xlane.f32.xlu1 %v6981_v28  ;;  %9479 = vmatprep.subr.bf16.mxu1 %v9478_v32 }
0x2094   :  { %6986 = vadd.xlane.f32.xlu0 %v6976_v41  ;;  %9481 = vmatpush3.bf16.msra.mxu1 %v9478_v32 }
0x2120   :  { %v6989_v49 = vpop.xlane.xlu1 %6988 }
0x2121   :  { %v6991_v40 = vmul.f32 0.0078125, %v6989_v49  ;;  %v6987_v25 = vpop.xlane.xlu0 %6986 }
0x2122   :  { %v6990_v62 = vmul.f32 0.0078125, %v6987_v25  ;;  %v7171_v25 = vld [vmem:[%s10310_s12 + $0x28] sm:$0xff] }
0x2123   :  { %v6993_v33 = vsub.f32 %v6981_v28, %v6991_v40  ;;  %v7169_v28 = vld [vmem:[%s10310_s12 + $0x18] sm:$0xff]  ;;  %v7170_v40 = vld [vmem:[%s10310_s12 + $0x20] sm:$0xff] }
0x2124   :  { %v6992_v45 = vsub.f32 %v6976_v41, %v6990_v62  ;;  %v9482_v39 = vpack.c.bf16 %v7169_v28, %v7168_v31  ;;  %v9486_v62 = vpack.c.bf16 %v7171_v25, %v7170_v40 }
0x2125   :  { %v6995_v14 = vmul.f32 %v6993_v33, %v6993_v33 }
0x2126   :  { %v6994_v29 = vmul.f32 %v6992_v45, %v6992_v45  ;;  %9483 = vmatprep.subr.bf16.mxu1 %v9482_v39 }
0x2127   :  { %6998 = vadd.xlane.f32.xlu1 %v6995_v14  ;;  %9485 = vmatpush3.bf16.msra.mxu1 %v9482_v39 }
0x2128   :  { %6996 = vadd.xlane.f32.xlu0 %v6994_v29  ;;  %9487 = vmatprep.subr.bf16.mxu1 %v9486_v62  ;;  %v7174_v29 = vld [vmem:[%s10310_s12 + $0x40] sm:$0xff] }
0x2129   :  { %v9494_v23 = vpack.c.bf16 %v7175_v24, %v7174_v29 }
0x212b   :  { %9489 = vmatpush3.bf16.msra.mxu1 %v9486_v62 }
0x21b4   :  { %v6999_v4 = vpop.xlane.xlu1 %6998 }
0x21b5   :  { %v7001_v11 = vmul.f32 0.0078125, %v6999_v4  ;;  %v6997_v42 = vpop.xlane.xlu0 %6996  ;;  %v7742_v4 = vld [vmem:[%s12742_s8] ss:$0 sm:$0xff] }
0x21b6   :  { %v7000_v44 = vmul.f32 0.0078125, %v6997_v42 }
0x21b7   :  { %v7003_v35 = vadd.f32 1e-05, %v7001_v11 }
0x21b8   :  { %v7002_v36 = vadd.f32 1e-05, %v7000_v44  ;;  %v7743_v44 = vld [vmem:[%s10305_s24] ss:$0 sm:$0xff] }
0x21b9   :  { %9788 = vrsqrt.f32 %v7003_v35 }
0x21ba   :  { %9790 = vrsqrt.f32 %v7002_v36 }
0x21c3   :  { %v9789_v57 = vpop.eup %9788 }
0x21c4   :  { %v9791_v22 = vpop.eup %9790  ;;  %v7007_v13 = vmul.f32 %v9789_v57, %v6993_v33  ;;  %v7172_v33 = vld [vmem:[%s10310_s12 + $0x30] sm:$0xff] }
0x21c5   :  { %v7006_v12 = vmul.f32 %v9791_v22, %v6992_v45  ;;  %v7173_v45 = vld [vmem:[%s10310_s12 + $0x38] sm:$0xff]  ;;  %s10091_s12 = smov [#allocation20]  }
0x21c6   :  { %v7015_v0 = vmul.f32 %v7739_v26, %v7007_v13  ;;  %v9490_v14 = vpack.c.bf16 %v7173_v45, %v7172_v33  ;;  %s7273_s14 = sshll.u32 %s10091_s12, 4  ;;  %s7274_s14 = int_to_ptr.vmem [resolvable:$true] %s7273_s14 }
0x21c7   :  { %v7014_v27 = vmul.f32 %v7739_v26, %v7006_v12  ;;  %v7744_v12 = vld [vmem:[%s10315_s19] ss:$0 sm:$0xff]  ;;  %s9994_s24 = scalar_lea.vmem %s7274_s14, 256  ;;  %p9999_p3 = scmp.lt.s32.totalorder %s7274_s14, %s7274_s14 }
0x21c8   :  { %v7023_v5 = vadd.f32 %v7740_v15, %v7015_v0  ;;  %9491 = vmatprep.subr.bf16.mxu1 %v9490_v14  ;;  %p9995_p2 = scmp.ne.s32.totalorder %s7274_s14, %s9994_s24  ;;  %p10000_p4 = scmp.lt.s32.totalorder %s9994_s24, %s9994_s24 }
0x21c9   :  { %v7022_v1 = vadd.f32 %v7740_v15, %v7014_v27  ;;  %9493 = vmatpush3.bf16.msra.mxu1 %v9490_v14 }
0x21ca   :  { %v7025_v59 = vmax.f32 %v7023_v5, 0.0  ;;  %9495 = vmatprep.subr.bf16.mxu1 %v9494_v23  ;;  %p10001_p5 = por %p10000_p4, %p9999_p3 }
0x21cb   :  { %v7024_v2 = vmax.f32 %v7022_v1, 0.0 }
0x21cc   :  { %p10002_p6 = pnand %p10001_p5, %p9995_p2 }
0x21cd   :  { %9072 = vmatprep.mubr.f32.mxu0 %v7024_v2  ;;  %9497 = vmatpush3.bf16.msra.mxu1 %v9494_v23 }
0x21ce   :  { %9073 = vmatmul.mubr.f32.vlgmr.msra.gmra.mrb[166].mxu0 %v7025_v59  ;;  %9499 = vmatprep.subr.bf16.mxu1 %v9498_v8 }
0x21d1   :  { %9501 = vmatpush3.bf16.msra.mxu1 %v9498_v8 }
0x21d2   :  { %9503 = vmatprep.subr.bf16.mxu1 %v9502_v19 }
0x21d5   :  { %9505 = vmatpush3.bf16.msra.mxu1 %v9502_v19 }
0x21d6   :  { %9507 = vmatprep.subr.bf16.mxu1 %v9506_v60 }
0x21d9   :  { %9509 = vmatpush3.bf16.msra.mxu1 %v9506_v60 }
0x22a1   :  { %v9074_v6 = vpop.f32.mrb[166].mxu0 }
0x22a2   :  { %v7121_v43 = vadd.f32 %v9074_v6, %v7741_v18  ;;  %v7115_v17 = vpop.f32.mrb[167].mxu0 }
0x22a3   :  { %v7116_v61 = vadd.f32 %v7741_v18, %v7115_v17 }
0x22a4   :  { %7128 = vadd.xlane.f32.xlu1 %v7121_v43 }
0x22a5   :  { %7126 = vadd.xlane.f32.xlu0 %v7116_v61 }
0x2331   :  { %v7129_v41 = vpop.xlane.xlu1 %7128 }
0x2332   :  { %v7131_v7 = vmul.f32 0.0078125, %v7129_v41  ;;  %v7127_v46 = vpop.xlane.xlu0 %7126 }
0x2333   :  { %v7130_v9 = vmul.f32 0.0078125, %v7127_v46 }
0x2334   :  { %v7133_v51 = vsub.f32 %v7121_v43, %v7131_v7 }
0x2335   :  { %v7132_v53 = vsub.f32 %v7116_v61, %v7130_v9 }
0x2336   :  { %v7135_v56 = vmul.f32 %v7133_v51, %v7133_v51 }
0x2337   :  { %v7134_v49 = vmul.f32 %v7132_v53, %v7132_v53 }
0x2338   :  { %7138 = vadd.xlane.f32.xlu1 %v7135_v56 }
0x2339   :  { %7136 = vadd.xlane.f32.xlu0 %v7134_v49 }
0x23c5   :  { %v7139_v52 = vpop.xlane.xlu1 %7138 }
0x23c6   :  { %v7141_v55 = vmul.f32 0.0078125, %v7139_v52  ;;  %v7137_v37 = vpop.xlane.xlu0 %7136 }
0x23c7   :  { %v7140_v34 = vmul.f32 0.0078125, %v7137_v37 }
0x23c8   :  { %v7143_v16 = vadd.f32 1e-05, %v7141_v55 }
0x23c9   :  { %v7142_v10 = vadd.f32 1e-05, %v7140_v34 }
0x23ca   :  { %9792 = vrsqrt.f32 %v7143_v16 }
0x23cb   :  { %9794 = vrsqrt.f32 %v7142_v10 }
0x23d4   :  { %v9793_v21 = vpop.eup %9792 }
0x23d5   :  { %v9795_v11 = vpop.eup %9794  ;;  %v7147_v42 = vmul.f32 %v9793_v21, %v7133_v51 }
0x23d6   :  { %v7146_v35 = vmul.f32 %v9795_v11, %v7132_v53 }
0x23d7   :  { %v7155_v36 = vmul.f32 %v7742_v4, %v7147_v42 }
0x23d8   :  { %v7154_v57 = vmul.f32 %v7742_v4, %v7146_v35 }
0x23d9   :  { %v7163_v26 = vadd.f32 %v7743_v44, %v7155_v36 }
0x23da   :  { %v7162_v22 = vadd.f32 %v7743_v44, %v7154_v57 }
0x23db   :  { %v7165_v15 = vmax.f32 %v7163_v26, 0.0 }
0x23dc   :  { %v7164_v13 = vmax.f32 %v7162_v22, 0.0 }
0x23de   :  { %9107 = vmatprep.mubr.f32.mxu1 %v7164_v13 }
0x23df   :  { %9108 = vmatmul.mubr.f32.vlgmr.msra.gmra.mrb[164].mxu1 %v7165_v15 }
0x24b2   :  { %v9109_v0 = vpop.f32.mrb[164].mxu1 }
0x24b3   :  { %v7261_v27 = vadd.f32 %v9109_v0, %v7744_v12  ;;  %v7255_v5 = vpop.f32.mrb[165].mxu1 }
0x24b4   :  { %v7256_v1 = vadd.f32 %v7744_v12, %v7255_v5 }
0x24b5   :  { %v7265_v2 = vadd.f32 %v7261_v27, %v12192_v30 }
0x24b6   :  { %v7264_v59 = vadd.f32 %v7256_v1, %v12190_v3 }
0x24b7   :  { %7267 = vst.msk [vmem:[#allocation20 + $0x8] sm:$0xff] %vm667_vm2, %v7265_v2 }
0x24b8   :  { %7266 = vst.msk [vmem:[#allocation20] sm:$0xff] %vm667_vm2, %v7264_v59 }
0x24b9   :  { %10005 = shalt.err (!%p10002_p6)
}
0x24ba   :  { %s10006_s19 = scalar_lea.hbm %s10320_s27, 256 }
0x24bb   :  { %p10007_p7 = scmp.ne.s32.totalorder %s10320_s27, %s10006_s19  ;;  %p10010_p8 = scmp.lt.u32.totalorder %s10006_s19, %s10320_s27 }
0x24bd   :  { %p10012_p9 = pnand %p10010_p8, %p10007_p7 }
0x24bf   :  { %10015 = shalt.err (!%p10012_p9)
}
0x24c0   :  { %7279 = dma.vmem_to_hbm [thread:$0]  %s7274_s14, 256, %s10320_s27, [#allocation7], %s10083_s16, %s10083_s16, %s10084_s6  }
0x24c1   :  { %10026 = dma.done.wait [#allocation7], 256  }
0x24c2   :  { %10027 = vsyncadd [#allocation7], 4294967040 }
0x24c3   :  { %7283 = vsyncpa [#allocation6], 1 }
0x24c4   :  { %7284 = vsyncpa [#allocation9], 1 }
0x24c5   :  { %7285 = vsyncpa [#allocation12], 1 }
0x24c6   :  { %7286 = vsyncpa [#allocation15], 1 }
0x24c7   :  { %7287 = vsyncpa [#allocation18], 1 }
0x24c8   :  { %7288 = vsyncpa [#allocation7], 1 }

</bundles_post_ra>
